<compile_context>
chip_gen: v6e
topology: v6e:2x2x1
jax: 0.10.0
libtpu: 0.0.40
codegen_flags: <defaults>
</compile_context>

<pallas_src>
import functools

import jax
import jax.numpy as jnp
from jax.experimental import pallas as pl
from jax.experimental.pallas import tpu as pltpu

PATCH = 4            # stand-in backbone patch size / stride
FEAT = 2048          # resnet101 feature width
GATE_HID = 100
GATE_HID_P = 128     # padded gate hidden (lane-dense)
N_EXPERT = 3
EXP_HID = 1000
EXP_HID_P = 1024     # padded expert hidden (lane-dense)
N_CLASS = 61
N_CLASS_P = 128      # padded class dim (unmasked vector stores)


def _round_up(x, m):
    return ((x + m - 1) // m) * m


# ----------------------------------------------------------------------------
# Kernel 1: backbone stand-in (patch-conv matmul + bias + ReLU) with the
# spatial mean-pool FUSED in.  Grid = (batch, patch_tiles); the pooled (1, FEAT)
# feature is accumulated in VMEM scratch and written once per batch element.
# ----------------------------------------------------------------------------
def _backbone_pool_kernel(p_ref, w_ref, b_ref, feat_ref, acc_ref, *, n_patches, tp):
    t = pl.program_id(1)

    @pl.when(t == 0)
    def _():
        acc_ref[...] = jnp.zeros_like(acc_ref)

    # p_ref: (1, tp, C*P*P) -> (tp, C*P*P); w: (C*P*P, FEAT); b: (1, FEAT)
    y = jnp.dot(p_ref[0], w_ref[...], preferred_element_type=jnp.float32)
    y = jnp.maximum(y + b_ref[...], 0.0)                       # (tp, FEAT)

    # mask rows beyond the true patch count (input was zero-padded to tp mult.)
    row = t * tp + jax.lax.broadcasted_iota(jnp.int32, (tp, 1), 0)
    y = jnp.where(row < n_patches, y, 0.0)

    acc_ref[...] += jnp.sum(y, axis=0, keepdims=True)          # (1, FEAT)

    @pl.when(t == pl.num_programs(1) - 1)
    def _():
        feat_ref[0] = acc_ref[...] * (1.0 / n_patches)         # mean pool


def backbone_pool(x, w_pe, b_pe):
    """x: (B, C, H, W) NCHW -> pooled feature (B, FEAT)."""
    B, C, H, W = x.shape
    nph, npw = H // PATCH, W // PATCH
    n_patches = nph * npw
    kin = C * PATCH * PATCH

    # im2col-style patch extraction (glue, plain JAX)
    p = x.reshape(B, C, nph, PATCH, npw, PATCH)
    p = p.transpose(0, 2, 4, 1, 3, 5).reshape(B, n_patches, kin)

    tp = min(256, _round_up(n_patches, 8))         # patch tile (sublane mult. of 8)
    n_pad = _round_up(n_patches, tp)
    if n_pad != n_patches:
        p = jnp.pad(p, ((0, 0), (0, n_pad - n_patches), (0, 0)))

    kernel = functools.partial(_backbone_pool_kernel, n_patches=n_patches, tp=tp)
    feat = pl.pallas_call(
        kernel,
        out_shape=jax.ShapeDtypeStruct((B, 1, FEAT), jnp.float32),
        grid_spec=pltpu.PrefetchScalarGridSpec(
            num_scalar_prefetch=0,
            grid=(B, n_pad // tp),
            in_specs=[
                pl.BlockSpec((1, tp, kin), lambda b, t: (b, t, 0)),
                pl.BlockSpec(w_pe.shape, lambda b, t: (0, 0)),
                pl.BlockSpec(b_pe.shape, lambda b, t: (0, 0)),
            ],
            out_specs=pl.BlockSpec((1, 1, FEAT), lambda b, t: (b, 0, 0)),
            scratch_shapes=[pltpu.VMEM((1, FEAT), jnp.float32)],
        ),
        compiler_params=pltpu.CompilerParams(
            dimension_semantics=("parallel", "arbitrary"),
            vmem_limit_bytes=32 * 1024 * 1024,
        ),
    )(p, w_pe, b_pe)
    return feat.reshape(B, FEAT)


# ----------------------------------------------------------------------------
# Kernel 2: gate MLP (computed once) + 3 expert MLPs (bf16 weights streamed per
# grid step) + gated accumulation into a lane-dense (B, 128) output.
# ----------------------------------------------------------------------------
def _gate_head_kernel(feat_ref, wg1_ref, bg1_ref, wg2_ref, bg2_ref,
                      w1_ref, b1_ref, w2_ref, b2_ref, w3_ref, b3_ref,
                      out_ref, probs_ref):
    k = pl.program_id(0)
    feat = feat_ref[...]                                          # (B, FEAT) f32

    @pl.when(k == 0)
    def _():
        # gate: Linear -> ReLU -> Linear -> Softmax, computed once and cached.
        g = jnp.maximum(
            jnp.dot(feat, wg1_ref[...], preferred_element_type=jnp.float32)
            + bg1_ref[...], 0.0)
        logits = (jnp.dot(g, wg2_ref[...], preferred_element_type=jnp.float32)
                  + bg2_ref[...])                                 # (B, 3)
        probs_ref[...] = jax.nn.softmax(logits, axis=-1)
        out_ref[...] = jnp.zeros_like(out_ref)

    # gate weight for this expert without a dynamic lane slice
    onehot = (jax.lax.broadcasted_iota(jnp.int32, (1, N_EXPERT), 1) == k
              ).astype(jnp.float32)
    gate_k = jnp.sum(probs_ref[...] * onehot, axis=-1, keepdims=True)   # (B, 1)

    # expert k: Linear->ReLU->(Dropout=id)->Linear->ReLU->(Dropout=id)->Linear
    # bf16 weights / bf16 activations on the MXU, f32 accumulation.
    h1 = jnp.maximum(
        jnp.dot(feat.astype(jnp.bfloat16), w1_ref[0],
                preferred_element_type=jnp.float32) + b1_ref[0], 0.0)
    h2 = jnp.maximum(
        jnp.dot(h1.astype(jnp.bfloat16), w2_ref[0],
                preferred_element_type=jnp.float32) + b2_ref[0], 0.0)
    fck = (jnp.dot(h2.astype(jnp.bfloat16), w3_ref[0],
                   preferred_element_type=jnp.float32) + b3_ref[0])     # (B, 128)

    out_ref[...] += gate_k * fck


def gate_head(feat, head_params):
    wg1, bg1, wg2, bg2, w1, b1, w2, b2, w3, b3 = head_params
    B = feat.shape[0]

    def full(a):
        return pl.BlockSpec(a.shape, lambda k: (0,) * a.ndim)

    def per_expert(a):
        return pl.BlockSpec((1,) + a.shape[1:],
                            lambda k: (k,) + (0,) * (a.ndim - 1))

    # VMEM budget (double-buffered per-expert bf16 weights dominate):
    #   2*(4 MB + 2 MB + 0.25 MB) + ~1 MB gate/feat/out  ~= 14 MB  < 40 MiB limit.
    return pl.pallas_call(
        _gate_head_kernel,
        out_shape=jax.ShapeDtypeStruct((B, N_CLASS_P), jnp.float32),
        grid_spec=pltpu.PrefetchScalarGridSpec(
            num_scalar_prefetch=0,
            grid=(N_EXPERT,),
            in_specs=[
                full(feat),
                full(wg1), full(bg1), full(wg2), full(bg2),
                per_expert(w1), per_expert(b1),
                per_expert(w2), per_expert(b2),
                per_expert(w3), per_expert(b3),
            ],
            out_specs=pl.BlockSpec((B, N_CLASS_P), lambda k: (0, 0)),
            scratch_shapes=[pltpu.VMEM((B, N_EXPERT), jnp.float32)],
        ),
        compiler_params=pltpu.CompilerParams(
            dimension_semantics=("arbitrary",),   # accumulator output across experts
            vmem_limit_bytes=40 * 1024 * 1024,    # valid on v7x (64 MiB physical)
        ),
    )(feat, wg1, bg1, wg2, bg2, w1, b1, w2, b2, w3, b3)


# ----------------------------------------------------------------------------
# Parameter init (deterministic, torch-Linear style U(-1/sqrt(fan_in), +)),
# zero-padded to lane-dense shapes; expert weights stored in bf16.
# ----------------------------------------------------------------------------
def init_params(key):
    ks = jax.random.split(key, 12)

    def lin(k, fan_in, shape):
        bound = 1.0 / float(fan_in) ** 0.5
        return jax.random.uniform(k, shape, jnp.float32, -bound, bound)

    def pad_to(a, shape):
        return jnp.pad(a, [(0, t - s) for s, t in zip(a.shape, shape)])

    kin = 3 * PATCH * PATCH
    w_pe = lin(ks[0], kin, (kin, FEAT))
    b_pe = lin(ks[1], kin, (1, FEAT))

    # gate (hidden 100 -> 128; zero padding keeps the math exact through ReLU)
    wg1 = pad_to(lin(ks[2], FEAT, (FEAT, GATE_HID)), (FEAT, GATE_HID_P))
    bg1 = pad_to(lin(ks[3], FEAT, (1, GATE_HID)), (1, GATE_HID_P))
    wg2 = pad_to(lin(ks[4], GATE_HID, (GATE_HID, N_EXPERT)), (GATE_HID_P, N_EXPERT))
    bg2 = lin(ks[5], GATE_HID, (1, N_EXPERT))

    # experts: bf16 weights, f32 biases, padded 1000 -> 1024 and 61 -> 128
    w1 = pad_to(lin(ks[6], FEAT, (N_EXPERT, FEAT, EXP_HID)),
                (N_EXPERT, FEAT, EXP_HID_P)).astype(jnp.bfloat16)
    b1 = pad_to(lin(ks[7], FEAT, (N_EXPERT, 1, EXP_HID)), (N_EXPERT, 1, EXP_HID_P))
    w2 = pad_to(lin(ks[8], EXP_HID, (N_EXPERT, EXP_HID, EXP_HID)),
                (N_EXPERT, EXP_HID_P, EXP_HID_P)).astype(jnp.bfloat16)
    b2 = pad_to(lin(ks[9], EXP_HID, (N_EXPERT, 1, EXP_HID)), (N_EXPERT, 1, EXP_HID_P))
    w3 = pad_to(lin(ks[10], EXP_HID, (N_EXPERT, EXP_HID, N_CLASS)),
                (N_EXPERT, EXP_HID_P, N_CLASS_P)).astype(jnp.bfloat16)
    b3 = pad_to(lin(ks[11], EXP_HID, (N_EXPERT, 1, N_CLASS)), (N_EXPERT, 1, N_CLASS_P))
    return (w_pe, b_pe, wg1, bg1, wg2, bg2, w1, b1, w2, b2, w3, b3)


@jax.jit
def forward(x, params):
    w_pe, b_pe = params[0], params[1]
    head = params[2:]
    feat = backbone_pool(x, w_pe, b_pe)          # (B, 2048) pooled feature
    out = gate_head(feat, head)                  # (B, 128) padded, gated sum
    return out[:, :N_CLASS]                      # (B, 61) -- eval-mode gate_output


# Pure-JAX reference (mirrors the kernel's bf16 matmul path; sanity check only)
def reference(x, params):
    w_pe, b_pe, wg1, bg1, wg2, bg2, w1, b1, w2, b2, w3, b3 = params
    B, C, H, W = x.shape
    nph, npw = H // PATCH, W // PATCH
    p = x.reshape(B, C, nph, PATCH, npw, PATCH)
    p = p.transpose(0, 2, 4, 1, 3, 5).reshape(B, nph * npw, C * PATCH * PATCH)
    fmap = jnp.maximum(jnp.einsum("bpk,kf->bpf", p, w_pe) + b_pe, 0.0)
    feat = fmap.mean(axis=1)
    g = jnp.maximum(feat @ wg1 + bg1, 0.0)
    probs = jax.nn.softmax(g @ wg2 + bg2, axis=-1)
    feat_bf = feat.astype(jnp.bfloat16)
    outs = []
    for e in range(N_EXPERT):
        h1 = jnp.maximum(jnp.dot(feat_bf, w1[e],
                                 preferred_element_type=jnp.float32) + b1[e], 0.0)
        h2 = jnp.maximum(jnp.dot(h1.astype(jnp.bfloat16), w2[e],
                                 preferred_element_type=jnp.float32) + b2[e], 0.0)
        outs.append(jnp.dot(h2.astype(jnp.bfloat16), w3[e],
                            preferred_element_type=jnp.float32) + b3[e])
    fc = jnp.stack(outs, axis=-1)                          # (B, 128, 3)
    return (fc * probs[:, None, :]).sum(-1)[:, :N_CLASS]   # (B, 61)


if __name__ == "__main__":
    key = jax.random.PRNGKey(0)
    kx, kp = jax.random.split(key)
    x = jax.random.normal(kx, (2, 3, 16, 16), jnp.float32)   # NCHW, small shapes
    params = init_params(kp)

    out = forward(x, params)
    out = jax.block_until_ready(out)

    assert out.shape == (2, N_CLASS), out.shape
    ref = reference(x, params)
    max_err = float(jnp.max(jnp.abs(out - ref)))
    assert max_err < 1e-2, f"max abs error {max_err}"

    print("KERNEL_OK")
</pallas_src>

<mosaic_0001>
module attributes {stable_mosaic.version = 11 : i64} {
  func.func @_backbone_pool_kernel(%arg0: i32, %arg1: i32, %arg2: memref<1x16x48xf32, #tpu.memory_space<vmem>>, %arg3: memref<48x2048xf32, #tpu.memory_space<vmem>>, %arg4: memref<1x2048xf32, #tpu.memory_space<vmem>>, %arg5: memref<1x1x2048xf32, #tpu.memory_space<vmem>>, %arg6: memref<1x2048xf32, #tpu.memory_space<vmem>>) attributes {dimension_semantics = [#tpu.dimension_semantics<parallel>, #tpu.dimension_semantics<arbitrary>], iteration_bounds = array<i64: 2, 1>, scalar_prefetch = 0 : i64, scratch_operands = 1 : i64, tpu.core_type = #tpu.core_type<tc>, window_params = [{transform_indices = @transform_0, window_bounds = array<i64: 1, 16, 48>}, {pipeline_mode = #tpu.pipeline_mode<synchronous>, transform_indices = @transform_1, window_bounds = array<i64: 48, 2048>}, {pipeline_mode = #tpu.pipeline_mode<synchronous>, transform_indices = @transform_2, window_bounds = array<i64: 1, 2048>}, {transform_indices = @transform_3, window_bounds = array<i64: 1, 1, 2048>}]} {
    %c0_i32 = arith.constant 0 : i32
    %0 = arith.cmpi eq, %arg1, %c0_i32 : i32
    %1 = arith.extui %0 : i1 to i32
    %c0_i32_0 = arith.constant 0 : i32
    %2 = arith.cmpi ne, %1, %c0_i32_0 : i32
    scf.if %2 {
      %cst_17 = arith.constant 0.000000e+00 : f32
      %30 = vector.broadcast %cst_17 : f32 to vector<1x2048xf32>
      %c0_18 = arith.constant 0 : index
      %c0_19 = arith.constant 0 : index
      %31 = vector.load %arg6[%c0_18, %c0_19] : memref<1x2048xf32, #tpu.memory_space<vmem>>, vector<1x2048xf32>
      tpu.vector_store %arg6[%c0_18, %c0_19], %30 {strides = array<i32>} : memref<1x2048xf32, #tpu.memory_space<vmem>>, vector<1x2048xf32>,
    } else {
    }
    %c0 = arith.constant 0 : index
    %c0_1 = arith.constant 0 : index
    %c0_2 = arith.constant 0 : index
    %3 = vector.load %arg2[%c0, %c0_1, %c0_2] : memref<1x16x48xf32, #tpu.memory_space<vmem>>, vector<1x16x48xf32>
    %4 = vector.shape_cast %3 : vector<1x16x48xf32> to vector<16x48xf32>
    %c0_3 = arith.constant 0 : index
    %c0_4 = arith.constant 0 : index
    %5 = vector.load %arg3[%c0_3, %c0_4] : memref<48x2048xf32, #tpu.memory_space<vmem>>, vector<48x2048xf32>
    %cst = arith.constant dense<0.000000e+00> : vector<16x2048xf32>
    %6 = tpu.matmul %4, %5, %cst {dimension_numbers = #tpu.dot_dimension_numbers<[1], [0], [0], [1], [0, 0, 1, 1], [], []>} : vector<16x48xf32>, vector<48x2048xf32>, vector<16x2048xf32> -> vector<16x2048xf32>
    %c0_5 = arith.constant 0 : index
    %c0_6 = arith.constant 0 : index
    %7 = vector.load %arg4[%c0_5, %c0_6] : memref<1x2048xf32, #tpu.memory_space<vmem>>, vector<1x2048xf32>
    %8 = vector.broadcast %7 : vector<1x2048xf32> to vector<16x2048xf32>
    %9 = arith.addf %6, %8 : vector<16x2048xf32>
    %cst_7 = arith.constant 0.000000e+00 : f32
    %10 = vector.broadcast %cst_7 : f32 to vector<16x2048xf32>
    %11 = arith.maximumf %9, %10 : vector<16x2048xf32>
    %c16_i32 = arith.constant 16 : i32
    %12 = arith.muli %arg1, %c16_i32 : i32
    %13 = tpu.iota {dimensions = array<i32: 0>} : vector<16x1xi32>
    %14 = vector.broadcast %12 : i32 to vector<16x1xi32>
    %15 = arith.addi %14, %13 : vector<16x1xi32>
    %c16_i32_8 = arith.constant 16 : i32
    %16 = vector.broadcast %c16_i32_8 : i32 to vector<16x1xi32>
    %17 = arith.cmpi slt, %15, %16 : vector<16x1xi32>
    %cst_9 = arith.constant 0.000000e+00 : f32
    %18 = vector.shape_cast %17 : vector<16x1xi1> to vector<16x1xi1>
    %19 = vector.broadcast %18 : vector<16x1xi1> to vector<16x2048xi1>
    %20 = vector.broadcast %cst_9 : f32 to vector<16x2048xf32>
    %21 = arith.select %19, %11, %20 : vector<16x2048xi1>, vector<16x2048xf32>
    %c0_10 = arith.constant 0 : index
    %c0_11 = arith.constant 0 : index
    %22 = vector.load %arg6[%c0_10, %c0_11] : memref<1x2048xf32, #tpu.memory_space<vmem>>, vector<1x2048xf32>
    %cst_12 = arith.constant dense<0.000000e+00> : vector<2048xf32>
    %23 = vector.multi_reduction <add>, %21, %cst_12 [0] : vector<16x2048xf32> to vector<2048xf32>
    %24 = vector.shape_cast %23 : vector<2048xf32> to vector<1x2048xf32>
    %25 = arith.addf %22, %24 : vector<1x2048xf32>
    %c0_13 = arith.constant 0 : index
    %c0_14 = arith.constant 0 : index
    %26 = vector.load %arg6[%c0_13, %c0_14] : memref<1x2048xf32, #tpu.memory_space<vmem>>, vector<1x2048xf32>
    tpu.vector_store %arg6[%c0_13, %c0_14], %25 {strides = array<i32>} : memref<1x2048xf32, #tpu.memory_space<vmem>>, vector<1x2048xf32>,
    %c0_i32_15 = arith.constant 0 : i32
    %27 = arith.cmpi eq, %arg1, %c0_i32_15 : i32
    %28 = arith.extui %27 : i1 to i32
    %c0_i32_16 = arith.constant 0 : i32
    %29 = arith.cmpi ne, %28, %c0_i32_16 : i32
    scf.if %29 {
      %c0_17 = arith.constant 0 : index
      %c0_18 = arith.constant 0 : index
      %30 = vector.load %arg6[%c0_17, %c0_18] : memref<1x2048xf32, #tpu.memory_space<vmem>>, vector<1x2048xf32>
      %cst_19 = arith.constant 6.250000e-02 : f32
      %31 = vector.broadcast %cst_19 : f32 to vector<1x2048xf32>
      %32 = arith.mulf %30, %31 : vector<1x2048xf32>
      %c0_20 = arith.constant 0 : index
      %c0_21 = arith.constant 0 : index
      %c0_22 = arith.constant 0 : index
      %33 = vector.load %arg5[%c0_20, %c0_21, %c0_22] : memref<1x1x2048xf32, #tpu.memory_space<vmem>>, vector<1x1x2048xf32>
      %34 = vector.shape_cast %33 : vector<1x1x2048xf32> to vector<1x2048xf32>
      %35 = vector.shape_cast %32 : vector<1x2048xf32> to vector<1x1x2048xf32>
      tpu.vector_store %arg5[%c0_20, %c0_21, %c0_22], %35 {strides = array<i32>} : memref<1x1x2048xf32, #tpu.memory_space<vmem>>, vector<1x1x2048xf32>,
    } else {
    }
    return
  }
  func.func @transform_0(%arg0: i32, %arg1: i32) -> (i32, i32, i32) {
    %c0_i32 = arith.constant 0 : i32
    %c0_i32_0 = arith.constant 0 : i32
    return %arg0, %arg1, %c0_i32 : i32, i32, i32
  }
  func.func @transform_1(%arg0: i32, %arg1: i32) -> (i32, i32) {
    %c0_i32 = arith.constant 0 : i32
    %c0_i32_0 = arith.constant 0 : i32
    %c0_i32_1 = arith.constant 0 : i32
    return %c0_i32, %c0_i32_0 : i32, i32
  }
  func.func @transform_2(%arg0: i32, %arg1: i32) -> (i32, i32) {
    %c0_i32 = arith.constant 0 : i32
    %c0_i32_0 = arith.constant 0 : i32
    %c0_i32_1 = arith.constant 0 : i32
    return %c0_i32, %c0_i32_0 : i32, i32
  }
  func.func @transform_3(%arg0: i32, %arg1: i32) -> (i32, i32, i32) {
    %c0_i32 = arith.constant 0 : i32
    %c0_i32_0 = arith.constant 0 : i32
    %c0_i32_1 = arith.constant 0 : i32
    return %arg0, %c0_i32, %c0_i32_0 : i32, i32, i32
  }
}

module attributes {stable_mosaic.version = 11 : i64} {
  func.func @_gate_head_kernel(%arg0: i32, %arg1: memref<2x2048xf32, #tpu.memory_space<vmem>>, %arg2: memref<2048x128xf32, #tpu.memory_space<vmem>>, %arg3: memref<1x128xf32, #tpu.memory_space<vmem>>, %arg4: memref<128x3xf32, #tpu.memory_space<vmem>>, %arg5: memref<1x3xf32, #tpu.memory_space<vmem>>, %arg6: memref<1x2048x1024xbf16, #tpu.memory_space<vmem>>, %arg7: memref<1x1x1024xf32, #tpu.memory_space<vmem>>, %arg8: memref<1x1024x1024xbf16, #tpu.memory_space<vmem>>, %arg9: memref<1x1x1024xf32, #tpu.memory_space<vmem>>, %arg10: memref<1x1024x128xbf16, #tpu.memory_space<vmem>>, %arg11: memref<1x1x128xf32, #tpu.memory_space<vmem>>, %arg12: memref<2x128xf32, #tpu.memory_space<vmem>>, %arg13: memref<2x3xf32, #tpu.memory_space<vmem>>) attributes {dimension_semantics = [#tpu.dimension_semantics<arbitrary>], iteration_bounds = array<i64: 3>, scalar_prefetch = 0 : i64, scratch_operands = 1 : i64, tpu.core_type = #tpu.core_type<tc>, window_params = [{pipeline_mode = #tpu.pipeline_mode<synchronous>, transform_indices = @transform_0, window_bounds = array<i64: 2, 2048>}, {pipeline_mode = #tpu.pipeline_mode<synchronous>, transform_indices = @transform_1, window_bounds = array<i64: 2048, 128>}, {pipeline_mode = #tpu.pipeline_mode<synchronous>, transform_indices = @transform_2, window_bounds = array<i64: 1, 128>}, {pipeline_mode = #tpu.pipeline_mode<synchronous>, transform_indices = @transform_3, window_bounds = array<i64: 128, 3>}, {pipeline_mode = #tpu.pipeline_mode<synchronous>, transform_indices = @transform_4, window_bounds = array<i64: 1, 3>}, {transform_indices = @transform_5, window_bounds = array<i64: 1, 2048, 1024>}, {transform_indices = @transform_6, window_bounds = array<i64: 1, 1, 1024>}, {transform_indices = @transform_7, window_bounds = array<i64: 1, 1024, 1024>}, {transform_indices = @transform_8, window_bounds = array<i64: 1, 1, 1024>}, {transform_indices = @transform_9, window_bounds = array<i64: 1, 1024, 128>}, {transform_indices = @transform_10, window_bounds = array<i64: 1, 1, 128>}, {pipeline_mode = #tpu.pipeline_mode<synchronous>, transform_indices = @transform_11, window_bounds = array<i64: 2, 128>}]} {
    %c0 = arith.constant 0 : index
    %c0_0 = arith.constant 0 : index
    %0 = vector.load %arg1[%c0, %c0_0] : memref<2x2048xf32, #tpu.memory_space<vmem>>, vector<2x2048xf32>
    %c0_i32 = arith.constant 0 : i32
    %1 = arith.cmpi eq, %arg0, %c0_i32 : i32
    %2 = arith.extui %1 : i1 to i32
    %c0_i32_1 = arith.constant 0 : i32
    %3 = arith.cmpi ne, %2, %c0_i32_1 : i32
    scf.if %3 {
      %c0_31 = arith.constant 0 : index
      %c0_32 = arith.constant 0 : index
      %47 = vector.load %arg2[%c0_31, %c0_32] : memref<2048x128xf32, #tpu.memory_space<vmem>>, vector<2048x128xf32>
      %cst_33 = arith.constant dense<0.000000e+00> : vector<2x128xf32>
      %48 = tpu.matmul %0, %47, %cst_33 {dimension_numbers = #tpu.dot_dimension_numbers<[1], [0], [0], [1], [0, 0, 1, 1], [], []>} : vector<2x2048xf32>, vector<2048x128xf32>, vector<2x128xf32> -> vector<2x128xf32>
      %c0_34 = arith.constant 0 : index
      %c0_35 = arith.constant 0 : index
      %49 = vector.load %arg3[%c0_34, %c0_35] : memref<1x128xf32, #tpu.memory_space<vmem>>, vector<1x128xf32>
      %50 = vector.broadcast %49 : vector<1x128xf32> to vector<2x128xf32>
      %51 = arith.addf %48, %50 : vector<2x128xf32>
      %cst_36 = arith.constant 0.000000e+00 : f32
      %52 = vector.broadcast %cst_36 : f32 to vector<2x128xf32>
      %53 = arith.maximumf %51, %52 : vector<2x128xf32>
      %c0_37 = arith.constant 0 : index
      %c0_38 = arith.constant 0 : index
      %54 = vector.load %arg4[%c0_37, %c0_38] : memref<128x3xf32, #tpu.memory_space<vmem>>, vector<128x3xf32>
      %cst_39 = arith.constant dense<0.000000e+00> : vector<2x3xf32>
      %55 = tpu.matmul %53, %54, %cst_39 {dimension_numbers = #tpu.dot_dimension_numbers<[1], [0], [0], [1], [0, 0, 1, 1], [], []>} : vector<2x128xf32>, vector<128x3xf32>, vector<2x3xf32> -> vector<2x3xf32>
      %c0_40 = arith.constant 0 : index
      %c0_41 = arith.constant 0 : index
      %56 = vector.load %arg5[%c0_40, %c0_41] : memref<1x3xf32, #tpu.memory_space<vmem>>, vector<1x3xf32>
      %57 = vector.broadcast %56 : vector<1x3xf32> to vector<2x3xf32>
      %58 = arith.addf %55, %57 : vector<2x3xf32>
      %cst_42 = arith.constant dense<0xFF800000> : vector<2xf32>
      %59 = vector.multi_reduction <maximumf>, %58, %cst_42 [1] : vector<2x3xf32> to vector<2xf32>
      %cst_43 = arith.constant 0xFF800000 : f32
      %60 = vector.broadcast %cst_43 : f32 to vector<2xf32>
      %61 = arith.maximumf %60, %59 : vector<2xf32>
      %62 = vector.shape_cast %61 : vector<2xf32> to vector<2x1xf32>
      %63 = vector.broadcast %62 : vector<2x1xf32> to vector<2x3xf32>
      %64 = arith.subf %58, %63 : vector<2x3xf32>
      %65 = math.exp %64 : vector<2x3xf32>
      %cst_44 = arith.constant dense<0.000000e+00> : vector<2xf32>
      %66 = vector.multi_reduction <add>, %65, %cst_44 [1] : vector<2x3xf32> to vector<2xf32>
      %67 = vector.shape_cast %66 : vector<2xf32> to vector<2x1xf32>
      %68 = vector.broadcast %67 : vector<2x1xf32> to vector<2x3xf32>
      %69 = arith.divf %65, %68 : vector<2x3xf32>
      %c0_45 = arith.constant 0 : index
      %c0_46 = arith.constant 0 : index
      %70 = vector.load %arg13[%c0_45, %c0_46] : memref<2x3xf32, #tpu.memory_space<vmem>>, vector<2x3xf32>
      tpu.vector_store %arg13[%c0_45, %c0_46], %69 {strides = array<i32>} : memref<2x3xf32, #tpu.memory_space<vmem>>, vector<2x3xf32>,
      %cst_47 = arith.constant 0.000000e+00 : f32
      %71 = vector.broadcast %cst_47 : f32 to vector<2x128xf32>
      %c0_48 = arith.constant 0 : index
      %c0_49 = arith.constant 0 : index
      %72 = vector.load %arg12[%c0_48, %c0_49] : memref<2x128xf32, #tpu.memory_space<vmem>>, vector<2x128xf32>
      tpu.vector_store %arg12[%c0_48, %c0_49], %71 {strides = array<i32>} : memref<2x128xf32, #tpu.memory_space<vmem>>, vector<2x128xf32>,
    } else {
    }
    %4 = tpu.iota {dimensions = array<i32: 1>} : vector<1x3xi32>
    %5 = vector.broadcast %arg0 : i32 to vector<1x3xi32>
    %6 = arith.cmpi eq, %4, %5 : vector<1x3xi32>
    %7 = arith.extui %6 : vector<1x3xi1> to vector<1x3xi32>
    %8 = arith.sitofp %7 : vector<1x3xi32> to vector<1x3xf32>
    %c0_2 = arith.constant 0 : index
    %c0_3 = arith.constant 0 : index
    %9 = vector.load %arg13[%c0_2, %c0_3] : memref<2x3xf32, #tpu.memory_space<vmem>>, vector<2x3xf32>
    %10 = vector.broadcast %8 : vector<1x3xf32> to vector<2x3xf32>
    %11 = arith.mulf %9, %10 : vector<2x3xf32>
    %cst = arith.constant dense<0.000000e+00> : vector<2xf32>
    %12 = vector.multi_reduction <add>, %11, %cst [1] : vector<2x3xf32> to vector<2xf32>
    %13 = vector.shape_cast %12 : vector<2xf32> to vector<2x1xf32>
    %14 = arith.truncf %0 : vector<2x2048xf32> to vector<2x2048xbf16>
    %c0_4 = arith.constant 0 : index
    %c0_5 = arith.constant 0 : index
    %c0_6 = arith.constant 0 : index
    %15 = vector.load %arg6[%c0_4, %c0_5, %c0_6] : memref<1x2048x1024xbf16, #tpu.memory_space<vmem>>, vector<1x2048x1024xbf16>
    %16 = vector.shape_cast %15 : vector<1x2048x1024xbf16> to vector<2048x1024xbf16>
    %cst_7 = arith.constant dense<0.000000e+00> : vector<2x1024xf32>
    %17 = tpu.matmul %14, %16, %cst_7 {dimension_numbers = #tpu.dot_dimension_numbers<[1], [0], [0], [1], [0, 0, 1, 1], [], []>} : vector<2x2048xbf16>, vector<2048x1024xbf16>, vector<2x1024xf32> -> vector<2x1024xf32>
    %c0_8 = arith.constant 0 : index
    %c0_9 = arith.constant 0 : index
    %c0_10 = arith.constant 0 : index
    %18 = vector.load %arg7[%c0_8, %c0_9, %c0_10] : memref<1x1x1024xf32, #tpu.memory_space<vmem>>, vector<1x1x1024xf32>
    %19 = vector.shape_cast %18 : vector<1x1x1024xf32> to vector<1x1024xf32>
    %20 = vector.broadcast %19 : vector<1x1024xf32> to vector<2x1024xf32>
    %21 = arith.addf %17, %20 : vector<2x1024xf32>
    %cst_11 = arith.constant 0.000000e+00 : f32
    %22 = vector.broadcast %cst_11 : f32 to vector<2x1024xf32>
    %23 = arith.maximumf %21, %22 : vector<2x1024xf32>
    %24 = arith.truncf %23 : vector<2x1024xf32> to vector<2x1024xbf16>
    %c0_12 = arith.constant 0 : index
    %c0_13 = arith.constant 0 : index
    %c0_14 = arith.constant 0 : index
    %25 = vector.load %arg8[%c0_12, %c0_13, %c0_14] : memref<1x1024x1024xbf16, #tpu.memory_space<vmem>>, vector<1x1024x1024xbf16>
    %26 = vector.shape_cast %25 : vector<1x1024x1024xbf16> to vector<1024x1024xbf16>
    %cst_15 = arith.constant dense<0.000000e+00> : vector<2x1024xf32>
    %27 = tpu.matmul %24, %26, %cst_15 {dimension_numbers = #tpu.dot_dimension_numbers<[1], [0], [0], [1], [0, 0, 1, 1], [], []>} : vector<2x1024xbf16>, vector<1024x1024xbf16>, vector<2x1024xf32> -> vector<2x1024xf32>
    %c0_16 = arith.constant 0 : index
    %c0_17 = arith.constant 0 : index
    %c0_18 = arith.constant 0 : index
    %28 = vector.load %arg9[%c0_16, %c0_17, %c0_18] : memref<1x1x1024xf32, #tpu.memory_space<vmem>>, vector<1x1x1024xf32>
    %29 = vector.shape_cast %28 : vector<1x1x1024xf32> to vector<1x1024xf32>
    %30 = vector.broadcast %29 : vector<1x1024xf32> to vector<2x1024xf32>
    %31 = arith.addf %27, %30 : vector<2x1024xf32>
    %cst_19 = arith.constant 0.000000e+00 : f32
    %32 = vector.broadcast %cst_19 : f32 to vector<2x1024xf32>
    %33 = arith.maximumf %31, %32 : vector<2x1024xf32>
    %34 = arith.truncf %33 : vector<2x1024xf32> to vector<2x1024xbf16>
    %c0_20 = arith.constant 0 : index
    %c0_21 = arith.constant 0 : index
    %c0_22 = arith.constant 0 : index
    %35 = vector.load %arg10[%c0_20, %c0_21, %c0_22] : memref<1x1024x128xbf16, #tpu.memory_space<vmem>>, vector<1x1024x128xbf16>
    %36 = vector.shape_cast %35 : vector<1x1024x128xbf16> to vector<1024x128xbf16>
    %cst_23 = arith.constant dense<0.000000e+00> : vector<2x128xf32>
    %37 = tpu.matmul %34, %36, %cst_23 {dimension_numbers = #tpu.dot_dimension_numbers<[1], [0], [0], [1], [0, 0, 1, 1], [], []>} : vector<2x1024xbf16>, vector<1024x128xbf16>, vector<2x128xf32> -> vector<2x128xf32>
    %c0_24 = arith.constant 0 : index
    %c0_25 = arith.constant 0 : index
    %c0_26 = arith.constant 0 : index
    %38 = vector.load %arg11[%c0_24, %c0_25, %c0_26] : memref<1x1x128xf32, #tpu.memory_space<vmem>>, vector<1x1x128xf32>
    %39 = vector.shape_cast %38 : vector<1x1x128xf32> to vector<1x128xf32>
    %40 = vector.broadcast %39 : vector<1x128xf32> to vector<2x128xf32>
    %41 = arith.addf %37, %40 : vector<2x128xf32>
    %c0_27 = arith.constant 0 : index
    %c0_28 = arith.constant 0 : index
    %42 = vector.load %arg12[%c0_27, %c0_28] : memref<2x128xf32, #tpu.memory_space<vmem>>, vector<2x128xf32>
    %43 = vector.broadcast %13 : vector<2x1xf32> to vector<2x128xf32>
    %44 = arith.mulf %43, %41 : vector<2x128xf32>
    %45 = arith.addf %42, %44 : vector<2x128xf32>
    %c0_29 = arith.constant 0 : index
    %c0_30 = arith.constant 0 : index
    %46 = vector.load %arg12[%c0_29, %c0_30] : memref<2x128xf32, #tpu.memory_space<vmem>>, vector<2x128xf32>
    tpu.vector_store %arg12[%c0_29, %c0_30], %45 {strides = array<i32>} : memref<2x128xf32, #tpu.memory_space<vmem>>, vector<2x128xf32>,
    return
  }
  func.func @transform_0(%arg0: i32) -> (i32, i32) {
    %c0_i32 = arith.constant 0 : i32
    %c0_i32_0 = arith.constant 0 : i32
    %c0_i32_1 = arith.constant 0 : i32
    return %c0_i32, %c0_i32_0 : i32, i32
  }
  func.func @transform_1(%arg0: i32) -> (i32, i32) {
    %c0_i32 = arith.constant 0 : i32
    %c0_i32_0 = arith.constant 0 : i32
    %c0_i32_1 = arith.constant 0 : i32
    return %c0_i32, %c0_i32_0 : i32, i32
  }
  func.func @transform_2(%arg0: i32) -> (i32, i32) {
    %c0_i32 = arith.constant 0 : i32
    %c0_i32_0 = arith.constant 0 : i32
    %c0_i32_1 = arith.constant 0 : i32
    return %c0_i32, %c0_i32_0 : i32, i32
  }
  func.func @transform_3(%arg0: i32) -> (i32, i32) {
    %c0_i32 = arith.constant 0 : i32
    %c0_i32_0 = arith.constant 0 : i32
    %c0_i32_1 = arith.constant 0 : i32
    return %c0_i32, %c0_i32_0 : i32, i32
  }
  func.func @transform_4(%arg0: i32) -> (i32, i32) {
    %c0_i32 = arith.constant 0 : i32
    %c0_i32_0 = arith.constant 0 : i32
    %c0_i32_1 = arith.constant 0 : i32
    return %c0_i32, %c0_i32_0 : i32, i32
  }
  func.func @transform_5(%arg0: i32) -> (i32, i32, i32) {
    %c0_i32 = arith.constant 0 : i32
    %c0_i32_0 = arith.constant 0 : i32
    %c0_i32_1 = arith.constant 0 : i32
    return %arg0, %c0_i32, %c0_i32_0 : i32, i32, i32
  }
  func.func @transform_6(%arg0: i32) -> (i32, i32, i32) {
    %c0_i32 = arith.constant 0 : i32
    %c0_i32_0 = arith.constant 0 : i32
    %c0_i32_1 = arith.constant 0 : i32
    return %arg0, %c0_i32, %c0_i32_0 : i32, i32, i32
  }
  func.func @transform_7(%arg0: i32) -> (i32, i32, i32) {
    %c0_i32 = arith.constant 0 : i32
    %c0_i32_0 = arith.constant 0 : i32
    %c0_i32_1 = arith.constant 0 : i32
    return %arg0, %c0_i32, %c0_i32_0 : i32, i32, i32
  }
  func.func @transform_8(%arg0: i32) -> (i32, i32, i32) {
    %c0_i32 = arith.constant 0 : i32
    %c0_i32_0 = arith.constant 0 : i32
    %c0_i32_1 = arith.constant 0 : i32
    return %arg0, %c0_i32, %c0_i32_0 : i32, i32, i32
  }
  func.func @transform_9(%arg0: i32) -> (i32, i32, i32) {
    %c0_i32 = arith.constant 0 : i32
    %c0_i32_0 = arith.constant 0 : i32
    %c0_i32_1 = arith.constant 0 : i32
    return %arg0, %c0_i32, %c0_i32_0 : i32, i32, i32
  }
  func.func @transform_10(%arg0: i32) -> (i32, i32, i32) {
    %c0_i32 = arith.constant 0 : i32
    %c0_i32_0 = arith.constant 0 : i32
    %c0_i32_1 = arith.constant 0 : i32
    return %arg0, %c0_i32, %c0_i32_0 : i32, i32, i32
  }
  func.func @transform_11(%arg0: i32) -> (i32, i32) {
    %c0_i32 = arith.constant 0 : i32
    %c0_i32_0 = arith.constant 0 : i32
    %c0_i32_1 = arith.constant 0 : i32
    return %c0_i32, %c0_i32_0 : i32, i32
  }
}

</mosaic_0001>

<bundles_post_ra>
// kernel: forward.2
= control target key start
LH: loop header
LB: loop body
LE: loop exit
PB: predicated region body
PF: predicated region fallthrough
CT: control target
= control target key end

     0   :  { %8 = vsyncpa [#allocation4], 0  ;;  %s1852_s0 = inlined_call_operand.vmem [shape: f32[2,16,48], index: 0, kind: input, shape index: {}]   ;;  %s1853_s1 = inlined_call_operand.hbm [shape: f32[48,2048], index: 1, kind: input, shape index: {}]   ;;  %s1854_s2 = inlined_call_operand.hbm [shape: f32[1,2048], index: 2, kind: input, shape index: {}]   ;;  %s1855_s3 = inlined_call_operand.vmem [shape: f32[2,1,2048], index: 3, kind: output, shape index: {}]  }
   0x1   :  { %9 = vsyncpa [#allocation6], 0  ;;  %s1636_s12 = smov 0   ;;  %s1638_s13 = smov 0  }
   0x2   :  { %s1640_s14 = smov 0  }
   0x3 LB: > { %s1446_s15 = sadd.s32 4294967295, %s1608_s14   ;;  %s27_s16 = sadd.s32 1, %s1604_s13  ;;  %s1608_s14 = sphi %s1640_s14, %s15_s14   ;;  %s1604_s13 = sphi %s1638_s13, %s1860_s13   ;;  %s1600_s12 = sphi %s1636_s12, %s1859_s12  }
   0x4   : > { %p29_p0 = scmp.ge.s32.totalorder %s27_s16, 2  ;;  %p1448_p1 = scmp.ge.s32.totalorder %s1608_s14, 1 }
   0x5   : > { %p128_p2 = scmp.lt.s32.totalorder %s1608_s14, 3  ;;  %p1661_p4 = scmp.eq.s32.totalorder %s1446_s15, 0 }
   0x6   : > { %s1862_s16 = smov (%p29_p0, %s27_s16), 0  ;;  %s1610_s19 = smov [#allocation3]  }
   0x7   : > { %p1657_p3 = pnand %p1448_p1, %p128_p2  ;;  %s140_s20 = sshll.u32 %s1610_s19, 4  ;;  %s141_s20 = int_to_ptr.vmem [resolvable:$true] %s140_s20 }
   0x8   : > { %s1611_s22 = smov [#allocation5]   ;;  %s1537_s24 = scalar_lea.vmem %s141_s20, 12288 }
   0x9   : > { %p1485_p5 = pneg %p1657_p3  ;;  %s154_s23 = sshll.u32 %s1611_s22, 4  ;;  %s155_s23 = int_to_ptr.vmem [resolvable:$true] %s154_s23 }
   0xa   : > { %p1538_p8 = scmp.ne.s32.totalorder %s141_s20, %s1537_s24  ;;  %p1545_p11 = scmp.lt.s32.totalorder %s141_s20, %s141_s20 }
   0xb   : > { %p1669_p6 = pnand %p1661_p4, %p1485_p5  ;;  %p1546_p12 = scmp.lt.s32.totalorder %s1537_s24, %s1537_s24 }
   0xd   : > { %p1528_p7 = pneg %p1669_p6  ;;  %p1547_p13 = por %p1546_p12, %p1545_p11 }
   0xf   : > { %p1540_p9 = pnand %p1538_p8, %p1528_p7 }
  0x11   : > { %p1541_p10 = pneg %p1540_p9 }
  0x13   : > { %p1548_p0 = pnand %p1547_p13, %p1541_p10 }
  0x15   : > { %1551 = shalt.err (!%p1548_p0)
}
  0x16   : > { %s1612_s25 = smov 2048   ;;  %s1613_s26 = smov 128  }
  0x17   : > { %1488 = dma.hbm_to_vmem [thread:$0]  (!%p1669_p6), %s1853_s1, 12288, %s141_s20, [#allocation4], %s1612_s25, %s1612_s25, %s1613_s26  }
  0x18   : > { %s1563_s29 = scalar_lea.vmem %s155_s23, 256  ;;  %p1571_p8 = scmp.lt.s32.totalorder %s155_s23, %s155_s23 }
  0x19   : > { %p1564_p1 = scmp.ne.s32.totalorder %s155_s23, %s1563_s29  ;;  %p1572_p9 = scmp.lt.s32.totalorder %s1563_s29, %s1563_s29 }
  0x1b   : > { %p1566_p2 = pnand %p1564_p1, %p1528_p7  ;;  %p1573_p11 = por %p1572_p9, %p1571_p8 }
  0x1d   : > { %p1567_p5 = pneg %p1566_p2 }
  0x1f   : > { %p1574_p10 = pnand %p1573_p11, %p1567_p5 }
  0x21   : > { %1577 = shalt.err (!%p1574_p10)
}
  0x22   : > { %1491 = dma.hbm_to_vmem [thread:$0]  (!%p1669_p6), %s1854_s2, 256, %s155_s23, [#allocation6]  }
  0x23   : > { %180 = sbr.rel (%p1657_p3) target bundleno = 335 (0x14f), region = 32 }
  0x28   : > { %1591 = dma.done.wait (%p1661_p4), [#allocation4], 12288  }
  0x29   : > { %1593 = vsyncadd (%p1661_p4), [#allocation4], 4294955008 }
  0x2a   : > { %1595 = dma.done.wait (%p1661_p4), [#allocation6], 256  }
  0x2b   : > { %1597 = vsyncadd (%p1661_p4), [#allocation6], 4294967040  ;;  %v1614_v0 = vmov 0.0   ;;  %p212_p3 = scmp.lt.s32.totalorder %s1600_s12, 1  ;;  %v314_v1 = vld [vmem:[#allocation3 + $0x288] sm:$0xff]  ;;  %v316_v2 = vld [vmem:[#allocation3 + $0x298] sm:$0xff] }
  0x2c   : > { %484 = vmatprep.mubr.f32.mxu0 %v1614_v0  ;;  %561 = vmatprep.mubr.f32.mxu1 %v1614_v0  ;;  %v313_v3 = vld [vmem:[#allocation3 + $0x280] sm:$0xff]  ;;  %v315_v4 = vld [vmem:[#allocation3 + $0x290] sm:$0xff]  ;;  %v298_v5 = vld [vmem:[#allocation3 + $0x208] sm:$0xff]  ;;  %vm413_vm0 = vcmask 392192  }
  0x2d   : > { %s1864_s12 = smov (!%p212_p3, %s1600_s12), 1  ;;  %440 = vmatprep.subr.mxu0 %v314_v1  ;;  %517 = vmatprep.subr.mxu1 %v316_v2  ;;  %v300_v6 = vld [vmem:[#allocation3 + $0x218] sm:$0xff]  ;;  %v297_v7 = vld [vmem:[#allocation3 + $0x200] sm:$0xff]  ;;  %v299_v8 = vld [vmem:[#allocation3 + $0x210] sm:$0xff] }
  0x2e   : > { %441 = vmatpush1.msra.mxu0 %v313_v3  ;;  %518 = vmatpush1.msra.mxu1 %v315_v4  ;;  %v282_v9 = vld [vmem:[#allocation3 + $0x188] sm:$0xff]  ;;  %v284_v10 = vld [vmem:[#allocation3 + $0x198] sm:$0xff]  ;;  %v281_v11 = vld [vmem:[#allocation3 + $0x180] sm:$0xff]  ;;  %s1476_s5 = sshll.u32 %s1864_s12, 4 }
  0x2f   : > { %442 = vmatprep.subr.mxu0 %v298_v5  ;;  %519 = vmatprep.subr.mxu1 %v300_v6  ;;  %v283_v12 = vld [vmem:[#allocation3 + $0x190] sm:$0xff]  ;;  %v266_v13 = vld [vmem:[#allocation3 + $0x108] sm:$0xff]  ;;  %v268_v14 = vld [vmem:[#allocation3 + $0x118] sm:$0xff]  ;;  %s1713_s8 = scalar_lea.vmem %s1852_s0, %s1476_s5  ;;  %s1833_s11 = scalar_lea.vmem %s1855_s3, %s1476_s5 }
  0x30   : > { %443 = vmatpush1.msra.mxu0 %v297_v7  ;;  %520 = vmatpush1.msra.mxu1 %v299_v8  ;;  %v265_v15 = vld [vmem:[#allocation3 + $0x100] sm:$0xff]  ;;  %v267_v16 = vld [vmem:[#allocation3 + $0x110] sm:$0xff]  ;;  %v250_v17 = vld [vmem:[#allocation3 + $0x88] sm:$0xff] }
  0x31   : > { %444 = vmatprep.subr.mxu0 %v282_v9  ;;  %521 = vmatprep.subr.mxu1 %v284_v10  ;;  %v252_v18 = vld [vmem:[#allocation3 + $0x98] sm:$0xff]  ;;  %v249_v19 = vld [vmem:[#allocation3 + $0x80] sm:$0xff]  ;;  %v251_v20 = vld [vmem:[#allocation3 + $0x90] sm:$0xff] }
  0x32   : > { %445 = vmatpush1.msra.mxu0 %v281_v11  ;;  %522 = vmatpush1.msra.mxu1 %v283_v12  ;;  %v234_v21 = vld [vmem:[#allocation3 + $0x8] sm:$0xff]  ;;  %v236_v22 = vld [vmem:[#allocation3 + $0x18] sm:$0xff]  ;;  %v233_v23 = vld [vmem:[#allocation3] sm:$0xff] }
  0x33   : > { %446 = vmatprep.subr.mxu0 %v266_v13  ;;  %523 = vmatprep.subr.mxu1 %v268_v14  ;;  %v235_v24 = vld [vmem:[#allocation3 + $0x10] sm:$0xff]  ;;  %v1716_v25 = vld [vmem:[%s1713_s8] sm:$0xff]  ;;  %v318_v26 = vld [vmem:[#allocation3 + $0x2a8] sm:$0xff] }
  0x34   : > { %447 = vmatpush1.msra.mxu0 %v265_v15  ;;  %524 = vmatpush1.msra.mxu1 %v267_v16  ;;  %v320_v27 = vld [vmem:[#allocation3 + $0x2b8] sm:$0xff]  ;;  %v317_v28 = vld [vmem:[#allocation3 + $0x2a0] sm:$0xff]  ;;  %v319_v29 = vld [vmem:[#allocation3 + $0x2b0] sm:$0xff] }
  0x35   : > { %448 = vmatprep.subr.mxu0 %v250_v17  ;;  %525 = vmatprep.subr.mxu1 %v252_v18  ;;  %v302_v30 = vld [vmem:[#allocation3 + $0x228] sm:$0xff]  ;;  %v304_v31 = vld [vmem:[#allocation3 + $0x238] sm:$0xff]  ;;  %v301_v32 = vld [vmem:[#allocation3 + $0x220] sm:$0xff] }
  0x36   : > { %449 = vmatpush1.msra.mxu0 %v249_v19  ;;  %526 = vmatpush1.msra.mxu1 %v251_v20  ;;  %v303_v33 = vld [vmem:[#allocation3 + $0x230] sm:$0xff]  ;;  %v1723_v34 = vld [vmem:[%s1713_s8 + $0x8] sm:$0xff]  ;;  %v288_v36 = vld [vmem:[#allocation3 + $0x1b8] sm:$0xff] }
  0x37   : > { %450 = vmatprep.subr.mxu0 %v234_v21  ;;  %527 = vmatprep.subr.mxu1 %v236_v22  ;;  %v286_v35 = vld [vmem:[#allocation3 + $0x1a8] sm:$0xff]  ;;  %v285_v37 = vld [vmem:[#allocation3 + $0x1a0] sm:$0xff]  ;;  %v287_v38 = vld [vmem:[#allocation3 + $0x1b0] sm:$0xff] }
  0x38   : > { %451 = vmatpush1.msra.mxu0 %v233_v23  ;;  %528 = vmatpush1.msra.mxu1 %v235_v24  ;;  %v270_v39 = vld [vmem:[#allocation3 + $0x128] sm:$0xff]  ;;  %v272_v40 = vld [vmem:[#allocation3 + $0x138] sm:$0xff]  ;;  %v269_v41 = vld [vmem:[#allocation3 + $0x120] sm:$0xff] }
  0x39   : > { %1458 = vmatmul.mubr.msk.f32.vlgmr.msra.gmra.mxu0 %vm413_vm0, %v1716_v25  ;;  %1460 = vmatmul.mubr.msk.f32.vlgmr.msra.gmra.mxu1 %vm413_vm0, %v1716_v25  ;;  %v271_v42 = vld [vmem:[#allocation3 + $0x130] sm:$0xff]  ;;  %v254_v43 = vld [vmem:[#allocation3 + $0xa8] sm:$0xff]  ;;  %v256_v44 = vld [vmem:[#allocation3 + $0xb8] sm:$0xff] }
  0x3a   : > { %594 = vmatprep.subr.mxu0 %v318_v26  ;;  %671 = vmatprep.subr.mxu1 %v320_v27  ;;  %v253_v45 = vld [vmem:[#allocation3 + $0xa0] sm:$0xff]  ;;  %v255_v46 = vld [vmem:[#allocation3 + $0xb0] sm:$0xff]  ;;  %v238_v47 = vld [vmem:[#allocation3 + $0x28] sm:$0xff] }
  0x3b   : > { %595 = vmatpush1.msra.mxu0 %v317_v28  ;;  %672 = vmatpush1.msra.mxu1 %v319_v29  ;;  %v240_v48 = vld [vmem:[#allocation3 + $0x38] sm:$0xff]  ;;  %v237_v49 = vld [vmem:[#allocation3 + $0x20] sm:$0xff]  ;;  %v239_v50 = vld [vmem:[#allocation3 + $0x30] sm:$0xff] }
  0x3c   : > { %596 = vmatprep.subr.mxu0 %v302_v30  ;;  %673 = vmatprep.subr.mxu1 %v304_v31  ;;  %v322_v51 = vld [vmem:[#allocation3 + $0x2c8] sm:$0xff]  ;;  %v324_v52 = vld [vmem:[#allocation3 + $0x2d8] sm:$0xff]  ;;  %v321_v53 = vld [vmem:[#allocation3 + $0x2c0] sm:$0xff] }
  0x3d   : > { %490 = vmatprep.mubr.f32.mxu0 %v1614_v0  ;;  %567 = vmatprep.mubr.f32.mxu1 %v1614_v0  ;;  %v323_v54 = vld [vmem:[#allocation3 + $0x2d0] sm:$0xff]  ;;  %v306_v55 = vld [vmem:[#allocation3 + $0x248] sm:$0xff]  ;;  %v308_v56 = vld [vmem:[#allocation3 + $0x258] sm:$0xff] }
  0x3e   : > { %597 = vmatpush1.msra.mxu0 %v301_v32  ;;  %674 = vmatpush1.msra.mxu1 %v303_v33  ;;  %v305_v57 = vld [vmem:[#allocation3 + $0x240] sm:$0xff]  ;;  %v307_v58 = vld [vmem:[#allocation3 + $0x250] sm:$0xff]  ;;  %v290_v59 = vld [vmem:[#allocation3 + $0x1c8] sm:$0xff] }
  0x3f   : > { %1459 = vmatmul.mubr.msk.f32.gmra.mxu0 %vm413_vm0, %v1723_v34  ;;  %1461 = vmatmul.mubr.msk.f32.gmra.mxu1 %vm413_vm0, %v1723_v34  ;;  %v292_v60 = vld [vmem:[#allocation3 + $0x1d8] sm:$0xff]  ;;  %v289_v61 = vld [vmem:[#allocation3 + $0x1c0] sm:$0xff]  ;;  %v291_v62 = vld [vmem:[#allocation3 + $0x1d0] sm:$0xff] }
  0x40   : > { %598 = vmatprep.subr.mxu0 %v286_v35  ;;  %675 = vmatprep.subr.mxu1 %v288_v36  ;;  %v274_v63 = vld [vmem:[#allocation3 + $0x148] sm:$0xff]  ;;  %v276_v1 = vld [vmem:[#allocation3 + $0x158] sm:$0xff]  ;;  %v273_v2 = vld [vmem:[#allocation3 + $0x140] sm:$0xff] }
  0x41   : > { %599 = vmatpush1.msra.mxu0 %v285_v37  ;;  %676 = vmatpush1.msra.mxu1 %v287_v38  ;;  %v275_v3 = vld [vmem:[#allocation3 + $0x150] sm:$0xff]  ;;  %v258_v4 = vld [vmem:[#allocation3 + $0xc8] sm:$0xff]  ;;  %v260_v5 = vld [vmem:[#allocation3 + $0xd8] sm:$0xff]  ;;  %v333_v38 = vlaneseq }
  0x42   : > { %600 = vmatprep.subr.mxu0 %v270_v39  ;;  %677 = vmatprep.subr.mxu1 %v272_v40  ;;  %v257_v6 = vld [vmem:[#allocation3 + $0xc0] sm:$0xff]  ;;  %v259_v7 = vld [vmem:[#allocation3 + $0xd0] sm:$0xff]  ;;  %v242_v8 = vld [vmem:[#allocation3 + $0x48] sm:$0xff] }
  0x43   : > { %601 = vmatpush1.msra.mxu0 %v269_v41  ;;  %678 = vmatpush1.msra.mxu1 %v271_v42  ;;  %v244_v9 = vld [vmem:[#allocation3 + $0x58] sm:$0xff]  ;;  %v241_v10 = vld [vmem:[#allocation3 + $0x40] sm:$0xff]  ;;  %v243_v11 = vld [vmem:[#allocation3 + $0x50] sm:$0xff]  ;;  %v1767_v39 = vshrl.u32 %v333_v38, 7 }
  0x44   : > { %602 = vmatprep.subr.mxu0 %v254_v43  ;;  %679 = vmatprep.subr.mxu1 %v256_v44  ;;  %v326_v12 = vld [vmem:[#allocation3 + $0x2e8] sm:$0xff]  ;;  %v328_v13 = vld [vmem:[#allocation3 + $0x2f8] sm:$0xff]  ;;  %v325_v14 = vld [vmem:[#allocation3 + $0x2e0] sm:$0xff] }
  0x45   : > { %603 = vmatpush1.msra.mxu0 %v253_v45  ;;  %680 = vmatpush1.msra.mxu1 %v255_v46  ;;  %v327_v15 = vld [vmem:[#allocation3 + $0x2f0] sm:$0xff]  ;;  %v310_v16 = vld [vmem:[#allocation3 + $0x268] sm:$0xff]  ;;  %v312_v17 = vld [vmem:[#allocation3 + $0x278] sm:$0xff]  ;;  %v335_v40 = vsub.s32 0, %v1767_v39  ;;  %v343_v41 = vsub.s32 2, %v1767_v39  ;;  %v347_v43 = vsub.s32 3, %v1767_v39 }
  0x46   : > { %604 = vmatprep.subr.mxu0 %v238_v47  ;;  %681 = vmatprep.subr.mxu1 %v240_v48  ;;  %v309_v18 = vld [vmem:[#allocation3 + $0x260] sm:$0xff]  ;;  %v311_v19 = vld [vmem:[#allocation3 + $0x270] sm:$0xff]  ;;  %v294_v20 = vld [vmem:[#allocation3 + $0x1e8] sm:$0xff] }
  0x47   : > { %605 = vmatpush1.msra.mxu0 %v237_v49  ;;  %638 = vmatprep.mubr.f32.mxu0 %v1614_v0  ;;  %v296_v21 = vld [vmem:[#allocation3 + $0x1f8] sm:$0xff]  ;;  %v293_v22 = vld [vmem:[#allocation3 + $0x1e0] sm:$0xff]  ;;  %v295_v23 = vld [vmem:[#allocation3 + $0x1f0] sm:$0xff] }
  0x48   : > { %682 = vmatpush1.msra.mxu1 %v239_v50  ;;  %715 = vmatprep.mubr.f32.mxu1 %v1614_v0  ;;  %v278_v24 = vld [vmem:[#allocation3 + $0x168] sm:$0xff]  ;;  %v280_v26 = vld [vmem:[#allocation3 + $0x178] sm:$0xff]  ;;  %v277_v27 = vld [vmem:[#allocation3 + $0x160] sm:$0xff] }
  0x49   : > { %1462 = vmatmul.mubr.msk.f32.vlgmr.msra.gmra.mxu0 %vm413_vm0, %v1716_v25  ;;  %1464 = vmatmul.mubr.msk.f32.vlgmr.msra.gmra.mxu1 %vm413_vm0, %v1716_v25  ;;  %v279_v28 = vld [vmem:[#allocation3 + $0x170] sm:$0xff]  ;;  %v262_v29 = vld [vmem:[#allocation3 + $0xe8] sm:$0xff]  ;;  %v264_v30 = vld [vmem:[#allocation3 + $0xf8] sm:$0xff] }
  0x4a   : > { %748 = vmatprep.subr.mxu0 %v322_v51  ;;  %825 = vmatprep.subr.mxu1 %v324_v52  ;;  %v261_v31 = vld [vmem:[#allocation3 + $0xe0] sm:$0xff]  ;;  %v263_v32 = vld [vmem:[#allocation3 + $0xf0] sm:$0xff]  ;;  %v246_v33 = vld [vmem:[#allocation3 + $0x68] sm:$0xff] }
  0x4b   : > { %749 = vmatpush1.msra.mxu0 %v321_v53  ;;  %826 = vmatpush1.msra.mxu1 %v323_v54  ;;  %v248_v35 = vld [vmem:[#allocation3 + $0x78] sm:$0xff]  ;;  %v245_v36 = vld [vmem:[#allocation3 + $0x60] sm:$0xff]  ;;  %v247_v37 = vld [vmem:[#allocation3 + $0x70] sm:$0xff] }
  0x4c   : > { %750 = vmatprep.subr.mxu0 %v306_v55  ;;  %827 = vmatprep.subr.mxu1 %v308_v56  ;;  %v329_v42 = vld [vmem:[#allocation5] sm:$0xff] }
  0x4d   : > { %644 = vmatprep.mubr.f32.mxu0 %v1614_v0  ;;  %721 = vmatprep.mubr.f32.mxu1 %v1614_v0  ;;  %v344_v45 = vrot.slane %v329_v42, %v343_v41  ;;  %v348_v48 = vrot.slane %v329_v42, %v347_v43 }
  0x4e   : > { %751 = vmatpush1.msra.mxu0 %v305_v57  ;;  %828 = vmatpush1.msra.mxu1 %v307_v58 }
  0x4f   : > { %1463 = vmatmul.mubr.msk.f32.gmra.mxu0 %vm413_vm0, %v1723_v34  ;;  %1465 = vmatmul.mubr.msk.f32.gmra.mxu1 %vm413_vm0, %v1723_v34 }
  0x50   : > { %752 = vmatprep.subr.mxu0 %v290_v59  ;;  %829 = vmatprep.subr.mxu1 %v292_v60 }
  0x51   : > { %753 = vmatpush1.msra.mxu0 %v289_v61  ;;  %830 = vmatpush1.msra.mxu1 %v291_v62 }
  0x52   : > { %754 = vmatprep.subr.mxu0 %v274_v63  ;;  %831 = vmatprep.subr.mxu1 %v276_v1 }
  0x53   : > { %755 = vmatpush1.msra.mxu0 %v273_v2  ;;  %832 = vmatpush1.msra.mxu1 %v275_v3 }
  0x54   : > { %756 = vmatprep.subr.mxu0 %v258_v4  ;;  %833 = vmatprep.subr.mxu1 %v260_v5 }
  0x55   : > { %757 = vmatpush1.msra.mxu0 %v257_v6  ;;  %834 = vmatpush1.msra.mxu1 %v259_v7 }
  0x56   : > { %758 = vmatprep.subr.mxu0 %v242_v8  ;;  %835 = vmatprep.subr.mxu1 %v244_v9  ;;  %v351_v9 = vsub.s32 4, %v1767_v39 }
  0x57   : > { %759 = vmatpush1.msra.mxu0 %v241_v10  ;;  %792 = vmatprep.mubr.f32.mxu0 %v1614_v0  ;;  %v359_v10 = vsub.s32 6, %v1767_v39 }
  0x58   : > { %836 = vmatpush1.msra.mxu1 %v243_v11  ;;  %869 = vmatprep.mubr.f32.mxu1 %v1614_v0 }
  0x59   : > { %1466 = vmatmul.mubr.msk.f32.vlgmr.msra.gmra.mxu0 %vm413_vm0, %v1716_v25  ;;  %1468 = vmatmul.mubr.msk.f32.vlgmr.msra.gmra.mxu1 %vm413_vm0, %v1716_v25 }
  0x5a   : > { %902 = vmatprep.subr.mxu0 %v326_v12  ;;  %979 = vmatprep.subr.mxu1 %v328_v13 }
  0x5b   : > { %903 = vmatpush1.msra.mxu0 %v325_v14  ;;  %980 = vmatpush1.msra.mxu1 %v327_v15  ;;  %v355_v15 = vsub.s32 5, %v1767_v39 }
  0x5c   : > { %904 = vmatprep.subr.mxu0 %v310_v16  ;;  %981 = vmatprep.subr.mxu1 %v312_v17  ;;  %v363_v16 = vsub.s32 7, %v1767_v39 }
  0x5d   : > { %798 = vmatprep.mubr.f32.mxu0 %v1614_v0  ;;  %875 = vmatprep.mubr.f32.mxu1 %v1614_v0 }
  0x5e   : > { %905 = vmatpush1.msra.mxu0 %v309_v18  ;;  %982 = vmatpush1.msra.mxu1 %v311_v19 }
  0x5f   : > { %1467 = vmatmul.mubr.msk.f32.gmra.mxu0 %vm413_vm0, %v1723_v34  ;;  %1469 = vmatmul.mubr.msk.f32.gmra.mxu1 %vm413_vm0, %v1723_v34 }
  0x60   : > { %906 = vmatprep.subr.mxu0 %v294_v20  ;;  %983 = vmatprep.subr.mxu1 %v296_v21  ;;  %v352_v21 = vrot.slane %v329_v42, %v351_v9 }
  0x61   : > { %907 = vmatpush1.msra.mxu0 %v293_v22  ;;  %984 = vmatpush1.msra.mxu1 %v295_v23  ;;  %v360_v23 = vrot.slane %v329_v42, %v359_v10 }
  0x62   : > { %908 = vmatprep.subr.mxu0 %v278_v24  ;;  %985 = vmatprep.subr.mxu1 %v280_v26 }
  0x63   : > { %909 = vmatpush1.msra.mxu0 %v277_v27  ;;  %986 = vmatpush1.msra.mxu1 %v279_v28 }
  0x64   : > { %910 = vmatprep.subr.mxu0 %v262_v29  ;;  %987 = vmatprep.subr.mxu1 %v264_v30 }
  0x65   : > { %911 = vmatpush1.msra.mxu0 %v261_v31  ;;  %988 = vmatpush1.msra.mxu1 %v263_v32 }
  0x66   : > { %912 = vmatprep.subr.mxu0 %v246_v33  ;;  %989 = vmatprep.subr.mxu1 %v248_v35  ;;  %v356_v35 = vrot.slane %v329_v42, %v355_v15 }
  0x67   : > { %913 = vmatpush1.msra.mxu0 %v245_v36  ;;  %946 = vmatprep.mubr.f32.mxu0 %v1614_v0  ;;  %v364_v36 = vrot.slane %v329_v42, %v363_v16 }
  0x68   : > { %990 = vmatpush1.msra.mxu1 %v247_v37  ;;  %1023 = vmatprep.mubr.f32.mxu1 %v1614_v0 }
  0x69   : > { %1470 = vmatmul.mubr.msk.f32.vlgmr.msra.gmra.mxu0 %vm413_vm0, %v1716_v25  ;;  %1472 = vmatmul.mubr.msk.f32.vlgmr.msra.gmra.mxu1 %vm413_vm0, %v1716_v25  ;;  %v339_v25 = vsub.s32 1, %v1767_v39 }
  0x6a   : > { %952 = vmatprep.mubr.f32.mxu0 %v1614_v0  ;;  %1029 = vmatprep.mubr.f32.mxu1 %v1614_v0  ;;  %v336_v0 = vrot.slane %v329_v42, %v335_v40 }
  0x6b   : > { %v340_v46 = vrot.slane %v329_v42, %v339_v25 }
  0x6d   : > { %1471 = vmatmul.mubr.msk.f32.gmra.mxu0 %vm413_vm0, %v1723_v34  ;;  %1473 = vmatmul.mubr.msk.f32.gmra.mxu1 %vm413_vm0, %v1723_v34 }
  0xf9   : > { %v486_v44 = vpop.f32.mrf.mxu0  ;;  %v563_v34 = vpop.f32.mrf.mxu1 }
  0xfa   : > { %v487_v50 = vadd.f32 %v486_v44, %v336_v0  ;;  %v564_v51 = vadd.f32 %v563_v34, %v344_v45 }
  0xfb   : > { %v488_v47 = vpop.f32.mrf.mxu0  ;;  %v565_v49 = vpop.f32.mrf.mxu1 }
  0xfc   : > { %v489_v52 = vadd.f32 %v488_v47, %v340_v46  ;;  %v566_v53 = vadd.f32 %v565_v49, %v348_v48  ;;  %v1036_v58 = vmax.f32 %v487_v50, 0.0  ;;  %v1038_v59 = vmax.f32 %v564_v51, 0.0 }
  0xfe   : > { %v1037_v3 = vmax.f32 %v489_v52, 0.0  ;;  %v1039_v4 = vmax.f32 %v566_v53, 0.0 }
  0xff   : > { %v492_v54 = vpop.f32.mrf.mxu0  ;;  %v569_v55 = vpop.f32.mrf.mxu1 }
 0x100   : > { %v493_v56 = vadd.f32 %v492_v54, %v336_v0  ;;  %v570_v57 = vadd.f32 %v569_v55, %v344_v45 }
 0x101   : > { %v494_v60 = vpop.f32.mrf.mxu0  ;;  %v571_v61 = vpop.f32.mrf.mxu1 }
 0x102   : > { %v1052_v62 = vmax.f32 %v493_v56, 0.0  ;;  %v1054_v63 = vmax.f32 %v570_v57, 0.0  ;;  %v495_v1 = vadd.f32 %v494_v60, %v340_v46  ;;  %v572_v2 = vadd.f32 %v571_v61, %v348_v48 }
 0x103   : > { %v1615_v48 = vmov 1966171168  }
 0x104   : > { %v1115_v5 = vadd.f32 %v1052_v62, %v1036_v58  ;;  %v1129_v6 = vadd.f32 %v1054_v63, %v1038_v59  ;;  %v1053_v7 = vmax.f32 %v495_v1, 0.0  ;;  %v1055_v8 = vmax.f32 %v572_v2, 0.0 }
 0x105   : > { %v1248_v49 = vunpack.c.l.s4 %v1615_v48 }
 0x106   : > { %v1116_v11 = vrot.slane %v1115_v5, 4  ;;  %v1130_v12 = vrot.slane %v1129_v6, 4  ;;  %v1122_v13 = vadd.f32 %v1053_v7, %v1037_v3  ;;  %v1136_v14 = vadd.f32 %v1055_v8, %v1039_v4 }
 0x107   : > { %v1249_v7 = vunpack.c.0.s8 %v1248_v49 }
 0x108   : > { %v1117_v17 = vadd.f32 %v1116_v11, %v1115_v5  ;;  %v1131_v18 = vadd.f32 %v1130_v12, %v1129_v6  ;;  %v1123_v19 = vrot.slane %v1122_v13, 4  ;;  %v1137_v20 = vrot.slane %v1136_v14, 4  ;;  %v1793_v6 = vld [vmem:[#allocation5 + $0x8] sm:$0xff] }
 0x109   : > { %v640_v22 = vpop.f32.mrf.mxu0  ;;  %v717_v24 = vpop.f32.mrf.mxu1 }
 0x10a   : > { %v1124_v26 = vadd.f32 %v1123_v19, %v1122_v13  ;;  %v1138_v27 = vadd.f32 %v1137_v20, %v1136_v14  ;;  %v1118_v28 = vrot.slane %v1117_v17, 2  ;;  %v1132_v29 = vrot.slane %v1131_v18, 2 }
 0x10b   : > { %v642_v30 = vpop.f32.mrf.mxu0  ;;  %v719_v31 = vpop.f32.mrf.mxu1  ;;  %v641_v37 = vadd.f32 %v640_v22, %v352_v21  ;;  %v718_v38 = vadd.f32 %v717_v24, %v360_v23  ;;  %v368_v20 = vrot.slane %v1793_v6, %v335_v40 }
 0x10c   : > { %v1125_v32 = vrot.slane %v1124_v26, 2  ;;  %v1139_v33 = vrot.slane %v1138_v27, 2  ;;  %v1119_v45 = vadd.f32 %v1118_v28, %v1117_v17  ;;  %v1133_v34 = vadd.f32 %v1132_v29, %v1131_v18 }
 0x10d   : > { %v643_v50 = vadd.f32 %v642_v30, %v356_v35  ;;  %v720_v51 = vadd.f32 %v719_v31, %v364_v36  ;;  %v1040_v52 = vmax.f32 %v641_v37, 0.0  ;;  %v1042_v53 = vmax.f32 %v718_v38, 0.0 }
 0x10e   : > { %v1126_v0 = vadd.f32 %v1125_v32, %v1124_v26  ;;  %v1140_v44 = vadd.f32 %v1139_v33, %v1138_v27  ;;  %v1120_v61 = vrot.slane %v1119_v45, 1  ;;  %v1134_v62 = vrot.slane %v1133_v34, 1 }
 0x10f   : > { %v646_v46 = vpop.f32.mrf.mxu0  ;;  %v723_v47 = vpop.f32.mrf.mxu1  ;;  %v1041_v2 = vmax.f32 %v643_v50, 0.0  ;;  %v1043_v3 = vmax.f32 %v720_v51, 0.0  ;;  %v1799_v26 = vsub.s32 %v1249_v7, %v1767_v39  ;;  %v376_v30 = vrot.slane %v1793_v6, %v343_v41 }
 0x110   : > { %v647_v54 = vadd.f32 %v646_v46, %v352_v21  ;;  %v724_v55 = vadd.f32 %v723_v47, %v360_v23  ;;  %v1127_v58 = vrot.slane %v1126_v0, 1  ;;  %v1141_v42 = vrot.slane %v1140_v44, 1 }
 0x111   : > { %v648_v56 = vpop.f32.mrf.mxu0  ;;  %v725_v57 = vpop.f32.mrf.mxu1  ;;  %v1121_v21 = vadd.f32 %v1120_v61, %v1119_v45  ;;  %v1135_v22 = vadd.f32 %v1134_v62, %v1133_v34  ;;  %v380_v41 = vrot.slane %v1793_v6, %v347_v43 }
 0x112   : > { %v649_v59 = vadd.f32 %v648_v56, %v356_v35  ;;  %v726_v60 = vadd.f32 %v725_v57, %v364_v36  ;;  %v1056_v63 = vmax.f32 %v647_v54, 0.0  ;;  %v1058_v1 = vmax.f32 %v724_v55, 0.0 }
 0x113   : > { %v1128_v12 = vadd.f32 %v1127_v58, %v1126_v0  ;;  %v1142_v13 = vadd.f32 %v1141_v42, %v1140_v44  ;;  %v372_v0 = vrot.slane %v1793_v6, %v339_v25 }
 0x114   : > { %v1057_v4 = vmax.f32 %v649_v59, 0.0  ;;  %v1059_v5 = vmax.f32 %v726_v60, 0.0  ;;  %v1143_v8 = vadd.f32 %v1056_v63, %v1040_v52  ;;  %v1157_v11 = vadd.f32 %v1058_v1, %v1042_v53 }
 0x115   : > { %v1243_v32 = vcombine.low %v1121_v21, %v1128_v12  ;;  %v1244_v33 = vcombine.low %v1135_v22, %v1142_v13 }
 0x116   : > { %v1150_v14 = vadd.f32 %v1057_v4, %v1041_v2  ;;  %v1164_v17 = vadd.f32 %v1059_v5, %v1043_v3  ;;  %v1144_v18 = vrot.slane %v1143_v8, 4  ;;  %v1158_v19 = vrot.slane %v1157_v11, 4 }
 0x117   : > { %v1253_v50 = vrot.slane %v1243_v32, %v1799_v26  ;;  %v1260_v51 = vrot.slane %v1244_v33, %v1799_v26 }
 0x118   : > { %v1151_v23 = vrot.slane %v1150_v14, 4  ;;  %v1165_v24 = vrot.slane %v1164_v17, 4  ;;  %v1145_v27 = vadd.f32 %v1144_v18, %v1143_v8  ;;  %v1159_v28 = vadd.f32 %v1158_v19, %v1157_v11 }
 0x119   : > { %v794_v29 = vpop.f32.mrf.mxu0  ;;  %v871_v31 = vpop.f32.mrf.mxu1 }
 0x11a   : > { %v1152_v35 = vadd.f32 %v1151_v23, %v1150_v14  ;;  %v1166_v36 = vadd.f32 %v1165_v24, %v1164_v17  ;;  %v1146_v40 = vrot.slane %v1145_v27, 2  ;;  %v1160_v37 = vrot.slane %v1159_v28, 2 }
 0x11b   : > { %v795_v38 = vadd.f32 %v794_v29, %v368_v20  ;;  %v796_v44 = vpop.f32.mrf.mxu0  ;;  %v873_v45 = vpop.f32.mrf.mxu1  ;;  %v872_v49 = vadd.f32 %v871_v31, %v376_v30  ;;  %v1275_v23 = vcombine.low %v1253_v50, %v1260_v51 }
 0x11c   : > { %v1153_v34 = vrot.slane %v1152_v35, 2  ;;  %v1167_v46 = vrot.slane %v1166_v36, 2  ;;  %v1147_v47 = vadd.f32 %v1146_v40, %v1145_v27  ;;  %v1161_v48 = vadd.f32 %v1160_v37, %v1159_v28 }
 0x11d   : > { %v1044_v25 = vmax.f32 %v795_v38, 0.0  ;;  %v797_v56 = vadd.f32 %v796_v44, %v372_v0  ;;  %v1046_v1 = vmax.f32 %v872_v49, 0.0  ;;  %v874_v43 = vadd.f32 %v873_v45, %v380_v41 }
 0x11e   : > { %v1154_v52 = vadd.f32 %v1153_v34, %v1152_v35  ;;  %v1168_v53 = vadd.f32 %v1167_v46, %v1166_v36  ;;  %v1148_v54 = vrot.slane %v1147_v47, 1  ;;  %v1162_v55 = vrot.slane %v1161_v48, 1 }
 0x11f   : > { %v800_v57 = vpop.f32.mrf.mxu0  ;;  %v877_v58 = vpop.f32.mrf.mxu1  ;;  %v1045_v19 = vmax.f32 %v797_v56, 0.0  ;;  %v1047_v21 = vmax.f32 %v874_v43, 0.0  ;;  %v384_v36 = vrot.slane %v1793_v6, %v351_v9  ;;  %v392_v37 = vrot.slane %v1793_v6, %v359_v10 }
 0x120   : > { %v1155_v42 = vrot.slane %v1154_v52, 1  ;;  %v1169_v59 = vrot.slane %v1168_v53, 1  ;;  %v801_v60 = vadd.f32 %v800_v57, %v368_v20  ;;  %v878_v61 = vadd.f32 %v877_v58, %v376_v30 }
 0x121   : > { %v1149_v62 = vadd.f32 %v1148_v54, %v1147_v47  ;;  %v1163_v63 = vadd.f32 %v1162_v55, %v1161_v48  ;;  %v802_v2 = vpop.f32.mrf.mxu0  ;;  %v879_v3 = vpop.f32.mrf.mxu1  ;;  %v388_v47 = vrot.slane %v1793_v6, %v355_v15  ;;  %v396_v10 = vrot.slane %v1793_v6, %v363_v16 }
 0x122   : > { %v1156_v4 = vadd.f32 %v1155_v42, %v1154_v52  ;;  %v1170_v5 = vadd.f32 %v1169_v59, %v1168_v53  ;;  %v1060_v7 = vmax.f32 %v801_v60, 0.0  ;;  %v1062_v8 = vmax.f32 %v878_v61, 0.0 }
 0x123   : > { %v803_v11 = vadd.f32 %v802_v2, %v372_v0  ;;  %v880_v12 = vadd.f32 %v879_v3, %v380_v41  ;;  %v1283_v0 = vrot.slane %v1275_v23, %v1799_v26 }
 0x124   : > { %v1245_v13 = vcombine.low %v1149_v62, %v1156_v4  ;;  %v1246_v14 = vcombine.low %v1163_v63, %v1170_v5  ;;  %v1171_v17 = vadd.f32 %v1060_v7, %v1044_v25  ;;  %v1185_v18 = vadd.f32 %v1062_v8, %v1046_v1 }
 0x125   : > { %v1061_v20 = vmax.f32 %v803_v11, 0.0  ;;  %v1063_v22 = vmax.f32 %v880_v12, 0.0 }
 0x126   : > { %v1267_v24 = vrot.slane %v1245_v13, %v1799_v26  ;;  %v1274_v27 = vrot.slane %v1246_v14, %v1799_v26  ;;  %v1172_v28 = vrot.slane %v1171_v17, 4  ;;  %v1186_v32 = vrot.slane %v1185_v18, 4 }
 0x127   : > { %v1178_v29 = vadd.f32 %v1061_v20, %v1045_v19  ;;  %v1192_v30 = vadd.f32 %v1063_v22, %v1047_v21 }
 0x128   : > { %v1276_v31 = vcombine.low %v1267_v24, %v1274_v27  ;;  %v1173_v45 = vadd.f32 %v1172_v28, %v1171_v17  ;;  %v1187_v41 = vadd.f32 %v1186_v32, %v1185_v18 }
 0x129   : > { %v1179_v33 = vrot.slane %v1178_v29, 4  ;;  %v1193_v35 = vrot.slane %v1192_v30, 4  ;;  %v948_v40 = vpop.f32.mrf.mxu0  ;;  %v1025_v38 = vpop.f32.mrf.mxu1 }
 0x12a   : > { %v1290_v44 = vrot.slane %v1276_v31, %v1799_v26  ;;  %v949_v50 = vadd.f32 %v948_v40, %v384_v36  ;;  %v1026_v51 = vadd.f32 %v1025_v38, %v392_v37  ;;  %v1174_v25 = vrot.slane %v1173_v45, 2 }
 0x12b   : > { %v1180_v34 = vadd.f32 %v1179_v33, %v1178_v29  ;;  %v1194_v46 = vadd.f32 %v1193_v35, %v1192_v30  ;;  %v950_v48 = vpop.f32.mrf.mxu0  ;;  %v1027_v49 = vpop.f32.mrf.mxu1  ;;  %v1188_v16 = vrot.slane %v1187_v41, 2 }
 0x12c   : > { %v1291_v9 = vcombine.low %v1283_v0, %v1290_v44  ;;  %v951_v56 = vadd.f32 %v950_v48, %v388_v47  ;;  %v1028_v6 = vadd.f32 %v1027_v49, %v396_v10  ;;  %v1048_v59 = vmax.f32 %v949_v50, 0.0 }
 0x12d   : > { %v954_v52 = vpop.f32.mrf.mxu0  ;;  %v1031_v53 = vpop.f32.mrf.mxu1  ;;  %v1181_v54 = vrot.slane %v1180_v34, 2  ;;  %v1195_v55 = vrot.slane %v1194_v46, 2  ;;  %v1050_v60 = vmax.f32 %v1026_v51, 0.0  ;;  %v1175_v3 = vadd.f32 %v1174_v25, %v1173_v45 }
 0x12e   : > { %v1352_v15 = vmul.f32 0.0625, %v1291_v9  ;;  %v955_v57 = vadd.f32 %v954_v52, %v384_v36  ;;  %v1032_v42 = vadd.f32 %v1031_v53, %v392_v37  ;;  %v1049_v4 = vmax.f32 %v951_v56, 0.0 }
 0x12f   : > { %v956_v39 = vpop.f32.mrf.mxu0  ;;  %v1033_v58 = vpop.f32.mrf.mxu1  ;;  %v1182_v63 = vadd.f32 %v1181_v54, %v1180_v34  ;;  %v1196_v1 = vadd.f32 %v1195_v55, %v1194_v46  ;;  %v1189_v8 = vadd.f32 %v1188_v16, %v1187_v41  ;;  %v1051_v11 = vmax.f32 %v1028_v6, 0.0 }
 0x130   : > { %1354 = vst [vmem:[%s1833_s11] sm:$0xff] %v1352_v15  ;;  %v1064_v61 = vmax.f32 %v955_v57, 0.0  ;;  %v957_v62 = vadd.f32 %v956_v39, %v388_v47  ;;  %v1066_v43 = vmax.f32 %v1032_v42, 0.0  ;;  %v1034_v2 = vadd.f32 %v1033_v58, %v396_v10 }
 0x131   : > { %v1183_v18 = vrot.slane %v1182_v63, 1  ;;  %v1197_v19 = vrot.slane %v1196_v1, 1  ;;  %v1176_v24 = vrot.slane %v1175_v3, 1  ;;  %v1190_v27 = vrot.slane %v1189_v8, 1 }
 0x132   : > { %v1199_v5 = vadd.f32 %v1064_v61, %v1048_v59  ;;  %v1065_v7 = vmax.f32 %v957_v62, 0.0  ;;  %v1213_v12 = vadd.f32 %v1066_v43, %v1050_v60  ;;  %v1067_v13 = vmax.f32 %v1034_v2, 0.0 }
 0x133   : > { %v1184_v32 = vadd.f32 %v1183_v18, %v1182_v63  ;;  %v1198_v33 = vadd.f32 %v1197_v19, %v1196_v1  ;;  %v1177_v38 = vadd.f32 %v1176_v24, %v1175_v3  ;;  %v1191_v0 = vadd.f32 %v1190_v27, %v1189_v8 }
 0x134   : > { %v1200_v14 = vrot.slane %v1199_v5, 4  ;;  %v1206_v17 = vadd.f32 %v1065_v7, %v1049_v4  ;;  %v1214_v21 = vrot.slane %v1213_v12, 4  ;;  %v1220_v20 = vadd.f32 %v1067_v13, %v1051_v11 }
 0x135   : > { %v1292_v47 = vcombine.low %v1177_v38, %v1184_v32  ;;  %v1293_v48 = vcombine.low %v1191_v0, %v1198_v33 }
 0x136   : > { %v1201_v22 = vadd.f32 %v1200_v14, %v1199_v5  ;;  %v1207_v23 = vrot.slane %v1206_v17, 4  ;;  %v1215_v28 = vadd.f32 %v1214_v21, %v1213_v12  ;;  %v1221_v29 = vrot.slane %v1220_v20, 4 }
 0x137   : > { %v1302_v52 = vrot.slane %v1292_v47, %v1799_v26  ;;  %v1309_v53 = vrot.slane %v1293_v48, %v1799_v26 }
 0x138   : > { %v1202_v30 = vrot.slane %v1201_v22, 2  ;;  %v1208_v31 = vadd.f32 %v1207_v23, %v1206_v17  ;;  %v1216_v35 = vrot.slane %v1215_v28, 2  ;;  %v1222_v36 = vadd.f32 %v1221_v29, %v1220_v20 }
 0x139   : > { %v1324_v57 = vcombine.low %v1302_v52, %v1309_v53 }
 0x13a   : > { %v1203_v40 = vadd.f32 %v1202_v30, %v1201_v22  ;;  %v1209_v37 = vrot.slane %v1208_v31, 2  ;;  %v1217_v44 = vadd.f32 %v1216_v35, %v1215_v28  ;;  %v1223_v45 = vrot.slane %v1222_v36, 2 }
 0x13b   : > { %v1332_v16 = vrot.slane %v1324_v57, %v1799_v26 }
 0x13c   : > { %v1204_v34 = vrot.slane %v1203_v40, 1  ;;  %v1210_v46 = vadd.f32 %v1209_v37, %v1208_v31  ;;  %v1218_v49 = vrot.slane %v1217_v44, 1  ;;  %v1224_v9 = vadd.f32 %v1223_v45, %v1222_v36 }
 0x13e   : > { %v1211_v41 = vrot.slane %v1210_v46, 1  ;;  %v1225_v10 = vrot.slane %v1224_v9, 1  ;;  %v1205_v50 = vadd.f32 %v1204_v34, %v1203_v40  ;;  %v1219_v15 = vadd.f32 %v1218_v49, %v1217_v44 }
 0x140   : > { %v1212_v51 = vadd.f32 %v1211_v41, %v1210_v46  ;;  %v1226_v54 = vadd.f32 %v1225_v10, %v1224_v9 }
 0x142   : > { %v1294_v55 = vcombine.low %v1205_v50, %v1212_v51  ;;  %v1295_v25 = vcombine.low %v1219_v15, %v1226_v54 }
 0x144   : > { %v1316_v56 = vrot.slane %v1294_v55, %v1799_v26  ;;  %v1323_v39 = vrot.slane %v1295_v25, %v1799_v26 }
 0x146   : > { %v1325_v58 = vcombine.low %v1316_v56, %v1323_v39 }
 0x148   : > { %v1339_v6 = vrot.slane %v1325_v58, %v1799_v26 }
 0x14a   : > { %v1340_v42 = vcombine.low %v1332_v16, %v1339_v6 }
 0x14c   : > { %v1353_v59 = vmul.f32 0.0625, %v1340_v42 }
 0x14e   : > { %1355 = vst [vmem:[%s1833_s11 + $0x8] sm:$0xff] %v1353_v59 }
 0x14f PF: > { %s15_s14 = sadd.s32 1, %s1608_s14   ;;  %s1859_s12 = smov %s1604_s13 }
 0x150   : > { %p12_p4 = scmp.ge.s32.totalorder %s15_s14, 4   ;;  %s1860_s13 = smov %s1862_s16 }
 0x152   :  { %14 = sbr.rel (!%p12_p4) target bundleno = 3 (0x3), region = 79 }
 0x157   :  { %1375 = vsyncpa [#allocation4], 1 }
 0x158   :  { %1377 = vsyncpa [#allocation4 + $0x1], 1 }
 0x159   :  { %1378 = vsyncpa [#allocation6], 1 }

// kernel: forward.3
= control target key start
LH: loop header
LB: loop body
LE: loop exit
PB: predicated region body
PF: predicated region fallthrough
CT: control target
= control target key end

     0   :  { %s19051_s0 = inlined_call_operand.vmem [shape: f32[2,2048], index: 0, kind: input, shape index: {}]   ;;  %s19052_s1 = inlined_call_operand.hbm [shape: f32[2048,128], index: 1, kind: input, shape index: {}]   ;;  %s19053_s2 = inlined_call_operand.hbm [shape: f32[1,128], index: 2, kind: input, shape index: {}]   ;;  %s19054_s3 = inlined_call_operand.vmem [shape: f32[128,3], index: 3, kind: input, shape index: {}]   ;;  %s19055_s4 = inlined_call_operand.hbm [shape: f32[1,3], index: 4, kind: input, shape index: {}]   ;;  %s19056_s5 = inlined_call_operand.hbm [shape: bf16[3,2048,1024], index: 5, kind: input, shape index: {}]   ;;  %s19057_s6 = inlined_call_operand.hbm [shape: f32[3,1,1024], index: 6, kind: input, shape index: {}]   ;;  %s19058_s7 = inlined_call_operand.hbm [shape: bf16[3,1024,1024], index: 7, kind: input, shape index: {}]   ;;  %s19059_s8 = inlined_call_operand.hbm [shape: f32[3,1,1024], index: 8, kind: input, shape index: {}]   ;;  %s19060_s9 = inlined_call_operand.hbm [shape: bf16[3,1024,128], index: 9, kind: input, shape index: {}]   ;;  %s19061_s10 = inlined_call_operand.hbm [shape: f32[3,1,128], index: 10, kind: input, shape index: {}]   ;;  %s19062_s11 = inlined_call_operand.hbm [shape: f32[2,128], index: 11, kind: output, shape index: {}]  }
   0x1   :  { %19076 = sst [smem:[#allocation28_spill]] %s19051_s0 }
   0x2   :  { %19077 = sst [smem:[#allocation29_spill]] %s19053_s2 }
   0x3   :  { %19078 = sst [smem:[#allocation30_spill]] %s19054_s3 }
   0x4   :  { %19079 = sst [smem:[#allocation31_spill]] %s19056_s5 }
   0x5   :  { %19080 = sst [smem:[#allocation32_spill]] %s19062_s11 }
   0x6   :  { %16 = vsyncpa [#allocation4], 0 }
   0x7   :  { %17 = vsyncpa [#allocation7], 0 }
   0x8   :  { %18 = vsyncpa [#allocation10], 0 }
   0x9   :  { %20 = vsyncpa [#allocation10 + $0x1], 0 }
   0xa   :  { %21 = vsyncpa [#allocation13], 0 }
   0xb   :  { %23 = vsyncpa [#allocation13 + $0x1], 0 }
   0xc   :  { %24 = vsyncpa [#allocation16], 0 }
   0xd   :  { %26 = vsyncpa [#allocation16 + $0x1], 0 }
   0xe   :  { %27 = vsyncpa [#allocation5], 0  ;;  %s16589_s17 = smov 0   ;;  %s16591_s18 = smov 0  }
   0xf   :  { %s16593_s19 = smov 0   ;;  %s16595_s20 = smov 0  }
  0x10 LB: > { %19081 = sst [smem:[#allocation25_spill]] %s16502_s19  ;;  %s16608_s21 = sadd.s32 4294967295, %s16506_s20   ;;  %s16506_s20 = sphi %s16595_s20, %s19107_s20   ;;  %s16502_s19 = sphi %s16593_s19, %s19109_s19   ;;  %s16498_s18 = sphi %s16591_s18, %s19111_s18   ;;  %s16494_s17 = sphi %s16589_s17, %s19110_s17  }
  0x11   : > { %s16611_s22 = sadd.s32 1, %s16506_s20   ;;  %s145_s24 = sadd.s32 1, %s16502_s19 }
  0x12   : > { %19082 = sst [smem:[#allocation26_spill]] %s16611_s22  ;;  %s142_s23 = ssub.s32 %s16506_s20, %s16611_s22 }
  0x13   : > { %p143_p0 = scmp.eq.s32.totalorder %s142_s23, 0  ;;  %p152_p1 = scmp.ne.s32.totalorder %s16502_s19, %s16498_s18 }
  0x14   : > { %p153_p2 = scmp.eq.s32.totalorder %s16506_s20, 0  ;;  %p158_p3 = scmp.ne.s32.totalorder %s16498_s18, %s16494_s17 }
  0x15   : > { %s16621_s25 = scalar_select %p143_p0, %s16502_s19, %s145_s24  }
  0x16   : > { %p16623_p4 = por %p153_p2, %p152_p1  ;;  %p19067_p5 = scmp.eq.s32.totalorder %s16608_s21, 0 }
  0x17   : > { %19083 = sst [smem:[#allocation27_spill]] %s16621_s25  ;;  %p13933_p6 = scmp.ge.s32.totalorder %s16506_s20, 1 }
  0x18   : > { %p320_p7 = scmp.lt.s32.totalorder %s16506_s20, 4  ;;  %p16632_p8 = por %p19067_p5, %p158_p3 }
  0x19   : > { %s16508_s29 = smov [#allocation6]   ;;  %p16057_p12 = scmp.lt.s32.totalorder %s16506_s20, 3 }
  0x1a   : > { %s19085_s27 = scalar_select %p16632_p8, 1, 0 }
  0x1b   : > { %p16637_p10 = pnand %p13933_p6, %p320_p7  ;;  %s349_s30 = sshll.u32 %s16508_s29, 4  ;;  %s350_s30 = int_to_ptr.vmem [resolvable:$true] %s349_s30 }
  0x1c   : > { %s16645_s12 = sand.u32 1, %s16506_s20   ;;  %p16655_p0 = pnand %p16057_p12, %p16623_p4 }
  0x1d   : > { %s19086_s28 = scalar_select %p16637_p10, 1, 0 }
  0x1e   : > { %p16025_p11 = pneg %p16637_p10  ;;  %s16660_s15 = sand.u32 1, %s16502_s19  }
  0x1f   : > { %s13938_s16 = sshll.u32 %s16660_s15, 13  ;;  %s16193_s17 = scalar_lea.vmem %s350_s30, 16 }
  0x20   : > { %p16649_p13 = pnand %p16025_p11, %p19067_p5  ;;  %p16194_p2 = scmp.ne.s32.totalorder %s350_s30, %s16193_s17 }
  0x21   : > { %s16200_s23 = scalar_lea.vmem %s350_s30, 32  ;;  %p16201_p7 = scmp.lt.s32.totalorder %s350_s30, %s350_s30 }
  0x22   : > { %s19087_s13 = scalar_select %p16649_p13, 1, 0 }
  0x23   : > { %p19068_p1 = pneg %p16649_p13  ;;  %p16202_p11 = scmp.lt.s32.totalorder %s16200_s23, %s16193_s17 }
  0x25   : > { %p16196_p3 = pnand %p16194_p2, %p19068_p1  ;;  %p16203_p9 = por %p16202_p11, %p16201_p7 }
  0x27   : > { %p16197_p6 = pneg %p16196_p3 }
  0x29   : > { %p16204_p4 = pnand %p16203_p9, %p16197_p6 }
  0x2b   : > { %16207 = shalt.err (!%p16204_p4)
}
  0x2c   : > { %s19089_s2 = sld [smem:[#allocation29_spill]]  ;;  %s15572_s29 = sshll.u32 %s16506_s20, 17 }
  0x2d   : > { %s378_s25 = scalar_lea.vmem [#allocation9], %s13938_s16  ;;  %s19090_s5 = sld [smem:[#allocation31_spill]] }
  0x2e   : > { %s385_s19 = sshll.u32 %s378_s25, 4  ;;  %s19074_s17 = scalar_lea.sflag [#allocation10], %s16645_s12  ;;  %s16679_s19 = int_to_ptr.vmem [resolvable:$true] %s385_s19 }
  0x2f   : > { %p16686_p12 = pneg %p16655_p0 }
  0x32   : > { %16031 = dma.hbm_to_vmem [thread:$0]  (!%p16649_p13), %s19089_s2, 16, %s350_s30, [#allocation7]  }
  0x33   : > { %s16677_s3 = scalar_lea.hbm %s19090_s5, %s15572_s29  ;;  %s16213_s25 = scalar_lea.hbm %s19090_s5, 393216 }
  0x34   : > { %s16208_s23 = scalar_lea.hbm %s16677_s3, 131072  ;;  %p16214_p6 = scmp.lt.s32.totalorder %s16677_s3, %s19090_s5 }
  0x35   : > { %p16209_p9 = scmp.ne.s32.totalorder %s16677_s3, %s16208_s23  ;;  %p16215_p7 = scmp.lt.s32.totalorder %s16213_s25, %s16208_s23 }
  0x37   : > { %p16211_p2 = pnand %p16686_p12, %p16209_p9  ;;  %p16216_p11 = por %p16215_p7, %p16214_p6 }
  0x39   : > { %p16212_p3 = pneg %p16211_p2 }
  0x3b   : > { %p16217_p4 = pnand %p16216_p11, %p16212_p3 }
  0x3d   : > { %16220 = shalt.err (!%p16217_p4)
}
  0x3e   : > { %s16221_s26 = scalar_lea.vmem %s16679_s19, 131072  ;;  %s16509_s29 = smov [#allocation9]  }
  0x3f   : > { %p16222_p5 = scmp.ne.s32.totalorder %s16679_s19, %s16221_s26  ;;  %s16226_s11 = sshll.u32 %s16509_s29, 4  ;;  %s16227_s11 = int_to_ptr.vmem [resolvable:$false] %s16226_s11 }
  0x40   : > { %s16228_s22 = scalar_lea.vmem %s16227_s11, 262144  ;;  %p16229_p1 = scmp.lt.s32.totalorder %s16679_s19, %s16227_s11 }
  0x41   : > { %p16224_p9 = pnand %p16222_p5, %p16686_p12  ;;  %p16230_p8 = scmp.lt.s32.totalorder %s16228_s22, %s16221_s26 }
  0x43   : > { %p16225_p2 = pneg %p16224_p9  ;;  %p16231_p10 = por %p16230_p8, %p16229_p1 }
  0x45   : > { %p16232_p13 = pnand %p16231_p10, %p16225_p2 }
  0x47   : > { %16235 = shalt.err (!%p16232_p13)
}
  0x48   : > { %s16510_s23 = smov 512   ;;  %s16511_s25 = smov 32  }
  0x49   : > { %16038 = dma.hbm_to_vmem [thread:$0]  (!%p16655_p0), %s16677_s3, 131072, %s16679_s19, %s19074_s17, %s16510_s23, %s16510_s23, %s16511_s25  }
  0x4a   : > { %s13944_s30 = sshll.u32 %s16660_s15, 12  ;;  %s15574_s16 = sshll.u32 %s16506_s20, 16 }
  0x4b   : > { %s16718_s11 = scalar_lea.hbm %s19058_s7, %s15574_s16  ;;  %s418_s22 = scalar_lea.vmem [#allocation12], %s13944_s30 }
  0x4c   : > { %s425_s2 = sshll.u32 %s418_s22, 4  ;;  %s415_s5 = scalar_lea.sflag [#allocation13], %s16645_s12  ;;  %s16720_s2 = int_to_ptr.vmem [resolvable:$true] %s425_s2 }
  0x4d   : > { %s16236_s0 = scalar_lea.hbm %s16718_s11, 65536  ;;  %s16241_s17 = scalar_lea.hbm %s19058_s7, 196608 }
  0x4e   : > { %p16237_p5 = scmp.ne.s32.totalorder %s16718_s11, %s16236_s0  ;;  %p16242_p13 = scmp.lt.s32.totalorder %s16718_s11, %s19058_s7 }
  0x4f   : > { %p16243_p1 = scmp.lt.s32.totalorder %s16241_s17, %s16236_s0 }
  0x50   : > { %p16239_p8 = pnand %p16237_p5, %p16686_p12 }
  0x51   : > { %p16244_p3 = por %p16243_p1, %p16242_p13 }
  0x52   : > { %p16240_p10 = pneg %p16239_p8 }
  0x54   : > { %p16245_p6 = pnand %p16244_p3, %p16240_p10 }
  0x56   : > { %16248 = shalt.err (!%p16245_p6)
}
  0x57   : > { %s16249_s30 = scalar_lea.vmem %s16720_s2, 65536  ;;  %s16512_s29 = smov [#allocation12]  }
  0x58   : > { %p16250_p7 = scmp.ne.s32.totalorder %s16720_s2, %s16249_s30  ;;  %s16254_s22 = sshll.u32 %s16512_s29, 4  ;;  %s16255_s22 = int_to_ptr.vmem [resolvable:$false] %s16254_s22 }
  0x59   : > { %s16256_s3 = scalar_lea.vmem %s16255_s22, 131072  ;;  %p16257_p9 = scmp.lt.s32.totalorder %s16720_s2, %s16255_s22 }
  0x5a   : > { %p16252_p11 = pnand %p16250_p7, %p16686_p12  ;;  %p16258_p2 = scmp.lt.s32.totalorder %s16256_s3, %s16249_s30 }
  0x5c   : > { %p16253_p4 = pneg %p16252_p11  ;;  %p16259_p5 = por %p16258_p2, %p16257_p9 }
  0x5e   : > { %p16260_p8 = pnand %p16259_p5, %p16253_p4 }
  0x60   : > { %16263 = shalt.err (!%p16260_p8)
}
  0x61   : > { %16044 = dma.hbm_to_vmem [thread:$0]  (!%p16655_p0), %s16718_s11, 65536, %s16720_s2, %s415_s5, %s16510_s23, %s16510_s23, %s16511_s25  }
  0x62   : > { %s13950_s0 = sshll.u32 %s16660_s15, 9  ;;  %s15576_s17 = sshll.u32 %s16506_s20, 13 }
  0x63   : > { %s16753_s16 = scalar_lea.hbm %s19060_s9, %s15576_s17  ;;  %s458_s30 = scalar_lea.vmem [#allocation15], %s13950_s0 }
  0x64   : > { %s465_s29 = sshll.u32 %s458_s30, 4  ;;  %s19075_s22 = scalar_lea.sflag [#allocation16], %s16645_s12  ;;  %s16755_s29 = int_to_ptr.vmem [resolvable:$true] %s465_s29 }
  0x65   : > { %s16264_s3 = scalar_lea.hbm %s16753_s16, 8192  ;;  %s16269_s25 = scalar_lea.hbm %s19060_s9, 24576 }
  0x66   : > { %p16265_p10 = scmp.ne.s32.totalorder %s16753_s16, %s16264_s3  ;;  %p16270_p3 = scmp.lt.s32.totalorder %s16753_s16, %s19060_s9 }
  0x67   : > { %p16271_p6 = scmp.lt.s32.totalorder %s16269_s25, %s16264_s3 }
  0x68   : > { %p16267_p13 = pnand %p16265_p10, %p16686_p12 }
  0x69   : > { %p16272_p7 = por %p16271_p6, %p16270_p3 }
  0x6a   : > { %p16268_p1 = pneg %p16267_p13 }
  0x6c   : > { %p16273_p11 = pnand %p16272_p7, %p16268_p1 }
  0x6e   : > { %16276 = shalt.err (!%p16273_p11)
}
  0x6f   : > { %s16277_s0 = scalar_lea.vmem %s16755_s29, 8192  ;;  %s16513_s19 = smov [#allocation15]  }
  0x70   : > { %p16278_p4 = scmp.ne.s32.totalorder %s16755_s29, %s16277_s0  ;;  %s16282_s26 = sshll.u32 %s16513_s19, 4  ;;  %s16283_s26 = int_to_ptr.vmem [resolvable:$false] %s16282_s26 }
  0x71   : > { %s16284_s30 = scalar_lea.vmem %s16283_s26, 16384  ;;  %p16285_p5 = scmp.lt.s32.totalorder %s16755_s29, %s16283_s26 }
  0x72   : > { %p16280_p9 = pnand %p16278_p4, %p16686_p12  ;;  %p16286_p8 = scmp.lt.s32.totalorder %s16284_s30, %s16277_s0 }
  0x74   : > { %p16281_p2 = pneg %p16280_p9  ;;  %p16287_p10 = por %p16286_p8, %p16285_p5 }
  0x76   : > { %p16288_p13 = pnand %p16287_p10, %p16281_p2 }
  0x78   : > { %16291 = shalt.err (!%p16288_p13)
}
  0x79   : > { %s16514_s3 = smov 64   ;;  %s16515_s2 = smov 4  }
  0x7a   : > { %16050 = dma.hbm_to_vmem [thread:$0]  (!%p16655_p0), %s16753_s16, 8192, %s16755_s29, %s19075_s22, %s16514_s3, %s16514_s3, %s16515_s2  }
  0x7b   : > { %s16516_s23 = smov [#allocation3]   ;;  %p19092_p3 = scmp.ne.s32.totalorder %s19087_s13, 0 }
  0x7c   : > { %s335_s25 = sshll.u32 %s16516_s23, 4  ;;  %s336_s25 = int_to_ptr.vmem [resolvable:$true] %s335_s25 }
  0x7d   : > { %s16303_s11 = scalar_lea.vmem %s336_s25, 32768  ;;  %p19093_p6 = pneg %p19092_p3 }
  0x7e   : > { %p16304_p1 = scmp.ne.s32.totalorder %s336_s25, %s16303_s11  ;;  %p16311_p4 = scmp.lt.s32.totalorder %s336_s25, %s336_s25 }
  0x7f   : > { %p16312_p9 = scmp.lt.s32.totalorder %s16303_s11, %s16303_s11 }
  0x80   : > { %p16306_p7 = pnand %p16304_p1, %p19093_p6 }
  0x81   : > { %p16313_p2 = por %p16312_p9, %p16311_p4 }
  0x82   : > { %p16307_p11 = pneg %p16306_p7 }
  0x84   : > { %p16314_p5 = pnand %p16313_p2, %p16307_p11 }
  0x86   : > { %16317 = shalt.err (!%p16314_p5)
}
  0x87   : > { %s16517_s17 = smov 128   ;;  %s16518_s0 = smov 8  }
  0x88   : > { %16028 = dma.hbm_to_vmem [thread:$0]  (!%p19092_p3), %s19052_s1, 32768, %s336_s25, [#allocation4], %s16517_s17, %s16517_s17, %s16518_s0  }
  0x89   : > { %s16519_s19 = smov [#allocation8]   ;;  %s13941_s30 = sshll.u32 %s16660_s15, 3 }
  0x8a   : > { %s363_s26 = sshll.u32 %s16519_s19, 4  ;;  %p19094_p10 = pmov %p19093_p6  ;;  %s364_s26 = int_to_ptr.vmem [resolvable:$true] %s363_s26 }
  0x8b   : > { %s16329_s3 = scalar_lea.vmem %s364_s26, 16  ;;  %s16336_s2 = scalar_lea.vmem %s364_s26, 32 }
  0x8c   : > { %p16330_p8 = scmp.ne.s32.totalorder %s364_s26, %s16329_s3  ;;  %p16337_p6 = scmp.lt.s32.totalorder %s364_s26, %s364_s26 }
  0x8d   : > { %p16338_p7 = scmp.lt.s32.totalorder %s16336_s2, %s16329_s3 }
  0x8e   : > { %p16332_p13 = pnand %p16330_p8, %p19094_p10 }
  0x8f   : > { %p16339_p11 = por %p16338_p7, %p16337_p6 }
  0x90   : > { %p16333_p1 = pneg %p16332_p13 }
  0x92   : > { %p16340_p4 = pnand %p16339_p11, %p16333_p1 }
  0x94   : > { %16343 = shalt.err (!%p16340_p4)
}
  0x95   : > { %16034 = dma.hbm_to_vmem [thread:$0]  (!%p19092_p3), %s19055_s4, 16, %s364_s26, [#allocation7]  }
  0x96   : > { %s15573_s11 = sshll.u32 %s16506_s20, 7  ;;  %s399_s17 = scalar_lea.vmem [#allocation11], %s13941_s30 }
  0x97   : > { %s407_s0 = sshll.u32 %s399_s17, 4  ;;  %s405_s19 = scalar_lea.hbm %s19057_s6, %s15573_s11  ;;  %s408_s0 = int_to_ptr.vmem [resolvable:$true] %s407_s0 }
  0x98   : > { %s16344_s3 = scalar_lea.hbm %s405_s19, 128  ;;  %s16349_s23 = scalar_lea.hbm %s19057_s6, 384 }
  0x99   : > { %p16345_p9 = scmp.ne.s32.totalorder %s405_s19, %s16344_s3  ;;  %p16350_p3 = scmp.lt.s32.totalorder %s405_s19, %s19057_s6 }
  0x9a   : > { %p16351_p8 = scmp.lt.s32.totalorder %s16349_s23, %s16344_s3 }
  0x9b   : > { %p16347_p2 = pnand %p16345_p9, %p16686_p12 }
  0x9c   : > { %p16352_p10 = por %p16351_p8, %p16350_p3 }
  0x9d   : > { %p16348_p5 = pneg %p16347_p2 }
  0x9f   : > { %p16353_p13 = pnand %p16352_p10, %p16348_p5 }
  0xa1   : > { %16356 = shalt.err (!%p16353_p13)
}
  0xa2   : > { %s16357_s17 = scalar_lea.vmem %s408_s0, 128  ;;  %s16520_s16 = smov [#allocation11]  }
  0xa3   : > { %p16358_p1 = scmp.ne.s32.totalorder %s408_s0, %s16357_s17  ;;  %s16362_s29 = sshll.u32 %s16520_s16, 4  ;;  %s16363_s29 = int_to_ptr.vmem [resolvable:$false] %s16362_s29 }
  0xa4   : > { %s16364_s22 = scalar_lea.vmem %s16363_s29, 256  ;;  %p16365_p11 = scmp.lt.s32.totalorder %s408_s0, %s16363_s29 }
  0xa5   : > { %p16360_p6 = pnand %p16358_p1, %p16686_p12  ;;  %p16366_p4 = scmp.lt.s32.totalorder %s16364_s22, %s16357_s17 }
  0xa7   : > { %p16361_p7 = pneg %p16360_p6  ;;  %p16367_p9 = por %p16366_p4, %p16365_p11 }
  0xa9   : > { %p16368_p2 = pnand %p16367_p9, %p16361_p7 }
  0xab   : > { %16371 = shalt.err (!%p16368_p2)
}
  0xac   : > { %s19095_s3 = scalar_lea.sflag [#allocation10], %s16645_s12  ;;  %s16824_s23 = scalar_lea.hbm %s19059_s8, %s15573_s11 }
  0xad   : > { %16041 = dma.hbm_to_vmem [thread:$0]  (!%p16655_p0), %s405_s19, 128, %s408_s0, %s19095_s3  }
  0xae   : > { %s439_s22 = scalar_lea.vmem [#allocation14], %s13941_s30  ;;  %s13953_s25 = sshll.u32 %s16506_s20, 4 }
  0xaf   : > { %s447_s26 = sshll.u32 %s439_s22, 4  ;;  %s16372_s17 = scalar_lea.hbm %s16824_s23, 128  ;;  %s448_s26 = int_to_ptr.vmem [resolvable:$true] %s447_s26 }
  0xb0   : > { %p16373_p5 = scmp.ne.s32.totalorder %s16824_s23, %s16372_s17  ;;  %s16377_s16 = scalar_lea.hbm %s19059_s8, 384 }
  0xb1   : > { %p16378_p10 = scmp.lt.s32.totalorder %s16824_s23, %s19059_s8  ;;  %p16379_p13 = scmp.lt.s32.totalorder %s16377_s16, %s16372_s17 }
  0xb2   : > { %p16375_p3 = pnand %p16373_p5, %p16686_p12 }
  0xb3   : > { %p16380_p1 = por %p16379_p13, %p16378_p10 }
  0xb4   : > { %p16376_p8 = pneg %p16375_p3 }
  0xb6   : > { %p16381_p6 = pnand %p16380_p1, %p16376_p8 }
  0xb8   : > { %16384 = shalt.err (!%p16381_p6)
}
  0xb9   : > { %s16385_s30 = scalar_lea.vmem %s448_s26, 128  ;;  %s16521_s20 = smov [#allocation14]  }
  0xba   : > { %p16386_p7 = scmp.ne.s32.totalorder %s448_s26, %s16385_s30  ;;  %s16390_s3 = sshll.u32 %s16521_s20, 4  ;;  %s16391_s3 = int_to_ptr.vmem [resolvable:$false] %s16390_s3 }
  0xbb   : > { %s16392_s13 = scalar_lea.vmem %s16391_s3, 256  ;;  %p16393_p9 = scmp.lt.s32.totalorder %s448_s26, %s16391_s3 }
  0xbc   : > { %p16388_p11 = pnand %p16386_p7, %p16686_p12  ;;  %p16394_p2 = scmp.lt.s32.totalorder %s16392_s13, %s16385_s30 }
  0xbe   : > { %p16389_p4 = pneg %p16388_p11  ;;  %p16395_p5 = por %p16394_p2, %p16393_p9 }
  0xc0   : > { %p16396_p3 = pnand %p16395_p5, %p16389_p4 }
  0xc2   : > { %16399 = shalt.err (!%p16396_p3)
}
  0xc3   : > { %16047 = dma.hbm_to_vmem [thread:$0]  (!%p16655_p0), %s16824_s23, 128, %s448_s26, %s415_s5  }
  0xc4   : > { %s483_s17 = scalar_lea.hbm %s19061_s10, %s13953_s25  ;;  %s478_s0 = scalar_lea.vmem [#allocation17], %s16660_s15 }
  0xc5   : > { %s485_s19 = sshll.u32 %s478_s0, 4  ;;  %s16400_s16 = scalar_lea.hbm %s483_s17, 16  ;;  %s486_s19 = int_to_ptr.vmem [resolvable:$true] %s485_s19 }
  0xc6   : > { %p16401_p8 = scmp.ne.s32.totalorder %s483_s17, %s16400_s16  ;;  %s16405_s30 = scalar_lea.hbm %s19061_s10, 48 }
  0xc7   : > { %p16406_p1 = scmp.lt.s32.totalorder %s483_s17, %s19061_s10  ;;  %p16407_p6 = scmp.lt.s32.totalorder %s16405_s30, %s16400_s16 }
  0xc8   : > { %p16403_p10 = pnand %p16401_p8, %p16686_p12 }
  0xc9   : > { %p16408_p7 = por %p16407_p6, %p16406_p1 }
  0xca   : > { %p16404_p13 = pneg %p16403_p10 }
  0xcc   : > { %p16409_p11 = pnand %p16408_p7, %p16404_p13 }
  0xce   : > { %16412 = shalt.err (!%p16409_p11)
}
  0xcf   : > { %s16413_s5 = scalar_lea.vmem %s486_s19, 16  ;;  %s16522_s15 = smov [#allocation17]  }
  0xd0   : > { %p16414_p4 = scmp.ne.s32.totalorder %s486_s19, %s16413_s5  ;;  %s16418_s23 = sshll.u32 %s16522_s15, 4  ;;  %s16419_s23 = int_to_ptr.vmem [resolvable:$false] %s16418_s23 }
  0xd1   : > { %s16420_s26 = scalar_lea.vmem %s16419_s23, 32  ;;  %p16421_p5 = scmp.lt.s32.totalorder %s486_s19, %s16419_s23 }
  0xd2   : > { %p16416_p9 = pnand %p16414_p4, %p16686_p12  ;;  %p16422_p3 = scmp.lt.s32.totalorder %s16420_s26, %s16413_s5 }
  0xd4   : > { %p16417_p2 = pneg %p16416_p9  ;;  %p16423_p8 = por %p16422_p3, %p16421_p5 }
  0xd6   : > { %p16424_p10 = pnand %p16423_p8, %p16417_p2 }
  0xd8   : > { %16427 = shalt.err (!%p16424_p10)
}
  0xd9   : > { %s19096_s25 = scalar_lea.sflag [#allocation16], %s16645_s12  ;;  %p19097_p13 = scmp.ne.s32.totalorder %s19086_s28, 0 }
  0xda   : > { %16053 = dma.hbm_to_vmem [thread:$0]  (!%p16655_p0), %s483_s17, 16, %s486_s19, %s19096_s25  }
  0xdb   : > { %494 = sbr.rel (%p19097_p13) target bundleno = 3129 (0xc39), region = 64  ;;  %p19098_p12 = scmp.eq.s32.totalorder (!%p19097_p13), %s16608_s21, 0 }
  0xe0   : > { %16469 = dma.done.wait (%p19098_p12), [#allocation4], 32768   ;;  %p19099_p1 = pmov %p19098_p12 }
  0xe2   : > { %16471 = vsyncadd (%p19099_p1), [#allocation4], 4294934528  ;;  %p19100_p6 = pmov %p19099_p1 }
  0xe3   : > { %p19101_p7 = pmov %p19099_p1 }
  0xe4   : > { %16473 = dma.done.wait (%p19100_p6), [#allocation7], 32  }
  0xe5   : > { %16475 = vsyncadd (%p19101_p7), [#allocation7], 4294967264  ;;  %s508_s12 = sand.u32 1, %s16608_s21   ;;  %s16877_s14 = sand.u32 1, %s16498_s18  }
  0xe6   : > { %s13958_s28 = sshll.u32 %s16877_s14, 13  ;;  %s509_s24 = scalar_lea.sflag [#allocation10], %s508_s12 }
  0xe7   : > { %s16880_s13 = scalar_lea.vmem [#allocation9], %s13958_s28  ;;  %p19102_p0 = scmp.ne.s32.totalorder %s19085_s27, 0 }
  0xe9   : > { %16477 = dma.done.wait (%p19102_p0), %s509_s24, 131200  }
  0xea   : > { %16479 = vsyncadd (%p19102_p0), %s509_s24, 4294836096  ;;  %s13959_s2 = sshll.u32 %s16877_s14, 3  ;;  %s13960_s22 = sshll.u32 %s16877_s14, 12 }
  0xeb   : > { %s16888_s17 = scalar_lea.vmem [#allocation11], %s13959_s2  ;;  %s527_s0 = scalar_lea.sflag [#allocation13], %s508_s12 }
  0xec   : > { %s16890_s19 = scalar_lea.vmem [#allocation12], %s13960_s22 }
  0xed   : > { %16481 = dma.done.wait (%p19102_p0), %s527_s0, 65664  }
  0xee   : > { %16483 = vsyncadd (%p19102_p0), %s527_s0, 4294901632  ;;  %s13962_s16 = sshll.u32 %s16877_s14, 9  ;;  %s16897_s29 = scalar_lea.vmem [#allocation14], %s13959_s2 }
  0xef   : > { %s545_s11 = scalar_lea.sflag [#allocation16], %s508_s12  ;;  %s16899_s30 = scalar_lea.vmem [#allocation15], %s13962_s16 }
  0xf0   : > { %16485 = dma.done.wait (%p19102_p0), %s545_s11, 8208  }
  0xf1   : > { %16487 = vsyncadd (%p19102_p0), %s545_s11, 4294959088  ;;  %s19103_s5 = sld [smem:[#allocation28_spill]]  ;;  %s556_s27 = scalar_lea.vmem [#allocation17], %s16877_s14 }
  0xf2   : > { %p19104_p11 = scmp.ne.s32.totalorder %s16608_s21, 0 }
  0xf3   : > { %s19105_s22 = sld [smem:[#allocation30_spill]] (!%p19104_p11) }
  0xf4   : > { %622 = sbr.rel (%p19104_p11) target bundleno = 1097 (0x449), region = 104 }
  0xf7   : > { %v16908_v0 = vld [vmem:[%s19103_s5] sm:$0xff]  ;;  %v16913_v1 = vld [vmem:[%s19103_s5 + $0x8] sm:$0xff]  ;;  %v16918_v2 = vld [vmem:[%s19103_s5 + $0x10] sm:$0xff] }
  0xf8   : > { %v16923_v3 = vld [vmem:[%s19103_s5 + $0x18] sm:$0xff] }
  0xf9   : > { %v654_v4 = vld [vmem:[#allocation3 + $0xf8] sm:$0xff]  ;;  %v653_v8 = vld [vmem:[#allocation3 + $0xf0] sm:$0xff]  ;;  %v652_v12 = vld [vmem:[#allocation3 + $0xe8] sm:$0xff]  ;;  %v16523_v34 = vmov 1983009808   ;;  %v894_v36 = vlaneseq  ;;  %v890_v60 = vcombine.high %v16908_v0, %v16908_v0  ;;  %vm16525_vm0 = vmmov 0  }
  0xfa   : > { %v686_v5 = vld [vmem:[#allocation3 + $0x1f8] sm:$0xff]  ;;  %15577 = vmatprep.subr.mxu0 %v654_v4  ;;  %v685_v9 = vld [vmem:[#allocation3 + $0x1f0] sm:$0xff]  ;;  %v684_v13 = vld [vmem:[#allocation3 + $0x1e8] sm:$0xff]  ;;  %v892_v35 = vunpack.c.l.s4 %v16523_v34  ;;  %vm1628_vm1 = vcmask 17408  }
  0xfb   : > { %v638_v6 = vld [vmem:[#allocation3 + $0x78] sm:$0xff]  ;;  %15612 = vmatprep.subr.mxu1 %v686_v5  ;;  %v637_v10 = vld [vmem:[#allocation3 + $0x70] sm:$0xff]  ;;  %v636_v14 = vld [vmem:[#allocation3 + $0x68] sm:$0xff]  ;;  %v895_v46 = vshrl.u32 %v894_v36, 7 }
  0xfc   : > { %v670_v7 = vld [vmem:[#allocation3 + $0x178] sm:$0xff]  ;;  %15578 = vmatpush3.msra.mxu0 %v638_v6  ;;  %v669_v11 = vld [vmem:[#allocation3 + $0x170] sm:$0xff]  ;;  %v668_v15 = vld [vmem:[#allocation3 + $0x168] sm:$0xff]  ;;  %v893_v45 = vunpack.c.0.s8 %v892_v35 }
  0xfd   : > { %15613 = vmatpush3.msra.mxu1 %v670_v7  ;;  %15579 = vmatprep.subr.mxu0 %v653_v8  ;;  %v651_v16 = vld [vmem:[#allocation3 + $0xe0] sm:$0xff]  ;;  %v650_v20 = vld [vmem:[#allocation3 + $0xd8] sm:$0xff]  ;;  %v649_v24 = vld [vmem:[#allocation3 + $0xd0] sm:$0xff] }
  0xfe   : > { %15614 = vmatprep.subr.mxu1 %v685_v9  ;;  %15580 = vmatpush3.msra.mxu0 %v637_v10  ;;  %v683_v17 = vld [vmem:[#allocation3 + $0x1e0] sm:$0xff]  ;;  %v682_v21 = vld [vmem:[#allocation3 + $0x1d8] sm:$0xff]  ;;  %v681_v25 = vld [vmem:[#allocation3 + $0x1d0] sm:$0xff]  ;;  %v16928_v55 = vsub.s32 %v893_v45, %v895_v46 }
  0xff   : > { %15615 = vmatpush3.msra.mxu1 %v669_v11  ;;  %15581 = vmatprep.subr.mxu0 %v652_v12  ;;  %v635_v18 = vld [vmem:[#allocation3 + $0x60] sm:$0xff]  ;;  %v634_v22 = vld [vmem:[#allocation3 + $0x58] sm:$0xff]  ;;  %v633_v26 = vld [vmem:[#allocation3 + $0x50] sm:$0xff] }
 0x100   : > { %15616 = vmatprep.subr.mxu1 %v684_v13  ;;  %v667_v19 = vld [vmem:[#allocation3 + $0x160] sm:$0xff]  ;;  %15582 = vmatpush3.msra.mxu0 %v636_v14  ;;  %v666_v23 = vld [vmem:[#allocation3 + $0x158] sm:$0xff]  ;;  %v665_v27 = vld [vmem:[#allocation3 + $0x150] sm:$0xff]  ;;  %v897_v5 = vrot.slane %v16908_v0, %v16928_v55  ;;  %v904_v10 = vrot.slane %v890_v60, %v16928_v55 }
 0x101   : > { %15617 = vmatpush3.msra.mxu1 %v668_v15  ;;  %15583 = vmatprep.subr.mxu0 %v651_v16  ;;  %v648_v28 = vld [vmem:[#allocation3 + $0xc8] sm:$0xff]  ;;  %v647_v32 = vld [vmem:[#allocation3 + $0xc0] sm:$0xff]  ;;  %v646_v39 = vld [vmem:[#allocation3 + $0xb8] sm:$0xff] }
 0x102   : > { %15618 = vmatprep.subr.mxu1 %v683_v17  ;;  %15584 = vmatpush3.msra.mxu0 %v635_v18  ;;  %v680_v29 = vld [vmem:[#allocation3 + $0x1c8] sm:$0xff]  ;;  %v679_v33 = vld [vmem:[#allocation3 + $0x1c0] sm:$0xff]  ;;  %v678_v40 = vld [vmem:[#allocation3 + $0x1b8] sm:$0xff]  ;;  %v905_v15 = vcombine.high %v897_v5, %v897_v5  ;;  %v906_v18 = vcombine.high %v904_v10, %v904_v10 }
 0x103   : > { %15619 = vmatpush3.msra.mxu1 %v667_v19  ;;  %15585 = vmatprep.subr.mxu0 %v650_v20  ;;  %v632_v30 = vld [vmem:[#allocation3 + $0x48] sm:$0xff]  ;;  %v631_v37 = vld [vmem:[#allocation3 + $0x40] sm:$0xff]  ;;  %v630_v41 = vld [vmem:[#allocation3 + $0x38] sm:$0xff] }
 0x104   : > { %15620 = vmatprep.subr.mxu1 %v682_v21  ;;  %15586 = vmatpush3.msra.mxu0 %v634_v22  ;;  %v664_v31 = vld [vmem:[#allocation3 + $0x148] sm:$0xff]  ;;  %v663_v38 = vld [vmem:[#allocation3 + $0x140] sm:$0xff]  ;;  %v662_v42 = vld [vmem:[#allocation3 + $0x138] sm:$0xff] }
 0x105   : > { %15621 = vmatpush3.msra.mxu1 %v666_v23  ;;  %15587 = vmatprep.subr.mxu0 %v649_v24  ;;  %v645_v43 = vld [vmem:[#allocation3 + $0xb0] sm:$0xff]  ;;  %v644_v49 = vld [vmem:[#allocation3 + $0xa8] sm:$0xff]  ;;  %v643_v53 = vld [vmem:[#allocation3 + $0xa0] sm:$0xff] }
 0x106   : > { %15622 = vmatprep.subr.mxu1 %v681_v25  ;;  %15588 = vmatpush3.msra.mxu0 %v633_v26  ;;  %v677_v44 = vld [vmem:[#allocation3 + $0x1b0] sm:$0xff]  ;;  %v676_v50 = vld [vmem:[#allocation3 + $0x1a8] sm:$0xff]  ;;  %v675_v54 = vld [vmem:[#allocation3 + $0x1a0] sm:$0xff] }
 0x107   : > { %15623 = vmatpush3.msra.mxu1 %v665_v27  ;;  %15589 = vmatprep.subr.mxu0 %v648_v28  ;;  %v629_v47 = vld [vmem:[#allocation3 + $0x30] sm:$0xff]  ;;  %v628_v51 = vld [vmem:[#allocation3 + $0x28] sm:$0xff]  ;;  %v627_v56 = vld [vmem:[#allocation3 + $0x20] sm:$0xff] }
 0x108   : > { %15624 = vmatprep.subr.mxu1 %v680_v29  ;;  %15590 = vmatpush3.msra.mxu0 %v632_v30  ;;  %v661_v48 = vld [vmem:[#allocation3 + $0x130] sm:$0xff]  ;;  %v660_v52 = vld [vmem:[#allocation3 + $0x128] sm:$0xff]  ;;  %v659_v57 = vld [vmem:[#allocation3 + $0x120] sm:$0xff] }
 0x109   : > { %15625 = vmatpush3.msra.mxu1 %v664_v31  ;;  %15591 = vmatprep.subr.mxu0 %v647_v32  ;;  %v642_v58 = vld [vmem:[#allocation3 + $0x98] sm:$0xff]  ;;  %v641_v63 = vld [vmem:[#allocation3 + $0x90] sm:$0xff]  ;;  %v640_v8 = vld [vmem:[#allocation3 + $0x88] sm:$0xff] }
 0x10a   : > { %15626 = vmatprep.subr.mxu1 %v679_v33  ;;  %15592 = vmatpush3.msra.mxu0 %v631_v37  ;;  %v674_v59 = vld [vmem:[#allocation3 + $0x198] sm:$0xff]  ;;  %v673_v4 = vld [vmem:[#allocation3 + $0x190] sm:$0xff]  ;;  %v672_v9 = vld [vmem:[#allocation3 + $0x188] sm:$0xff] }
 0x10b   : > { %15627 = vmatpush3.msra.mxu1 %v663_v38  ;;  %15593 = vmatprep.subr.mxu0 %v646_v39  ;;  %v626_v61 = vld [vmem:[#allocation3 + $0x18] sm:$0xff]  ;;  %v625_v6 = vld [vmem:[#allocation3 + $0x10] sm:$0xff]  ;;  %v624_v11 = vld [vmem:[#allocation3 + $0x8] sm:$0xff] }
 0x10c   : > { %15628 = vmatprep.subr.mxu1 %v678_v40  ;;  %15594 = vmatpush3.msra.mxu0 %v630_v41  ;;  %v658_v62 = vld [vmem:[#allocation3 + $0x118] sm:$0xff]  ;;  %v657_v7 = vld [vmem:[#allocation3 + $0x110] sm:$0xff]  ;;  %v656_v12 = vld [vmem:[#allocation3 + $0x108] sm:$0xff] }
 0x10d   : > { %15629 = vmatpush3.msra.mxu1 %v662_v42  ;;  %15595 = vmatprep.subr.mxu0 %v645_v43  ;;  %v639_v13 = vld [vmem:[#allocation3 + $0x80] sm:$0xff]  ;;  %v718_v19 = vld [vmem:[#allocation3 + $0x2f8] sm:$0xff]  ;;  %v717_v23 = vld [vmem:[#allocation3 + $0x2f0] sm:$0xff] }
 0x10e   : > { %15630 = vmatprep.subr.mxu1 %v677_v44  ;;  %15596 = vmatpush3.msra.mxu0 %v629_v47  ;;  %v671_v14 = vld [vmem:[#allocation3 + $0x180] sm:$0xff]  ;;  %v750_v20 = vld [vmem:[#allocation3 + $0x3f8] sm:$0xff]  ;;  %v749_v24 = vld [vmem:[#allocation3 + $0x3f0] sm:$0xff] }
 0x10f   : > { %15631 = vmatpush3.msra.mxu1 %v661_v48  ;;  %15597 = vmatprep.subr.mxu0 %v644_v49  ;;  %v623_v16 = vld [vmem:[#allocation3] sm:$0xff]  ;;  %v702_v21 = vld [vmem:[#allocation3 + $0x278] sm:$0xff]  ;;  %v701_v25 = vld [vmem:[#allocation3 + $0x270] sm:$0xff] }
 0x110   : > { %15632 = vmatprep.subr.mxu1 %v676_v50  ;;  %15598 = vmatpush3.msra.mxu0 %v628_v51  ;;  %v655_v17 = vld [vmem:[#allocation3 + $0x100] sm:$0xff]  ;;  %v734_v22 = vld [vmem:[#allocation3 + $0x378] sm:$0xff]  ;;  %v733_v26 = vld [vmem:[#allocation3 + $0x370] sm:$0xff] }
 0x111   : > { %15633 = vmatpush3.msra.mxu1 %v660_v52  ;;  %15599 = vmatprep.subr.mxu0 %v643_v53  ;;  %v716_v27 = vld [vmem:[#allocation3 + $0x2e8] sm:$0xff]  ;;  %v715_v31 = vld [vmem:[#allocation3 + $0x2e0] sm:$0xff]  ;;  %v714_v35 = vld [vmem:[#allocation3 + $0x2d8] sm:$0xff] }
 0x112   : > { %15634 = vmatprep.subr.mxu1 %v675_v54  ;;  %15600 = vmatpush3.msra.mxu0 %v627_v56  ;;  %v748_v28 = vld [vmem:[#allocation3 + $0x3e8] sm:$0xff]  ;;  %v747_v32 = vld [vmem:[#allocation3 + $0x3e0] sm:$0xff]  ;;  %v746_v36 = vld [vmem:[#allocation3 + $0x3d8] sm:$0xff] }
 0x113   : > { %15635 = vmatpush3.msra.mxu1 %v659_v57  ;;  %15601 = vmatprep.subr.mxu0 %v642_v58  ;;  %v700_v29 = vld [vmem:[#allocation3 + $0x268] sm:$0xff]  ;;  %v699_v33 = vld [vmem:[#allocation3 + $0x260] sm:$0xff]  ;;  %v698_v37 = vld [vmem:[#allocation3 + $0x258] sm:$0xff] }
 0x114   : > { %15636 = vmatprep.subr.mxu1 %v674_v59  ;;  %15602 = vmatpush3.msra.mxu0 %v626_v61  ;;  %v732_v30 = vld [vmem:[#allocation3 + $0x368] sm:$0xff]  ;;  %v731_v34 = vld [vmem:[#allocation3 + $0x360] sm:$0xff]  ;;  %v730_v38 = vld [vmem:[#allocation3 + $0x358] sm:$0xff] }
 0x115   : > { %15637 = vmatpush3.msra.mxu1 %v658_v62  ;;  %15603 = vmatprep.subr.mxu0 %v641_v63  ;;  %v713_v39 = vld [vmem:[#allocation3 + $0x2d0] sm:$0xff]  ;;  %v712_v43 = vld [vmem:[#allocation3 + $0x2c8] sm:$0xff]  ;;  %v711_v47 = vld [vmem:[#allocation3 + $0x2c0] sm:$0xff] }
 0x116   : > { %15638 = vmatprep.subr.mxu1 %v673_v4  ;;  %15604 = vmatpush3.msra.mxu0 %v625_v6  ;;  %v745_v40 = vld [vmem:[#allocation3 + $0x3d0] sm:$0xff]  ;;  %v744_v44 = vld [vmem:[#allocation3 + $0x3c8] sm:$0xff]  ;;  %v743_v48 = vld [vmem:[#allocation3 + $0x3c0] sm:$0xff] }
 0x117   : > { %15639 = vmatpush3.msra.mxu1 %v657_v7  ;;  %15605 = vmatprep.subr.mxu0 %v640_v8  ;;  %v697_v41 = vld [vmem:[#allocation3 + $0x250] sm:$0xff]  ;;  %v696_v45 = vld [vmem:[#allocation3 + $0x248] sm:$0xff]  ;;  %v695_v49 = vld [vmem:[#allocation3 + $0x240] sm:$0xff] }
 0x118   : > { %15640 = vmatprep.subr.mxu1 %v672_v9  ;;  %15606 = vmatpush3.msra.mxu0 %v624_v11  ;;  %v729_v42 = vld [vmem:[#allocation3 + $0x350] sm:$0xff]  ;;  %v728_v46 = vld [vmem:[#allocation3 + $0x348] sm:$0xff]  ;;  %v727_v50 = vld [vmem:[#allocation3 + $0x340] sm:$0xff] }
 0x119   : > { %15641 = vmatpush3.msra.mxu1 %v656_v12  ;;  %15607 = vmatprep.subr.mxu0 %v639_v13  ;;  %v710_v51 = vld [vmem:[#allocation3 + $0x2b8] sm:$0xff]  ;;  %v709_v56 = vld [vmem:[#allocation3 + $0x2b0] sm:$0xff]  ;;  %v708_v60 = vld [vmem:[#allocation3 + $0x2a8] sm:$0xff] }
 0x11a   : > { %15642 = vmatprep.subr.mxu1 %v671_v14  ;;  %15608 = vmatpush3.msra.mxu0 %v623_v16  ;;  %v742_v52 = vld [vmem:[#allocation3 + $0x3b8] sm:$0xff]  ;;  %v741_v57 = vld [vmem:[#allocation3 + $0x3b0] sm:$0xff]  ;;  %v740_v61 = vld [vmem:[#allocation3 + $0x3a8] sm:$0xff] }
 0x11b   : > { %1038 = vmatprep.mubr.f32.mxu0 %v905_v15  ;;  %15643 = vmatpush3.msra.mxu1 %v655_v17  ;;  %v694_v53 = vld [vmem:[#allocation3 + $0x238] sm:$0xff]  ;;  %v693_v58 = vld [vmem:[#allocation3 + $0x230] sm:$0xff]  ;;  %v692_v62 = vld [vmem:[#allocation3 + $0x228] sm:$0xff]  ;;  %v914_v15 = vrot.slane %v16913_v1, %v16928_v55 }
 0x11c   : > { %1039 = vmatmul.mubr.f32.vlgmr.msra.gmra.mxu0 %v897_v5  ;;  %1108 = vmatprep.mubr.f32.mxu1 %v906_v18  ;;  %v726_v54 = vld [vmem:[#allocation3 + $0x338] sm:$0xff]  ;;  %v725_v59 = vld [vmem:[#allocation3 + $0x330] sm:$0xff]  ;;  %v724_v63 = vld [vmem:[#allocation3 + $0x328] sm:$0xff] }
 0x11d   : > { %15647 = vmatprep.subr.mxu0 %v718_v19  ;;  %15682 = vmatprep.subr.mxu1 %v750_v20  ;;  %v707_v4 = vld [vmem:[#allocation3 + $0x2a0] sm:$0xff]  ;;  %v706_v8 = vld [vmem:[#allocation3 + $0x298] sm:$0xff]  ;;  %v705_v13 = vld [vmem:[#allocation3 + $0x290] sm:$0xff] }
 0x11e   : > { %1109 = vmatmul.mubr.f32.vlgmr.msra.gmra.mxu1 %v904_v10  ;;  %15648 = vmatpush3.msra.mxu0 %v702_v21  ;;  %v739_v5 = vld [vmem:[#allocation3 + $0x3a0] sm:$0xff]  ;;  %v738_v9 = vld [vmem:[#allocation3 + $0x398] sm:$0xff]  ;;  %v907_v10 = vcombine.high %v16913_v1, %v16913_v1  ;;  %v737_v14 = vld [vmem:[#allocation3 + $0x390] sm:$0xff] }
 0x11f   : > { %15683 = vmatpush3.msra.mxu1 %v734_v22  ;;  %15649 = vmatprep.subr.mxu0 %v717_v23  ;;  %v691_v6 = vld [vmem:[#allocation3 + $0x220] sm:$0xff]  ;;  %v690_v11 = vld [vmem:[#allocation3 + $0x218] sm:$0xff]  ;;  %v689_v16 = vld [vmem:[#allocation3 + $0x210] sm:$0xff] }
 0x120   : > { %15684 = vmatprep.subr.mxu1 %v749_v24  ;;  %15650 = vmatpush3.msra.mxu0 %v701_v25  ;;  %v723_v7 = vld [vmem:[#allocation3 + $0x320] sm:$0xff]  ;;  %v722_v12 = vld [vmem:[#allocation3 + $0x318] sm:$0xff]  ;;  %v721_v17 = vld [vmem:[#allocation3 + $0x310] sm:$0xff]  ;;  %v921_v20 = vrot.slane %v907_v10, %v16928_v55  ;;  %v922_v25 = vcombine.high %v914_v15, %v914_v15 }
 0x121   : > { %15685 = vmatpush3.msra.mxu1 %v733_v26  ;;  %15651 = vmatprep.subr.mxu0 %v716_v27  ;;  %v704_v18 = vld [vmem:[#allocation3 + $0x288] sm:$0xff]  ;;  %v703_v23 = vld [vmem:[#allocation3 + $0x280] sm:$0xff] }
 0x122   : > { %15686 = vmatprep.subr.mxu1 %v748_v28  ;;  %15652 = vmatpush3.msra.mxu0 %v700_v29  ;;  %v736_v19 = vld [vmem:[#allocation3 + $0x388] sm:$0xff]  ;;  %v735_v24 = vld [vmem:[#allocation3 + $0x380] sm:$0xff]  ;;  %v923_v28 = vcombine.high %v921_v20, %v921_v20  ;;  %v782_v29 = vld [vmem:[#allocation3 + $0x4f8] sm:$0xff] }
 0x123   : > { %15687 = vmatpush3.msra.mxu1 %v732_v30  ;;  %15653 = vmatprep.subr.mxu0 %v715_v31  ;;  %v688_v21 = vld [vmem:[#allocation3 + $0x208] sm:$0xff]  ;;  %v687_v26 = vld [vmem:[#allocation3 + $0x200] sm:$0xff]  ;;  %v814_v30 = vld [vmem:[#allocation3 + $0x5f8] sm:$0xff] }
 0x124   : > { %15688 = vmatprep.subr.mxu1 %v747_v32  ;;  %15654 = vmatpush3.msra.mxu0 %v699_v33  ;;  %v720_v22 = vld [vmem:[#allocation3 + $0x308] sm:$0xff]  ;;  %v719_v27 = vld [vmem:[#allocation3 + $0x300] sm:$0xff]  ;;  %v766_v31 = vld [vmem:[#allocation3 + $0x478] sm:$0xff] }
 0x125   : > { %15689 = vmatpush3.msra.mxu1 %v731_v34  ;;  %15655 = vmatprep.subr.mxu0 %v714_v35  ;;  %v798_v32 = vld [vmem:[#allocation3 + $0x578] sm:$0xff]  ;;  %v781_v33 = vld [vmem:[#allocation3 + $0x4f0] sm:$0xff]  ;;  %v772_v10 = vld [vmem:[#allocation3 + $0x4a8] sm:$0xff] }
 0x126   : > { %15690 = vmatprep.subr.mxu1 %v746_v36  ;;  %15656 = vmatpush3.msra.mxu0 %v698_v37  ;;  %v813_v34 = vld [vmem:[#allocation3 + $0x5f0] sm:$0xff]  ;;  %v780_v37 = vld [vmem:[#allocation3 + $0x4e8] sm:$0xff] }
 0x127   : > { %15691 = vmatpush3.msra.mxu1 %v730_v38  ;;  %15657 = vmatprep.subr.mxu0 %v713_v39  ;;  %v765_v35 = vld [vmem:[#allocation3 + $0x470] sm:$0xff]  ;;  %v812_v38 = vld [vmem:[#allocation3 + $0x5e8] sm:$0xff] }
 0x128   : > { %15692 = vmatprep.subr.mxu1 %v745_v40  ;;  %15658 = vmatpush3.msra.mxu0 %v697_v41  ;;  %v797_v36 = vld [vmem:[#allocation3 + $0x570] sm:$0xff]  ;;  %v764_v39 = vld [vmem:[#allocation3 + $0x468] sm:$0xff]  ;;  %v779_v41 = vld [vmem:[#allocation3 + $0x4e0] sm:$0xff] }
 0x129   : > { %15693 = vmatpush3.msra.mxu1 %v729_v42  ;;  %15659 = vmatprep.subr.mxu0 %v712_v43  ;;  %v796_v40 = vld [vmem:[#allocation3 + $0x568] sm:$0xff]  ;;  %v811_v42 = vld [vmem:[#allocation3 + $0x5e0] sm:$0xff] }
 0x12a   : > { %15694 = vmatprep.subr.mxu1 %v744_v44  ;;  %15660 = vmatpush3.msra.mxu0 %v696_v45  ;;  %v763_v43 = vld [vmem:[#allocation3 + $0x460] sm:$0xff]  ;;  %v778_v45 = vld [vmem:[#allocation3 + $0x4d8] sm:$0xff] }
 0x12b   : > { %15695 = vmatpush3.msra.mxu1 %v728_v46  ;;  %15661 = vmatprep.subr.mxu0 %v711_v47  ;;  %v795_v44 = vld [vmem:[#allocation3 + $0x560] sm:$0xff]  ;;  %v810_v46 = vld [vmem:[#allocation3 + $0x5d8] sm:$0xff] }
 0x12c   : > { %15696 = vmatprep.subr.mxu1 %v743_v48  ;;  %15662 = vmatpush3.msra.mxu0 %v695_v49  ;;  %v762_v47 = vld [vmem:[#allocation3 + $0x458] sm:$0xff]  ;;  %v777_v49 = vld [vmem:[#allocation3 + $0x4d0] sm:$0xff] }
 0x12d   : > { %15697 = vmatpush3.msra.mxu1 %v727_v50  ;;  %15663 = vmatprep.subr.mxu0 %v710_v51  ;;  %v794_v48 = vld [vmem:[#allocation3 + $0x558] sm:$0xff]  ;;  %v809_v50 = vld [vmem:[#allocation3 + $0x5d0] sm:$0xff] }
 0x12e   : > { %15698 = vmatprep.subr.mxu1 %v742_v52  ;;  %15664 = vmatpush3.msra.mxu0 %v694_v53  ;;  %v761_v51 = vld [vmem:[#allocation3 + $0x450] sm:$0xff]  ;;  %v776_v53 = vld [vmem:[#allocation3 + $0x4c8] sm:$0xff] }
 0x12f   : > { %15699 = vmatpush3.msra.mxu1 %v726_v54  ;;  %15665 = vmatprep.subr.mxu0 %v709_v56  ;;  %v793_v52 = vld [vmem:[#allocation3 + $0x550] sm:$0xff]  ;;  %v808_v54 = vld [vmem:[#allocation3 + $0x5c8] sm:$0xff] }
 0x130   : > { %15700 = vmatprep.subr.mxu1 %v741_v57  ;;  %15666 = vmatpush3.msra.mxu0 %v693_v58  ;;  %v760_v56 = vld [vmem:[#allocation3 + $0x448] sm:$0xff]  ;;  %v775_v58 = vld [vmem:[#allocation3 + $0x4c0] sm:$0xff] }
 0x131   : > { %15701 = vmatpush3.msra.mxu1 %v725_v59  ;;  %15667 = vmatprep.subr.mxu0 %v708_v60  ;;  %v792_v57 = vld [vmem:[#allocation3 + $0x548] sm:$0xff]  ;;  %v807_v59 = vld [vmem:[#allocation3 + $0x5c0] sm:$0xff] }
 0x132   : > { %15702 = vmatprep.subr.mxu1 %v740_v61  ;;  %15668 = vmatpush3.msra.mxu0 %v692_v62  ;;  %v759_v60 = vld [vmem:[#allocation3 + $0x440] sm:$0xff]  ;;  %v774_v62 = vld [vmem:[#allocation3 + $0x4b8] sm:$0xff] }
 0x133   : > { %15703 = vmatpush3.msra.mxu1 %v724_v63  ;;  %15669 = vmatprep.subr.mxu0 %v707_v4  ;;  %v791_v61 = vld [vmem:[#allocation3 + $0x540] sm:$0xff]  ;;  %v806_v63 = vld [vmem:[#allocation3 + $0x5b8] sm:$0xff] }
 0x134   : > { %15704 = vmatprep.subr.mxu1 %v739_v5  ;;  %15670 = vmatpush3.msra.mxu0 %v691_v6  ;;  %v758_v4 = vld [vmem:[#allocation3 + $0x438] sm:$0xff]  ;;  %v773_v6 = vld [vmem:[#allocation3 + $0x4b0] sm:$0xff] }
 0x135   : > { %15705 = vmatpush3.msra.mxu1 %v723_v7  ;;  %15671 = vmatprep.subr.mxu0 %v706_v8  ;;  %v790_v5 = vld [vmem:[#allocation3 + $0x538] sm:$0xff]  ;;  %v805_v7 = vld [vmem:[#allocation3 + $0x5b0] sm:$0xff] }
 0x136   : > { %15706 = vmatprep.subr.mxu1 %v738_v9  ;;  %15672 = vmatpush3.msra.mxu0 %v690_v11  ;;  %v757_v8 = vld [vmem:[#allocation3 + $0x430] sm:$0xff]  ;;  %v804_v11 = vld [vmem:[#allocation3 + $0x5a8] sm:$0xff] }
 0x137   : > { %15707 = vmatpush3.msra.mxu1 %v722_v12  ;;  %15673 = vmatprep.subr.mxu0 %v705_v13  ;;  %v789_v9 = vld [vmem:[#allocation3 + $0x530] sm:$0xff]  ;;  %v756_v12 = vld [vmem:[#allocation3 + $0x428] sm:$0xff] }
 0x138   : > { %15708 = vmatprep.subr.mxu1 %v737_v14  ;;  %15674 = vmatpush3.msra.mxu0 %v689_v16  ;;  %v788_v13 = vld [vmem:[#allocation3 + $0x528] sm:$0xff]  ;;  %v771_v14 = vld [vmem:[#allocation3 + $0x4a0] sm:$0xff] }
 0x139   : > { %15709 = vmatpush3.msra.mxu1 %v721_v17  ;;  %15675 = vmatprep.subr.mxu0 %v704_v18  ;;  %v755_v16 = vld [vmem:[#allocation3 + $0x420] sm:$0xff]  ;;  %v770_v18 = vld [vmem:[#allocation3 + $0x498] sm:$0xff] }
 0x13a   : > { %15710 = vmatprep.subr.mxu1 %v736_v19  ;;  %15676 = vmatpush3.msra.mxu0 %v688_v21  ;;  %v787_v17 = vld [vmem:[#allocation3 + $0x520] sm:$0xff]  ;;  %v802_v19 = vld [vmem:[#allocation3 + $0x598] sm:$0xff] }
 0x13b   : > { %15711 = vmatpush3.msra.mxu1 %v720_v22  ;;  %15677 = vmatprep.subr.mxu0 %v703_v23  ;;  %v754_v21 = vld [vmem:[#allocation3 + $0x418] sm:$0xff]  ;;  %v769_v23 = vld [vmem:[#allocation3 + $0x490] sm:$0xff] }
 0x13c   : > { %15712 = vmatprep.subr.mxu1 %v735_v24  ;;  %15678 = vmatpush3.msra.mxu0 %v687_v26  ;;  %v786_v22 = vld [vmem:[#allocation3 + $0x518] sm:$0xff]  ;;  %v801_v24 = vld [vmem:[#allocation3 + $0x590] sm:$0xff] }
 0x13d   : > { %1178 = vmatprep.mubr.f32.mxu0 %v922_v25  ;;  %15713 = vmatpush3.msra.mxu1 %v719_v27  ;;  %v931_v25 = vrot.slane %v16918_v2, %v16928_v55  ;;  %v753_v26 = vld [vmem:[#allocation3 + $0x410] sm:$0xff] }
 0x13e   : > { %1179 = vmatmul.mubr.f32.vlgmr.msra.gmra.mxu0 %v914_v15  ;;  %1248 = vmatprep.mubr.f32.mxu1 %v923_v28  ;;  %v803_v15 = vld [vmem:[#allocation3 + $0x5a0] sm:$0xff]  ;;  %v785_v27 = vld [vmem:[#allocation3 + $0x510] sm:$0xff]  ;;  %v768_v28 = vld [vmem:[#allocation3 + $0x488] sm:$0xff] }
 0x13f   : > { %15717 = vmatprep.subr.mxu0 %v782_v29  ;;  %15752 = vmatprep.subr.mxu1 %v814_v30  ;;  %v800_v29 = vld [vmem:[#allocation3 + $0x588] sm:$0xff] }
 0x140   : > { %1249 = vmatmul.mubr.f32.vlgmr.msra.gmra.mxu1 %v921_v20  ;;  %15718 = vmatpush3.msra.mxu0 %v766_v31  ;;  %v924_v20 = vcombine.high %v16918_v2, %v16918_v2  ;;  %v752_v31 = vld [vmem:[#allocation3 + $0x408] sm:$0xff] }
 0x141   : > { %15753 = vmatpush3.msra.mxu1 %v798_v32  ;;  %15719 = vmatprep.subr.mxu0 %v781_v33  ;;  %v784_v32 = vld [vmem:[#allocation3 + $0x508] sm:$0xff]  ;;  %v767_v33 = vld [vmem:[#allocation3 + $0x480] sm:$0xff] }
 0x142   : > { %15754 = vmatprep.subr.mxu1 %v813_v34  ;;  %15720 = vmatpush3.msra.mxu0 %v765_v35  ;;  %v938_v30 = vrot.slane %v924_v20, %v16928_v55  ;;  %v799_v34 = vld [vmem:[#allocation3 + $0x580] sm:$0xff]  ;;  %v939_v35 = vcombine.high %v931_v25, %v931_v25  ;;  %v836_v20 = vld [vmem:[#allocation3 + $0x6a8] sm:$0xff] }
 0x143   : > { %15755 = vmatpush3.msra.mxu1 %v797_v36  ;;  %15721 = vmatprep.subr.mxu0 %v780_v37  ;;  %v751_v36 = vld [vmem:[#allocation3 + $0x400] sm:$0xff] }
 0x144   : > { %15756 = vmatprep.subr.mxu1 %v812_v38  ;;  %15722 = vmatpush3.msra.mxu0 %v764_v39  ;;  %v783_v37 = vld [vmem:[#allocation3 + $0x500] sm:$0xff]  ;;  %v940_v38 = vcombine.high %v938_v30, %v938_v30  ;;  %v846_v39 = vld [vmem:[#allocation3 + $0x6f8] sm:$0xff] }
 0x145   : > { %15757 = vmatpush3.msra.mxu1 %v796_v40  ;;  %15723 = vmatprep.subr.mxu0 %v779_v41  ;;  %v878_v40 = vld [vmem:[#allocation3 + $0x7f8] sm:$0xff] }
 0x146   : > { %15758 = vmatprep.subr.mxu1 %v811_v42  ;;  %15724 = vmatpush3.msra.mxu0 %v763_v43  ;;  %v830_v41 = vld [vmem:[#allocation3 + $0x678] sm:$0xff]  ;;  %v845_v43 = vld [vmem:[#allocation3 + $0x6f0] sm:$0xff] }
 0x147   : > { %15759 = vmatpush3.msra.mxu1 %v795_v44  ;;  %15725 = vmatprep.subr.mxu0 %v778_v45  ;;  %v862_v42 = vld [vmem:[#allocation3 + $0x778] sm:$0xff]  ;;  %v877_v44 = vld [vmem:[#allocation3 + $0x7f0] sm:$0xff] }
 0x148   : > { %15760 = vmatprep.subr.mxu1 %v810_v46  ;;  %15726 = vmatpush3.msra.mxu0 %v762_v47  ;;  %v829_v45 = vld [vmem:[#allocation3 + $0x670] sm:$0xff]  ;;  %v844_v47 = vld [vmem:[#allocation3 + $0x6e8] sm:$0xff] }
 0x149   : > { %15761 = vmatpush3.msra.mxu1 %v794_v48  ;;  %15727 = vmatprep.subr.mxu0 %v777_v49  ;;  %v861_v46 = vld [vmem:[#allocation3 + $0x770] sm:$0xff]  ;;  %v876_v48 = vld [vmem:[#allocation3 + $0x7e8] sm:$0xff] }
 0x14a   : > { %15762 = vmatprep.subr.mxu1 %v809_v50  ;;  %15728 = vmatpush3.msra.mxu0 %v761_v51  ;;  %v828_v49 = vld [vmem:[#allocation3 + $0x668] sm:$0xff]  ;;  %v843_v51 = vld [vmem:[#allocation3 + $0x6e0] sm:$0xff] }
 0x14b   : > { %15763 = vmatpush3.msra.mxu1 %v793_v52  ;;  %15729 = vmatprep.subr.mxu0 %v776_v53  ;;  %v860_v50 = vld [vmem:[#allocation3 + $0x768] sm:$0xff]  ;;  %v875_v52 = vld [vmem:[#allocation3 + $0x7e0] sm:$0xff] }
 0x14c   : > { %15764 = vmatprep.subr.mxu1 %v808_v54  ;;  %15730 = vmatpush3.msra.mxu0 %v760_v56  ;;  %v827_v53 = vld [vmem:[#allocation3 + $0x660] sm:$0xff]  ;;  %v842_v56 = vld [vmem:[#allocation3 + $0x6d8] sm:$0xff] }
 0x14d   : > { %15765 = vmatpush3.msra.mxu1 %v792_v57  ;;  %15731 = vmatprep.subr.mxu0 %v775_v58  ;;  %v859_v54 = vld [vmem:[#allocation3 + $0x760] sm:$0xff]  ;;  %v874_v57 = vld [vmem:[#allocation3 + $0x7d8] sm:$0xff] }
 0x14e   : > { %15766 = vmatprep.subr.mxu1 %v807_v59  ;;  %15732 = vmatpush3.msra.mxu0 %v759_v60  ;;  %v826_v58 = vld [vmem:[#allocation3 + $0x658] sm:$0xff]  ;;  %v841_v60 = vld [vmem:[#allocation3 + $0x6d0] sm:$0xff] }
 0x14f   : > { %15767 = vmatpush3.msra.mxu1 %v791_v61  ;;  %15733 = vmatprep.subr.mxu0 %v774_v62  ;;  %v858_v59 = vld [vmem:[#allocation3 + $0x758] sm:$0xff]  ;;  %v873_v61 = vld [vmem:[#allocation3 + $0x7d0] sm:$0xff] }
 0x150   : > { %15768 = vmatprep.subr.mxu1 %v806_v63  ;;  %15734 = vmatpush3.msra.mxu0 %v758_v4  ;;  %v825_v62 = vld [vmem:[#allocation3 + $0x650] sm:$0xff]  ;;  %v840_v4 = vld [vmem:[#allocation3 + $0x6c8] sm:$0xff] }
 0x151   : > { %15769 = vmatpush3.msra.mxu1 %v790_v5  ;;  %15735 = vmatprep.subr.mxu0 %v773_v6  ;;  %v857_v63 = vld [vmem:[#allocation3 + $0x750] sm:$0xff]  ;;  %v872_v5 = vld [vmem:[#allocation3 + $0x7c8] sm:$0xff] }
 0x152   : > { %15770 = vmatprep.subr.mxu1 %v805_v7  ;;  %15736 = vmatpush3.msra.mxu0 %v757_v8  ;;  %v824_v6 = vld [vmem:[#allocation3 + $0x648] sm:$0xff]  ;;  %v839_v8 = vld [vmem:[#allocation3 + $0x6c0] sm:$0xff] }
 0x153   : > { %15771 = vmatpush3.msra.mxu1 %v789_v9  ;;  %15737 = vmatprep.subr.mxu0 %v772_v10  ;;  %v856_v7 = vld [vmem:[#allocation3 + $0x748] sm:$0xff]  ;;  %v871_v9 = vld [vmem:[#allocation3 + $0x7c0] sm:$0xff] }
 0x154   : > { %15772 = vmatprep.subr.mxu1 %v804_v11  ;;  %15738 = vmatpush3.msra.mxu0 %v756_v12  ;;  %v823_v10 = vld [vmem:[#allocation3 + $0x640] sm:$0xff]  ;;  %v838_v12 = vld [vmem:[#allocation3 + $0x6b8] sm:$0xff] }
 0x155   : > { %15773 = vmatpush3.msra.mxu1 %v788_v13  ;;  %15739 = vmatprep.subr.mxu0 %v771_v14  ;;  %v855_v11 = vld [vmem:[#allocation3 + $0x740] sm:$0xff]  ;;  %v870_v13 = vld [vmem:[#allocation3 + $0x7b8] sm:$0xff] }
 0x156   : > { %15774 = vmatprep.subr.mxu1 %v803_v15  ;;  %15740 = vmatpush3.msra.mxu0 %v755_v16  ;;  %v822_v14 = vld [vmem:[#allocation3 + $0x638] sm:$0xff]  ;;  %v837_v16 = vld [vmem:[#allocation3 + $0x6b0] sm:$0xff] }
 0x157   : > { %15775 = vmatpush3.msra.mxu1 %v787_v17  ;;  %15741 = vmatprep.subr.mxu0 %v770_v18  ;;  %v854_v15 = vld [vmem:[#allocation3 + $0x738] sm:$0xff]  ;;  %v869_v17 = vld [vmem:[#allocation3 + $0x7b0] sm:$0xff] }
 0x158   : > { %15776 = vmatprep.subr.mxu1 %v802_v19  ;;  %15742 = vmatpush3.msra.mxu0 %v754_v21  ;;  %v821_v18 = vld [vmem:[#allocation3 + $0x630] sm:$0xff]  ;;  %v868_v21 = vld [vmem:[#allocation3 + $0x7a8] sm:$0xff] }
 0x159   : > { %15777 = vmatpush3.msra.mxu1 %v786_v22  ;;  %15743 = vmatprep.subr.mxu0 %v769_v23  ;;  %v853_v19 = vld [vmem:[#allocation3 + $0x730] sm:$0xff]  ;;  %v820_v22 = vld [vmem:[#allocation3 + $0x628] sm:$0xff] }
 0x15a   : > { %15778 = vmatprep.subr.mxu1 %v801_v24  ;;  %15744 = vmatpush3.msra.mxu0 %v753_v26  ;;  %v852_v23 = vld [vmem:[#allocation3 + $0x728] sm:$0xff]  ;;  %v835_v24 = vld [vmem:[#allocation3 + $0x6a0] sm:$0xff] }
 0x15b   : > { %15779 = vmatpush3.msra.mxu1 %v785_v27  ;;  %15745 = vmatprep.subr.mxu0 %v768_v28  ;;  %v819_v26 = vld [vmem:[#allocation3 + $0x620] sm:$0xff]  ;;  %v941_v28 = vcombine.high %v16923_v3, %v16923_v3 }
 0x15c   : > { %15780 = vmatprep.subr.mxu1 %v800_v29  ;;  %15746 = vmatpush3.msra.mxu0 %v752_v31  ;;  %v851_v27 = vld [vmem:[#allocation3 + $0x720] sm:$0xff]  ;;  %v834_v29 = vld [vmem:[#allocation3 + $0x698] sm:$0xff] }
 0x15d   : > { %15781 = vmatpush3.msra.mxu1 %v784_v32  ;;  %15747 = vmatprep.subr.mxu0 %v767_v33  ;;  %v818_v31 = vld [vmem:[#allocation3 + $0x618] sm:$0xff]  ;;  %v833_v33 = vld [vmem:[#allocation3 + $0x690] sm:$0xff] }
 0x15e   : > { %15782 = vmatprep.subr.mxu1 %v799_v34  ;;  %15748 = vmatpush3.msra.mxu0 %v751_v36  ;;  %v850_v32 = vld [vmem:[#allocation3 + $0x718] sm:$0xff]  ;;  %v865_v34 = vld [vmem:[#allocation3 + $0x790] sm:$0xff] }
 0x15f   : > { %1318 = vmatprep.mubr.f32.mxu0 %v939_v35  ;;  %15783 = vmatpush3.msra.mxu1 %v783_v37  ;;  %v948_v35 = vrot.slane %v16923_v3, %v16928_v55  ;;  %v817_v36 = vld [vmem:[#allocation3 + $0x610] sm:$0xff] }
 0x160   : > { %1319 = vmatmul.mubr.f32.vlgmr.msra.gmra.mxu0 %v931_v25  ;;  %1388 = vmatprep.mubr.f32.mxu1 %v940_v38  ;;  %v867_v25 = vld [vmem:[#allocation3 + $0x7a0] sm:$0xff]  ;;  %v849_v37 = vld [vmem:[#allocation3 + $0x710] sm:$0xff]  ;;  %v955_v38 = vrot.slane %v941_v28, %v16928_v55 }
 0x161   : > { %15787 = vmatprep.subr.mxu0 %v846_v39  ;;  %15822 = vmatprep.subr.mxu1 %v878_v40  ;;  %v832_v39 = vld [vmem:[#allocation3 + $0x688] sm:$0xff]  ;;  %v847_v55 = vld [vmem:[#allocation3 + $0x700] sm:$0xff] }
 0x162   : > { %1389 = vmatmul.mubr.f32.vlgmr.msra.gmra.mxu1 %v938_v30  ;;  %15788 = vmatpush3.msra.mxu0 %v830_v41  ;;  %v866_v30 = vld [vmem:[#allocation3 + $0x798] sm:$0xff]  ;;  %v864_v40 = vld [vmem:[#allocation3 + $0x788] sm:$0xff] }
 0x163   : > { %15823 = vmatpush3.msra.mxu1 %v862_v42  ;;  %15789 = vmatprep.subr.mxu0 %v845_v43  ;;  %v816_v41 = vld [vmem:[#allocation3 + $0x608] sm:$0xff]  ;;  %v831_v43 = vld [vmem:[#allocation3 + $0x680] sm:$0xff] }
 0x164   : > { %15824 = vmatprep.subr.mxu1 %v877_v44  ;;  %15790 = vmatpush3.msra.mxu0 %v829_v45  ;;  %v848_v42 = vld [vmem:[#allocation3 + $0x708] sm:$0xff]  ;;  %v863_v44 = vld [vmem:[#allocation3 + $0x780] sm:$0xff]  ;;  %v956_v45 = vcombine.high %v948_v35, %v948_v35 }
 0x165   : > { %15825 = vmatpush3.msra.mxu1 %v861_v46  ;;  %15791 = vmatprep.subr.mxu0 %v844_v47  ;;  %v815_v46 = vld [vmem:[#allocation3 + $0x600] sm:$0xff]  ;;  %v957_v47 = vcombine.high %v955_v38, %v955_v38 }
 0x166   : > { %15826 = vmatprep.subr.mxu1 %v876_v48  ;;  %15792 = vmatpush3.msra.mxu0 %v828_v49  ;;  %v1550_v48 = vld [vmem:[%s19105_s22 + $0x78] sm:$0xff]  ;;  %v16524_v49 = vmov 0.0  }
 0x167   : > { %15827 = vmatpush3.msra.mxu1 %v860_v50  ;;  %15793 = vmatprep.subr.mxu0 %v843_v51  ;;  %1641 = vst [vmem:[#allocation18] sm:$0x3] %v16524_v49  ;;  %v1549_v50 = vld [vmem:[%s19105_s22 + $0x70] sm:$0xff]  ;;  %v1548_v51 = vld [vmem:[%s19105_s22 + $0x68] sm:$0xff] }
 0x168   : > { %15828 = vmatprep.subr.mxu1 %v875_v52  ;;  %15794 = vmatpush3.msra.mxu0 %v827_v53  ;;  %v1547_v52 = vld [vmem:[%s19105_s22 + $0x60] sm:$0xff]  ;;  %v1546_v53 = vld [vmem:[%s19105_s22 + $0x58] sm:$0xff] }
 0x169   : > { %15829 = vmatpush3.msra.mxu1 %v859_v54  ;;  %15795 = vmatprep.subr.mxu0 %v842_v56  ;;  %v1545_v54 = vld [vmem:[%s19105_s22 + $0x50] sm:$0xff]  ;;  %v1544_v56 = vld [vmem:[%s19105_s22 + $0x48] sm:$0xff] }
 0x16a   : > { %15830 = vmatprep.subr.mxu1 %v874_v57  ;;  %15796 = vmatpush3.msra.mxu0 %v826_v58  ;;  %v1543_v57 = vld [vmem:[%s19105_s22 + $0x40] sm:$0xff]  ;;  %v1542_v58 = vld [vmem:[%s19105_s22 + $0x38] sm:$0xff] }
 0x16b   : > { %15831 = vmatpush3.msra.mxu1 %v858_v59  ;;  %15797 = vmatprep.subr.mxu0 %v841_v60  ;;  %v1541_v59 = vld [vmem:[%s19105_s22 + $0x30] sm:$0xff]  ;;  %v1540_v60 = vld [vmem:[%s19105_s22 + $0x28] sm:$0xff] }
 0x16c   : > { %15832 = vmatprep.subr.mxu1 %v873_v61  ;;  %15798 = vmatpush3.msra.mxu0 %v825_v62  ;;  %v1539_v61 = vld [vmem:[%s19105_s22 + $0x20] sm:$0xff]  ;;  %v1538_v62 = vld [vmem:[%s19105_s22 + $0x18] sm:$0xff] }
 0x16d   : > { %15833 = vmatpush3.msra.mxu1 %v857_v63  ;;  %15799 = vmatprep.subr.mxu0 %v840_v4  ;;  %v1537_v63 = vld [vmem:[%s19105_s22 + $0x10] sm:$0xff]  ;;  %v1536_v4 = vld [vmem:[%s19105_s22 + $0x8] sm:$0xff] }
 0x16e   : > { %15834 = vmatprep.subr.mxu1 %v872_v5  ;;  %15800 = vmatpush3.msra.mxu0 %v824_v6  ;;  %v1535_v5 = vld [vmem:[%s19105_s22] sm:$0xff] }
 0x16f   : > { %15835 = vmatpush3.msra.mxu1 %v856_v7  ;;  %15801 = vmatprep.subr.mxu0 %v839_v8 }
 0x170   : > { %15836 = vmatprep.subr.mxu1 %v871_v9  ;;  %15802 = vmatpush3.msra.mxu0 %v823_v10 }
 0x171   : > { %15837 = vmatpush3.msra.mxu1 %v855_v11  ;;  %15803 = vmatprep.subr.mxu0 %v838_v12  ;;  %v13964_v11 = vld [vmem:[#allocation6] ss:$0 sm:$0xff] }
 0x172   : > { %15838 = vmatprep.subr.mxu1 %v870_v13  ;;  %15804 = vmatpush3.msra.mxu0 %v822_v14 }
 0x173   : > { %15839 = vmatpush3.msra.mxu1 %v854_v15  ;;  %15805 = vmatprep.subr.mxu0 %v837_v16 }
 0x174   : > { %15840 = vmatprep.subr.mxu1 %v869_v17  ;;  %15806 = vmatpush3.msra.mxu0 %v821_v18 }
 0x175   : > { %15841 = vmatpush3.msra.mxu1 %v853_v19  ;;  %15807 = vmatprep.subr.mxu0 %v836_v20 }
 0x176   : > { %15842 = vmatprep.subr.mxu1 %v868_v21  ;;  %15808 = vmatpush3.msra.mxu0 %v820_v22 }
 0x177   : > { %15843 = vmatpush3.msra.mxu1 %v852_v23  ;;  %15809 = vmatprep.subr.mxu0 %v835_v24 }
 0x178   : > { %15844 = vmatprep.subr.mxu1 %v867_v25  ;;  %15810 = vmatpush3.msra.mxu0 %v819_v26 }
 0x179   : > { %15845 = vmatpush3.msra.mxu1 %v851_v27  ;;  %15811 = vmatprep.subr.mxu0 %v834_v29 }
 0x17a   : > { %15846 = vmatprep.subr.mxu1 %v866_v30  ;;  %15812 = vmatpush3.msra.mxu0 %v818_v31 }
 0x17b   : > { %15847 = vmatpush3.msra.mxu1 %v850_v32  ;;  %15813 = vmatprep.subr.mxu0 %v833_v33 }
 0x17c   : > { %15848 = vmatprep.subr.mxu1 %v865_v34  ;;  %15814 = vmatpush3.msra.mxu0 %v817_v36 }
 0x17d   : > { %15849 = vmatpush3.msra.mxu1 %v849_v37  ;;  %15815 = vmatprep.subr.mxu0 %v832_v39 }
 0x17e   : > { %15850 = vmatprep.subr.mxu1 %v864_v40  ;;  %15816 = vmatpush3.msra.mxu0 %v816_v41  ;;  %v13965_v40 = vld [vmem:[#allocation8] ss:$0 sm:$0xff] }
 0x17f   : > { %15851 = vmatpush3.msra.mxu1 %v848_v42  ;;  %15817 = vmatprep.subr.mxu0 %v831_v43 }
 0x180   : > { %15852 = vmatprep.subr.mxu1 %v863_v44  ;;  %15818 = vmatpush3.msra.mxu0 %v815_v46 }
 0x181   : > { %1458 = vmatprep.mubr.f32.mxu0 %v956_v45  ;;  %15853 = vmatpush3.msra.mxu1 %v847_v55 }
 0x182   : > { %1528 = vmatprep.mubr.f32.mxu1 %v957_v47  ;;  %1459 = vmatmul.mubr.f32.vlgmr.msra.gmra.mxu0 %v948_v35 }
 0x183   : > { %1529 = vmatmul.mubr.f32.vlgmr.msra.gmra.mxu1 %v955_v38  ;;  %15962 = vmatprep.subr.mxu0 %v16524_v49 }
 0x184   : > { %15963 = vmatpush3.msra.mxu0 %v1550_v48  ;;  %15994 = vmatprep.mubr.msk.f32.mxu0 %vm16525_vm0, %v16524_v49 }
 0x185   : > { %15964 = vmatprep.subr.mxu0 %v16524_v49 }
 0x186   : > { %15965 = vmatpush3.msra.mxu0 %v1549_v50 }
 0x187   : > { %15966 = vmatprep.subr.mxu0 %v16524_v49 }
 0x188   : > { %15967 = vmatpush3.msra.mxu0 %v1548_v51 }
 0x189   : > { %15968 = vmatprep.subr.mxu0 %v16524_v49 }
 0x18a   : > { %15969 = vmatpush3.msra.mxu0 %v1547_v52 }
 0x18b   : > { %15970 = vmatprep.subr.mxu0 %v16524_v49 }
 0x18c   : > { %15971 = vmatpush3.msra.mxu0 %v1546_v53 }
 0x18d   : > { %15972 = vmatprep.subr.mxu0 %v16524_v49 }
 0x18e   : > { %15973 = vmatpush3.msra.mxu0 %v1545_v54 }
 0x18f   : > { %15974 = vmatprep.subr.mxu0 %v16524_v49 }
 0x190   : > { %15975 = vmatpush3.msra.mxu0 %v1544_v56 }
 0x191   : > { %15976 = vmatprep.subr.mxu0 %v16524_v49 }
 0x192   : > { %15977 = vmatpush3.msra.mxu0 %v1543_v57 }
 0x193   : > { %15978 = vmatprep.subr.mxu0 %v16524_v49 }
 0x194   : > { %15979 = vmatpush3.msra.mxu0 %v1542_v58 }
 0x195   : > { %15980 = vmatprep.subr.mxu0 %v16524_v49 }
 0x196   : > { %15981 = vmatpush3.msra.mxu0 %v1541_v59 }
 0x197   : > { %15982 = vmatprep.subr.mxu0 %v16524_v49 }
 0x198   : > { %15983 = vmatpush3.msra.mxu0 %v1540_v60 }
 0x199   : > { %15984 = vmatprep.subr.mxu0 %v16524_v49 }
 0x19a   : > { %15985 = vmatpush3.msra.mxu0 %v1539_v61 }
 0x19b   : > { %15986 = vmatprep.subr.mxu0 %v16524_v49 }
 0x19c   : > { %15987 = vmatpush3.msra.mxu0 %v1538_v62 }
 0x19d   : > { %15988 = vmatprep.subr.mxu0 %v16524_v49 }
 0x19e   : > { %15989 = vmatpush3.msra.mxu0 %v1537_v63 }
 0x19f   : > { %15990 = vmatprep.subr.mxu0 %v16524_v49 }
 0x1a0   : > { %15991 = vmatpush3.msra.mxu0 %v1536_v4 }
 0x1a1   : > { %15992 = vmatprep.subr.mxu0 %v16524_v49 }
 0x1a2   : > { %15993 = vmatpush3.msra.mxu0 %v1535_v5 }
 0x1dc   : > { %v15609_v6 = vpop.f32.mrf.mxu0 }
 0x1de   : > { %v15644_v7 = vpop.f32.mrf.mxu1  ;;  %v15610_v8 = vpop.f32.mrf.mxu0 }
 0x1df   : > { %v15611_v10 = vadd.f32 %v15610_v8, %v15609_v6 }
 0x1e0   : > { %v15645_v12 = vpop.f32.mrf.mxu1 }
 0x1e1   : > { %v1041_v15 = vadd.f32 %v15611_v10, %v13964_v11  ;;  %v15646_v16 = vadd.f32 %v15645_v12, %v15644_v7 }
 0x1e3   : > { %v1111_v20 = vadd.f32 %v15646_v16, %v1041_v15 }
 0x1fe   : > { %v15679_v9 = vpop.f32.mrf.mxu0 }
 0x200   : > { %v15714_v13 = vpop.f32.mrf.mxu1  ;;  %v15680_v14 = vpop.f32.mrf.mxu0 }
 0x201   : > { %v15681_v18 = vadd.f32 %v15680_v14, %v15679_v9 }
 0x202   : > { %v15715_v19 = vpop.f32.mrf.mxu1 }
 0x203   : > { %v1181_v23 = vadd.f32 %v15681_v18, %v1111_v20  ;;  %v15716_v24 = vadd.f32 %v15715_v19, %v15714_v13 }
 0x205   : > { %v1251_v27 = vadd.f32 %v15716_v24, %v1181_v23 }
 0x220   : > { %v15749_v17 = vpop.f32.mrf.mxu0 }
 0x222   : > { %v15784_v21 = vpop.f32.mrf.mxu1  ;;  %v15750_v22 = vpop.f32.mrf.mxu0 }
 0x223   : > { %v15751_v25 = vadd.f32 %v15750_v22, %v15749_v17 }
 0x224   : > { %v15785_v26 = vpop.f32.mrf.mxu1 }
 0x225   : > { %v1321_v28 = vadd.f32 %v15751_v25, %v1251_v27  ;;  %v15786_v29 = vadd.f32 %v15785_v26, %v15784_v21 }
 0x227   : > { %v1391_v34 = vadd.f32 %v15786_v29, %v1321_v28 }
 0x242   : > { %v15819_v30 = vpop.f32.mrf.mxu0 }
 0x243   : > { %v15854_v31 = vpop.f32.mrf.mxu1 }
 0x244   : > { %v15820_v32 = vpop.f32.mrf.mxu0 }
 0x245   : > { %v15855_v33 = vpop.f32.mrf.mxu1  ;;  %v15821_v35 = vadd.f32 %v15820_v32, %v15819_v30 }
 0x246   : > { %v15856_v37 = vadd.f32 %v15855_v33, %v15854_v31 }
 0x247   : > { %v1461_v36 = vadd.f32 %v15821_v35, %v1391_v34 }
 0x249   : > { %v1531_v38 = vadd.f32 %v15856_v37, %v1461_v36 }
 0x24b   : > { %v1534_v39 = vmax.f32 %v1531_v38, 0.0 }
 0x24d   : > { %15995 = vmatmul.mubr.f32.vlgmr.msra.gmra.mxu0 %v1534_v39 }
 0x30d   : > { %v1624_v41 = vpop.f32.mrf.mxu0 }
 0x30e   : > { %v1625_v42 = vadd.f32 %v13965_v40, %v1624_v41 }
 0x30f   : > { %v15996_v43 = vpop.f32.mrf.mxu0 }
 0x310   : > { %v1629_v44 = vsel %vm1628_vm1, %v1625_v42, -inf }
 0x311   : > { %1630 = vmax.xlane.f32.xlu0 %v1629_v44 }
 0x39a   : > { %v1631_v45 = vpop.xlane.xlu0 %1630 }
 0x39b   : > { %v1632_v46 = vsub.f32 %v1625_v42, %v1631_v45 }
 0x39d   : > { %v1633_v47 = vmul.f32 1.442695, %v1632_v46 }
 0x39f   : > { %16110 = vpow2.f32 %v1633_v47 }
 0x3ac   : > { %v16111_v55 = vpop.eup %16110 }
 0x3ad   : > { %v1635_v48 = vsel %vm1628_vm1, %v16111_v55, 0.0 }
 0x3ae   : > { %1636 = vadd.xlane.f32.xlu0 %v1635_v48 }
 0x437   : > { %v1637_v49 = vpop.xlane.xlu0 %1636 }
 0x438   : > { %16112 = vrcp.f32 %v1637_v49 }
 0x445   : > { %v16113_v50 = vpop.eup %16112 }
 0x446   : > { %v1639_v51 = vmul.f32 %v16113_v50, %v16111_v55 }
 0x448   : > { %1640 = vst.msk [vmem:[#allocation2] sm:$0x3] %vm1628_vm1, %v1639_v51 }
 0x449 PF: > { %v1814_v52 = vld [vmem:[%s16880_s13 + $0x1c0] sm:$0xff]  ;;  %v1642_v56 = vlaneseq  ;;  %v16526_v62 = vmov 1983009808   ;;  %v1658_v25 = vcombine.high %v16908_v0, %v16908_v0  ;;  %vm1650_vm3 = vcmask 17408   ;;  %s16528_s14 = smov [#allocation18]   ;;  %p16061_p4 = scmp.eq.s32.totalorder %s16608_s21, 2 }
 0x44a   : > { %v1818_v53 = vld [vmem:[%s16880_s13 + $0x1e0] sm:$0xff]  ;;  %v1660_v63 = vunpack.c.l.s4 %v16526_v62 }
 0x44b   : > { %v1942_v54 = vld [vmem:[%s16880_s13 + $0x5c0] sm:$0xff]  ;;  %v14024_v57 = vcombine.high %v1814_v52, %v1818_v53  ;;  %v14023_v59 = vcombine.low %v1814_v52, %v1818_v53  ;;  %v17014_v15 = vshrl.u32 %v1642_v56, 7 }
 0x44c   : > { %v1946_v58 = vld [vmem:[%s16880_s13 + $0x5e0] sm:$0xff]  ;;  %v1661_v14 = vunpack.c.0.s8 %v1660_v63 }
 0x44d   : > { %v1806_v60 = vld [vmem:[%s16880_s13 + $0x180] sm:$0xff]  ;;  %v14152_v4 = vcombine.high %v1942_v54, %v1946_v58  ;;  %v14151_v5 = vcombine.low %v1942_v54, %v1946_v58  ;;  %7944 = vmatprep.subr.bf16.mxu0 %v14024_v57 }
 0x44e   : > { %v1810_v61 = vld [vmem:[%s16880_s13 + $0x1a0] sm:$0xff]  ;;  %7945 = vmatpush1.bf16.msra.mxu0 %v14023_v59  ;;  %v17021_v24 = vsub.s32 %v1661_v14, %v17014_v15 }
 0x44f   : > { %v14016_v6 = vcombine.high %v1806_v60, %v1810_v61  ;;  %v1934_v7 = vld [vmem:[%s16880_s13 + $0x580] sm:$0xff]  ;;  %7985 = vmatprep.subr.bf16.mxu1 %v14152_v4  ;;  %v14015_v16 = vcombine.low %v1806_v60, %v1810_v61 }
 0x450   : > { %v1938_v8 = vld [vmem:[%s16880_s13 + $0x5a0] sm:$0xff]  ;;  %7986 = vmatpush1.bf16.msra.mxu1 %v14151_v5  ;;  %v17027_v29 = vrot.slane %v16908_v0, %v17021_v24  ;;  %v17036_v36 = vrot.slane %v1658_v25, %v17021_v24 }
 0x451   : > { %v1798_v9 = vld [vmem:[%s16880_s13 + $0x140] sm:$0xff]  ;;  %v14144_v10 = vcombine.high %v1934_v7, %v1938_v8  ;;  %7946 = vmatprep.subr.bf16.mxu0 %v14016_v6  ;;  %v14143_v17 = vcombine.low %v1934_v7, %v1938_v8 }
 0x452   : > { %v1802_v11 = vld [vmem:[%s16880_s13 + $0x160] sm:$0xff]  ;;  %7947 = vmatpush1.bf16.msra.mxu0 %v14015_v16  ;;  %v1673_v35 = vcombine.high %v17027_v29, %v17027_v29  ;;  %v1674_v45 = vcombine.high %v17036_v36, %v17036_v36 }
 0x453   : > { %v1926_v12 = vld [vmem:[%s16880_s13 + $0x540] sm:$0xff]  ;;  %v14008_v18 = vcombine.high %v1798_v9, %v1802_v11  ;;  %7987 = vmatprep.subr.bf16.mxu1 %v14144_v10  ;;  %v14007_v26 = vcombine.low %v1798_v9, %v1802_v11 }
 0x454   : > { %v1930_v13 = vld [vmem:[%s16880_s13 + $0x560] sm:$0xff]  ;;  %7988 = vmatpush1.bf16.msra.mxu1 %v14143_v17  ;;  %v17038_v39 = vpack.c.bf16 %v1673_v35, %v1673_v35  ;;  %v17047_v48 = vpack.c.bf16 %v1674_v45, %v1674_v45 }
 0x455   : > { %v14136_v19 = vcombine.high %v1926_v12, %v1930_v13  ;;  %v1790_v20 = vld [vmem:[%s16880_s13 + $0x100] sm:$0xff]  ;;  %7948 = vmatprep.subr.bf16.mxu0 %v14008_v18  ;;  %v14135_v27 = vcombine.low %v1926_v12, %v1930_v13 }
 0x456   : > { %v1794_v21 = vld [vmem:[%s16880_s13 + $0x120] sm:$0xff]  ;;  %7949 = vmatpush1.bf16.msra.mxu0 %v14007_v26  ;;  %7976 = vmatprep.mubr.bf16.mxu0 %v17038_v39 }
 0x457   : > { %v1918_v22 = vld [vmem:[%s16880_s13 + $0x500] sm:$0xff]  ;;  %v14000_v28 = vcombine.high %v1790_v20, %v1794_v21  ;;  %7989 = vmatprep.subr.bf16.mxu1 %v14136_v19  ;;  %v13999_v37 = vcombine.low %v1790_v20, %v1794_v21  ;;  %8017 = vmatprep.mubr.bf16.mxu1 %v17047_v48 }
 0x458   : > { %v1922_v23 = vld [vmem:[%s16880_s13 + $0x520] sm:$0xff]  ;;  %7990 = vmatpush1.bf16.msra.mxu1 %v14135_v27 }
 0x459   : > { %v14128_v30 = vcombine.high %v1918_v22, %v1922_v23  ;;  %v1782_v31 = vld [vmem:[%s16880_s13 + $0xc0] sm:$0xff]  ;;  %7950 = vmatprep.subr.bf16.mxu0 %v14000_v28  ;;  %v14127_v0 = vcombine.low %v1918_v22, %v1922_v23 }
 0x45a   : > { %v1786_v32 = vld [vmem:[%s16880_s13 + $0xe0] sm:$0xff]  ;;  %7951 = vmatpush1.bf16.msra.mxu0 %v13999_v37 }
 0x45b   : > { %v1910_v33 = vld [vmem:[%s16880_s13 + $0x4c0] sm:$0xff]  ;;  %v13992_v38 = vcombine.high %v1782_v31, %v1786_v32  ;;  %7991 = vmatprep.subr.bf16.mxu1 %v14128_v30  ;;  %v13991_v46 = vcombine.low %v1782_v31, %v1786_v32 }
 0x45c   : > { %v1914_v34 = vld [vmem:[%s16880_s13 + $0x4e0] sm:$0xff]  ;;  %7992 = vmatpush1.bf16.msra.mxu1 %v14127_v0 }
 0x45d   : > { %v14120_v40 = vcombine.high %v1910_v33, %v1914_v34  ;;  %v1774_v41 = vld [vmem:[%s16880_s13 + $0x80] sm:$0xff]  ;;  %7952 = vmatprep.subr.bf16.mxu0 %v13992_v38  ;;  %v14119_v47 = vcombine.low %v1910_v33, %v1914_v34 }
 0x45e   : > { %v1778_v42 = vld [vmem:[%s16880_s13 + $0xa0] sm:$0xff]  ;;  %7953 = vmatpush1.bf16.msra.mxu0 %v13991_v46 }
 0x45f   : > { %v1902_v43 = vld [vmem:[%s16880_s13 + $0x480] sm:$0xff]  ;;  %v13984_v55 = vcombine.high %v1774_v41, %v1778_v42  ;;  %7993 = vmatprep.subr.bf16.mxu1 %v14120_v40  ;;  %v13983_v54 = vcombine.low %v1774_v41, %v1778_v42 }
 0x460   : > { %v1906_v44 = vld [vmem:[%s16880_s13 + $0x4a0] sm:$0xff]  ;;  %7994 = vmatpush1.bf16.msra.mxu1 %v14119_v47 }
 0x461   : > { %v14112_v49 = vcombine.high %v1902_v43, %v1906_v44  ;;  %v1766_v50 = vld [vmem:[%s16880_s13 + $0x40] sm:$0xff]  ;;  %7954 = vmatprep.subr.bf16.mxu0 %v13984_v55  ;;  %v14111_v57 = vcombine.low %v1902_v43, %v1906_v44 }
 0x462   : > { %v1770_v51 = vld [vmem:[%s16880_s13 + $0x60] sm:$0xff]  ;;  %7955 = vmatpush1.bf16.msra.mxu0 %v13983_v54 }
 0x463   : > { %v1894_v52 = vld [vmem:[%s16880_s13 + $0x440] sm:$0xff]  ;;  %v13976_v58 = vcombine.high %v1766_v50, %v1770_v51  ;;  %7995 = vmatprep.subr.bf16.mxu1 %v14112_v49  ;;  %v13975_v4 = vcombine.low %v1766_v50, %v1770_v51 }
 0x464   : > { %v1898_v53 = vld [vmem:[%s16880_s13 + $0x460] sm:$0xff]  ;;  %7996 = vmatpush1.bf16.msra.mxu1 %v14111_v57 }
 0x465   : > { %v14104_v59 = vcombine.high %v1894_v52, %v1898_v53  ;;  %v1758_v60 = vld [vmem:[%s16880_s13] sm:$0xff]  ;;  %7956 = vmatprep.subr.bf16.mxu0 %v13976_v58  ;;  %v14103_v5 = vcombine.low %v1894_v52, %v1898_v53 }
 0x466   : > { %v1762_v61 = vld [vmem:[%s16880_s13 + $0x20] sm:$0xff]  ;;  %7957 = vmatpush1.bf16.msra.mxu0 %v13975_v4 }
 0x467   : > { %v1886_v62 = vld [vmem:[%s16880_s13 + $0x400] sm:$0xff]  ;;  %v13968_v6 = vcombine.high %v1758_v60, %v1762_v61  ;;  %7997 = vmatprep.subr.bf16.mxu1 %v14104_v59  ;;  %v13967_v12 = vcombine.low %v1758_v60, %v1762_v61 }
 0x468   : > { %v1890_v63 = vld [vmem:[%s16880_s13 + $0x420] sm:$0xff]  ;;  %7998 = vmatpush1.bf16.msra.mxu1 %v14103_v5 }
 0x469   : > { %v14096_v7 = vcombine.high %v1886_v62, %v1890_v63  ;;  %v1878_v8 = vld [vmem:[%s16880_s13 + $0x3c0] sm:$0xff]  ;;  %7958 = vmatprep.subr.bf16.mxu0 %v13968_v6  ;;  %v14095_v13 = vcombine.low %v1886_v62, %v1890_v63 }
 0x46a   : > { %v1882_v9 = vld [vmem:[%s16880_s13 + $0x3e0] sm:$0xff]  ;;  %7959 = vmatpush1.bf16.msra.mxu0 %v13967_v12 }
 0x46b   : > { %v2006_v10 = vld [vmem:[%s16880_s13 + $0x7c0] sm:$0xff]  ;;  %v14088_v14 = vcombine.high %v1878_v8, %v1882_v9  ;;  %7999 = vmatprep.subr.bf16.mxu1 %v14096_v7  ;;  %v14087_v21 = vcombine.low %v1878_v8, %v1882_v9 }
 0x46c   : > { %v2010_v11 = vld [vmem:[%s16880_s13 + $0x7e0] sm:$0xff]  ;;  %8000 = vmatpush1.bf16.msra.mxu1 %v14095_v13 }
 0x46d   : > { %v14216_v16 = vcombine.high %v2006_v10, %v2010_v11  ;;  %v1870_v17 = vld [vmem:[%s16880_s13 + $0x380] sm:$0xff]  ;;  %7960 = vmatprep.subr.bf16.mxu0 %v14088_v14  ;;  %v14215_v22 = vcombine.low %v2006_v10, %v2010_v11  ;;  %v1675_v14 = vcombine.high %v16913_v1, %v16913_v1 }
 0x46e   : > { %v1874_v18 = vld [vmem:[%s16880_s13 + $0x3a0] sm:$0xff]  ;;  %7961 = vmatpush2.bf16.msra.mxu0 %v14087_v21 }
 0x46f   : > { %v1998_v19 = vld [vmem:[%s16880_s13 + $0x780] sm:$0xff]  ;;  %v14080_v23 = vcombine.high %v1870_v17, %v1874_v18  ;;  %8001 = vmatprep.subr.bf16.mxu1 %v14216_v16  ;;  %v14079_v31 = vcombine.low %v1870_v17, %v1874_v18 }
 0x470   : > { %v2002_v20 = vld [vmem:[%s16880_s13 + $0x7a0] sm:$0xff]  ;;  %8002 = vmatpush2.bf16.msra.mxu1 %v14215_v22  ;;  %v17096_v22 = vrot.slane %v16913_v1, %v17021_v24 }
 0x471   : > { %v14208_v25 = vcombine.high %v1998_v19, %v2002_v20  ;;  %v1862_v26 = vld [vmem:[%s16880_s13 + $0x340] sm:$0xff]  ;;  %7962 = vmatprep.subr.bf16.mxu0 %v14080_v23  ;;  %v14207_v32 = vcombine.low %v1998_v19, %v2002_v20 }
 0x472   : > { %v1866_v27 = vld [vmem:[%s16880_s13 + $0x360] sm:$0xff]  ;;  %7963 = vmatpush2.bf16.msra.mxu0 %v14079_v31 }
 0x473   : > { %v1990_v28 = vld [vmem:[%s16880_s13 + $0x740] sm:$0xff]  ;;  %v14072_v33 = vcombine.high %v1862_v26, %v1866_v27  ;;  %8003 = vmatprep.subr.bf16.mxu1 %v14208_v25  ;;  %v14071_v40 = vcombine.low %v1862_v26, %v1866_v27  ;;  %v17101_v26 = vrot.slane %v1675_v14, %v17021_v24 }
 0x474   : > { %v1994_v30 = vld [vmem:[%s16880_s13 + $0x760] sm:$0xff]  ;;  %8004 = vmatpush2.bf16.msra.mxu1 %v14207_v32 }
 0x475   : > { %v14200_v34 = vcombine.high %v1990_v28, %v1994_v30  ;;  %v1854_v35 = vld [vmem:[%s16880_s13 + $0x300] sm:$0xff]  ;;  %7964 = vmatprep.subr.bf16.mxu0 %v14072_v33  ;;  %v14199_v41 = vcombine.low %v1990_v28, %v1994_v30  ;;  %v1690_v33 = vcombine.high %v17096_v22, %v17096_v22 }
 0x476   : > { %v1858_v37 = vld [vmem:[%s16880_s13 + $0x320] sm:$0xff]  ;;  %7965 = vmatpush2.bf16.msra.mxu0 %v14071_v40 }
 0x477   : > { %v1982_v0 = vld [vmem:[%s16880_s13 + $0x700] sm:$0xff]  ;;  %v14064_v42 = vcombine.high %v1854_v35, %v1858_v37  ;;  %8005 = vmatprep.subr.bf16.mxu1 %v14200_v34  ;;  %v14063_v55 = vcombine.low %v1854_v35, %v1858_v37  ;;  %v17109_v34 = vpack.c.bf16 %v17027_v29, %v17027_v29 }
 0x478   : > { %v1986_v38 = vld [vmem:[%s16880_s13 + $0x720] sm:$0xff]  ;;  %8006 = vmatpush2.bf16.msra.mxu1 %v14199_v41 }
 0x479   : > { %v14192_v43 = vcombine.high %v1982_v0, %v1986_v38  ;;  %v1846_v44 = vld [vmem:[%s16880_s13 + $0x2c0] sm:$0xff]  ;;  %7966 = vmatprep.subr.bf16.mxu0 %v14064_v42  ;;  %v14191_v49 = vcombine.low %v1982_v0, %v1986_v38  ;;  %v1691_v0 = vcombine.high %v17101_v26, %v17101_v26  ;;  %v17117_v38 = vpack.c.bf16 %v17036_v36, %v17036_v36 }
 0x47a   : > { %v1850_v45 = vld [vmem:[%s16880_s13 + $0x2e0] sm:$0xff]  ;;  %7967 = vmatpush2.bf16.msra.mxu0 %v14063_v55 }
 0x47b   : > { %v1974_v46 = vld [vmem:[%s16880_s13 + $0x6c0] sm:$0xff]  ;;  %v14056_v50 = vcombine.high %v1846_v44, %v1850_v45  ;;  %8007 = vmatprep.subr.bf16.mxu1 %v14192_v43  ;;  %v14055_v58 = vcombine.low %v1846_v44, %v1850_v45  ;;  %v17126_v36 = vpack.c.bf16 %v1691_v0, %v1691_v0 }
 0x47c   : > { %v1978_v47 = vld [vmem:[%s16880_s13 + $0x6e0] sm:$0xff]  ;;  %8008 = vmatpush2.bf16.msra.mxu1 %v14191_v49 }
 0x47d   : > { %v14184_v51 = vcombine.high %v1974_v46, %v1978_v47  ;;  %v1838_v52 = vld [vmem:[%s16880_s13 + $0x280] sm:$0xff]  ;;  %7968 = vmatprep.subr.bf16.mxu0 %v14056_v50  ;;  %v14183_v59 = vcombine.low %v1974_v46, %v1978_v47  ;;  %v17123_v47 = vpack.c.bf16 %v1690_v33, %v1690_v33 }
 0x47e   : > { %v1842_v53 = vld [vmem:[%s16880_s13 + $0x2a0] sm:$0xff]  ;;  %7969 = vmatpush2.bf16.msra.mxu0 %v14055_v58 }
 0x47f   : > { %v1966_v54 = vld [vmem:[%s16880_s13 + $0x680] sm:$0xff]  ;;  %v14048_v60 = vcombine.high %v1838_v52, %v1842_v53  ;;  %8009 = vmatprep.subr.bf16.mxu1 %v14184_v51  ;;  %v14047_v6 = vcombine.low %v1838_v52, %v1842_v53 }
 0x480   : > { %v1970_v57 = vld [vmem:[%s16880_s13 + $0x6a0] sm:$0xff]  ;;  %8010 = vmatpush2.bf16.msra.mxu1 %v14183_v59 }
 0x481   : > { %v14176_v61 = vcombine.high %v1966_v54, %v1970_v57  ;;  %v1830_v62 = vld [vmem:[%s16880_s13 + $0x240] sm:$0xff]  ;;  %7970 = vmatprep.subr.bf16.mxu0 %v14048_v60  ;;  %v14175_v7 = vcombine.low %v1966_v54, %v1970_v57 }
 0x482   : > { %v1834_v63 = vld [vmem:[%s16880_s13 + $0x260] sm:$0xff]  ;;  %7971 = vmatpush2.bf16.msra.mxu0 %v14047_v6 }
 0x483   : > { %v1958_v4 = vld [vmem:[%s16880_s13 + $0x640] sm:$0xff]  ;;  %v14040_v8 = vcombine.high %v1830_v62, %v1834_v63  ;;  %8011 = vmatprep.subr.bf16.mxu1 %v14176_v61  ;;  %v14039_v16 = vcombine.low %v1830_v62, %v1834_v63 }
 0x484   : > { %v1962_v5 = vld [vmem:[%s16880_s13 + $0x660] sm:$0xff]  ;;  %8012 = vmatpush2.bf16.msra.mxu1 %v14175_v7 }
 0x485   : > { %v14168_v9 = vcombine.high %v1958_v4, %v1962_v5  ;;  %v1822_v10 = vld [vmem:[%s16880_s13 + $0x200] sm:$0xff]  ;;  %7972 = vmatprep.subr.bf16.mxu0 %v14040_v8  ;;  %v14167_v17 = vcombine.low %v1958_v4, %v1962_v5 }
 0x486   : > { %v1826_v11 = vld [vmem:[%s16880_s13 + $0x220] sm:$0xff]  ;;  %7973 = vmatpush2.bf16.msra.mxu0 %v14039_v16 }
 0x487   : > { %v1950_v12 = vld [vmem:[%s16880_s13 + $0x600] sm:$0xff]  ;;  %v14032_v18 = vcombine.high %v1822_v10, %v1826_v11  ;;  %8013 = vmatprep.subr.bf16.mxu1 %v14168_v9  ;;  %v14031_v27 = vcombine.low %v1822_v10, %v1826_v11 }
 0x488   : > { %v1954_v13 = vld [vmem:[%s16880_s13 + $0x620] sm:$0xff]  ;;  %8014 = vmatpush2.bf16.msra.mxu1 %v14167_v17 }
 0x489   : > { %v14160_v19 = vcombine.high %v1950_v12, %v1954_v13  ;;  %v2070_v20 = vld [vmem:[%s16880_s13 + $0x9c0] sm:$0xff]  ;;  %7974 = vmatprep.subr.bf16.mxu0 %v14032_v18  ;;  %v14159_v28 = vcombine.low %v1950_v12, %v1954_v13 }
 0x48a   : > { %v2074_v21 = vld [vmem:[%s16880_s13 + $0x9e0] sm:$0xff]  ;;  %7975 = vmatpush2.bf16.msra.mxu0 %v14031_v27 }
 0x48b   : > { %v2198_v23 = vld [vmem:[%s16880_s13 + $0xdc0] sm:$0xff]  ;;  %v14280_v30 = vcombine.high %v2070_v20, %v2074_v21  ;;  %8015 = vmatprep.subr.bf16.mxu1 %v14160_v19  ;;  %v14279_v40 = vcombine.low %v2070_v20, %v2074_v21 }
 0x48c   : > { %v2202_v25 = vld [vmem:[%s16880_s13 + $0xde0] sm:$0xff]  ;;  %8016 = vmatpush2.bf16.msra.mxu1 %v14159_v28 }
 0x48d   : > { %v14408_v31 = vcombine.high %v2198_v23, %v2202_v25  ;;  %v2062_v32 = vld [vmem:[%s16880_s13 + $0x980] sm:$0xff]  ;;  %8026 = vmatprep.subr.bf16.mxu0 %v14280_v30  ;;  %v14407_v41 = vcombine.low %v2198_v23, %v2202_v25  ;;  %7977 = vmatmul.mubr.bf16.vlgmr.msra.gmra.mxu0 %v17109_v34 }
 0x48e   : > { %v2066_v1 = vld [vmem:[%s16880_s13 + $0x9a0] sm:$0xff]  ;;  %8027 = vmatpush1.bf16.msra.mxu0 %v14279_v40  ;;  %8058 = vmatprep.mubr.bf16.mxu0 %v17123_v47 }
 0x48f   : > { %v2190_v35 = vld [vmem:[%s16880_s13 + $0xd80] sm:$0xff]  ;;  %v14272_v42 = vcombine.high %v2062_v32, %v2066_v1  ;;  %8067 = vmatprep.subr.bf16.mxu1 %v14408_v31  ;;  %8018 = vmatmul.mubr.bf16.vlgmr.msra.gmra.mxu1 %v17117_v38  ;;  %v14271_v55 = vcombine.low %v2062_v32, %v2066_v1 }
 0x490   : > { %v2194_v37 = vld [vmem:[%s16880_s13 + $0xda0] sm:$0xff]  ;;  %8068 = vmatpush1.bf16.msra.mxu1 %v14407_v41  ;;  %8099 = vmatprep.mubr.bf16.mxu1 %v17126_v36 }
 0x491   : > { %v2054_v43 = vld [vmem:[%s16880_s13 + $0x940] sm:$0xff]  ;;  %v14400_v45 = vcombine.high %v2190_v35, %v2194_v37  ;;  %8028 = vmatprep.subr.bf16.mxu0 %v14272_v42  ;;  %v14399_v49 = vcombine.low %v2190_v35, %v2194_v37 }
 0x492   : > { %v2058_v29 = vld [vmem:[%s16880_s13 + $0x960] sm:$0xff]  ;;  %8029 = vmatpush1.bf16.msra.mxu0 %v14271_v55 }
 0x493   : > { %v2182_v44 = vld [vmem:[%s16880_s13 + $0xd40] sm:$0xff]  ;;  %v14264_v50 = vcombine.high %v2054_v43, %v2058_v29  ;;  %8069 = vmatprep.subr.bf16.mxu1 %v14400_v45  ;;  %v14263_v58 = vcombine.low %v2054_v43, %v2058_v29 }
 0x494   : > { %v2186_v46 = vld [vmem:[%s16880_s13 + $0xd60] sm:$0xff]  ;;  %8070 = vmatpush1.bf16.msra.mxu1 %v14399_v49 }
 0x495   : > { %v2046_v51 = vld [vmem:[%s16880_s13 + $0x900] sm:$0xff]  ;;  %v14392_v54 = vcombine.high %v2182_v44, %v2186_v46  ;;  %8030 = vmatprep.subr.bf16.mxu0 %v14264_v50  ;;  %v14391_v59 = vcombine.low %v2182_v44, %v2186_v46 }
 0x496   : > { %v2050_v52 = vld [vmem:[%s16880_s13 + $0x920] sm:$0xff]  ;;  %8031 = vmatpush1.bf16.msra.mxu0 %v14263_v58 }
 0x497   : > { %v2174_v53 = vld [vmem:[%s16880_s13 + $0xd00] sm:$0xff]  ;;  %v14256_v60 = vcombine.high %v2046_v51, %v2050_v52  ;;  %8071 = vmatprep.subr.bf16.mxu1 %v14392_v54  ;;  %v14255_v6 = vcombine.low %v2046_v51, %v2050_v52 }
 0x498   : > { %v2178_v57 = vld [vmem:[%s16880_s13 + $0xd20] sm:$0xff]  ;;  %8072 = vmatpush1.bf16.msra.mxu1 %v14391_v59 }
 0x499   : > { %v2038_v61 = vld [vmem:[%s16880_s13 + $0x8c0] sm:$0xff]  ;;  %v14384_v4 = vcombine.high %v2174_v53, %v2178_v57  ;;  %8032 = vmatprep.subr.bf16.mxu0 %v14256_v60  ;;  %v14383_v7 = vcombine.low %v2174_v53, %v2178_v57 }
 0x49a   : > { %v2042_v62 = vld [vmem:[%s16880_s13 + $0x8e0] sm:$0xff]  ;;  %8033 = vmatpush1.bf16.msra.mxu0 %v14255_v6 }
 0x49b   : > { %v2166_v63 = vld [vmem:[%s16880_s13 + $0xcc0] sm:$0xff]  ;;  %v14248_v8 = vcombine.high %v2038_v61, %v2042_v62  ;;  %8073 = vmatprep.subr.bf16.mxu1 %v14384_v4  ;;  %v14247_v14 = vcombine.low %v2038_v61, %v2042_v62 }
 0x49c   : > { %v2170_v5 = vld [vmem:[%s16880_s13 + $0xce0] sm:$0xff]  ;;  %8074 = vmatpush1.bf16.msra.mxu1 %v14383_v7 }
 0x49d   : > { %v2030_v9 = vld [vmem:[%s16880_s13 + $0x880] sm:$0xff]  ;;  %v14376_v12 = vcombine.high %v2166_v63, %v2170_v5  ;;  %8034 = vmatprep.subr.bf16.mxu0 %v14248_v8  ;;  %v14375_v16 = vcombine.low %v2166_v63, %v2170_v5 }
 0x49e   : > { %v2034_v10 = vld [vmem:[%s16880_s13 + $0x8a0] sm:$0xff]  ;;  %8035 = vmatpush1.bf16.msra.mxu0 %v14247_v14 }
 0x49f   : > { %v2158_v11 = vld [vmem:[%s16880_s13 + $0xc80] sm:$0xff]  ;;  %v14240_v17 = vcombine.high %v2030_v9, %v2034_v10  ;;  %8075 = vmatprep.subr.bf16.mxu1 %v14376_v12  ;;  %v14239_v25 = vcombine.low %v2030_v9, %v2034_v10 }
 0x4a0   : > { %v2162_v13 = vld [vmem:[%s16880_s13 + $0xca0] sm:$0xff]  ;;  %8076 = vmatpush1.bf16.msra.mxu1 %v14375_v16 }
 0x4a1   : > { %v2022_v18 = vld [vmem:[%s16880_s13 + $0x840] sm:$0xff]  ;;  %v14368_v21 = vcombine.high %v2158_v11, %v2162_v13  ;;  %8036 = vmatprep.subr.bf16.mxu0 %v14240_v17  ;;  %v14367_v27 = vcombine.low %v2158_v11, %v2162_v13 }
 0x4a2   : > { %v2026_v19 = vld [vmem:[%s16880_s13 + $0x860] sm:$0xff]  ;;  %8037 = vmatpush1.bf16.msra.mxu0 %v14239_v25 }
 0x4a3   : > { %v2150_v20 = vld [vmem:[%s16880_s13 + $0xc40] sm:$0xff]  ;;  %v14232_v28 = vcombine.high %v2022_v18, %v2026_v19  ;;  %8077 = vmatprep.subr.bf16.mxu1 %v14368_v21  ;;  %v14231_v35 = vcombine.low %v2022_v18, %v2026_v19 }
 0x4a4   : > { %v2154_v23 = vld [vmem:[%s16880_s13 + $0xc60] sm:$0xff]  ;;  %8078 = vmatpush1.bf16.msra.mxu1 %v14367_v27 }
 0x4a5   : > { %v2014_v30 = vld [vmem:[%s16880_s13 + $0x800] sm:$0xff]  ;;  %v14360_v1 = vcombine.high %v2150_v20, %v2154_v23  ;;  %8038 = vmatprep.subr.bf16.mxu0 %v14232_v28  ;;  %v14359_v37 = vcombine.low %v2150_v20, %v2154_v23 }
 0x4a6   : > { %v2018_v31 = vld [vmem:[%s16880_s13 + $0x820] sm:$0xff]  ;;  %8039 = vmatpush1.bf16.msra.mxu0 %v14231_v35 }
 0x4a7   : > { %v2142_v32 = vld [vmem:[%s16880_s13 + $0xc00] sm:$0xff]  ;;  %v14224_v0 = vcombine.high %v2014_v30, %v2018_v31  ;;  %8079 = vmatprep.subr.bf16.mxu1 %v14360_v1  ;;  %v14223_v44 = vcombine.low %v2014_v30, %v2018_v31 }
 0x4a8   : > { %v2146_v33 = vld [vmem:[%s16880_s13 + $0xc20] sm:$0xff]  ;;  %8080 = vmatpush1.bf16.msra.mxu1 %v14359_v37 }
 0x4a9   : > { %v2134_v40 = vld [vmem:[%s16880_s13 + $0xbc0] sm:$0xff]  ;;  %v14352_v43 = vcombine.high %v2142_v32, %v2146_v33  ;;  %8040 = vmatprep.subr.bf16.mxu0 %v14224_v0  ;;  %v14351_v45 = vcombine.low %v2142_v32, %v2146_v33 }
 0x4aa   : > { %v2138_v41 = vld [vmem:[%s16880_s13 + $0xbe0] sm:$0xff]  ;;  %8041 = vmatpush1.bf16.msra.mxu0 %v14223_v44 }
 0x4ab   : > { %v2262_v42 = vld [vmem:[%s16880_s13 + $0xfc0] sm:$0xff]  ;;  %v14344_v46 = vcombine.high %v2134_v40, %v2138_v41  ;;  %8081 = vmatprep.subr.bf16.mxu1 %v14352_v43  ;;  %v14343_v53 = vcombine.low %v2134_v40, %v2138_v41 }
 0x4ac   : > { %v2266_v29 = vld [vmem:[%s16880_s13 + $0xfe0] sm:$0xff]  ;;  %8082 = vmatpush1.bf16.msra.mxu1 %v14351_v45 }
 0x4ad   : > { %v2126_v55 = vld [vmem:[%s16880_s13 + $0xb80] sm:$0xff]  ;;  %v14472_v51 = vcombine.high %v2262_v42, %v2266_v29  ;;  %8042 = vmatprep.subr.bf16.mxu0 %v14344_v46  ;;  %v14471_v54 = vcombine.low %v2262_v42, %v2266_v29 }
 0x4ae   : > { %v2130_v49 = vld [vmem:[%s16880_s13 + $0xba0] sm:$0xff]  ;;  %8043 = vmatpush2.bf16.msra.mxu0 %v14343_v53 }
 0x4af   : > { %v2254_v50 = vld [vmem:[%s16880_s13 + $0xf80] sm:$0xff]  ;;  %v14336_v57 = vcombine.high %v2126_v55, %v2130_v49  ;;  %8083 = vmatprep.subr.bf16.mxu1 %v14472_v51  ;;  %v14335_v63 = vcombine.low %v2126_v55, %v2130_v49 }
 0x4b0   : > { %v2258_v52 = vld [vmem:[%s16880_s13 + $0xfa0] sm:$0xff]  ;;  %8084 = vmatpush2.bf16.msra.mxu1 %v14471_v54 }
 0x4b1   : > { %v2118_v58 = vld [vmem:[%s16880_s13 + $0xb40] sm:$0xff]  ;;  %v14464_v61 = vcombine.high %v2254_v50, %v2258_v52  ;;  %8044 = vmatprep.subr.bf16.mxu0 %v14336_v57  ;;  %v14463_v4 = vcombine.low %v2254_v50, %v2258_v52  ;;  %v1692_v50 = vcombine.high %v16918_v2, %v16918_v2 }
 0x4b2   : > { %v2122_v59 = vld [vmem:[%s16880_s13 + $0xb60] sm:$0xff]  ;;  %8045 = vmatpush2.bf16.msra.mxu0 %v14335_v63 }
 0x4b3   : > { %v2246_v60 = vld [vmem:[%s16880_s13 + $0xf40] sm:$0xff]  ;;  %v14328_v5 = vcombine.high %v2118_v58, %v2122_v59  ;;  %8085 = vmatprep.subr.bf16.mxu1 %v14464_v61  ;;  %v14327_v11 = vcombine.low %v2118_v58, %v2122_v59  ;;  %v17191_v61 = vrot.slane %v16918_v2, %v17021_v24 }
 0x4b4   : > { %v2250_v62 = vld [vmem:[%s16880_s13 + $0xf60] sm:$0xff]  ;;  %8086 = vmatpush2.bf16.msra.mxu1 %v14463_v4 }
 0x4b5   : > { %v2110_v6 = vld [vmem:[%s16880_s13 + $0xb00] sm:$0xff]  ;;  %v14456_v9 = vcombine.high %v2246_v60, %v2250_v62  ;;  %8046 = vmatprep.subr.bf16.mxu0 %v14328_v5  ;;  %v14455_v12 = vcombine.low %v2246_v60, %v2250_v62  ;;  %v17194_v62 = vrot.slane %v1692_v50, %v17021_v24  ;;  %v1707_v2 = vcombine.high %v17191_v61, %v17191_v61 }
 0x4b6   : > { %v2114_v7 = vld [vmem:[%s16880_s13 + $0xb20] sm:$0xff]  ;;  %8047 = vmatpush2.bf16.msra.mxu0 %v14327_v11  ;;  %v17204_v11 = vpack.c.bf16 %v17096_v22, %v17096_v22 }
 0x4b7   : > { %v2238_v8 = vld [vmem:[%s16880_s13 + $0xf00] sm:$0xff]  ;;  %v14320_v13 = vcombine.high %v2110_v6, %v2114_v7  ;;  %8087 = vmatprep.subr.bf16.mxu1 %v14456_v9  ;;  %v14319_v20 = vcombine.low %v2110_v6, %v2114_v7 }
 0x4b8   : > { %v2242_v10 = vld [vmem:[%s16880_s13 + $0xf20] sm:$0xff]  ;;  %8088 = vmatpush2.bf16.msra.mxu1 %v14455_v12  ;;  %v1708_v12 = vcombine.high %v17194_v62, %v17194_v62 }
 0x4b9   : > { %v2102_v14 = vld [vmem:[%s16880_s13 + $0xac0] sm:$0xff]  ;;  %v14448_v18 = vcombine.high %v2238_v8, %v2242_v10  ;;  %8048 = vmatprep.subr.bf16.mxu0 %v14320_v13  ;;  %v14447_v21 = vcombine.low %v2238_v8, %v2242_v10  ;;  %v17210_v13 = vpack.c.bf16 %v17101_v26, %v17101_v26 }
 0x4ba   : > { %v2106_v16 = vld [vmem:[%s16880_s13 + $0xae0] sm:$0xff]  ;;  %8049 = vmatpush2.bf16.msra.mxu0 %v14319_v20  ;;  %v17214_v20 = vpack.c.bf16 %v1707_v2, %v1707_v2 }
 0x4bb   : > { %v2230_v17 = vld [vmem:[%s16880_s13 + $0xec0] sm:$0xff]  ;;  %v14312_v23 = vcombine.high %v2102_v14, %v2106_v16  ;;  %8089 = vmatprep.subr.bf16.mxu1 %v14448_v18  ;;  %v14311_v32 = vcombine.low %v2102_v14, %v2106_v16 }
 0x4bc   : > { %v2234_v19 = vld [vmem:[%s16880_s13 + $0xee0] sm:$0xff]  ;;  %8090 = vmatpush2.bf16.msra.mxu1 %v14447_v21 }
 0x4bd   : > { %v2094_v25 = vld [vmem:[%s16880_s13 + $0xa80] sm:$0xff]  ;;  %v14440_v30 = vcombine.high %v2230_v17, %v2234_v19  ;;  %8050 = vmatprep.subr.bf16.mxu0 %v14312_v23  ;;  %v14439_v1 = vcombine.low %v2230_v17, %v2234_v19  ;;  %v17219_v23 = vpack.c.bf16 %v1708_v12, %v1708_v12 }
 0x4be   : > { %v2098_v27 = vld [vmem:[%s16880_s13 + $0xaa0] sm:$0xff]  ;;  %8051 = vmatpush2.bf16.msra.mxu0 %v14311_v32 }
 0x4bf   : > { %v2222_v28 = vld [vmem:[%s16880_s13 + $0xe80] sm:$0xff]  ;;  %v14304_v33 = vcombine.high %v2094_v25, %v2098_v27  ;;  %8091 = vmatprep.subr.bf16.mxu1 %v14440_v30  ;;  %v14303_v42 = vcombine.low %v2094_v25, %v2098_v27 }
 0x4c0   : > { %v2226_v31 = vld [vmem:[%s16880_s13 + $0xea0] sm:$0xff]  ;;  %8092 = vmatpush2.bf16.msra.mxu1 %v14439_v1 }
 0x4c1   : > { %v2086_v35 = vld [vmem:[%s16880_s13 + $0xa40] sm:$0xff]  ;;  %v14432_v40 = vcombine.high %v2222_v28, %v2226_v31  ;;  %8052 = vmatprep.subr.bf16.mxu0 %v14304_v33  ;;  %v14431_v43 = vcombine.low %v2222_v28, %v2226_v31 }
 0x4c2   : > { %v2090_v37 = vld [vmem:[%s16880_s13 + $0xa60] sm:$0xff]  ;;  %8053 = vmatpush2.bf16.msra.mxu0 %v14303_v42 }
 0x4c3   : > { %v2214_v0 = vld [vmem:[%s16880_s13 + $0xe40] sm:$0xff]  ;;  %v14296_v29 = vcombine.high %v2086_v35, %v2090_v37  ;;  %8093 = vmatprep.subr.bf16.mxu1 %v14432_v40  ;;  %v14295_v51 = vcombine.low %v2086_v35, %v2090_v37 }
 0x4c4   : > { %v2218_v41 = vld [vmem:[%s16880_s13 + $0xe60] sm:$0xff]  ;;  %8094 = vmatpush2.bf16.msra.mxu1 %v14431_v43 }
 0x4c5   : > { %v2078_v44 = vld [vmem:[%s16880_s13 + $0xa00] sm:$0xff]  ;;  %v14424_v55 = vcombine.high %v2214_v0, %v2218_v41  ;;  %8054 = vmatprep.subr.bf16.mxu0 %v14296_v29  ;;  %v14423_v52 = vcombine.low %v2214_v0, %v2218_v41 }
 0x4c6   : > { %v2082_v45 = vld [vmem:[%s16880_s13 + $0xa20] sm:$0xff]  ;;  %8055 = vmatpush2.bf16.msra.mxu0 %v14295_v51 }
 0x4c7   : > { %v2206_v46 = vld [vmem:[%s16880_s13 + $0xe00] sm:$0xff]  ;;  %v14288_v53 = vcombine.high %v2078_v44, %v2082_v45  ;;  %8095 = vmatprep.subr.bf16.mxu1 %v14424_v55  ;;  %v14287_v63 = vcombine.low %v2078_v44, %v2082_v45 }
 0x4c8   : > { %v2210_v49 = vld [vmem:[%s16880_s13 + $0xe20] sm:$0xff]  ;;  %8096 = vmatpush2.bf16.msra.mxu1 %v14423_v52 }
 0x4c9   : > { %v2326_v54 = vld [vmem:[%s16880_s13 + $0x11c0] sm:$0xff]  ;;  %v14416_v59 = vcombine.high %v2206_v46, %v2210_v49  ;;  %8056 = vmatprep.subr.bf16.mxu0 %v14288_v53  ;;  %v14415_v4 = vcombine.low %v2206_v46, %v2210_v49 }
 0x4ca   : > { %v2330_v57 = vld [vmem:[%s16880_s13 + $0x11e0] sm:$0xff]  ;;  %8057 = vmatpush2.bf16.msra.mxu0 %v14287_v63 }
 0x4cb   : > { %v2454_v58 = vld [vmem:[%s16880_s13 + $0x15c0] sm:$0xff]  ;;  %v14536_v5 = vcombine.high %v2326_v54, %v2330_v57  ;;  %8097 = vmatprep.subr.bf16.mxu1 %v14416_v59  ;;  %v14535_v14 = vcombine.low %v2326_v54, %v2330_v57 }
 0x4cc   : > { %v2458_v60 = vld [vmem:[%s16880_s13 + $0x15e0] sm:$0xff]  ;;  %8098 = vmatpush2.bf16.msra.mxu1 %v14415_v4 }
 0x4cd   : > { %v2318_v6 = vld [vmem:[%s16880_s13 + $0x1180] sm:$0xff]  ;;  %v14664_v9 = vcombine.high %v2454_v58, %v2458_v60  ;;  %8108 = vmatprep.subr.bf16.mxu0 %v14536_v5  ;;  %v14663_v16 = vcombine.low %v2454_v58, %v2458_v60  ;;  %8059 = vmatmul.mubr.bf16.vlgmr.msra.gmra.mxu0 %v17204_v11 }
 0x4ce   : > { %v2322_v7 = vld [vmem:[%s16880_s13 + $0x11a0] sm:$0xff]  ;;  %8109 = vmatpush1.bf16.msra.mxu0 %v14535_v14  ;;  %8140 = vmatprep.mubr.bf16.mxu0 %v17214_v20 }
 0x4cf   : > { %v2446_v8 = vld [vmem:[%s16880_s13 + $0x1580] sm:$0xff]  ;;  %v14528_v17 = vcombine.high %v2318_v6, %v2322_v7  ;;  %8149 = vmatprep.subr.bf16.mxu1 %v14664_v9  ;;  %8100 = vmatmul.mubr.bf16.vlgmr.msra.gmra.mxu1 %v17210_v13  ;;  %v14527_v25 = vcombine.low %v2318_v6, %v2322_v7 }
 0x4d0   : > { %v2450_v10 = vld [vmem:[%s16880_s13 + $0x15a0] sm:$0xff]  ;;  %8150 = vmatpush1.bf16.msra.mxu1 %v14663_v16  ;;  %8181 = vmatprep.mubr.bf16.mxu1 %v17219_v23 }
 0x4d1   : > { %v14656_v18 = vcombine.high %v2446_v8, %v2450_v10  ;;  %v2310_v19 = vld [vmem:[%s16880_s13 + $0x1140] sm:$0xff]  ;;  %8110 = vmatprep.subr.bf16.mxu0 %v14528_v17  ;;  %v14655_v27 = vcombine.low %v2446_v8, %v2450_v10 }
 0x4d2   : > { %v2314_v22 = vld [vmem:[%s16880_s13 + $0x1160] sm:$0xff]  ;;  %8111 = vmatpush1.bf16.msra.mxu0 %v14527_v25 }
 0x4d3   : > { %v2438_v21 = vld [vmem:[%s16880_s13 + $0x1540] sm:$0xff]  ;;  %v14520_v28 = vcombine.high %v2310_v19, %v2314_v22  ;;  %8151 = vmatprep.subr.bf16.mxu1 %v14656_v18  ;;  %v14519_v35 = vcombine.low %v2310_v19, %v2314_v22 }
 0x4d4   : > { %v2442_v26 = vld [vmem:[%s16880_s13 + $0x1560] sm:$0xff]  ;;  %8152 = vmatpush1.bf16.msra.mxu1 %v14655_v27 }
 0x4d5   : > { %v14648_v30 = vcombine.high %v2438_v21, %v2442_v26  ;;  %v2302_v31 = vld [vmem:[%s16880_s13 + $0x1100] sm:$0xff]  ;;  %8112 = vmatprep.subr.bf16.mxu0 %v14520_v28  ;;  %v14647_v37 = vcombine.low %v2438_v21, %v2442_v26 }
 0x4d6   : > { %v2306_v32 = vld [vmem:[%s16880_s13 + $0x1120] sm:$0xff]  ;;  %8113 = vmatpush1.bf16.msra.mxu0 %v14519_v35 }
 0x4d7   : > { %v2430_v1 = vld [vmem:[%s16880_s13 + $0x1500] sm:$0xff]  ;;  %v14512_v0 = vcombine.high %v2302_v31, %v2306_v32  ;;  %8153 = vmatprep.subr.bf16.mxu1 %v14648_v30  ;;  %v14511_v44 = vcombine.low %v2302_v31, %v2306_v32 }
 0x4d8   : > { %v2434_v33 = vld [vmem:[%s16880_s13 + $0x1520] sm:$0xff]  ;;  %8154 = vmatpush1.bf16.msra.mxu1 %v14647_v37 }
 0x4d9   : > { %v14640_v40 = vcombine.high %v2430_v1, %v2434_v33  ;;  %v2294_v41 = vld [vmem:[%s16880_s13 + $0x10c0] sm:$0xff]  ;;  %8114 = vmatprep.subr.bf16.mxu0 %v14512_v0  ;;  %v14639_v45 = vcombine.low %v2430_v1, %v2434_v33 }
 0x4da   : > { %v2298_v42 = vld [vmem:[%s16880_s13 + $0x10e0] sm:$0xff]  ;;  %8115 = vmatpush1.bf16.msra.mxu0 %v14511_v44 }
 0x4db   : > { %v2422_v43 = vld [vmem:[%s16880_s13 + $0x14c0] sm:$0xff]  ;;  %v14504_v46 = vcombine.high %v2294_v41, %v2298_v42  ;;  %8155 = vmatprep.subr.bf16.mxu1 %v14640_v40  ;;  %v14503_v53 = vcombine.low %v2294_v41, %v2298_v42 }
 0x4dc   : > { %v2426_v29 = vld [vmem:[%s16880_s13 + $0x14e0] sm:$0xff]  ;;  %8156 = vmatpush1.bf16.msra.mxu1 %v14639_v45 }
 0x4dd   : > { %v14632_v55 = vcombine.high %v2422_v43, %v2426_v29  ;;  %v2286_v49 = vld [vmem:[%s16880_s13 + $0x1080] sm:$0xff]  ;;  %8116 = vmatprep.subr.bf16.mxu0 %v14504_v46  ;;  %v14631_v54 = vcombine.low %v2422_v43, %v2426_v29 }
 0x4de   : > { %v2290_v50 = vld [vmem:[%s16880_s13 + $0x10a0] sm:$0xff]  ;;  %8117 = vmatpush1.bf16.msra.mxu0 %v14503_v53 }
 0x4df   : > { %v2414_v51 = vld [vmem:[%s16880_s13 + $0x1480] sm:$0xff]  ;;  %v14496_v57 = vcombine.high %v2286_v49, %v2290_v50  ;;  %8157 = vmatprep.subr.bf16.mxu1 %v14632_v55  ;;  %v14495_v5 = vcombine.low %v2286_v49, %v2290_v50 }
 0x4e0   : > { %v2418_v52 = vld [vmem:[%s16880_s13 + $0x14a0] sm:$0xff]  ;;  %8158 = vmatpush1.bf16.msra.mxu1 %v14631_v54 }
 0x4e1   : > { %v14624_v58 = vcombine.high %v2414_v51, %v2418_v52  ;;  %v2278_v59 = vld [vmem:[%s16880_s13 + $0x1040] sm:$0xff]  ;;  %8118 = vmatprep.subr.bf16.mxu0 %v14496_v57  ;;  %v14623_v6 = vcombine.low %v2414_v51, %v2418_v52 }
 0x4e2   : > { %v2282_v60 = vld [vmem:[%s16880_s13 + $0x1060] sm:$0xff]  ;;  %8119 = vmatpush1.bf16.msra.mxu0 %v14495_v5 }
 0x4e3   : > { %v2406_v63 = vld [vmem:[%s16880_s13 + $0x1440] sm:$0xff]  ;;  %v14488_v7 = vcombine.high %v2278_v59, %v2282_v60  ;;  %8159 = vmatprep.subr.bf16.mxu1 %v14624_v58  ;;  %v14487_v14 = vcombine.low %v2278_v59, %v2282_v60 }
 0x4e4   : > { %v2410_v4 = vld [vmem:[%s16880_s13 + $0x1460] sm:$0xff]  ;;  %8160 = vmatpush1.bf16.msra.mxu1 %v14623_v6 }
 0x4e5   : > { %v14616_v8 = vcombine.high %v2406_v63, %v2410_v4  ;;  %v2270_v9 = vld [vmem:[%s16880_s13 + $0x1000] sm:$0xff]  ;;  %8120 = vmatprep.subr.bf16.mxu0 %v14488_v7  ;;  %v14615_v16 = vcombine.low %v2406_v63, %v2410_v4 }
 0x4e6   : > { %v2274_v10 = vld [vmem:[%s16880_s13 + $0x1020] sm:$0xff]  ;;  %8121 = vmatpush1.bf16.msra.mxu0 %v14487_v14 }
 0x4e7   : > { %v2398_v2 = vld [vmem:[%s16880_s13 + $0x1400] sm:$0xff]  ;;  %v14480_v17 = vcombine.high %v2270_v9, %v2274_v10  ;;  %8161 = vmatprep.subr.bf16.mxu1 %v14616_v8  ;;  %v14479_v25 = vcombine.low %v2270_v9, %v2274_v10 }
 0x4e8   : > { %v2402_v12 = vld [vmem:[%s16880_s13 + $0x1420] sm:$0xff]  ;;  %8162 = vmatpush1.bf16.msra.mxu1 %v14615_v16 }
 0x4e9   : > { %v14608_v18 = vcombine.high %v2398_v2, %v2402_v12  ;;  %v2390_v19 = vld [vmem:[%s16880_s13 + $0x13c0] sm:$0xff]  ;;  %8122 = vmatprep.subr.bf16.mxu0 %v14480_v17  ;;  %v14607_v27 = vcombine.low %v2398_v2, %v2402_v12 }
 0x4ea   : > { %v2394_v22 = vld [vmem:[%s16880_s13 + $0x13e0] sm:$0xff]  ;;  %8123 = vmatpush1.bf16.msra.mxu0 %v14479_v25 }
 0x4eb   : > { %v2518_v21 = vld [vmem:[%s16880_s13 + $0x17c0] sm:$0xff]  ;;  %v14600_v28 = vcombine.high %v2390_v19, %v2394_v22  ;;  %8163 = vmatprep.subr.bf16.mxu1 %v14608_v18  ;;  %v14599_v35 = vcombine.low %v2390_v19, %v2394_v22 }
 0x4ec   : > { %v2522_v26 = vld [vmem:[%s16880_s13 + $0x17e0] sm:$0xff]  ;;  %8164 = vmatpush1.bf16.msra.mxu1 %v14607_v27 }
 0x4ed   : > { %v14728_v30 = vcombine.high %v2518_v21, %v2522_v26  ;;  %v2382_v31 = vld [vmem:[%s16880_s13 + $0x1380] sm:$0xff]  ;;  %8124 = vmatprep.subr.bf16.mxu0 %v14600_v28  ;;  %v14727_v37 = vcombine.low %v2518_v21, %v2522_v26 }
 0x4ee   : > { %v2386_v32 = vld [vmem:[%s16880_s13 + $0x13a0] sm:$0xff]  ;;  %8125 = vmatpush2.bf16.msra.mxu0 %v14599_v35  ;;  %v1709_v35 = vcombine.high %v16923_v3, %v16923_v3 }
 0x4ef   : > { %v2510_v1 = vld [vmem:[%s16880_s13 + $0x1780] sm:$0xff]  ;;  %v14592_v0 = vcombine.high %v2382_v31, %v2386_v32  ;;  %8165 = vmatprep.subr.bf16.mxu1 %v14728_v30  ;;  %v14591_v44 = vcombine.low %v2382_v31, %v2386_v32 }
 0x4f0   : > { %v2514_v33 = vld [vmem:[%s16880_s13 + $0x17a0] sm:$0xff]  ;;  %8166 = vmatpush2.bf16.msra.mxu1 %v14727_v37 }
 0x4f1   : > { %v14720_v40 = vcombine.high %v2510_v1, %v2514_v33  ;;  %v2374_v41 = vld [vmem:[%s16880_s13 + $0x1340] sm:$0xff]  ;;  %8126 = vmatprep.subr.bf16.mxu0 %v14592_v0  ;;  %v14719_v45 = vcombine.low %v2510_v1, %v2514_v33 }
 0x4f2   : > { %v2378_v42 = vld [vmem:[%s16880_s13 + $0x1360] sm:$0xff]  ;;  %8127 = vmatpush2.bf16.msra.mxu0 %v14591_v44 }
 0x4f3   : > { %v2502_v43 = vld [vmem:[%s16880_s13 + $0x1740] sm:$0xff]  ;;  %v14584_v46 = vcombine.high %v2374_v41, %v2378_v42  ;;  %8167 = vmatprep.subr.bf16.mxu1 %v14720_v40  ;;  %v14583_v53 = vcombine.low %v2374_v41, %v2378_v42 }
 0x4f4   : > { %v2506_v29 = vld [vmem:[%s16880_s13 + $0x1760] sm:$0xff]  ;;  %8168 = vmatpush2.bf16.msra.mxu1 %v14719_v45 }
 0x4f5   : > { %v14712_v55 = vcombine.high %v2502_v43, %v2506_v29  ;;  %v2366_v49 = vld [vmem:[%s16880_s13 + $0x1300] sm:$0xff]  ;;  %8128 = vmatprep.subr.bf16.mxu0 %v14584_v46  ;;  %v14711_v54 = vcombine.low %v2502_v43, %v2506_v29  ;;  %v17282_v29 = vrot.slane %v16923_v3, %v17021_v24  ;;  %v17287_v46 = vrot.slane %v1709_v35, %v17021_v24 }
 0x4f6   : > { %v2370_v50 = vld [vmem:[%s16880_s13 + $0x1320] sm:$0xff]  ;;  %8129 = vmatpush2.bf16.msra.mxu0 %v14583_v53 }
 0x4f7   : > { %v2494_v51 = vld [vmem:[%s16880_s13 + $0x1700] sm:$0xff]  ;;  %v14576_v57 = vcombine.high %v2366_v49, %v2370_v50  ;;  %8169 = vmatprep.subr.bf16.mxu1 %v14712_v55  ;;  %v14575_v5 = vcombine.low %v2366_v49, %v2370_v50  ;;  %v1724_v3 = vcombine.high %v17282_v29, %v17282_v29 }
 0x4f8   : > { %v2498_v52 = vld [vmem:[%s16880_s13 + $0x1720] sm:$0xff]  ;;  %8170 = vmatpush2.bf16.msra.mxu1 %v14711_v54  ;;  %v17295_v54 = vpack.c.bf16 %v17191_v61, %v17191_v61 }
 0x4f9   : > { %v14704_v58 = vcombine.high %v2494_v51, %v2498_v52  ;;  %v2358_v59 = vld [vmem:[%s16880_s13 + $0x12c0] sm:$0xff]  ;;  %8130 = vmatprep.subr.bf16.mxu0 %v14576_v57  ;;  %v14703_v6 = vcombine.low %v2494_v51, %v2498_v52 }
 0x4fa   : > { %v2362_v60 = vld [vmem:[%s16880_s13 + $0x12e0] sm:$0xff]  ;;  %8131 = vmatpush2.bf16.msra.mxu0 %v14575_v5 }
 0x4fb   : > { %v2486_v63 = vld [vmem:[%s16880_s13 + $0x16c0] sm:$0xff]  ;;  %v14568_v7 = vcombine.high %v2358_v59, %v2362_v60  ;;  %8171 = vmatprep.subr.bf16.mxu1 %v14704_v58  ;;  %v14567_v14 = vcombine.low %v2358_v59, %v2362_v60  ;;  %v1725_v58 = vcombine.high %v17287_v46, %v17287_v46  ;;  %v17303_v59 = vpack.c.bf16 %v17194_v62, %v17194_v62 }
 0x4fc   : > { %v2490_v4 = vld [vmem:[%s16880_s13 + $0x16e0] sm:$0xff]  ;;  %8172 = vmatpush2.bf16.msra.mxu1 %v14703_v6 }
 0x4fd   : > { %v14696_v8 = vcombine.high %v2486_v63, %v2490_v4  ;;  %v2350_v9 = vld [vmem:[%s16880_s13 + $0x1280] sm:$0xff]  ;;  %8132 = vmatprep.subr.bf16.mxu0 %v14568_v7  ;;  %v14695_v16 = vcombine.low %v2486_v63, %v2490_v4  ;;  %v17307_v7 = vpack.c.bf16 %v1724_v3, %v1724_v3 }
 0x4fe   : > { %v2354_v10 = vld [vmem:[%s16880_s13 + $0x12a0] sm:$0xff]  ;;  %8133 = vmatpush2.bf16.msra.mxu0 %v14567_v14 }
 0x4ff   : > { %v2478_v2 = vld [vmem:[%s16880_s13 + $0x1680] sm:$0xff]  ;;  %v14560_v17 = vcombine.high %v2350_v9, %v2354_v10  ;;  %8173 = vmatprep.subr.bf16.mxu1 %v14696_v8  ;;  %v14559_v25 = vcombine.low %v2350_v9, %v2354_v10  ;;  %v17312_v9 = vpack.c.bf16 %v1725_v58, %v1725_v58 }
 0x500   : > { %v2482_v12 = vld [vmem:[%s16880_s13 + $0x16a0] sm:$0xff]  ;;  %8174 = vmatpush2.bf16.msra.mxu1 %v14695_v16 }
 0x501   : > { %v14688_v18 = vcombine.high %v2478_v2, %v2482_v12  ;;  %v2342_v19 = vld [vmem:[%s16880_s13 + $0x1240] sm:$0xff]  ;;  %8134 = vmatprep.subr.bf16.mxu0 %v14560_v17  ;;  %v14687_v27 = vcombine.low %v2478_v2, %v2482_v12 }
 0x502   : > { %v2346_v22 = vld [vmem:[%s16880_s13 + $0x1260] sm:$0xff]  ;;  %8135 = vmatpush2.bf16.msra.mxu0 %v14559_v25 }
 0x503   : > { %v2470_v21 = vld [vmem:[%s16880_s13 + $0x1640] sm:$0xff]  ;;  %v14552_v28 = vcombine.high %v2342_v19, %v2346_v22  ;;  %8175 = vmatprep.subr.bf16.mxu1 %v14688_v18  ;;  %v14551_v37 = vcombine.low %v2342_v19, %v2346_v22 }
 0x504   : > { %v2474_v26 = vld [vmem:[%s16880_s13 + $0x1660] sm:$0xff]  ;;  %8176 = vmatpush2.bf16.msra.mxu1 %v14687_v27 }
 0x505   : > { %v14680_v30 = vcombine.high %v2470_v21, %v2474_v26  ;;  %v2334_v31 = vld [vmem:[%s16880_s13 + $0x1200] sm:$0xff]  ;;  %8136 = vmatprep.subr.bf16.mxu0 %v14552_v28  ;;  %v14679_v0 = vcombine.low %v2470_v21, %v2474_v26 }
 0x506   : > { %v2338_v32 = vld [vmem:[%s16880_s13 + $0x1220] sm:$0xff]  ;;  %8137 = vmatpush2.bf16.msra.mxu0 %v14551_v37 }
 0x507   : > { %v2462_v1 = vld [vmem:[%s16880_s13 + $0x1600] sm:$0xff]  ;;  %v14544_v40 = vcombine.high %v2334_v31, %v2338_v32  ;;  %8177 = vmatprep.subr.bf16.mxu1 %v14680_v30  ;;  %v14543_v55 = vcombine.low %v2334_v31, %v2338_v32 }
 0x508   : > { %v2466_v33 = vld [vmem:[%s16880_s13 + $0x1620] sm:$0xff]  ;;  %8178 = vmatpush2.bf16.msra.mxu1 %v14679_v0 }
 0x509   : > { %v14672_v41 = vcombine.high %v2462_v1, %v2466_v33  ;;  %v2582_v42 = vld [vmem:[%s16880_s13 + $0x19c0] sm:$0xff]  ;;  %8138 = vmatprep.subr.bf16.mxu0 %v14544_v40  ;;  %v14671_v49 = vcombine.low %v2462_v1, %v2466_v33 }
 0x50a   : > { %v2586_v43 = vld [vmem:[%s16880_s13 + $0x19e0] sm:$0xff]  ;;  %8139 = vmatpush2.bf16.msra.mxu0 %v14543_v55 }
 0x50b   : > { %v2710_v44 = vld [vmem:[%s16880_s13 + $0x1dc0] sm:$0xff]  ;;  %v14792_v50 = vcombine.high %v2582_v42, %v2586_v43  ;;  %8179 = vmatprep.subr.bf16.mxu1 %v14672_v41  ;;  %v14791_v60 = vcombine.low %v2582_v42, %v2586_v43 }
 0x50c   : > { %v2714_v45 = vld [vmem:[%s16880_s13 + $0x1de0] sm:$0xff]  ;;  %8180 = vmatpush2.bf16.msra.mxu1 %v14671_v49 }
 0x50d   : > { %v14920_v51 = vcombine.high %v2710_v44, %v2714_v45  ;;  %v2574_v52 = vld [vmem:[%s16880_s13 + $0x1980] sm:$0xff]  ;;  %8190 = vmatprep.subr.bf16.mxu0 %v14792_v50  ;;  %v14919_v63 = vcombine.low %v2710_v44, %v2714_v45  ;;  %8141 = vmatmul.mubr.bf16.vlgmr.msra.gmra.mxu0 %v17295_v54 }
 0x50e   : > { %v2578_v53 = vld [vmem:[%s16880_s13 + $0x19a0] sm:$0xff]  ;;  %8191 = vmatpush1.bf16.msra.mxu0 %v14791_v60  ;;  %8222 = vmatprep.mubr.bf16.mxu0 %v17307_v7 }
 0x50f   : > { %v2702_v24 = vld [vmem:[%s16880_s13 + $0x1d80] sm:$0xff]  ;;  %v14784_v4 = vcombine.high %v2574_v52, %v2578_v53  ;;  %8231 = vmatprep.subr.bf16.mxu1 %v14920_v51  ;;  %8182 = vmatmul.mubr.bf16.vlgmr.msra.gmra.mxu1 %v17303_v59  ;;  %v14783_v10 = vcombine.low %v2574_v52, %v2578_v53 }
 0x510   : > { %v2706_v57 = vld [vmem:[%s16880_s13 + $0x1da0] sm:$0xff]  ;;  %8232 = vmatpush1.bf16.msra.mxu1 %v14919_v63  ;;  %8263 = vmatprep.mubr.bf16.mxu1 %v17312_v9 }
 0x511   : > { %v14912_v61 = vcombine.high %v2702_v24, %v2706_v57  ;;  %v2566_v5 = vld [vmem:[%s16880_s13 + $0x1940] sm:$0xff]  ;;  %8192 = vmatprep.subr.bf16.mxu0 %v14784_v4  ;;  %v14911_v2 = vcombine.low %v2702_v24, %v2706_v57 }
 0x512   : > { %v2570_v6 = vld [vmem:[%s16880_s13 + $0x1960] sm:$0xff]  ;;  %8193 = vmatpush1.bf16.msra.mxu0 %v14783_v10 }
 0x513   : > { %v2694_v8 = vld [vmem:[%s16880_s13 + $0x1d40] sm:$0xff]  ;;  %v14776_v12 = vcombine.high %v2566_v5, %v2570_v6  ;;  %8233 = vmatprep.subr.bf16.mxu1 %v14912_v61  ;;  %v14775_v22 = vcombine.low %v2566_v5, %v2570_v6 }
 0x514   : > { %v2698_v62 = vld [vmem:[%s16880_s13 + $0x1d60] sm:$0xff]  ;;  %8234 = vmatpush1.bf16.msra.mxu1 %v14911_v2 }
 0x515   : > { %v14904_v14 = vcombine.high %v2694_v8, %v2698_v62  ;;  %v2558_v16 = vld [vmem:[%s16880_s13 + $0x1900] sm:$0xff]  ;;  %8194 = vmatprep.subr.bf16.mxu0 %v14776_v12  ;;  %v14903_v21 = vcombine.low %v2694_v8, %v2698_v62 }
 0x516   : > { %v2562_v17 = vld [vmem:[%s16880_s13 + $0x1920] sm:$0xff]  ;;  %8195 = vmatpush1.bf16.msra.mxu0 %v14775_v22 }
 0x517   : > { %v2686_v18 = vld [vmem:[%s16880_s13 + $0x1d00] sm:$0xff]  ;;  %v14768_v26 = vcombine.high %v2558_v16, %v2562_v17  ;;  %8235 = vmatprep.subr.bf16.mxu1 %v14904_v14  ;;  %v14767_v32 = vcombine.low %v2558_v16, %v2562_v17 }
 0x518   : > { %v2690_v19 = vld [vmem:[%s16880_s13 + $0x1d20] sm:$0xff]  ;;  %8236 = vmatpush1.bf16.msra.mxu1 %v14903_v21 }
 0x519   : > { %v14896_v25 = vcombine.high %v2686_v18, %v2690_v19  ;;  %v2550_v27 = vld [vmem:[%s16880_s13 + $0x18c0] sm:$0xff]  ;;  %8196 = vmatprep.subr.bf16.mxu0 %v14768_v26  ;;  %v14895_v1 = vcombine.low %v2686_v18, %v2690_v19 }
 0x51a   : > { %v2554_v28 = vld [vmem:[%s16880_s13 + $0x18e0] sm:$0xff]  ;;  %8197 = vmatpush1.bf16.msra.mxu0 %v14767_v32 }
 0x51b   : > { %v2678_v30 = vld [vmem:[%s16880_s13 + $0x1cc0] sm:$0xff]  ;;  %v14760_v33 = vcombine.high %v2550_v27, %v2554_v28  ;;  %8237 = vmatprep.subr.bf16.mxu1 %v14896_v25  ;;  %v14759_v42 = vcombine.low %v2550_v27, %v2554_v28 }
 0x51c   : > { %v2682_v31 = vld [vmem:[%s16880_s13 + $0x1ce0] sm:$0xff]  ;;  %8238 = vmatpush1.bf16.msra.mxu1 %v14895_v1 }
 0x51d   : > { %v14888_v35 = vcombine.high %v2678_v30, %v2682_v31  ;;  %v2542_v37 = vld [vmem:[%s16880_s13 + $0x1880] sm:$0xff]  ;;  %8198 = vmatprep.subr.bf16.mxu0 %v14760_v33  ;;  %v14887_v43 = vcombine.low %v2678_v30, %v2682_v31 }
 0x51e   : > { %v2546_v0 = vld [vmem:[%s16880_s13 + $0x18a0] sm:$0xff]  ;;  %8199 = vmatpush1.bf16.msra.mxu0 %v14759_v42 }
 0x51f   : > { %v2670_v40 = vld [vmem:[%s16880_s13 + $0x1c80] sm:$0xff]  ;;  %v14752_v44 = vcombine.high %v2542_v37, %v2546_v0  ;;  %8239 = vmatprep.subr.bf16.mxu1 %v14888_v35  ;;  %v14751_v52 = vcombine.low %v2542_v37, %v2546_v0 }
 0x520   : > { %v2674_v41 = vld [vmem:[%s16880_s13 + $0x1ca0] sm:$0xff]  ;;  %8240 = vmatpush1.bf16.msra.mxu1 %v14887_v43 }
 0x521   : > { %v14880_v45 = vcombine.high %v2670_v40, %v2674_v41  ;;  %v2534_v55 = vld [vmem:[%s16880_s13 + $0x1840] sm:$0xff]  ;;  %8200 = vmatprep.subr.bf16.mxu0 %v14752_v44  ;;  %v14879_v53 = vcombine.low %v2670_v40, %v2674_v41 }
 0x522   : > { %v2538_v49 = vld [vmem:[%s16880_s13 + $0x1860] sm:$0xff]  ;;  %8201 = vmatpush1.bf16.msra.mxu0 %v14751_v52 }
 0x523   : > { %v2662_v50 = vld [vmem:[%s16880_s13 + $0x1c40] sm:$0xff]  ;;  %v14744_v3 = vcombine.high %v2534_v55, %v2538_v49  ;;  %8241 = vmatprep.subr.bf16.mxu1 %v14880_v45  ;;  %v14743_v4 = vcombine.low %v2534_v55, %v2538_v49 }
 0x524   : > { %v2666_v51 = vld [vmem:[%s16880_s13 + $0x1c60] sm:$0xff]  ;;  %8242 = vmatpush1.bf16.msra.mxu1 %v14879_v53 }
 0x525   : > { %v14872_v24 = vcombine.high %v2662_v50, %v2666_v51  ;;  %v2526_v57 = vld [vmem:[%s16880_s13 + $0x1800] sm:$0xff]  ;;  %8202 = vmatprep.subr.bf16.mxu0 %v14744_v3  ;;  %v14871_v61 = vcombine.low %v2662_v50, %v2666_v51 }
 0x526   : > { %v2530_v58 = vld [vmem:[%s16880_s13 + $0x1820] sm:$0xff]  ;;  %8203 = vmatpush1.bf16.msra.mxu0 %v14743_v4 }
 0x527   : > { %v2654_v60 = vld [vmem:[%s16880_s13 + $0x1c00] sm:$0xff]  ;;  %v14736_v5 = vcombine.high %v2526_v57, %v2530_v58  ;;  %8243 = vmatprep.subr.bf16.mxu1 %v14872_v24  ;;  %v14735_v12 = vcombine.low %v2526_v57, %v2530_v58 }
 0x528   : > { %v2658_v63 = vld [vmem:[%s16880_s13 + $0x1c20] sm:$0xff]  ;;  %8244 = vmatpush1.bf16.msra.mxu1 %v14871_v61 }
 0x529   : > { %v14864_v6 = vcombine.high %v2654_v60, %v2658_v63  ;;  %v2646_v8 = vld [vmem:[%s16880_s13 + $0x1bc0] sm:$0xff]  ;;  %8204 = vmatprep.subr.bf16.mxu0 %v14736_v5  ;;  %v14863_v14 = vcombine.low %v2654_v60, %v2658_v63 }
 0x52a   : > { %v2650_v62 = vld [vmem:[%s16880_s13 + $0x1be0] sm:$0xff]  ;;  %8205 = vmatpush1.bf16.msra.mxu0 %v14735_v12 }
 0x52b   : > { %v2774_v10 = vld [vmem:[%s16880_s13 + $0x1fc0] sm:$0xff]  ;;  %v14856_v16 = vcombine.high %v2646_v8, %v2650_v62  ;;  %8245 = vmatprep.subr.bf16.mxu1 %v14864_v6  ;;  %v14855_v26 = vcombine.low %v2646_v8, %v2650_v62 }
 0x52c   : > { %v2778_v2 = vld [vmem:[%s16880_s13 + $0x1fe0] sm:$0xff]  ;;  %8246 = vmatpush1.bf16.msra.mxu1 %v14863_v14 }
 0x52d   : > { %v14984_v17 = vcombine.high %v2774_v10, %v2778_v2  ;;  %v2638_v18 = vld [vmem:[%s16880_s13 + $0x1b80] sm:$0xff]  ;;  %8206 = vmatprep.subr.bf16.mxu0 %v14856_v16  ;;  %v14983_v25 = vcombine.low %v2774_v10, %v2778_v2 }
 0x52e   : > { %v2642_v19 = vld [vmem:[%s16880_s13 + $0x1ba0] sm:$0xff]  ;;  %8207 = vmatpush2.bf16.msra.mxu0 %v14855_v26 }
 0x52f   : > { %v2766_v22 = vld [vmem:[%s16880_s13 + $0x1f80] sm:$0xff]  ;;  %v14848_v27 = vcombine.high %v2638_v18, %v2642_v19  ;;  %8247 = vmatprep.subr.bf16.mxu1 %v14984_v17  ;;  %v14847_v33 = vcombine.low %v2638_v18, %v2642_v19 }
 0x530   : > { %v2770_v21 = vld [vmem:[%s16880_s13 + $0x1fa0] sm:$0xff]  ;;  %8248 = vmatpush2.bf16.msra.mxu1 %v14983_v25 }
 0x531   : > { %v14976_v28 = vcombine.high %v2766_v22, %v2770_v21  ;;  %v2630_v30 = vld [vmem:[%s16880_s13 + $0x1b40] sm:$0xff]  ;;  %8208 = vmatprep.subr.bf16.mxu0 %v14848_v27  ;;  %v14975_v35 = vcombine.low %v2766_v22, %v2770_v21 }
 0x532   : > { %v2634_v31 = vld [vmem:[%s16880_s13 + $0x1b60] sm:$0xff]  ;;  %8209 = vmatpush2.bf16.msra.mxu0 %v14847_v33  ;;  %v1943_v33 = vld [vmem:[%s16880_s13 + $0x5c8] sm:$0xff] }
 0x533   : > { %v2758_v32 = vld [vmem:[%s16880_s13 + $0x1f40] sm:$0xff]  ;;  %v14840_v37 = vcombine.high %v2630_v30, %v2634_v31  ;;  %8249 = vmatprep.subr.bf16.mxu1 %v14976_v28  ;;  %v14839_v44 = vcombine.low %v2630_v30, %v2634_v31 }
 0x534   : > { %v2762_v1 = vld [vmem:[%s16880_s13 + $0x1f60] sm:$0xff]  ;;  %8250 = vmatpush2.bf16.msra.mxu1 %v14975_v35  ;;  %v1947_v35 = vld [vmem:[%s16880_s13 + $0x5e8] sm:$0xff] }
 0x535   : > { %v14968_v0 = vcombine.high %v2758_v32, %v2762_v1  ;;  %v2622_v40 = vld [vmem:[%s16880_s13 + $0x1b00] sm:$0xff]  ;;  %8210 = vmatprep.subr.bf16.mxu0 %v14840_v37  ;;  %v14967_v45 = vcombine.low %v2758_v32, %v2762_v1  ;;  %v1815_v32 = vld [vmem:[%s16880_s13 + $0x1c8] sm:$0xff] }
 0x536   : > { %v2626_v41 = vld [vmem:[%s16880_s13 + $0x1b20] sm:$0xff]  ;;  %8211 = vmatpush2.bf16.msra.mxu0 %v14839_v44  ;;  %v1819_v1 = vld [vmem:[%s16880_s13 + $0x1e8] sm:$0xff]  ;;  %v2790_v44 = vsub.s32 1, %v17014_v15 }
 0x537   : > { %v2750_v42 = vld [vmem:[%s16880_s13 + $0x1f00] sm:$0xff]  ;;  %v14832_v55 = vcombine.high %v2622_v40, %v2626_v41  ;;  %8251 = vmatprep.subr.bf16.mxu1 %v14968_v0  ;;  %v14831_v3 = vcombine.low %v2622_v40, %v2626_v41  ;;  %v2786_v0 = vsub.s32 0, %v17014_v15 }
 0x538   : > { %v2754_v43 = vld [vmem:[%s16880_s13 + $0x1f20] sm:$0xff]  ;;  %8252 = vmatpush2.bf16.msra.mxu1 %v14967_v45  ;;  %v1807_v45 = vld [vmem:[%s16880_s13 + $0x188] sm:$0xff] }
 0x539   : > { %v14960_v49 = vcombine.high %v2750_v42, %v2754_v43  ;;  %v2614_v50 = vld [vmem:[%s16880_s13 + $0x1ac0] sm:$0xff]  ;;  %8212 = vmatprep.subr.bf16.mxu0 %v14832_v55  ;;  %v14959_v24 = vcombine.low %v2750_v42, %v2754_v43  ;;  %v14026_v42 = vcombine.high %v1815_v32, %v1819_v1  ;;  %v14154_v43 = vcombine.high %v1943_v33, %v1947_v35  ;;  %v1811_v55 = vld [vmem:[%s16880_s13 + $0x1a8] sm:$0xff] }
 0x53a   : > { %v2618_v51 = vld [vmem:[%s16880_s13 + $0x1ae0] sm:$0xff]  ;;  %8213 = vmatpush2.bf16.msra.mxu0 %v14831_v3  ;;  %v14025_v3 = vcombine.low %v1815_v32, %v1819_v1 }
 0x53b   : > { %v2742_v52 = vld [vmem:[%s16880_s13 + $0x1ec0] sm:$0xff]  ;;  %v14824_v57 = vcombine.high %v2614_v50, %v2618_v51  ;;  %8253 = vmatprep.subr.bf16.mxu1 %v14960_v49  ;;  %v14823_v5 = vcombine.low %v2614_v50, %v2618_v51  ;;  %v17380_v49 = vpack.c.bf16 %v17282_v29, %v17282_v29  ;;  %v1935_v50 = vld [vmem:[%s16880_s13 + $0x588] sm:$0xff] }
 0x53c   : > { %v2746_v53 = vld [vmem:[%s16880_s13 + $0x1ee0] sm:$0xff]  ;;  %8254 = vmatpush2.bf16.msra.mxu1 %v14959_v24  ;;  %v1939_v51 = vld [vmem:[%s16880_s13 + $0x5a8] sm:$0xff]  ;;  %v14153_v24 = vcombine.low %v1943_v33, %v1947_v35 }
 0x53d   : > { %v14952_v58 = vcombine.high %v2742_v52, %v2746_v53  ;;  %v2606_v60 = vld [vmem:[%s16880_s13 + $0x1a80] sm:$0xff]  ;;  %8214 = vmatprep.subr.bf16.mxu0 %v14824_v57  ;;  %v14951_v6 = vcombine.low %v2742_v52, %v2746_v53  ;;  %v17388_v53 = vpack.c.bf16 %v17287_v46, %v17287_v46  ;;  %v14018_v57 = vcombine.high %v1807_v45, %v1811_v55  ;;  %v1783_v35 = vld [vmem:[%s16880_s13 + $0xc8] sm:$0xff] }
 0x53e   : > { %v2610_v63 = vld [vmem:[%s16880_s13 + $0x1aa0] sm:$0xff]  ;;  %8215 = vmatpush2.bf16.msra.mxu0 %v14823_v5  ;;  %v1931_v5 = vld [vmem:[%s16880_s13 + $0x568] sm:$0xff] }
 0x53f   : > { %v2734_v4 = vld [vmem:[%s16880_s13 + $0x1e80] sm:$0xff]  ;;  %v14816_v8 = vcombine.high %v2606_v60, %v2610_v63  ;;  %8255 = vmatprep.subr.bf16.mxu1 %v14952_v58  ;;  %v14815_v16 = vcombine.low %v2606_v60, %v2610_v63  ;;  %v14146_v58 = vcombine.high %v1935_v50, %v1939_v51  ;;  %v1799_v60 = vld [vmem:[%s16880_s13 + $0x148] sm:$0xff] }
 0x540   : > { %v2738_v61 = vld [vmem:[%s16880_s13 + $0x1ea0] sm:$0xff]  ;;  %8256 = vmatpush2.bf16.msra.mxu1 %v14951_v6  ;;  %v1803_v63 = vld [vmem:[%s16880_s13 + $0x168] sm:$0xff] }
 0x541   : > { %v14944_v62 = vcombine.high %v2734_v4, %v2738_v61  ;;  %v2598_v10 = vld [vmem:[%s16880_s13 + $0x1a40] sm:$0xff]  ;;  %8216 = vmatprep.subr.bf16.mxu0 %v14816_v8  ;;  %v14943_v17 = vcombine.low %v2734_v4, %v2738_v61  ;;  %v1927_v61 = vld [vmem:[%s16880_s13 + $0x548] sm:$0xff]  ;;  %v14017_v8 = vcombine.low %v1807_v45, %v1811_v55 }
 0x542   : > { %v2602_v2 = vld [vmem:[%s16880_s13 + $0x1a60] sm:$0xff]  ;;  %8217 = vmatpush2.bf16.msra.mxu0 %v14815_v16 }
 0x543   : > { %v2726_v12 = vld [vmem:[%s16880_s13 + $0x1e40] sm:$0xff]  ;;  %v14808_v18 = vcombine.high %v2598_v10, %v2602_v2  ;;  %8257 = vmatprep.subr.bf16.mxu1 %v14944_v62  ;;  %v14807_v27 = vcombine.low %v2598_v10, %v2602_v2  ;;  %v14145_v10 = vcombine.low %v1935_v50, %v1939_v51  ;;  %v14010_v2 = vcombine.high %v1799_v60, %v1803_v63  ;;  %v1775_v50 = vld [vmem:[%s16880_s13 + $0x88] sm:$0xff] }
 0x544   : > { %v2730_v14 = vld [vmem:[%s16880_s13 + $0x1e60] sm:$0xff]  ;;  %8258 = vmatpush2.bf16.msra.mxu1 %v14943_v17  ;;  %v14138_v17 = vcombine.high %v1927_v61, %v1931_v5  ;;  %v1779_v51 = vld [vmem:[%s16880_s13 + $0xa8] sm:$0xff] }
 0x545   : > { %v14936_v19 = vcombine.high %v2726_v12, %v2730_v14  ;;  %v2590_v22 = vld [vmem:[%s16880_s13 + $0x1a00] sm:$0xff]  ;;  %8218 = vmatprep.subr.bf16.mxu0 %v14808_v18  ;;  %v14935_v28 = vcombine.low %v2726_v12, %v2730_v14  ;;  %v1791_v18 = vld [vmem:[%s16880_s13 + $0x108] sm:$0xff] }
 0x546   : > { %v2594_v21 = vld [vmem:[%s16880_s13 + $0x1a20] sm:$0xff]  ;;  %8219 = vmatpush2.bf16.msra.mxu0 %v14807_v27 }
 0x547   : > { %v2718_v26 = vld [vmem:[%s16880_s13 + $0x1e00] sm:$0xff]  ;;  %v14800_v30 = vcombine.high %v2590_v22, %v2594_v21  ;;  %8259 = vmatprep.subr.bf16.mxu1 %v14936_v19  ;;  %v14799_v37 = vcombine.low %v2590_v22, %v2594_v21  ;;  %v1795_v19 = vld [vmem:[%s16880_s13 + $0x128] sm:$0xff] }
 0x548   : > { %v2722_v25 = vld [vmem:[%s16880_s13 + $0x1e20] sm:$0xff]  ;;  %8260 = vmatpush2.bf16.msra.mxu1 %v14935_v28  ;;  %v1919_v21 = vld [vmem:[%s16880_s13 + $0x508] sm:$0xff]  ;;  %v14009_v28 = vcombine.low %v1799_v60, %v1803_v63  ;;  %v14002_v32 = vcombine.high %v1791_v18, %v1795_v19 }
 0x549   : > { %v14928_v31 = vcombine.high %v2718_v26, %v2722_v25  ;;  %8220 = vmatprep.subr.bf16.mxu0 %v14800_v30  ;;  %v14927_v40 = vcombine.low %v2718_v26, %v2722_v25  ;;  %v2782_v41 = vld [vmem:[%s16888_s17] sm:$0xff] }
 0x54a   : > { %8221 = vmatpush2.bf16.msra.mxu0 %v14799_v37  ;;  %v2787_v52 = vrot.slane %v2782_v41, %v2786_v0  ;;  %v2791_v29 = vrot.slane %v2782_v41, %v2790_v44  ;;  %v1923_v26 = vld [vmem:[%s16880_s13 + $0x528] sm:$0xff] }
 0x54b   : > { %8261 = vmatprep.subr.bf16.mxu1 %v14928_v31  ;;  %8272 = vmatprep.subr.bf16.mxu0 %v14026_v42  ;;  %v14137_v31 = vcombine.low %v1927_v61, %v1931_v5  ;;  %v14130_v33 = vcombine.high %v1919_v21, %v1923_v26  ;;  %v1787_v37 = vld [vmem:[%s16880_s13 + $0xe8] sm:$0xff]  ;;  %v14001_v42 = vcombine.low %v1791_v18, %v1795_v19 }
 0x54c   : > { %8262 = vmatpush2.bf16.msra.mxu1 %v14927_v40  ;;  %v1911_v40 = vld [vmem:[%s16880_s13 + $0x4c8] sm:$0xff]  ;;  %v13994_v45 = vcombine.high %v1783_v35, %v1787_v37  ;;  %v13985_v5 = vcombine.low %v1775_v50, %v1779_v51 }
 0x54d   : > { %8313 = vmatprep.subr.bf16.mxu1 %v14154_v43  ;;  %v7978_v4 = vpop.f32.mrf.mxu0  ;;  %8223 = vmatmul.mubr.bf16.vlgmr.msra.gmra.mxu0 %v17380_v49  ;;  %v1915_v41 = vld [vmem:[%s16880_s13 + $0x4e8] sm:$0xff]  ;;  %v14129_v43 = vcombine.low %v1919_v21, %v1923_v26 }
 0x54e   : > { %v7979_v46 = vadd.f32 %v7978_v4, %v2787_v52  ;;  %8273 = vmatpush1.bf16.msra.mxu0 %v14025_v3  ;;  %8304 = vmatprep.mubr.bf16.mxu0 %v17038_v39  ;;  %v14122_v55 = vcombine.high %v1911_v40, %v1915_v41  ;;  %v1903_v52 = vld [vmem:[%s16880_s13 + $0x488] sm:$0xff] }
 0x54f   : > { %v8019_v6 = vpop.f32.mrf.mxu1  ;;  %8264 = vmatmul.mubr.bf16.vlgmr.msra.gmra.mxu1 %v17388_v53  ;;  %v7980_v62 = vpop.f32.mrf.mxu0  ;;  %8274 = vmatprep.subr.bf16.mxu0 %v14018_v57  ;;  %v1907_v3 = vld [vmem:[%s16880_s13 + $0x4a8] sm:$0xff]  ;;  %v14121_v57 = vcombine.low %v1911_v40, %v1915_v41 }
 0x550   : > { %8314 = vmatpush1.bf16.msra.mxu1 %v14153_v24  ;;  %v17398_v12 = vadd.f32 %v8019_v6, %v7979_v46  ;;  %v7981_v14 = vadd.f32 %v7980_v62, %v2791_v29  ;;  %8345 = vmatprep.mubr.bf16.mxu1 %v17047_v48  ;;  %v13993_v24 = vcombine.low %v1783_v35, %v1787_v37  ;;  %v1767_v60 = vld [vmem:[%s16880_s13 + $0x48] sm:$0xff] }
 0x551   : > { %v8021_v16 = vpop.f32.mrf.mxu1  ;;  %8315 = vmatprep.subr.bf16.mxu1 %v14146_v58  ;;  %v7982_v22 = vpop.f32.mrf.mxu0  ;;  %v13986_v29 = vcombine.high %v1775_v50, %v1779_v51  ;;  %v14114_v58 = vcombine.high %v1903_v52, %v1907_v3  ;;  %v1771_v63 = vld [vmem:[%s16880_s13 + $0x68] sm:$0xff]  ;;  %v14113_v46 = vcombine.low %v1903_v52, %v1907_v3 }
 0x552   : > { %v17406_v25 = vadd.f32 %v8021_v16, %v7981_v14  ;;  %8275 = vmatpush1.bf16.msra.mxu0 %v14017_v8  ;;  %v1895_v4 = vld [vmem:[%s16880_s13 + $0x448] sm:$0xff]  ;;  %v13978_v6 = vcombine.high %v1767_v60, %v1771_v63  ;;  %v13977_v16 = vcombine.low %v1767_v60, %v1771_v63 }
 0x553   : > { %v8023_v27 = vpop.f32.mrf.mxu1  ;;  %v7983_v30 = vpop.f32.mrf.mxu0  ;;  %8276 = vmatprep.subr.bf16.mxu0 %v14010_v2  ;;  %v1899_v61 = vld [vmem:[%s16880_s13 + $0x468] sm:$0xff] }
 0x554   : > { %8316 = vmatpush1.bf16.msra.mxu1 %v14145_v10  ;;  %v14106_v8 = vcombine.high %v1895_v4, %v1899_v61  ;;  %v1759_v62 = vld [vmem:[%s16880_s13 + $0x8] sm:$0xff] }
 0x555   : > { %v8024_v1 = vpop.f32.mrf.mxu1  ;;  %8317 = vmatprep.subr.bf16.mxu1 %v14138_v17  ;;  %v1763_v10 = vld [vmem:[%s16880_s13 + $0x28] sm:$0xff]  ;;  %v14105_v17 = vcombine.low %v1895_v4, %v1899_v61 }
 0x556   : > { %8277 = vmatpush1.bf16.msra.mxu0 %v14009_v28  ;;  %v1887_v2 = vld [vmem:[%s16880_s13 + $0x408] sm:$0xff]  ;;  %v13970_v18 = vcombine.high %v1759_v62, %v1763_v10  ;;  %v13969_v28 = vcombine.low %v1759_v62, %v1763_v10 }
 0x557   : > { %8278 = vmatprep.subr.bf16.mxu0 %v14002_v32  ;;  %v1891_v14 = vld [vmem:[%s16880_s13 + $0x428] sm:$0xff] }
 0x558   : > { %8318 = vmatpush1.bf16.msra.mxu1 %v14137_v31  ;;  %v14098_v19 = vcombine.high %v1887_v2, %v1891_v14  ;;  %v1879_v22 = vld [vmem:[%s16880_s13 + $0x3c8] sm:$0xff]  ;;  %v14097_v30 = vcombine.low %v1887_v2, %v1891_v14 }
 0x559   : > { %8319 = vmatprep.subr.bf16.mxu1 %v14130_v33  ;;  %v1883_v21 = vld [vmem:[%s16880_s13 + $0x3e8] sm:$0xff] }
 0x55a   : > { %8279 = vmatpush1.bf16.msra.mxu0 %v14001_v42  ;;  %v2007_v26 = vld [vmem:[%s16880_s13 + $0x7c8] sm:$0xff]  ;;  %v14090_v31 = vcombine.high %v1879_v22, %v1883_v21  ;;  %v14089_v40 = vcombine.low %v1879_v22, %v1883_v21 }
 0x55b   : > { %8280 = vmatprep.subr.bf16.mxu0 %v13994_v45  ;;  %v2011_v27 = vld [vmem:[%s16880_s13 + $0x7e8] sm:$0xff] }
 0x55c   : > { %8320 = vmatpush1.bf16.msra.mxu1 %v14129_v43  ;;  %v14218_v32 = vcombine.high %v2007_v26, %v2011_v27  ;;  %v1871_v1 = vld [vmem:[%s16880_s13 + $0x388] sm:$0xff]  ;;  %v14217_v41 = vcombine.low %v2007_v26, %v2011_v27 }
 0x55d   : > { %8321 = vmatprep.subr.bf16.mxu1 %v14122_v55  ;;  %v1875_v33 = vld [vmem:[%s16880_s13 + $0x3a8] sm:$0xff] }
 0x55e   : > { %8281 = vmatpush1.bf16.msra.mxu0 %v13993_v24  ;;  %v1999_v35 = vld [vmem:[%s16880_s13 + $0x788] sm:$0xff]  ;;  %v14082_v42 = vcombine.high %v1871_v1, %v1875_v33  ;;  %v14081_v52 = vcombine.low %v1871_v1, %v1875_v33 }
 0x55f   : > { %8282 = vmatprep.subr.bf16.mxu0 %v13986_v29  ;;  %v2003_v37 = vld [vmem:[%s16880_s13 + $0x7a8] sm:$0xff] }
 0x560   : > { %8322 = vmatpush1.bf16.msra.mxu1 %v14121_v57  ;;  %v14210_v43 = vcombine.high %v1999_v35, %v2003_v37  ;;  %v1863_v45 = vld [vmem:[%s16880_s13 + $0x348] sm:$0xff]  ;;  %v14209_v3 = vcombine.low %v1999_v35, %v2003_v37 }
 0x561   : > { %8323 = vmatprep.subr.bf16.mxu1 %v14114_v58  ;;  %v1867_v55 = vld [vmem:[%s16880_s13 + $0x368] sm:$0xff] }
 0x562   : > { %8283 = vmatpush1.bf16.msra.mxu0 %v13985_v5  ;;  %v1991_v50 = vld [vmem:[%s16880_s13 + $0x748] sm:$0xff]  ;;  %v14074_v24 = vcombine.high %v1863_v45, %v1867_v55  ;;  %v14073_v4 = vcombine.low %v1863_v45, %v1867_v55 }
 0x563   : > { %8284 = vmatprep.subr.bf16.mxu0 %v13978_v6  ;;  %v1995_v51 = vld [vmem:[%s16880_s13 + $0x768] sm:$0xff] }
 0x564   : > { %8324 = vmatpush1.bf16.msra.mxu1 %v14113_v46  ;;  %v14202_v57 = vcombine.high %v1991_v50, %v1995_v51  ;;  %v1855_v29 = vld [vmem:[%s16880_s13 + $0x308] sm:$0xff]  ;;  %v14201_v61 = vcombine.low %v1991_v50, %v1995_v51 }
 0x565   : > { %8325 = vmatprep.subr.bf16.mxu1 %v14106_v8  ;;  %v1859_v58 = vld [vmem:[%s16880_s13 + $0x328] sm:$0xff] }
 0x566   : > { %8285 = vmatpush1.bf16.msra.mxu0 %v13977_v16  ;;  %v1983_v60 = vld [vmem:[%s16880_s13 + $0x708] sm:$0xff]  ;;  %v14066_v5 = vcombine.high %v1855_v29, %v1859_v58  ;;  %v14065_v2 = vcombine.low %v1855_v29, %v1859_v58 }
 0x567   : > { %8286 = vmatprep.subr.bf16.mxu0 %v13970_v18  ;;  %v1987_v63 = vld [vmem:[%s16880_s13 + $0x728] sm:$0xff] }
 0x568   : > { %8326 = vmatpush1.bf16.msra.mxu1 %v14105_v17  ;;  %v14194_v46 = vcombine.high %v1983_v60, %v1987_v63  ;;  %v1847_v6 = vld [vmem:[%s16880_s13 + $0x2c8] sm:$0xff]  ;;  %v14193_v14 = vcombine.low %v1983_v60, %v1987_v63 }
 0x569   : > { %8327 = vmatprep.subr.bf16.mxu1 %v14098_v19  ;;  %v1851_v8 = vld [vmem:[%s16880_s13 + $0x2e8] sm:$0xff] }
 0x56a   : > { %8287 = vmatpush1.bf16.msra.mxu0 %v13969_v28  ;;  %v1975_v62 = vld [vmem:[%s16880_s13 + $0x6c8] sm:$0xff]  ;;  %v14058_v16 = vcombine.high %v1847_v6, %v1851_v8  ;;  %v14057_v26 = vcombine.low %v1847_v6, %v1851_v8 }
 0x56b   : > { %8288 = vmatprep.subr.bf16.mxu0 %v14090_v31  ;;  %v1979_v10 = vld [vmem:[%s16880_s13 + $0x6e8] sm:$0xff] }
 0x56c   : > { %8328 = vmatpush1.bf16.msra.mxu1 %v14097_v30  ;;  %v14186_v17 = vcombine.high %v1975_v62, %v1979_v10  ;;  %v1839_v18 = vld [vmem:[%s16880_s13 + $0x288] sm:$0xff]  ;;  %v14185_v27 = vcombine.low %v1975_v62, %v1979_v10 }
 0x56d   : > { %8329 = vmatprep.subr.bf16.mxu1 %v14218_v32  ;;  %v1843_v19 = vld [vmem:[%s16880_s13 + $0x2a8] sm:$0xff] }
 0x56e   : > { %8289 = vmatpush2.bf16.msra.mxu0 %v14089_v40  ;;  %v1967_v22 = vld [vmem:[%s16880_s13 + $0x688] sm:$0xff]  ;;  %v14050_v28 = vcombine.high %v1839_v18, %v1843_v19  ;;  %v14049_v35 = vcombine.low %v1839_v18, %v1843_v19 }
 0x56f   : > { %8290 = vmatprep.subr.bf16.mxu0 %v14082_v42  ;;  %v1971_v21 = vld [vmem:[%s16880_s13 + $0x6a8] sm:$0xff] }
 0x570   : > { %8330 = vmatpush2.bf16.msra.mxu1 %v14217_v41  ;;  %v14178_v30 = vcombine.high %v1967_v22, %v1971_v21  ;;  %v1831_v31 = vld [vmem:[%s16880_s13 + $0x248] sm:$0xff]  ;;  %v14177_v37 = vcombine.low %v1967_v22, %v1971_v21 }
 0x571   : > { %8331 = vmatprep.subr.bf16.mxu1 %v14210_v43  ;;  %v1835_v32 = vld [vmem:[%s16880_s13 + $0x268] sm:$0xff] }
 0x572   : > { %8291 = vmatpush2.bf16.msra.mxu0 %v14081_v52  ;;  %v1959_v1 = vld [vmem:[%s16880_s13 + $0x648] sm:$0xff]  ;;  %v14042_v40 = vcombine.high %v1831_v31, %v1835_v32  ;;  %v14041_v50 = vcombine.low %v1831_v31, %v1835_v32 }
 0x573   : > { %8292 = vmatprep.subr.bf16.mxu0 %v14074_v24  ;;  %v1963_v33 = vld [vmem:[%s16880_s13 + $0x668] sm:$0xff] }
 0x574   : > { %8332 = vmatpush2.bf16.msra.mxu1 %v14209_v3  ;;  %v14170_v41 = vcombine.high %v1959_v1, %v1963_v33  ;;  %v1823_v42 = vld [vmem:[%s16880_s13 + $0x208] sm:$0xff]  ;;  %v14169_v51 = vcombine.low %v1959_v1, %v1963_v33 }
 0x575   : > { %8333 = vmatprep.subr.bf16.mxu1 %v14202_v57  ;;  %v1827_v43 = vld [vmem:[%s16880_s13 + $0x228] sm:$0xff] }
 0x576   : > { %8293 = vmatpush2.bf16.msra.mxu0 %v14073_v4  ;;  %v1951_v45 = vld [vmem:[%s16880_s13 + $0x608] sm:$0xff]  ;;  %v14034_v52 = vcombine.high %v1823_v42, %v1827_v43  ;;  %v14033_v60 = vcombine.low %v1823_v42, %v1827_v43 }
 0x577   : > { %8294 = vmatprep.subr.bf16.mxu0 %v14066_v5  ;;  %v1955_v55 = vld [vmem:[%s16880_s13 + $0x628] sm:$0xff] }
 0x578   : > { %8334 = vmatpush2.bf16.msra.mxu1 %v14201_v61  ;;  %v14162_v3 = vcombine.high %v1951_v45, %v1955_v55  ;;  %v2071_v24 = vld [vmem:[%s16880_s13 + $0x9c8] sm:$0xff]  ;;  %v14161_v63 = vcombine.low %v1951_v45, %v1955_v55 }
 0x579   : > { %8335 = vmatprep.subr.bf16.mxu1 %v14194_v46  ;;  %v2075_v57 = vld [vmem:[%s16880_s13 + $0x9e8] sm:$0xff] }
 0x57a   : > { %8295 = vmatpush2.bf16.msra.mxu0 %v14065_v2  ;;  %v2199_v29 = vld [vmem:[%s16880_s13 + $0xdc8] sm:$0xff]  ;;  %v14282_v4 = vcombine.high %v2071_v24, %v2075_v57  ;;  %v14281_v62 = vcombine.low %v2071_v24, %v2075_v57 }
 0x57b   : > { %8296 = vmatprep.subr.bf16.mxu0 %v14058_v16  ;;  %v2203_v58 = vld [vmem:[%s16880_s13 + $0xde8] sm:$0xff] }
 0x57c   : > { %8336 = vmatpush2.bf16.msra.mxu1 %v14193_v14  ;;  %v14410_v61 = vcombine.high %v2199_v29, %v2203_v58  ;;  %v2063_v5 = vld [vmem:[%s16880_s13 + $0x988] sm:$0xff]  ;;  %v14409_v10 = vcombine.low %v2199_v29, %v2203_v58 }
 0x57d   : > { %8337 = vmatprep.subr.bf16.mxu1 %v14186_v17  ;;  %v2067_v46 = vld [vmem:[%s16880_s13 + $0x9a8] sm:$0xff] }
 0x57e   : > { %8297 = vmatpush2.bf16.msra.mxu0 %v14057_v26  ;;  %v2191_v6 = vld [vmem:[%s16880_s13 + $0xd88] sm:$0xff]  ;;  %v14274_v2 = vcombine.high %v2063_v5, %v2067_v46 }
 0x57f   : > { %8298 = vmatprep.subr.bf16.mxu0 %v14050_v28  ;;  %v2195_v8 = vld [vmem:[%s16880_s13 + $0xda8] sm:$0xff] }
 0x580   : > { %8338 = vmatpush2.bf16.msra.mxu1 %v14185_v27  ;;  %v14402_v14 = vcombine.high %v2191_v6, %v2195_v8  ;;  %v2055_v16 = vld [vmem:[%s16880_s13 + $0x948] sm:$0xff]  ;;  %v14273_v27 = vcombine.low %v2063_v5, %v2067_v46 }
 0x581   : > { %8339 = vmatprep.subr.bf16.mxu1 %v14178_v30  ;;  %v2059_v17 = vld [vmem:[%s16880_s13 + $0x968] sm:$0xff]  ;;  %v14401_v30 = vcombine.low %v2191_v6, %v2195_v8 }
 0x582   : > { %8299 = vmatpush2.bf16.msra.mxu0 %v14049_v35  ;;  %v2183_v19 = vld [vmem:[%s16880_s13 + $0xd48] sm:$0xff]  ;;  %v14266_v31 = vcombine.high %v2055_v16, %v2059_v17 }
 0x583   : > { %8300 = vmatprep.subr.bf16.mxu0 %v14042_v40  ;;  %v2187_v22 = vld [vmem:[%s16880_s13 + $0xd68] sm:$0xff] }
 0x584   : > { %8340 = vmatpush2.bf16.msra.mxu1 %v14177_v37  ;;  %v2047_v35 = vld [vmem:[%s16880_s13 + $0x908] sm:$0xff] }
 0x585   : > { %8341 = vmatprep.subr.bf16.mxu1 %v14170_v41  ;;  %v2051_v37 = vld [vmem:[%s16880_s13 + $0x928] sm:$0xff] }
 0x586   : > { %8301 = vmatpush2.bf16.msra.mxu0 %v14041_v50  ;;  %v2175_v41 = vld [vmem:[%s16880_s13 + $0xd08] sm:$0xff]  ;;  %v14393_v50 = vcombine.low %v2183_v19, %v2187_v22 }
 0x587   : > { %8302 = vmatprep.subr.bf16.mxu0 %v14034_v52  ;;  %v2179_v42 = vld [vmem:[%s16880_s13 + $0xd28] sm:$0xff] }
 0x588   : > { %8342 = vmatpush2.bf16.msra.mxu1 %v14169_v51  ;;  %v14258_v51 = vcombine.high %v2047_v35, %v2051_v37  ;;  %v2039_v24 = vld [vmem:[%s16880_s13 + $0x8c8] sm:$0xff] }
 0x589   : > { %8343 = vmatprep.subr.bf16.mxu1 %v14162_v3  ;;  %v14386_v3 = vcombine.high %v2175_v41, %v2179_v42  ;;  %v2043_v57 = vld [vmem:[%s16880_s13 + $0x8e8] sm:$0xff] }
 0x58a   : > { %8303 = vmatpush2.bf16.msra.mxu0 %v14033_v60  ;;  %v2167_v29 = vld [vmem:[%s16880_s13 + $0xcc8] sm:$0xff]  ;;  %v14257_v60 = vcombine.low %v2047_v35, %v2051_v37 }
 0x58b   : > { %8354 = vmatprep.subr.bf16.mxu0 %v14282_v4  ;;  %v2171_v58 = vld [vmem:[%s16880_s13 + $0xce8] sm:$0xff]  ;;  %v14250_v4 = vcombine.high %v2039_v24, %v2043_v57 }
 0x58c   : > { %8344 = vmatpush2.bf16.msra.mxu1 %v14161_v63  ;;  %v14385_v63 = vcombine.low %v2175_v41, %v2179_v42  ;;  %v2031_v5 = vld [vmem:[%s16880_s13 + $0x888] sm:$0xff] }
 0x58d   : > { %8395 = vmatprep.subr.bf16.mxu1 %v14410_v61  ;;  %v8060_v18 = vpop.f32.mrf.mxu0  ;;  %8305 = vmatmul.mubr.bf16.vlgmr.msra.gmra.mxu0 %v17109_v34  ;;  %v14378_v61 = vcombine.high %v2167_v29, %v2171_v58  ;;  %v2035_v46 = vld [vmem:[%s16880_s13 + $0x8a8] sm:$0xff] }
 0x58e   : > { %v8061_v21 = vadd.f32 %v8060_v18, %v17398_v12  ;;  %8355 = vmatpush1.bf16.msra.mxu0 %v14281_v62  ;;  %v14394_v12 = vcombine.high %v2183_v19, %v2187_v22  ;;  %8386 = vmatprep.mubr.bf16.mxu0 %v17123_v47  ;;  %v2159_v6 = vld [vmem:[%s16880_s13 + $0xc88] sm:$0xff]  ;;  %v14249_v62 = vcombine.low %v2039_v24, %v2043_v57 }
 0x58f   : > { %v8101_v26 = vpop.f32.mrf.mxu1  ;;  %8346 = vmatmul.mubr.bf16.vlgmr.msra.gmra.mxu1 %v17117_v38  ;;  %v8062_v28 = vpop.f32.mrf.mxu0  ;;  %8356 = vmatprep.subr.bf16.mxu0 %v14274_v2  ;;  %v2163_v8 = vld [vmem:[%s16880_s13 + $0xca8] sm:$0xff]  ;;  %v14242_v2 = vcombine.high %v2031_v5, %v2035_v46  ;;  %v14241_v22 = vcombine.low %v2031_v5, %v2035_v46 }
 0x590   : > { %8396 = vmatpush1.bf16.msra.mxu1 %v14409_v10  ;;  %v17471_v32 = vadd.f32 %v8101_v26, %v8061_v21  ;;  %v8063_v1 = vadd.f32 %v8062_v28, %v17406_v25  ;;  %8427 = vmatprep.mubr.bf16.mxu1 %v17126_v36  ;;  %v14265_v25 = vcombine.low %v2055_v16, %v2059_v17  ;;  %v2023_v16 = vld [vmem:[%s16880_s13 + $0x848] sm:$0xff] }
 0x591   : > { %v8103_v33 = vpop.f32.mrf.mxu1  ;;  %8397 = vmatprep.subr.bf16.mxu1 %v14402_v14  ;;  %v8064_v40 = vpop.f32.mrf.mxu0  ;;  %v14377_v10 = vcombine.low %v2167_v29, %v2171_v58  ;;  %v14370_v14 = vcombine.high %v2159_v6, %v2163_v8  ;;  %v2027_v17 = vld [vmem:[%s16880_s13 + $0x868] sm:$0xff]  ;;  %v14369_v21 = vcombine.low %v2159_v6, %v2163_v8 }
 0x592   : > { %v17480_v43 = vadd.f32 %v8103_v33, %v8063_v1  ;;  %8357 = vmatpush1.bf16.msra.mxu0 %v14273_v27  ;;  %v2151_v18 = vld [vmem:[%s16880_s13 + $0xc48] sm:$0xff]  ;;  %v14234_v26 = vcombine.high %v2023_v16, %v2027_v17  ;;  %v14233_v33 = vcombine.low %v2023_v16, %v2027_v17 }
 0x593   : > { %v8105_v45 = vpop.f32.mrf.mxu1  ;;  %v8065_v55 = vpop.f32.mrf.mxu0  ;;  %8358 = vmatprep.subr.bf16.mxu0 %v14266_v31  ;;  %v2155_v19 = vld [vmem:[%s16880_s13 + $0xc68] sm:$0xff] }
 0x594   : > { %8398 = vmatpush1.bf16.msra.mxu1 %v14401_v30  ;;  %v14362_v27 = vcombine.high %v2151_v18, %v2155_v19  ;;  %v2015_v28 = vld [vmem:[%s16880_s13 + $0x808] sm:$0xff] }
 0x595   : > { %v8106_v52 = vpop.f32.mrf.mxu1  ;;  %8399 = vmatprep.subr.bf16.mxu1 %v14394_v12  ;;  %v2019_v30 = vld [vmem:[%s16880_s13 + $0x828] sm:$0xff]  ;;  %v14361_v12 = vcombine.low %v2151_v18, %v2155_v19 }
 0x596   : > { %8359 = vmatpush1.bf16.msra.mxu0 %v14265_v25  ;;  %v2143_v31 = vld [vmem:[%s16880_s13 + $0xc08] sm:$0xff]  ;;  %v14226_v35 = vcombine.high %v2015_v28, %v2019_v30  ;;  %v14225_v25 = vcombine.low %v2015_v28, %v2019_v30 }
 0x597   : > { %8360 = vmatprep.subr.bf16.mxu0 %v14258_v51  ;;  %v2147_v1 = vld [vmem:[%s16880_s13 + $0xc28] sm:$0xff] }
 0x598   : > { %8400 = vmatpush1.bf16.msra.mxu1 %v14393_v50  ;;  %v14354_v37 = vcombine.high %v2143_v31, %v2147_v1  ;;  %v2135_v40 = vld [vmem:[%s16880_s13 + $0xbc8] sm:$0xff]  ;;  %v14353_v55 = vcombine.low %v2143_v31, %v2147_v1 }
 0x599   : > { %8401 = vmatprep.subr.bf16.mxu1 %v14386_v3  ;;  %v2139_v41 = vld [vmem:[%s16880_s13 + $0xbe8] sm:$0xff] }
 0x59a   : > { %8361 = vmatpush1.bf16.msra.mxu0 %v14257_v60  ;;  %v2263_v42 = vld [vmem:[%s16880_s13 + $0xfc8] sm:$0xff]  ;;  %v14346_v50 = vcombine.high %v2135_v40, %v2139_v41  ;;  %v14345_v29 = vcombine.low %v2135_v40, %v2139_v41 }
 0x59b   : > { %8362 = vmatprep.subr.bf16.mxu0 %v14250_v4  ;;  %v2267_v45 = vld [vmem:[%s16880_s13 + $0xfe8] sm:$0xff] }
 0x59c   : > { %8402 = vmatpush1.bf16.msra.mxu1 %v14385_v63  ;;  %v14474_v51 = vcombine.high %v2263_v42, %v2267_v45  ;;  %v2127_v52 = vld [vmem:[%s16880_s13 + $0xb88] sm:$0xff]  ;;  %v14473_v58 = vcombine.low %v2263_v42, %v2267_v45 }
 0x59d   : > { %8403 = vmatprep.subr.bf16.mxu1 %v14378_v61  ;;  %v2131_v3 = vld [vmem:[%s16880_s13 + $0xba8] sm:$0xff] }
 0x59e   : > { %8363 = vmatpush1.bf16.msra.mxu0 %v14249_v62  ;;  %v2255_v24 = vld [vmem:[%s16880_s13 + $0xf88] sm:$0xff]  ;;  %v14338_v60 = vcombine.high %v2127_v52, %v2131_v3  ;;  %v14337_v6 = vcombine.low %v2127_v52, %v2131_v3 }
 0x59f   : > { %8364 = vmatprep.subr.bf16.mxu0 %v14242_v2  ;;  %v2259_v57 = vld [vmem:[%s16880_s13 + $0xfa8] sm:$0xff] }
 0x5a0   : > { %8404 = vmatpush1.bf16.msra.mxu1 %v14377_v10  ;;  %v14466_v63 = vcombine.high %v2255_v24, %v2259_v57  ;;  %v2119_v4 = vld [vmem:[%s16880_s13 + $0xb48] sm:$0xff]  ;;  %v14465_v8 = vcombine.low %v2255_v24, %v2259_v57 }
 0x5a1   : > { %8405 = vmatprep.subr.bf16.mxu1 %v14370_v14  ;;  %v2123_v61 = vld [vmem:[%s16880_s13 + $0xb68] sm:$0xff] }
 0x5a2   : > { %8365 = vmatpush1.bf16.msra.mxu0 %v14241_v22  ;;  %v2247_v5 = vld [vmem:[%s16880_s13 + $0xf48] sm:$0xff]  ;;  %v14330_v62 = vcombine.high %v2119_v4, %v2123_v61  ;;  %v14329_v18 = vcombine.low %v2119_v4, %v2123_v61 }
 0x5a3   : > { %8366 = vmatprep.subr.bf16.mxu0 %v14234_v26  ;;  %v2251_v46 = vld [vmem:[%s16880_s13 + $0xf68] sm:$0xff] }
 0x5a4   : > { %8406 = vmatpush1.bf16.msra.mxu1 %v14369_v21  ;;  %v14458_v10 = vcombine.high %v2247_v5, %v2251_v46  ;;  %v2111_v2 = vld [vmem:[%s16880_s13 + $0xb08] sm:$0xff]  ;;  %v14457_v19 = vcombine.low %v2247_v5, %v2251_v46 }
 0x5a5   : > { %8407 = vmatprep.subr.bf16.mxu1 %v14362_v27  ;;  %v2115_v14 = vld [vmem:[%s16880_s13 + $0xb28] sm:$0xff] }
 0x5a6   : > { %8367 = vmatpush1.bf16.msra.mxu0 %v14233_v33  ;;  %v2239_v16 = vld [vmem:[%s16880_s13 + $0xf08] sm:$0xff]  ;;  %v14322_v22 = vcombine.high %v2111_v2, %v2115_v14  ;;  %v14321_v31 = vcombine.low %v2111_v2, %v2115_v14 }
 0x5a7   : > { %8368 = vmatprep.subr.bf16.mxu0 %v14226_v35  ;;  %v2243_v17 = vld [vmem:[%s16880_s13 + $0xf28] sm:$0xff] }
 0x5a8   : > { %8408 = vmatpush1.bf16.msra.mxu1 %v14361_v12  ;;  %v14450_v21 = vcombine.high %v2239_v16, %v2243_v17  ;;  %v2103_v26 = vld [vmem:[%s16880_s13 + $0xac8] sm:$0xff]  ;;  %v14449_v1 = vcombine.low %v2239_v16, %v2243_v17 }
 0x5a9   : > { %8409 = vmatprep.subr.bf16.mxu1 %v14354_v37  ;;  %v2107_v27 = vld [vmem:[%s16880_s13 + $0xae8] sm:$0xff] }
 0x5aa   : > { %8369 = vmatpush1.bf16.msra.mxu0 %v14225_v25  ;;  %v2231_v28 = vld [vmem:[%s16880_s13 + $0xec8] sm:$0xff]  ;;  %v14314_v33 = vcombine.high %v2103_v26, %v2107_v27  ;;  %v14313_v42 = vcombine.low %v2103_v26, %v2107_v27 }
 0x5ab   : > { %8370 = vmatprep.subr.bf16.mxu0 %v14346_v50  ;;  %v2235_v30 = vld [vmem:[%s16880_s13 + $0xee8] sm:$0xff] }
 0x5ac   : > { %8410 = vmatpush1.bf16.msra.mxu1 %v14353_v55  ;;  %v14442_v12 = vcombine.high %v2231_v28, %v2235_v30  ;;  %v2095_v35 = vld [vmem:[%s16880_s13 + $0xa88] sm:$0xff]  ;;  %v14441_v45 = vcombine.low %v2231_v28, %v2235_v30 }
 0x5ad   : > { %8411 = vmatprep.subr.bf16.mxu1 %v14474_v51  ;;  %v2099_v37 = vld [vmem:[%s16880_s13 + $0xaa8] sm:$0xff] }
 0x5ae   : > { %8371 = vmatpush2.bf16.msra.mxu0 %v14345_v29  ;;  %v2223_v40 = vld [vmem:[%s16880_s13 + $0xe88] sm:$0xff]  ;;  %v14306_v25 = vcombine.high %v2095_v35, %v2099_v37  ;;  %v14305_v24 = vcombine.low %v2095_v35, %v2099_v37 }
 0x5af   : > { %8372 = vmatprep.subr.bf16.mxu0 %v14338_v60  ;;  %v2227_v41 = vld [vmem:[%s16880_s13 + $0xea8] sm:$0xff] }
 0x5b0   : > { %8412 = vmatpush2.bf16.msra.mxu1 %v14473_v58  ;;  %v14434_v55 = vcombine.high %v2223_v40, %v2227_v41  ;;  %v2087_v50 = vld [vmem:[%s16880_s13 + $0xa48] sm:$0xff]  ;;  %v14433_v57 = vcombine.low %v2223_v40, %v2227_v41 }
 0x5b1   : > { %8413 = vmatprep.subr.bf16.mxu1 %v14466_v63  ;;  %v2091_v51 = vld [vmem:[%s16880_s13 + $0xa68] sm:$0xff] }
 0x5b2   : > { %8373 = vmatpush2.bf16.msra.mxu0 %v14337_v6  ;;  %v2215_v52 = vld [vmem:[%s16880_s13 + $0xe48] sm:$0xff]  ;;  %v14298_v29 = vcombine.high %v2087_v50, %v2091_v51  ;;  %v14297_v5 = vcombine.low %v2087_v50, %v2091_v51 }
 0x5b3   : > { %8374 = vmatprep.subr.bf16.mxu0 %v14330_v62  ;;  %v2219_v3 = vld [vmem:[%s16880_s13 + $0xe68] sm:$0xff] }
 0x5b4   : > { %8414 = vmatpush2.bf16.msra.mxu1 %v14465_v8  ;;  %v14426_v58 = vcombine.high %v2215_v52, %v2219_v3  ;;  %v2079_v60 = vld [vmem:[%s16880_s13 + $0xa08] sm:$0xff]  ;;  %v14425_v46 = vcombine.low %v2215_v52, %v2219_v3 }
 0x5b5   : > { %8415 = vmatprep.subr.bf16.mxu1 %v14458_v10  ;;  %v2083_v63 = vld [vmem:[%s16880_s13 + $0xa28] sm:$0xff] }
 0x5b6   : > { %8375 = vmatpush2.bf16.msra.mxu0 %v14329_v18  ;;  %v2207_v4 = vld [vmem:[%s16880_s13 + $0xe08] sm:$0xff]  ;;  %v14290_v6 = vcombine.high %v2079_v60, %v2083_v63  ;;  %v14289_v16 = vcombine.low %v2079_v60, %v2083_v63 }
 0x5b7   : > { %8376 = vmatprep.subr.bf16.mxu0 %v14322_v22  ;;  %v2211_v61 = vld [vmem:[%s16880_s13 + $0xe28] sm:$0xff] }
 0x5b8   : > { %8416 = vmatpush2.bf16.msra.mxu1 %v14457_v19  ;;  %v14418_v8 = vcombine.high %v2207_v4, %v2211_v61  ;;  %v2327_v62 = vld [vmem:[%s16880_s13 + $0x11c8] sm:$0xff]  ;;  %v14417_v17 = vcombine.low %v2207_v4, %v2211_v61 }
 0x5b9   : > { %8417 = vmatprep.subr.bf16.mxu1 %v14450_v21  ;;  %v2331_v10 = vld [vmem:[%s16880_s13 + $0x11e8] sm:$0xff] }
 0x5ba   : > { %8377 = vmatpush2.bf16.msra.mxu0 %v14321_v31  ;;  %v2455_v2 = vld [vmem:[%s16880_s13 + $0x15c8] sm:$0xff]  ;;  %v14538_v18 = vcombine.high %v2327_v62, %v2331_v10  ;;  %v14537_v28 = vcombine.low %v2327_v62, %v2331_v10 }
 0x5bb   : > { %8378 = vmatprep.subr.bf16.mxu0 %v14314_v33  ;;  %v2459_v14 = vld [vmem:[%s16880_s13 + $0x15e8] sm:$0xff] }
 0x5bc   : > { %8418 = vmatpush2.bf16.msra.mxu1 %v14449_v1  ;;  %v14666_v19 = vcombine.high %v2455_v2, %v2459_v14  ;;  %v2319_v22 = vld [vmem:[%s16880_s13 + $0x1188] sm:$0xff]  ;;  %v14665_v30 = vcombine.low %v2455_v2, %v2459_v14 }
 0x5bd   : > { %8419 = vmatprep.subr.bf16.mxu1 %v14442_v12  ;;  %v2323_v21 = vld [vmem:[%s16880_s13 + $0x11a8] sm:$0xff] }
 0x5be   : > { %8379 = vmatpush2.bf16.msra.mxu0 %v14313_v42  ;;  %v2447_v26 = vld [vmem:[%s16880_s13 + $0x1588] sm:$0xff]  ;;  %v14530_v31 = vcombine.high %v2319_v22, %v2323_v21 }
 0x5bf   : > { %8380 = vmatprep.subr.bf16.mxu0 %v14306_v25  ;;  %v2451_v27 = vld [vmem:[%s16880_s13 + $0x15a8] sm:$0xff] }
 0x5c0   : > { %8420 = vmatpush2.bf16.msra.mxu1 %v14441_v45  ;;  %v14658_v1 = vcombine.high %v2447_v26, %v2451_v27  ;;  %v2311_v33 = vld [vmem:[%s16880_s13 + $0x1148] sm:$0xff]  ;;  %v14529_v45 = vcombine.low %v2319_v22, %v2323_v21 }
 0x5c1   : > { %8421 = vmatprep.subr.bf16.mxu1 %v14434_v55  ;;  %v2315_v12 = vld [vmem:[%s16880_s13 + $0x1168] sm:$0xff]  ;;  %v14657_v55 = vcombine.low %v2447_v26, %v2451_v27 }
 0x5c2   : > { %8381 = vmatpush2.bf16.msra.mxu0 %v14305_v24  ;;  %v2439_v37 = vld [vmem:[%s16880_s13 + $0x1548] sm:$0xff]  ;;  %v14522_v50 = vcombine.high %v2311_v33, %v2315_v12 }
 0x5c3   : > { %8382 = vmatprep.subr.bf16.mxu0 %v14298_v29  ;;  %v2443_v40 = vld [vmem:[%s16880_s13 + $0x1568] sm:$0xff] }
 0x5c4   : > { %8422 = vmatpush2.bf16.msra.mxu1 %v14433_v57  ;;  %v2303_v24 = vld [vmem:[%s16880_s13 + $0x1108] sm:$0xff] }
 0x5c5   : > { %8423 = vmatprep.subr.bf16.mxu1 %v14426_v58  ;;  %v2307_v57 = vld [vmem:[%s16880_s13 + $0x1128] sm:$0xff] }
 0x5c6   : > { %8383 = vmatpush2.bf16.msra.mxu0 %v14297_v5  ;;  %v2431_v58 = vld [vmem:[%s16880_s13 + $0x1508] sm:$0xff]  ;;  %v14649_v5 = vcombine.low %v2439_v37, %v2443_v40 }
 0x5c7   : > { %8384 = vmatprep.subr.bf16.mxu0 %v14290_v6  ;;  %v2435_v60 = vld [vmem:[%s16880_s13 + $0x1528] sm:$0xff] }
 0x5c8   : > { %8424 = vmatpush2.bf16.msra.mxu1 %v14425_v46  ;;  %v14514_v46 = vcombine.high %v2303_v24, %v2307_v57  ;;  %v2295_v62 = vld [vmem:[%s16880_s13 + $0x10c8] sm:$0xff] }
 0x5c9   : > { %8425 = vmatprep.subr.bf16.mxu1 %v14418_v8  ;;  %v14642_v8 = vcombine.high %v2431_v58, %v2435_v60  ;;  %v2299_v10 = vld [vmem:[%s16880_s13 + $0x10e8] sm:$0xff] }
 0x5ca   : > { %8385 = vmatpush2.bf16.msra.mxu0 %v14289_v16  ;;  %v2423_v2 = vld [vmem:[%s16880_s13 + $0x14c8] sm:$0xff]  ;;  %v14513_v16 = vcombine.low %v2303_v24, %v2307_v57 }
 0x5cb   : > { %8436 = vmatprep.subr.bf16.mxu0 %v14538_v18  ;;  %v2427_v14 = vld [vmem:[%s16880_s13 + $0x14e8] sm:$0xff]  ;;  %v14506_v18 = vcombine.high %v2295_v62, %v2299_v10 }
 0x5cc   : > { %8426 = vmatpush2.bf16.msra.mxu1 %v14417_v17  ;;  %v14641_v17 = vcombine.low %v2431_v58, %v2435_v60  ;;  %v2287_v22 = vld [vmem:[%s16880_s13 + $0x1088] sm:$0xff] }
 0x5cd   : > { %8477 = vmatprep.subr.bf16.mxu1 %v14666_v19  ;;  %v8142_v35 = vpop.f32.mrf.mxu0  ;;  %8387 = vmatmul.mubr.bf16.vlgmr.msra.gmra.mxu0 %v17204_v11  ;;  %v14634_v19 = vcombine.high %v2423_v2, %v2427_v14  ;;  %v2291_v21 = vld [vmem:[%s16880_s13 + $0x10a8] sm:$0xff] }
 0x5ce   : > { %v8143_v41 = vadd.f32 %v8142_v35, %v17471_v32  ;;  %8437 = vmatpush1.bf16.msra.mxu0 %v14537_v28  ;;  %v14650_v32 = vcombine.high %v2439_v37, %v2443_v40  ;;  %8468 = vmatprep.mubr.bf16.mxu0 %v17214_v20  ;;  %v2415_v26 = vld [vmem:[%s16880_s13 + $0x1488] sm:$0xff]  ;;  %v14505_v28 = vcombine.low %v2295_v62, %v2299_v10 }
 0x5cf   : > { %v8183_v42 = vpop.f32.mrf.mxu1  ;;  %8428 = vmatmul.mubr.bf16.vlgmr.msra.gmra.mxu1 %v17210_v13  ;;  %v8144_v25 = vpop.f32.mrf.mxu0  ;;  %8438 = vmatprep.subr.bf16.mxu0 %v14530_v31  ;;  %v2419_v27 = vld [vmem:[%s16880_s13 + $0x14a8] sm:$0xff]  ;;  %v14498_v31 = vcombine.high %v2287_v22, %v2291_v21  ;;  %v14497_v40 = vcombine.low %v2287_v22, %v2291_v21 }
 0x5d0   : > { %8478 = vmatpush1.bf16.msra.mxu1 %v14665_v30  ;;  %v17545_v51 = vadd.f32 %v8183_v42, %v8143_v41  ;;  %v8145_v52 = vadd.f32 %v8144_v25, %v17480_v43  ;;  %8509 = vmatprep.mubr.bf16.mxu1 %v17219_v23  ;;  %v14521_v43 = vcombine.low %v2311_v33, %v2315_v12  ;;  %v2279_v33 = vld [vmem:[%s16880_s13 + $0x1048] sm:$0xff] }
 0x5d1   : > { %v8185_v3 = vpop.f32.mrf.mxu1  ;;  %8479 = vmatprep.subr.bf16.mxu1 %v14658_v1  ;;  %v8146_v29 = vpop.f32.mrf.mxu0  ;;  %v14633_v30 = vcombine.low %v2423_v2, %v2427_v14  ;;  %v14626_v1 = vcombine.high %v2415_v26, %v2419_v27  ;;  %v2283_v12 = vld [vmem:[%s16880_s13 + $0x1068] sm:$0xff]  ;;  %v14625_v41 = vcombine.low %v2415_v26, %v2419_v27 }
 0x5d2   : > { %v17554_v63 = vadd.f32 %v8185_v3, %v8145_v52  ;;  %8439 = vmatpush1.bf16.msra.mxu0 %v14529_v45  ;;  %v2407_v35 = vld [vmem:[%s16880_s13 + $0x1448] sm:$0xff]  ;;  %v14490_v42 = vcombine.high %v2279_v33, %v2283_v12  ;;  %v14489_v3 = vcombine.low %v2279_v33, %v2283_v12 }
 0x5d3   : > { %v8187_v4 = vpop.f32.mrf.mxu1  ;;  %v8147_v61 = vpop.f32.mrf.mxu0  ;;  %8440 = vmatprep.subr.bf16.mxu0 %v14522_v50  ;;  %v2411_v37 = vld [vmem:[%s16880_s13 + $0x1468] sm:$0xff] }
 0x5d4   : > { %8480 = vmatpush1.bf16.msra.mxu1 %v14657_v55  ;;  %v14618_v45 = vcombine.high %v2407_v35, %v2411_v37  ;;  %v2271_v25 = vld [vmem:[%s16880_s13 + $0x1008] sm:$0xff] }
 0x5d5   : > { %v8188_v6 = vpop.f32.mrf.mxu1  ;;  %8481 = vmatprep.subr.bf16.mxu1 %v14650_v32  ;;  %v2275_v55 = vld [vmem:[%s16880_s13 + $0x1028] sm:$0xff]  ;;  %v14617_v32 = vcombine.low %v2407_v35, %v2411_v37 }
 0x5d6   : > { %8441 = vmatpush1.bf16.msra.mxu0 %v14521_v43  ;;  %v2399_v50 = vld [vmem:[%s16880_s13 + $0x1408] sm:$0xff]  ;;  %v14482_v24 = vcombine.high %v2271_v25, %v2275_v55  ;;  %v14481_v43 = vcombine.low %v2271_v25, %v2275_v55 }
 0x5d7   : > { %8442 = vmatprep.subr.bf16.mxu0 %v14514_v46  ;;  %v2403_v52 = vld [vmem:[%s16880_s13 + $0x1428] sm:$0xff] }
 0x5d8   : > { %8482 = vmatpush1.bf16.msra.mxu1 %v14649_v5  ;;  %v14610_v57 = vcombine.high %v2399_v50, %v2403_v52  ;;  %v2391_v29 = vld [vmem:[%s16880_s13 + $0x13c8] sm:$0xff]  ;;  %v14609_v61 = vcombine.low %v2399_v50, %v2403_v52 }
 0x5d9   : > { %8483 = vmatprep.subr.bf16.mxu1 %v14642_v8  ;;  %v2395_v58 = vld [vmem:[%s16880_s13 + $0x13e8] sm:$0xff] }
 0x5da   : > { %8443 = vmatpush1.bf16.msra.mxu0 %v14513_v16  ;;  %v2519_v60 = vld [vmem:[%s16880_s13 + $0x17c8] sm:$0xff]  ;;  %v14602_v5 = vcombine.high %v2391_v29, %v2395_v58  ;;  %v14601_v2 = vcombine.low %v2391_v29, %v2395_v58 }
 0x5db   : > { %8444 = vmatprep.subr.bf16.mxu0 %v14506_v18  ;;  %v2523_v4 = vld [vmem:[%s16880_s13 + $0x17e8] sm:$0xff] }
 0x5dc   : > { %8484 = vmatpush1.bf16.msra.mxu1 %v14641_v17  ;;  %v14730_v46 = vcombine.high %v2519_v60, %v2523_v4  ;;  %v2383_v6 = vld [vmem:[%s16880_s13 + $0x1388] sm:$0xff]  ;;  %v14729_v14 = vcombine.low %v2519_v60, %v2523_v4 }
 0x5dd   : > { %8485 = vmatprep.subr.bf16.mxu1 %v14634_v19  ;;  %v2387_v8 = vld [vmem:[%s16880_s13 + $0x13a8] sm:$0xff] }
 0x5de   : > { %8445 = vmatpush1.bf16.msra.mxu0 %v14505_v28  ;;  %v2511_v62 = vld [vmem:[%s16880_s13 + $0x1788] sm:$0xff]  ;;  %v14594_v16 = vcombine.high %v2383_v6, %v2387_v8  ;;  %v14593_v26 = vcombine.low %v2383_v6, %v2387_v8 }
 0x5df   : > { %8446 = vmatprep.subr.bf16.mxu0 %v14498_v31  ;;  %v2515_v10 = vld [vmem:[%s16880_s13 + $0x17a8] sm:$0xff] }
 0x5e0   : > { %8486 = vmatpush1.bf16.msra.mxu1 %v14633_v30  ;;  %v14722_v17 = vcombine.high %v2511_v62, %v2515_v10  ;;  %v2375_v18 = vld [vmem:[%s16880_s13 + $0x1348] sm:$0xff]  ;;  %v14721_v27 = vcombine.low %v2511_v62, %v2515_v10 }
 0x5e1   : > { %8487 = vmatprep.subr.bf16.mxu1 %v14626_v1  ;;  %v2379_v19 = vld [vmem:[%s16880_s13 + $0x1368] sm:$0xff] }
 0x5e2   : > { %8447 = vmatpush1.bf16.msra.mxu0 %v14497_v40  ;;  %v2503_v22 = vld [vmem:[%s16880_s13 + $0x1748] sm:$0xff]  ;;  %v14586_v28 = vcombine.high %v2375_v18, %v2379_v19  ;;  %v14585_v35 = vcombine.low %v2375_v18, %v2379_v19 }
 0x5e3   : > { %8448 = vmatprep.subr.bf16.mxu0 %v14490_v42  ;;  %v2507_v21 = vld [vmem:[%s16880_s13 + $0x1768] sm:$0xff] }
 0x5e4   : > { %8488 = vmatpush1.bf16.msra.mxu1 %v14625_v41  ;;  %v14714_v30 = vcombine.high %v2503_v22, %v2507_v21  ;;  %v2367_v31 = vld [vmem:[%s16880_s13 + $0x1308] sm:$0xff]  ;;  %v14713_v37 = vcombine.low %v2503_v22, %v2507_v21 }
 0x5e5   : > { %8489 = vmatprep.subr.bf16.mxu1 %v14618_v45  ;;  %v2371_v1 = vld [vmem:[%s16880_s13 + $0x1328] sm:$0xff] }
 0x5e6   : > { %8449 = vmatpush1.bf16.msra.mxu0 %v14489_v3  ;;  %v2495_v33 = vld [vmem:[%s16880_s13 + $0x1708] sm:$0xff]  ;;  %v14578_v40 = vcombine.high %v2367_v31, %v2371_v1  ;;  %v14577_v50 = vcombine.low %v2367_v31, %v2371_v1 }
 0x5e7   : > { %8450 = vmatprep.subr.bf16.mxu0 %v14482_v24  ;;  %v2499_v12 = vld [vmem:[%s16880_s13 + $0x1728] sm:$0xff] }
 0x5e8   : > { %8490 = vmatpush1.bf16.msra.mxu1 %v14617_v32  ;;  %v14706_v41 = vcombine.high %v2495_v33, %v2499_v12  ;;  %v2359_v42 = vld [vmem:[%s16880_s13 + $0x12c8] sm:$0xff]  ;;  %v14705_v52 = vcombine.low %v2495_v33, %v2499_v12 }
 0x5e9   : > { %8491 = vmatprep.subr.bf16.mxu1 %v14610_v57  ;;  %v2363_v45 = vld [vmem:[%s16880_s13 + $0x12e8] sm:$0xff] }
 0x5ea   : > { %8451 = vmatpush1.bf16.msra.mxu0 %v14481_v43  ;;  %v2487_v25 = vld [vmem:[%s16880_s13 + $0x16c8] sm:$0xff]  ;;  %v14570_v3 = vcombine.high %v2359_v42, %v2363_v45  ;;  %v14569_v60 = vcombine.low %v2359_v42, %v2363_v45 }
 0x5eb   : > { %8452 = vmatprep.subr.bf16.mxu0 %v14602_v5  ;;  %v2491_v55 = vld [vmem:[%s16880_s13 + $0x16e8] sm:$0xff] }
 0x5ec   : > { %8492 = vmatpush1.bf16.msra.mxu1 %v14609_v61  ;;  %v14698_v32 = vcombine.high %v2487_v25, %v2491_v55  ;;  %v2351_v24 = vld [vmem:[%s16880_s13 + $0x1288] sm:$0xff]  ;;  %v14697_v4 = vcombine.low %v2487_v25, %v2491_v55 }
 0x5ed   : > { %8493 = vmatprep.subr.bf16.mxu1 %v14730_v46  ;;  %v2355_v57 = vld [vmem:[%s16880_s13 + $0x12a8] sm:$0xff] }
 0x5ee   : > { %8453 = vmatpush2.bf16.msra.mxu0 %v14601_v2  ;;  %v2479_v29 = vld [vmem:[%s16880_s13 + $0x1688] sm:$0xff]  ;;  %v14562_v43 = vcombine.high %v2351_v24, %v2355_v57  ;;  %v14561_v62 = vcombine.low %v2351_v24, %v2355_v57 }
 0x5ef   : > { %8454 = vmatprep.subr.bf16.mxu0 %v14594_v16  ;;  %v2483_v58 = vld [vmem:[%s16880_s13 + $0x16a8] sm:$0xff] }
 0x5f0   : > { %8494 = vmatpush2.bf16.msra.mxu1 %v14729_v14  ;;  %v14690_v61 = vcombine.high %v2479_v29, %v2483_v58  ;;  %v2343_v5 = vld [vmem:[%s16880_s13 + $0x1248] sm:$0xff]  ;;  %v14689_v10 = vcombine.low %v2479_v29, %v2483_v58 }
 0x5f1   : > { %8495 = vmatprep.subr.bf16.mxu1 %v14722_v17  ;;  %v2347_v46 = vld [vmem:[%s16880_s13 + $0x1268] sm:$0xff] }
 0x5f2   : > { %8455 = vmatpush2.bf16.msra.mxu0 %v14593_v26  ;;  %v2471_v6 = vld [vmem:[%s16880_s13 + $0x1648] sm:$0xff]  ;;  %v14554_v2 = vcombine.high %v2343_v5, %v2347_v46  ;;  %v14553_v22 = vcombine.low %v2343_v5, %v2347_v46 }
 0x5f3   : > { %8456 = vmatprep.subr.bf16.mxu0 %v14586_v28  ;;  %v2475_v8 = vld [vmem:[%s16880_s13 + $0x1668] sm:$0xff] }
 0x5f4   : > { %8496 = vmatpush2.bf16.msra.mxu1 %v14721_v27  ;;  %v14682_v14 = vcombine.high %v2471_v6, %v2475_v8  ;;  %v2335_v16 = vld [vmem:[%s16880_s13 + $0x1208] sm:$0xff]  ;;  %v14681_v21 = vcombine.low %v2471_v6, %v2475_v8 }
 0x5f5   : > { %8497 = vmatprep.subr.bf16.mxu1 %v14714_v30  ;;  %v2339_v17 = vld [vmem:[%s16880_s13 + $0x1228] sm:$0xff] }
 0x5f6   : > { %8457 = vmatpush2.bf16.msra.mxu0 %v14585_v35  ;;  %v2463_v18 = vld [vmem:[%s16880_s13 + $0x1608] sm:$0xff]  ;;  %v14546_v26 = vcombine.high %v2335_v16, %v2339_v17  ;;  %v14545_v33 = vcombine.low %v2335_v16, %v2339_v17 }
 0x5f7   : > { %8458 = vmatprep.subr.bf16.mxu0 %v14578_v40  ;;  %v2467_v19 = vld [vmem:[%s16880_s13 + $0x1628] sm:$0xff] }
 0x5f8   : > { %8498 = vmatpush2.bf16.msra.mxu1 %v14713_v37  ;;  %v14674_v27 = vcombine.high %v2463_v18, %v2467_v19  ;;  %v2583_v28 = vld [vmem:[%s16880_s13 + $0x19c8] sm:$0xff]  ;;  %v14673_v12 = vcombine.low %v2463_v18, %v2467_v19 }
 0x5f9   : > { %8499 = vmatprep.subr.bf16.mxu1 %v14706_v41  ;;  %v2587_v30 = vld [vmem:[%s16880_s13 + $0x19e8] sm:$0xff] }
 0x5fa   : > { %8459 = vmatpush2.bf16.msra.mxu0 %v14577_v50  ;;  %v2711_v31 = vld [vmem:[%s16880_s13 + $0x1dc8] sm:$0xff]  ;;  %v14794_v35 = vcombine.high %v2583_v28, %v2587_v30  ;;  %v14793_v25 = vcombine.low %v2583_v28, %v2587_v30 }
 0x5fb   : > { %8460 = vmatprep.subr.bf16.mxu0 %v14570_v3  ;;  %v2715_v1 = vld [vmem:[%s16880_s13 + $0x1de8] sm:$0xff] }
 0x5fc   : > { %8500 = vmatpush2.bf16.msra.mxu1 %v14705_v52  ;;  %v14922_v37 = vcombine.high %v2711_v31, %v2715_v1  ;;  %v2575_v40 = vld [vmem:[%s16880_s13 + $0x1988] sm:$0xff]  ;;  %v14921_v55 = vcombine.low %v2711_v31, %v2715_v1 }
 0x5fd   : > { %8501 = vmatprep.subr.bf16.mxu1 %v14698_v32  ;;  %v2579_v41 = vld [vmem:[%s16880_s13 + $0x19a8] sm:$0xff] }
 0x5fe   : > { %8461 = vmatpush2.bf16.msra.mxu0 %v14569_v60  ;;  %v2703_v42 = vld [vmem:[%s16880_s13 + $0x1d88] sm:$0xff]  ;;  %v14786_v50 = vcombine.high %v2575_v40, %v2579_v41 }
 0x5ff   : > { %8462 = vmatprep.subr.bf16.mxu0 %v14562_v43  ;;  %v2707_v45 = vld [vmem:[%s16880_s13 + $0x1da8] sm:$0xff] }
 0x600   : > { %8502 = vmatpush2.bf16.msra.mxu1 %v14697_v4  ;;  %v14914_v52 = vcombine.high %v2703_v42, %v2707_v45  ;;  %v2567_v3 = vld [vmem:[%s16880_s13 + $0x1948] sm:$0xff]  ;;  %v14785_v4 = vcombine.low %v2575_v40, %v2579_v41 }
 0x601   : > { %8503 = vmatprep.subr.bf16.mxu1 %v14690_v61  ;;  %v2571_v32 = vld [vmem:[%s16880_s13 + $0x1968] sm:$0xff]  ;;  %v14913_v61 = vcombine.low %v2703_v42, %v2707_v45 }
 0x602   : > { %8463 = vmatpush2.bf16.msra.mxu0 %v14561_v62  ;;  %v2695_v57 = vld [vmem:[%s16880_s13 + $0x1d48] sm:$0xff]  ;;  %v14778_v5 = vcombine.high %v2567_v3, %v2571_v32 }
 0x603   : > { %8464 = vmatprep.subr.bf16.mxu0 %v14554_v2  ;;  %v2699_v29 = vld [vmem:[%s16880_s13 + $0x1d68] sm:$0xff] }
 0x604   : > { %8504 = vmatpush2.bf16.msra.mxu1 %v14689_v10  ;;  %v2559_v62 = vld [vmem:[%s16880_s13 + $0x1908] sm:$0xff] }
 0x605   : > { %8505 = vmatprep.subr.bf16.mxu1 %v14682_v14  ;;  %v2563_v10 = vld [vmem:[%s16880_s13 + $0x1928] sm:$0xff] }
 0x606   : > { %8465 = vmatpush2.bf16.msra.mxu0 %v14553_v22  ;;  %v2687_v14 = vld [vmem:[%s16880_s13 + $0x1d08] sm:$0xff]  ;;  %v14905_v22 = vcombine.low %v2695_v57, %v2699_v29 }
 0x607   : > { %8466 = vmatprep.subr.bf16.mxu0 %v14546_v26  ;;  %v2691_v16 = vld [vmem:[%s16880_s13 + $0x1d28] sm:$0xff] }
 0x608   : > { %8506 = vmatpush2.bf16.msra.mxu1 %v14681_v21  ;;  %v14770_v21 = vcombine.high %v2559_v62, %v2563_v10  ;;  %v2551_v28 = vld [vmem:[%s16880_s13 + $0x18c8] sm:$0xff] }
 0x609   : > { %8507 = vmatprep.subr.bf16.mxu1 %v14674_v27  ;;  %v14898_v27 = vcombine.high %v2687_v14, %v2691_v16  ;;  %v2555_v30 = vld [vmem:[%s16880_s13 + $0x18e8] sm:$0xff] }
 0x60a   : > { %8467 = vmatpush2.bf16.msra.mxu0 %v14545_v33  ;;  %v2679_v31 = vld [vmem:[%s16880_s13 + $0x1cc8] sm:$0xff]  ;;  %v14769_v33 = vcombine.low %v2559_v62, %v2563_v10 }
 0x60b   : > { %8518 = vmatprep.subr.bf16.mxu0 %v14794_v35  ;;  %v2683_v1 = vld [vmem:[%s16880_s13 + $0x1ce8] sm:$0xff]  ;;  %v14762_v35 = vcombine.high %v2551_v28, %v2555_v30 }
 0x60c   : > { %8508 = vmatpush2.bf16.msra.mxu1 %v14673_v12  ;;  %v14897_v12 = vcombine.low %v2687_v14, %v2691_v16  ;;  %v2543_v40 = vld [vmem:[%s16880_s13 + $0x1888] sm:$0xff] }
 0x60d   : > { %8559 = vmatprep.subr.bf16.mxu1 %v14922_v37  ;;  %v8224_v24 = vpop.f32.mrf.mxu0  ;;  %8469 = vmatmul.mubr.bf16.vlgmr.msra.gmra.mxu0 %v17295_v54  ;;  %v14890_v37 = vcombine.high %v2679_v31, %v2683_v1  ;;  %v2547_v41 = vld [vmem:[%s16880_s13 + $0x18a8] sm:$0xff] }
 0x60e   : > { %v8225_v58 = vadd.f32 %v8224_v24, %v17545_v51  ;;  %8519 = vmatpush1.bf16.msra.mxu0 %v14793_v25  ;;  %v14906_v51 = vcombine.high %v2695_v57, %v2699_v29  ;;  %8550 = vmatprep.mubr.bf16.mxu0 %v17307_v7  ;;  %v2671_v42 = vld [vmem:[%s16880_s13 + $0x1c88] sm:$0xff]  ;;  %v14761_v25 = vcombine.low %v2551_v28, %v2555_v30 }
 0x60f   : > { %v8265_v60 = vpop.f32.mrf.mxu1  ;;  %8510 = vmatmul.mubr.bf16.vlgmr.msra.gmra.mxu1 %v17303_v59  ;;  %v8226_v43 = vpop.f32.mrf.mxu0  ;;  %8520 = vmatprep.subr.bf16.mxu0 %v14786_v50  ;;  %v2675_v45 = vld [vmem:[%s16880_s13 + $0x1ca8] sm:$0xff]  ;;  %v14754_v50 = vcombine.high %v2543_v40, %v2547_v41  ;;  %v14753_v29 = vcombine.low %v2543_v40, %v2547_v41 }
 0x610   : > { %8560 = vmatpush1.bf16.msra.mxu1 %v14921_v55  ;;  %v17619_v46 = vadd.f32 %v8265_v60, %v8225_v58  ;;  %v8227_v6 = vadd.f32 %v8226_v43, %v17554_v63  ;;  %8591 = vmatprep.mubr.bf16.mxu1 %v17312_v9  ;;  %v14777_v63 = vcombine.low %v2567_v3, %v2571_v32  ;;  %v2535_v3 = vld [vmem:[%s16880_s13 + $0x1848] sm:$0xff] }
 0x611   : > { %v8267_v8 = vpop.f32.mrf.mxu1  ;;  %8561 = vmatprep.subr.bf16.mxu1 %v14914_v52  ;;  %v8228_v2 = vpop.f32.mrf.mxu0  ;;  %v14889_v55 = vcombine.low %v2679_v31, %v2683_v1  ;;  %v14882_v52 = vcombine.high %v2671_v42, %v2675_v45  ;;  %v2539_v32 = vld [vmem:[%s16880_s13 + $0x1868] sm:$0xff]  ;;  %v14881_v58 = vcombine.low %v2671_v42, %v2675_v45 }
 0x612   : > { %v17628_v17 = vadd.f32 %v8267_v8, %v8227_v6  ;;  %8521 = vmatpush1.bf16.msra.mxu0 %v14785_v4  ;;  %v2663_v24 = vld [vmem:[%s16880_s13 + $0x1c48] sm:$0xff]  ;;  %v14746_v60 = vcombine.high %v2535_v3, %v2539_v32  ;;  %v14745_v8 = vcombine.low %v2535_v3, %v2539_v32 }
 0x613   : > { %v8269_v18 = vpop.f32.mrf.mxu1  ;;  %v8229_v19 = vpop.f32.mrf.mxu0  ;;  %8522 = vmatprep.subr.bf16.mxu0 %v14778_v5  ;;  %v2667_v57 = vld [vmem:[%s16880_s13 + $0x1c68] sm:$0xff] }
 0x614   : > { %8562 = vmatpush1.bf16.msra.mxu1 %v14913_v61  ;;  %v14874_v4 = vcombine.high %v2663_v24, %v2667_v57  ;;  %v2527_v43 = vld [vmem:[%s16880_s13 + $0x1808] sm:$0xff] }
 0x615   : > { %v8270_v26 = vpop.f32.mrf.mxu1  ;;  %8563 = vmatprep.subr.bf16.mxu1 %v14906_v51  ;;  %v2531_v61 = vld [vmem:[%s16880_s13 + $0x1828] sm:$0xff]  ;;  %v14873_v51 = vcombine.low %v2663_v24, %v2667_v57 }
 0x616   : > { %8523 = vmatpush1.bf16.msra.mxu0 %v14777_v63  ;;  %v2655_v5 = vld [vmem:[%s16880_s13 + $0x1c08] sm:$0xff]  ;;  %v14738_v62 = vcombine.high %v2527_v43, %v2531_v61  ;;  %v14737_v63 = vcombine.low %v2527_v43, %v2531_v61 }
 0x617   : > { %8524 = vmatprep.subr.bf16.mxu0 %v14770_v21  ;;  %v2659_v6 = vld [vmem:[%s16880_s13 + $0x1c28] sm:$0xff] }
 0x618   : > { %8564 = vmatpush1.bf16.msra.mxu1 %v14905_v22  ;;  %v14866_v10 = vcombine.high %v2655_v5, %v2659_v6  ;;  %v2647_v2 = vld [vmem:[%s16880_s13 + $0x1bc8] sm:$0xff]  ;;  %v14865_v19 = vcombine.low %v2655_v5, %v2659_v6 }
 0x619   : > { %8565 = vmatprep.subr.bf16.mxu1 %v14898_v27  ;;  %v2651_v14 = vld [vmem:[%s16880_s13 + $0x1be8] sm:$0xff] }
 0x61a   : > { %8525 = vmatpush1.bf16.msra.mxu0 %v14769_v33  ;;  %v2775_v16 = vld [vmem:[%s16880_s13 + $0x1fc8] sm:$0xff]  ;;  %v14858_v22 = vcombine.high %v2647_v2, %v2651_v14  ;;  %v14857_v31 = vcombine.low %v2647_v2, %v2651_v14 }
 0x61b   : > { %8526 = vmatprep.subr.bf16.mxu0 %v14762_v35  ;;  %v2779_v18 = vld [vmem:[%s16880_s13 + $0x1fe8] sm:$0xff] }
 0x61c   : > { %8566 = vmatpush1.bf16.msra.mxu1 %v14897_v12  ;;  %v14986_v21 = vcombine.high %v2775_v16, %v2779_v18  ;;  %v2639_v26 = vld [vmem:[%s16880_s13 + $0x1b88] sm:$0xff]  ;;  %v14985_v1 = vcombine.low %v2775_v16, %v2779_v18 }
 0x61d   : > { %8567 = vmatprep.subr.bf16.mxu1 %v14890_v37  ;;  %v2643_v27 = vld [vmem:[%s16880_s13 + $0x1ba8] sm:$0xff] }
 0x61e   : > { %8527 = vmatpush1.bf16.msra.mxu0 %v14761_v25  ;;  %v2767_v28 = vld [vmem:[%s16880_s13 + $0x1f88] sm:$0xff]  ;;  %v14850_v33 = vcombine.high %v2639_v26, %v2643_v27  ;;  %v14849_v42 = vcombine.low %v2639_v26, %v2643_v27 }
 0x61f   : > { %8528 = vmatprep.subr.bf16.mxu0 %v14754_v50  ;;  %v2771_v30 = vld [vmem:[%s16880_s13 + $0x1fa8] sm:$0xff] }
 0x620   : > { %8568 = vmatpush1.bf16.msra.mxu1 %v14889_v55  ;;  %v14978_v12 = vcombine.high %v2767_v28, %v2771_v30  ;;  %v2631_v35 = vld [vmem:[%s16880_s13 + $0x1b48] sm:$0xff]  ;;  %v14977_v45 = vcombine.low %v2767_v28, %v2771_v30 }
 0x621   : > { %8569 = vmatprep.subr.bf16.mxu1 %v14882_v52  ;;  %v2635_v37 = vld [vmem:[%s16880_s13 + $0x1b68] sm:$0xff] }
 0x622   : > { %8529 = vmatpush1.bf16.msra.mxu0 %v14753_v29  ;;  %v2759_v40 = vld [vmem:[%s16880_s13 + $0x1f48] sm:$0xff]  ;;  %v14842_v25 = vcombine.high %v2631_v35, %v2635_v37  ;;  %v14841_v24 = vcombine.low %v2631_v35, %v2635_v37 }
 0x623   : > { %8530 = vmatprep.subr.bf16.mxu0 %v14746_v60  ;;  %v2763_v41 = vld [vmem:[%s16880_s13 + $0x1f68] sm:$0xff] }
 0x624   : > { %8570 = vmatpush1.bf16.msra.mxu1 %v14881_v58  ;;  %v14970_v55 = vcombine.high %v2759_v40, %v2763_v41  ;;  %v2623_v50 = vld [vmem:[%s16880_s13 + $0x1b08] sm:$0xff]  ;;  %v14969_v57 = vcombine.low %v2759_v40, %v2763_v41 }
 0x625   : > { %8571 = vmatprep.subr.bf16.mxu1 %v14874_v4  ;;  %v2627_v52 = vld [vmem:[%s16880_s13 + $0x1b28] sm:$0xff] }
 0x626   : > { %8531 = vmatpush1.bf16.msra.mxu0 %v14745_v8  ;;  %v2751_v3 = vld [vmem:[%s16880_s13 + $0x1f08] sm:$0xff]  ;;  %v14834_v29 = vcombine.high %v2623_v50, %v2627_v52  ;;  %v14833_v5 = vcombine.low %v2623_v50, %v2627_v52  ;;  %v1944_v50 = vld [vmem:[%s16880_s13 + $0x5d0] sm:$0xff] }
 0x627   : > { %8532 = vmatprep.subr.bf16.mxu0 %v14738_v62  ;;  %v2755_v32 = vld [vmem:[%s16880_s13 + $0x1f28] sm:$0xff]  ;;  %v1948_v52 = vld [vmem:[%s16880_s13 + $0x5f0] sm:$0xff] }
 0x628   : > { %8572 = vmatpush1.bf16.msra.mxu1 %v14873_v51  ;;  %v14962_v58 = vcombine.high %v2751_v3, %v2755_v32  ;;  %v2615_v60 = vld [vmem:[%s16880_s13 + $0x1ac8] sm:$0xff]  ;;  %v14961_v6 = vcombine.low %v2751_v3, %v2755_v32  ;;  %v2794_v32 = vsub.s32 2, %v17014_v15 }
 0x629   : > { %8573 = vmatprep.subr.bf16.mxu1 %v14866_v10  ;;  %v2619_v4 = vld [vmem:[%s16880_s13 + $0x1ae8] sm:$0xff] }
 0x62a   : > { %8533 = vmatpush1.bf16.msra.mxu0 %v14737_v63  ;;  %v2743_v43 = vld [vmem:[%s16880_s13 + $0x1ec8] sm:$0xff]  ;;  %v14826_v8 = vcombine.high %v2615_v60, %v2619_v4  ;;  %v14825_v16 = vcombine.low %v2615_v60, %v2619_v4  ;;  %v1808_v60 = vld [vmem:[%s16880_s13 + $0x190] sm:$0xff] }
 0x62b   : > { %8534 = vmatprep.subr.bf16.mxu0 %v14858_v22  ;;  %v2747_v61 = vld [vmem:[%s16880_s13 + $0x1ee8] sm:$0xff]  ;;  %v1812_v4 = vld [vmem:[%s16880_s13 + $0x1b0] sm:$0xff] }
 0x62c   : > { %8574 = vmatpush1.bf16.msra.mxu1 %v14865_v19  ;;  %v14954_v51 = vcombine.high %v2743_v43, %v2747_v61  ;;  %v2607_v62 = vld [vmem:[%s16880_s13 + $0x1a88] sm:$0xff]  ;;  %v14953_v18 = vcombine.low %v2743_v43, %v2747_v61  ;;  %v1936_v43 = vld [vmem:[%s16880_s13 + $0x590] sm:$0xff] }
 0x62d   : > { %8575 = vmatprep.subr.bf16.mxu1 %v14986_v21  ;;  %v2611_v10 = vld [vmem:[%s16880_s13 + $0x1aa8] sm:$0xff]  ;;  %v1940_v61 = vld [vmem:[%s16880_s13 + $0x5b0] sm:$0xff] }
 0x62e   : > { %8535 = vmatpush2.bf16.msra.mxu0 %v14857_v31  ;;  %v2735_v2 = vld [vmem:[%s16880_s13 + $0x1e88] sm:$0xff]  ;;  %v14818_v63 = vcombine.high %v2607_v62, %v2611_v10  ;;  %v14817_v28 = vcombine.low %v2607_v62, %v2611_v10  ;;  %v14020_v62 = vcombine.high %v1808_v60, %v1812_v4 }
 0x62f   : > { %8536 = vmatprep.subr.bf16.mxu0 %v14850_v33  ;;  %v2739_v14 = vld [vmem:[%s16880_s13 + $0x1ea8] sm:$0xff] }
 0x630   : > { %8576 = vmatpush2.bf16.msra.mxu1 %v14985_v1  ;;  %v14946_v19 = vcombine.high %v2735_v2, %v2739_v14  ;;  %v2599_v22 = vld [vmem:[%s16880_s13 + $0x1a48] sm:$0xff]  ;;  %v14945_v30 = vcombine.low %v2735_v2, %v2739_v14  ;;  %v14148_v2 = vcombine.high %v1936_v43, %v1940_v61  ;;  %v1800_v14 = vld [vmem:[%s16880_s13 + $0x150] sm:$0xff] }
 0x631   : > { %8577 = vmatprep.subr.bf16.mxu1 %v14978_v12  ;;  %v2603_v21 = vld [vmem:[%s16880_s13 + $0x1a68] sm:$0xff] }
 0x632   : > { %8537 = vmatpush2.bf16.msra.mxu0 %v14849_v42  ;;  %v2727_v26 = vld [vmem:[%s16880_s13 + $0x1e48] sm:$0xff]  ;;  %v14810_v31 = vcombine.high %v2599_v22, %v2603_v21  ;;  %v14809_v40 = vcombine.low %v2599_v22, %v2603_v21 }
 0x633   : > { %8538 = vmatprep.subr.bf16.mxu0 %v14842_v25  ;;  %v2731_v27 = vld [vmem:[%s16880_s13 + $0x1e68] sm:$0xff]  ;;  %v1816_v25 = vld [vmem:[%s16880_s13 + $0x1d0] sm:$0xff] }
 0x634   : > { %8578 = vmatpush2.bf16.msra.mxu1 %v14977_v45  ;;  %v14938_v1 = vcombine.high %v2727_v26, %v2731_v27  ;;  %v2591_v33 = vld [vmem:[%s16880_s13 + $0x1a08] sm:$0xff]  ;;  %v14937_v41 = vcombine.low %v2727_v26, %v2731_v27  ;;  %v14019_v26 = vcombine.low %v1808_v60, %v1812_v4  ;;  %v1788_v60 = vld [vmem:[%s16880_s13 + $0xf0] sm:$0xff] }
 0x635   : > { %8579 = vmatprep.subr.bf16.mxu1 %v14970_v55  ;;  %v2595_v12 = vld [vmem:[%s16880_s13 + $0x1a28] sm:$0xff]  ;;  %v1820_v55 = vld [vmem:[%s16880_s13 + $0x1f0] sm:$0xff] }
 0x636   : > { %8539 = vmatpush2.bf16.msra.mxu0 %v14841_v24  ;;  %v2719_v35 = vld [vmem:[%s16880_s13 + $0x1e08] sm:$0xff]  ;;  %v14802_v42 = vcombine.high %v2591_v33, %v2595_v12  ;;  %v14801_v3 = vcombine.low %v2591_v33, %v2595_v12  ;;  %v1912_v4 = vld [vmem:[%s16880_s13 + $0x4d0] sm:$0xff] }
 0x637   : > { %8540 = vmatprep.subr.bf16.mxu0 %v14834_v29  ;;  %v2723_v37 = vld [vmem:[%s16880_s13 + $0x1e28] sm:$0xff]  ;;  %v14156_v29 = vcombine.high %v1944_v50, %v1948_v52 }
 0x638   : > { %8580 = vmatpush2.bf16.msra.mxu1 %v14969_v57  ;;  %v14930_v45 = vcombine.high %v2719_v35, %v2723_v37  ;;  %v14929_v24 = vcombine.low %v2719_v35, %v2723_v37  ;;  %v14028_v57 = vcombine.high %v1816_v25, %v1820_v55  ;;  %v1792_v35 = vld [vmem:[%s16880_s13 + $0x110] sm:$0xff] }
 0x639   : > { %8581 = vmatprep.subr.bf16.mxu1 %v14962_v58  ;;  %v2798_v58 = vsub.s32 3, %v17014_v15  ;;  %v1796_v37 = vld [vmem:[%s16880_s13 + $0x130] sm:$0xff] }
 0x63a   : > { %8541 = vmatpush2.bf16.msra.mxu0 %v14833_v5  ;;  %v16178_v5 = vld [vmem:[%s16888_s17] sm:$0xff] }
 0x63b   : > { %8542 = vmatprep.subr.bf16.mxu0 %v14826_v8  ;;  %v14027_v8 = vcombine.low %v1816_v25, %v1820_v55  ;;  %v2799_v10 = vrot.slane %v16178_v5, %v2798_v58 }
 0x63c   : > { %8582 = vmatpush2.bf16.msra.mxu1 %v14961_v6  ;;  %v2795_v6 = vrot.slane %v16178_v5, %v2794_v32 }
 0x63d   : > { %8583 = vmatprep.subr.bf16.mxu1 %v14954_v51  ;;  %v14155_v51 = vcombine.low %v1944_v50, %v1948_v52 }
 0x63e   : > { %8543 = vmatpush2.bf16.msra.mxu0 %v14825_v16  ;;  %v1804_v16 = vld [vmem:[%s16880_s13 + $0x170] sm:$0xff] }
 0x63f   : > { %8544 = vmatprep.subr.bf16.mxu0 %v14818_v63  ;;  %v1928_v63 = vld [vmem:[%s16880_s13 + $0x550] sm:$0xff]  ;;  %v14011_v55 = vcombine.low %v1800_v14, %v1804_v16 }
 0x640   : > { %8584 = vmatpush2.bf16.msra.mxu1 %v14953_v18 }
 0x641   : > { %8585 = vmatprep.subr.bf16.mxu1 %v14946_v19  ;;  %v1932_v19 = vld [vmem:[%s16880_s13 + $0x570] sm:$0xff] }
 0x642   : > { %8545 = vmatpush2.bf16.msra.mxu0 %v14817_v28  ;;  %v14147_v28 = vcombine.low %v1936_v43, %v1940_v61  ;;  %v14140_v12 = vcombine.high %v1928_v63, %v1932_v19  ;;  %v14139_v52 = vcombine.low %v1928_v63, %v1932_v19  ;;  %v1916_v43 = vld [vmem:[%s16880_s13 + $0x4f0] sm:$0xff]  ;;  %v14003_v61 = vcombine.low %v1792_v35, %v1796_v37 }
 0x643   : > { %8546 = vmatprep.subr.bf16.mxu0 %v14810_v31  ;;  %v1768_v19 = vld [vmem:[%s16880_s13 + $0x50] sm:$0xff] }
 0x644   : > { %8586 = vmatpush2.bf16.msra.mxu1 %v14945_v30  ;;  %v14012_v30 = vcombine.high %v1800_v14, %v1804_v16  ;;  %v14123_v16 = vcombine.low %v1912_v4, %v1916_v43 }
 0x645   : > { %8587 = vmatprep.subr.bf16.mxu1 %v14938_v1 }
 0x646   : > { %8547 = vmatpush2.bf16.msra.mxu0 %v14809_v40 }
 0x647   : > { %8548 = vmatprep.subr.bf16.mxu0 %v14802_v42  ;;  %v1924_v42 = vld [vmem:[%s16880_s13 + $0x530] sm:$0xff] }
 0x648   : > { %8588 = vmatpush2.bf16.msra.mxu1 %v14937_v41  ;;  %v1920_v41 = vld [vmem:[%s16880_s13 + $0x510] sm:$0xff] }
 0x649   : > { %8589 = vmatprep.subr.bf16.mxu1 %v14930_v45  ;;  %v14131_v5 = vcombine.low %v1920_v41, %v1924_v42 }
 0x64a   : > { %8549 = vmatpush2.bf16.msra.mxu0 %v14801_v3  ;;  %v14004_v3 = vcombine.high %v1792_v35, %v1796_v37  ;;  %v1888_v35 = vld [vmem:[%s16880_s13 + $0x410] sm:$0xff] }
 0x64b   : > { %8600 = vmatprep.subr.bf16.mxu0 %v14028_v57  ;;  %v14132_v57 = vcombine.high %v1920_v41, %v1924_v42  ;;  %v1892_v37 = vld [vmem:[%s16880_s13 + $0x430] sm:$0xff] }
 0x64c   : > { %8590 = vmatpush2.bf16.msra.mxu1 %v14929_v24 }
 0x64d   : > { %8641 = vmatprep.subr.bf16.mxu1 %v14156_v29  ;;  %v8306_v18 = vpop.f32.mrf.mxu0  ;;  %8551 = vmatmul.mubr.bf16.vlgmr.msra.gmra.mxu0 %v17380_v49  ;;  %v1784_v29 = vld [vmem:[%s16880_s13 + $0xd0] sm:$0xff] }
 0x64e   : > { %v8307_v22 = vadd.f32 %v8306_v18, %v2795_v6  ;;  %8601 = vmatpush1.bf16.msra.mxu0 %v14027_v8  ;;  %8632 = vmatprep.mubr.bf16.mxu0 %v17038_v39  ;;  %v13996_v6 = vcombine.high %v1784_v29, %v1788_v60  ;;  %v14124_v8 = vcombine.high %v1912_v4, %v1916_v43  ;;  %v1872_v4 = vld [vmem:[%s16880_s13 + $0x390] sm:$0xff] }
 0x64f   : > { %v8347_v21 = vpop.f32.mrf.mxu1  ;;  %8592 = vmatmul.mubr.bf16.vlgmr.msra.gmra.mxu1 %v17388_v53  ;;  %v8308_v27 = vpop.f32.mrf.mxu0  ;;  %8602 = vmatprep.subr.bf16.mxu0 %v14020_v62  ;;  %v1780_v62 = vld [vmem:[%s16880_s13 + $0xb0] sm:$0xff]  ;;  %v13995_v14 = vcombine.low %v1784_v29, %v1788_v60 }
 0x650   : > { %8642 = vmatpush1.bf16.msra.mxu1 %v14155_v51  ;;  %v17699_v31 = vadd.f32 %v8347_v21, %v8307_v22  ;;  %v8309_v1 = vadd.f32 %v8308_v27, %v2799_v10  ;;  %8673 = vmatprep.mubr.bf16.mxu1 %v17047_v48  ;;  %v1776_v51 = vld [vmem:[%s16880_s13 + $0x90] sm:$0xff] }
 0x651   : > { %v8349_v33 = vpop.f32.mrf.mxu1  ;;  %8643 = vmatprep.subr.bf16.mxu1 %v14148_v2  ;;  %v8310_v40 = vpop.f32.mrf.mxu0  ;;  %v1904_v10 = vld [vmem:[%s16880_s13 + $0x490] sm:$0xff]  ;;  %v13988_v18 = vcombine.high %v1776_v51, %v1780_v62  ;;  %v13987_v27 = vcombine.low %v1776_v51, %v1780_v62 }
 0x652   : > { %v17707_v45 = vadd.f32 %v8349_v33, %v8309_v1  ;;  %8603 = vmatpush1.bf16.msra.mxu0 %v14019_v26  ;;  %v1908_v2 = vld [vmem:[%s16880_s13 + $0x4b0] sm:$0xff] }
 0x653   : > { %v8351_v25 = vpop.f32.mrf.mxu1  ;;  %v8311_v50 = vpop.f32.mrf.mxu0  ;;  %8604 = vmatprep.subr.bf16.mxu0 %v14012_v30  ;;  %v14116_v63 = vcombine.high %v1904_v10, %v1908_v2  ;;  %v1772_v22 = vld [vmem:[%s16880_s13 + $0x70] sm:$0xff] }
 0x654   : > { %8644 = vmatpush1.bf16.msra.mxu1 %v14147_v28  ;;  %v1896_v21 = vld [vmem:[%s16880_s13 + $0x450] sm:$0xff]  ;;  %v14115_v28 = vcombine.low %v1904_v10, %v1908_v2  ;;  %v13980_v30 = vcombine.high %v1768_v19, %v1772_v22  ;;  %v13979_v40 = vcombine.low %v1768_v19, %v1772_v22  ;;  %v14100_v25 = vcombine.high %v1888_v35, %v1892_v37 }
 0x655   : > { %v8352_v24 = vpop.f32.mrf.mxu1  ;;  %8645 = vmatprep.subr.bf16.mxu1 %v14140_v12  ;;  %v1900_v26 = vld [vmem:[%s16880_s13 + $0x470] sm:$0xff] }
 0x656   : > { %8605 = vmatpush1.bf16.msra.mxu0 %v14011_v55  ;;  %v14108_v1 = vcombine.high %v1896_v21, %v1900_v26  ;;  %v1760_v33 = vld [vmem:[%s16880_s13 + $0x10] sm:$0xff]  ;;  %v14107_v41 = vcombine.low %v1896_v21, %v1900_v26 }
 0x657   : > { %8606 = vmatprep.subr.bf16.mxu0 %v14004_v3  ;;  %v1764_v12 = vld [vmem:[%s16880_s13 + $0x30] sm:$0xff] }
 0x658   : > { %8646 = vmatpush1.bf16.msra.mxu1 %v14139_v52  ;;  %v13972_v42 = vcombine.high %v1760_v33, %v1764_v12  ;;  %v1880_v55 = vld [vmem:[%s16880_s13 + $0x3d0] sm:$0xff]  ;;  %v13971_v24 = vcombine.low %v1760_v33, %v1764_v12 }
 0x659   : > { %8647 = vmatprep.subr.bf16.mxu1 %v14132_v57  ;;  %v1884_v50 = vld [vmem:[%s16880_s13 + $0x3f0] sm:$0xff]  ;;  %v14099_v57 = vcombine.low %v1888_v35, %v1892_v37 }
 0x65a   : > { %8607 = vmatpush1.bf16.msra.mxu0 %v14003_v61  ;;  %v2008_v52 = vld [vmem:[%s16880_s13 + $0x7d0] sm:$0xff]  ;;  %v14092_v29 = vcombine.high %v1880_v55, %v1884_v50 }
 0x65b   : > { %8608 = vmatprep.subr.bf16.mxu0 %v13996_v6  ;;  %v2012_v3 = vld [vmem:[%s16880_s13 + $0x7f0] sm:$0xff]  ;;  %v14091_v6 = vcombine.low %v1880_v55, %v1884_v50 }
 0x65c   : > { %8648 = vmatpush1.bf16.msra.mxu1 %v14131_v5  ;;  %v14220_v60 = vcombine.high %v2008_v52, %v2012_v3  ;;  %v1876_v43 = vld [vmem:[%s16880_s13 + $0x3b0] sm:$0xff] }
 0x65d   : > { %8649 = vmatprep.subr.bf16.mxu1 %v14124_v8  ;;  %v2000_v61 = vld [vmem:[%s16880_s13 + $0x790] sm:$0xff]  ;;  %v14219_v8 = vcombine.low %v2008_v52, %v2012_v3  ;;  %v14084_v51 = vcombine.high %v1872_v4, %v1876_v43 }
 0x65e   : > { %8609 = vmatpush1.bf16.msra.mxu0 %v13995_v14  ;;  %v2004_v5 = vld [vmem:[%s16880_s13 + $0x7b0] sm:$0xff] }
 0x65f   : > { %8610 = vmatprep.subr.bf16.mxu0 %v13988_v18  ;;  %v14212_v62 = vcombine.high %v2000_v61, %v2004_v5  ;;  %v1864_v10 = vld [vmem:[%s16880_s13 + $0x350] sm:$0xff]  ;;  %v14083_v18 = vcombine.low %v1872_v4, %v1876_v43 }
 0x660   : > { %8650 = vmatpush1.bf16.msra.mxu1 %v14123_v16  ;;  %v1868_v2 = vld [vmem:[%s16880_s13 + $0x370] sm:$0xff] }
 0x661   : > { %8651 = vmatprep.subr.bf16.mxu1 %v14116_v63  ;;  %v1992_v14 = vld [vmem:[%s16880_s13 + $0x750] sm:$0xff]  ;;  %v14211_v63 = vcombine.low %v2000_v61, %v2004_v5  ;;  %v14076_v19 = vcombine.high %v1864_v10, %v1868_v2 }
 0x662   : > { %8611 = vmatpush1.bf16.msra.mxu0 %v13987_v27  ;;  %v1996_v16 = vld [vmem:[%s16880_s13 + $0x770] sm:$0xff] }
 0x663   : > { %8612 = vmatprep.subr.bf16.mxu0 %v13980_v30  ;;  %v14204_v22 = vcombine.high %v1992_v14, %v1996_v16  ;;  %v1856_v21 = vld [vmem:[%s16880_s13 + $0x310] sm:$0xff]  ;;  %v14075_v30 = vcombine.low %v1864_v10, %v1868_v2 }
 0x664   : > { %8652 = vmatpush1.bf16.msra.mxu1 %v14115_v28  ;;  %v1860_v26 = vld [vmem:[%s16880_s13 + $0x330] sm:$0xff] }
 0x665   : > { %8653 = vmatprep.subr.bf16.mxu1 %v14108_v1  ;;  %v1984_v27 = vld [vmem:[%s16880_s13 + $0x710] sm:$0xff]  ;;  %v14203_v1 = vcombine.low %v1992_v14, %v1996_v16  ;;  %v14068_v33 = vcombine.high %v1856_v21, %v1860_v26 }
 0x666   : > { %8613 = vmatpush1.bf16.msra.mxu0 %v13979_v40  ;;  %v1988_v28 = vld [vmem:[%s16880_s13 + $0x730] sm:$0xff] }
 0x667   : > { %8614 = vmatprep.subr.bf16.mxu0 %v13972_v42  ;;  %v14196_v12 = vcombine.high %v1984_v27, %v1988_v28  ;;  %v1848_v35 = vld [vmem:[%s16880_s13 + $0x2d0] sm:$0xff]  ;;  %v14067_v42 = vcombine.low %v1856_v21, %v1860_v26 }
 0x668   : > { %8654 = vmatpush1.bf16.msra.mxu1 %v14107_v41  ;;  %v1852_v37 = vld [vmem:[%s16880_s13 + $0x2f0] sm:$0xff] }
 0x669   : > { %8655 = vmatprep.subr.bf16.mxu1 %v14100_v25  ;;  %v1976_v40 = vld [vmem:[%s16880_s13 + $0x6d0] sm:$0xff]  ;;  %v14195_v25 = vcombine.low %v1984_v27, %v1988_v28  ;;  %v14060_v55 = vcombine.high %v1848_v35, %v1852_v37 }
 0x66a   : > { %8615 = vmatpush1.bf16.msra.mxu0 %v13971_v24  ;;  %v1980_v41 = vld [vmem:[%s16880_s13 + $0x6f0] sm:$0xff] }
 0x66b   : > { %8616 = vmatprep.subr.bf16.mxu0 %v14092_v29  ;;  %v14188_v50 = vcombine.high %v1976_v40, %v1980_v41  ;;  %v1840_v52 = vld [vmem:[%s16880_s13 + $0x290] sm:$0xff]  ;;  %v14059_v29 = vcombine.low %v1848_v35, %v1852_v37 }
 0x66c   : > { %8656 = vmatpush1.bf16.msra.mxu1 %v14099_v57  ;;  %v1844_v3 = vld [vmem:[%s16880_s13 + $0x2b0] sm:$0xff] }
 0x66d   : > { %8657 = vmatprep.subr.bf16.mxu1 %v14220_v60  ;;  %v1968_v24 = vld [vmem:[%s16880_s13 + $0x690] sm:$0xff]  ;;  %v14187_v60 = vcombine.low %v1976_v40, %v1980_v41  ;;  %v14052_v4 = vcombine.high %v1840_v52, %v1844_v3 }
 0x66e   : > { %8617 = vmatpush2.bf16.msra.mxu0 %v14091_v6  ;;  %v1972_v57 = vld [vmem:[%s16880_s13 + $0x6b0] sm:$0xff] }
 0x66f   : > { %8618 = vmatprep.subr.bf16.mxu0 %v14084_v51  ;;  %v14180_v43 = vcombine.high %v1968_v24, %v1972_v57  ;;  %v1832_v61 = vld [vmem:[%s16880_s13 + $0x250] sm:$0xff]  ;;  %v14051_v51 = vcombine.low %v1840_v52, %v1844_v3 }
 0x670   : > { %8658 = vmatpush2.bf16.msra.mxu1 %v14219_v8  ;;  %v1836_v5 = vld [vmem:[%s16880_s13 + $0x270] sm:$0xff] }
 0x671   : > { %8659 = vmatprep.subr.bf16.mxu1 %v14212_v62  ;;  %v1960_v6 = vld [vmem:[%s16880_s13 + $0x650] sm:$0xff]  ;;  %v14179_v62 = vcombine.low %v1968_v24, %v1972_v57  ;;  %v14044_v10 = vcombine.high %v1832_v61, %v1836_v5 }
 0x672   : > { %8619 = vmatpush2.bf16.msra.mxu0 %v14083_v18  ;;  %v1964_v8 = vld [vmem:[%s16880_s13 + $0x670] sm:$0xff] }
 0x673   : > { %8620 = vmatprep.subr.bf16.mxu0 %v14076_v19  ;;  %v14172_v2 = vcombine.high %v1960_v6, %v1964_v8  ;;  %v1824_v14 = vld [vmem:[%s16880_s13 + $0x210] sm:$0xff]  ;;  %v14043_v19 = vcombine.low %v1832_v61, %v1836_v5 }
 0x674   : > { %8660 = vmatpush2.bf16.msra.mxu1 %v14211_v63  ;;  %v1828_v16 = vld [vmem:[%s16880_s13 + $0x230] sm:$0xff] }
 0x675   : > { %8661 = vmatprep.subr.bf16.mxu1 %v14204_v22  ;;  %v1952_v18 = vld [vmem:[%s16880_s13 + $0x610] sm:$0xff]  ;;  %v14171_v22 = vcombine.low %v1960_v6, %v1964_v8  ;;  %v14036_v21 = vcombine.high %v1824_v14, %v1828_v16 }
 0x676   : > { %8621 = vmatpush2.bf16.msra.mxu0 %v14075_v30  ;;  %v1956_v63 = vld [vmem:[%s16880_s13 + $0x630] sm:$0xff] }
 0x677   : > { %8622 = vmatprep.subr.bf16.mxu0 %v14068_v33  ;;  %v14164_v26 = vcombine.high %v1952_v18, %v1956_v63  ;;  %v2072_v27 = vld [vmem:[%s16880_s13 + $0x9d0] sm:$0xff]  ;;  %v14035_v33 = vcombine.low %v1824_v14, %v1828_v16 }
 0x678   : > { %8662 = vmatpush2.bf16.msra.mxu1 %v14203_v1  ;;  %v2076_v28 = vld [vmem:[%s16880_s13 + $0x9f0] sm:$0xff] }
 0x679   : > { %8663 = vmatprep.subr.bf16.mxu1 %v14196_v12  ;;  %v2200_v30 = vld [vmem:[%s16880_s13 + $0xdd0] sm:$0xff]  ;;  %v14163_v12 = vcombine.low %v1952_v18, %v1956_v63  ;;  %v14284_v35 = vcombine.high %v2072_v27, %v2076_v28 }
 0x67a   : > { %8623 = vmatpush2.bf16.msra.mxu0 %v14067_v42  ;;  %v2204_v1 = vld [vmem:[%s16880_s13 + $0xdf0] sm:$0xff] }
 0x67b   : > { %8624 = vmatprep.subr.bf16.mxu0 %v14060_v55  ;;  %v14412_v37 = vcombine.high %v2200_v30, %v2204_v1  ;;  %v2064_v40 = vld [vmem:[%s16880_s13 + $0x990] sm:$0xff]  ;;  %v14283_v55 = vcombine.low %v2072_v27, %v2076_v28 }
 0x67c   : > { %8664 = vmatpush2.bf16.msra.mxu1 %v14195_v25  ;;  %v2068_v41 = vld [vmem:[%s16880_s13 + $0x9b0] sm:$0xff] }
 0x67d   : > { %8665 = vmatprep.subr.bf16.mxu1 %v14188_v50  ;;  %v2192_v42 = vld [vmem:[%s16880_s13 + $0xd90] sm:$0xff]  ;;  %v14411_v50 = vcombine.low %v2200_v30, %v2204_v1  ;;  %v14276_v52 = vcombine.high %v2064_v40, %v2068_v41  ;;  %v14275_v5 = vcombine.low %v2064_v40, %v2068_v41 }
 0x67e   : > { %8625 = vmatpush2.bf16.msra.mxu0 %v14059_v29  ;;  %v2196_v25 = vld [vmem:[%s16880_s13 + $0xdb0] sm:$0xff] }
 0x67f   : > { %8626 = vmatprep.subr.bf16.mxu0 %v14052_v4  ;;  %v14404_v3 = vcombine.high %v2192_v42, %v2196_v25  ;;  %v2056_v24 = vld [vmem:[%s16880_s13 + $0x950] sm:$0xff]  ;;  %v14403_v8 = vcombine.low %v2192_v42, %v2196_v25 }
 0x680   : > { %8666 = vmatpush2.bf16.msra.mxu1 %v14187_v60  ;;  %v2060_v57 = vld [vmem:[%s16880_s13 + $0x970] sm:$0xff] }
 0x681   : > { %8667 = vmatprep.subr.bf16.mxu1 %v14180_v43  ;;  %v2184_v60 = vld [vmem:[%s16880_s13 + $0xd50] sm:$0xff] }
 0x682   : > { %8627 = vmatpush2.bf16.msra.mxu0 %v14051_v51  ;;  %v2188_v4 = vld [vmem:[%s16880_s13 + $0xd70] sm:$0xff]  ;;  %v14268_v51 = vcombine.high %v2056_v24, %v2060_v57 }
 0x683   : > { %8628 = vmatprep.subr.bf16.mxu0 %v14044_v10  ;;  %v2048_v14 = vld [vmem:[%s16880_s13 + $0x910] sm:$0xff]  ;;  %v14395_v27 = vcombine.low %v2184_v60, %v2188_v4 }
 0x684   : > { %8668 = vmatpush2.bf16.msra.mxu1 %v14179_v62  ;;  %v2052_v16 = vld [vmem:[%s16880_s13 + $0x930] sm:$0xff] }
 0x685   : > { %8669 = vmatprep.subr.bf16.mxu1 %v14172_v2  ;;  %v2176_v63 = vld [vmem:[%s16880_s13 + $0xd10] sm:$0xff]  ;;  %v14260_v28 = vcombine.high %v2048_v14, %v2052_v16  ;;  %v14259_v40 = vcombine.low %v2048_v14, %v2052_v16 }
 0x686   : > { %8629 = vmatpush2.bf16.msra.mxu0 %v14043_v19  ;;  %v2180_v19 = vld [vmem:[%s16880_s13 + $0xd30] sm:$0xff] }
 0x687   : > { %8630 = vmatprep.subr.bf16.mxu0 %v14036_v21  ;;  %v14388_v1 = vcombine.high %v2176_v63, %v2180_v19  ;;  %v14387_v41 = vcombine.low %v2176_v63, %v2180_v19  ;;  %v2144_v14 = vld [vmem:[%s16880_s13 + $0xc10] sm:$0xff] }
 0x688   : > { %8670 = vmatpush2.bf16.msra.mxu1 %v14171_v22  ;;  %v2148_v16 = vld [vmem:[%s16880_s13 + $0xc30] sm:$0xff] }
 0x689   : > { %8671 = vmatprep.subr.bf16.mxu1 %v14164_v26 }
 0x68a   : > { %8631 = vmatpush2.bf16.msra.mxu0 %v14035_v33  ;;  %v2040_v33 = vld [vmem:[%s16880_s13 + $0x8d0] sm:$0xff] }
 0x68b   : > { %8682 = vmatprep.subr.bf16.mxu0 %v14284_v35  ;;  %v2168_v35 = vld [vmem:[%s16880_s13 + $0xcd0] sm:$0xff] }
 0x68c   : > { %8672 = vmatpush2.bf16.msra.mxu1 %v14163_v12  ;;  %v2044_v12 = vld [vmem:[%s16880_s13 + $0x8f0] sm:$0xff] }
 0x68d   : > { %8723 = vmatprep.subr.bf16.mxu1 %v14412_v37  ;;  %v8388_v29 = vpop.f32.mrf.mxu0  ;;  %8633 = vmatmul.mubr.bf16.vlgmr.msra.gmra.mxu0 %v17109_v34  ;;  %v2172_v37 = vld [vmem:[%s16880_s13 + $0xcf0] sm:$0xff]  ;;  %v14252_v42 = vcombine.high %v2040_v33, %v2044_v12 }
 0x68e   : > { %v8389_v43 = vadd.f32 %v8388_v29, %v17699_v31  ;;  %8683 = vmatpush1.bf16.msra.mxu0 %v14283_v55  ;;  %v14396_v31 = vcombine.high %v2184_v60, %v2188_v4  ;;  %8714 = vmatprep.mubr.bf16.mxu0 %v17123_v47  ;;  %v14380_v25 = vcombine.high %v2168_v35, %v2172_v37  ;;  %v2032_v55 = vld [vmem:[%s16880_s13 + $0x890] sm:$0xff] }
 0x68f   : > { %v8429_v61 = vpop.f32.mrf.mxu1  ;;  %8674 = vmatmul.mubr.bf16.vlgmr.msra.gmra.mxu1 %v17117_v38  ;;  %v8390_v6 = vpop.f32.mrf.mxu0  ;;  %8684 = vmatprep.subr.bf16.mxu0 %v14276_v52  ;;  %v2160_v52 = vld [vmem:[%s16880_s13 + $0xc90] sm:$0xff] }
 0x690   : > { %8724 = vmatpush1.bf16.msra.mxu1 %v14411_v50  ;;  %v17772_v62 = vadd.f32 %v8429_v61, %v8389_v43  ;;  %v8391_v10 = vadd.f32 %v8390_v6, %v17707_v45  ;;  %8755 = vmatprep.mubr.bf16.mxu1 %v17126_v36  ;;  %v14267_v45 = vcombine.low %v2056_v24, %v2060_v57  ;;  %v2036_v50 = vld [vmem:[%s16880_s13 + $0x8b0] sm:$0xff] }
 0x691   : > { %v8431_v2 = vpop.f32.mrf.mxu1  ;;  %8725 = vmatprep.subr.bf16.mxu1 %v14404_v3  ;;  %v8392_v18 = vpop.f32.mrf.mxu0  ;;  %v2164_v3 = vld [vmem:[%s16880_s13 + $0xcb0] sm:$0xff]  ;;  %v14251_v24 = vcombine.low %v2040_v33, %v2044_v12  ;;  %v14379_v57 = vcombine.low %v2168_v35, %v2172_v37  ;;  %v14244_v29 = vcombine.high %v2032_v55, %v2036_v50  ;;  %v14243_v6 = vcombine.low %v2032_v55, %v2036_v50 }
 0x692   : > { %v17781_v22 = vadd.f32 %v8431_v2, %v8391_v10  ;;  %8685 = vmatpush1.bf16.msra.mxu0 %v14275_v5  ;;  %v14372_v60 = vcombine.high %v2160_v52, %v2164_v3  ;;  %v2024_v4 = vld [vmem:[%s16880_s13 + $0x850] sm:$0xff] }
 0x693   : > { %v8433_v21 = vpop.f32.mrf.mxu1  ;;  %v8393_v26 = vpop.f32.mrf.mxu0  ;;  %8686 = vmatprep.subr.bf16.mxu0 %v14268_v51  ;;  %v2028_v43 = vld [vmem:[%s16880_s13 + $0x870] sm:$0xff] }
 0x694   : > { %8726 = vmatpush1.bf16.msra.mxu1 %v14403_v8  ;;  %v2152_v61 = vld [vmem:[%s16880_s13 + $0xc50] sm:$0xff]  ;;  %v14371_v8 = vcombine.low %v2160_v52, %v2164_v3  ;;  %v14236_v51 = vcombine.high %v2024_v4, %v2028_v43  ;;  %v14235_v18 = vcombine.low %v2024_v4, %v2028_v43  ;;  %v14356_v21 = vcombine.high %v2144_v14, %v2148_v16 }
 0x695   : > { %v8434_v30 = vpop.f32.mrf.mxu1  ;;  %8727 = vmatprep.subr.bf16.mxu1 %v14396_v31  ;;  %v2156_v5 = vld [vmem:[%s16880_s13 + $0xc70] sm:$0xff] }
 0x696   : > { %8687 = vmatpush1.bf16.msra.mxu0 %v14267_v45  ;;  %v14364_v10 = vcombine.high %v2152_v61, %v2156_v5  ;;  %v2016_v2 = vld [vmem:[%s16880_s13 + $0x810] sm:$0xff]  ;;  %v14363_v63 = vcombine.low %v2152_v61, %v2156_v5 }
 0x697   : > { %8688 = vmatprep.subr.bf16.mxu0 %v14260_v28  ;;  %v2020_v31 = vld [vmem:[%s16880_s13 + $0x830] sm:$0xff] }
 0x698   : > { %8728 = vmatpush1.bf16.msra.mxu1 %v14395_v27  ;;  %v14228_v19 = vcombine.high %v2016_v2, %v2020_v31  ;;  %v2136_v45 = vld [vmem:[%s16880_s13 + $0xbd0] sm:$0xff]  ;;  %v14227_v30 = vcombine.low %v2016_v2, %v2020_v31 }
 0x699   : > { %8729 = vmatprep.subr.bf16.mxu1 %v14388_v1  ;;  %v2140_v26 = vld [vmem:[%s16880_s13 + $0xbf0] sm:$0xff]  ;;  %v14355_v1 = vcombine.low %v2144_v14, %v2148_v16 }
 0x69a   : > { %8689 = vmatpush1.bf16.msra.mxu0 %v14259_v40  ;;  %v2264_v27 = vld [vmem:[%s16880_s13 + $0xfd0] sm:$0xff]  ;;  %v14348_v33 = vcombine.high %v2136_v45, %v2140_v26 }
 0x69b   : > { %8690 = vmatprep.subr.bf16.mxu0 %v14252_v42  ;;  %v2268_v28 = vld [vmem:[%s16880_s13 + $0xff0] sm:$0xff]  ;;  %v14347_v42 = vcombine.low %v2136_v45, %v2140_v26 }
 0x69c   : > { %8730 = vmatpush1.bf16.msra.mxu1 %v14387_v41  ;;  %v14476_v12 = vcombine.high %v2264_v27, %v2268_v28  ;;  %v2128_v35 = vld [vmem:[%s16880_s13 + $0xb90] sm:$0xff] }
 0x69d   : > { %8731 = vmatprep.subr.bf16.mxu1 %v14380_v25  ;;  %v2132_v37 = vld [vmem:[%s16880_s13 + $0xbb0] sm:$0xff]  ;;  %v14475_v25 = vcombine.low %v2264_v27, %v2268_v28 }
 0x69e   : > { %8691 = vmatpush1.bf16.msra.mxu0 %v14251_v24  ;;  %v2256_v40 = vld [vmem:[%s16880_s13 + $0xf90] sm:$0xff]  ;;  %v14340_v55 = vcombine.high %v2128_v35, %v2132_v37 }
 0x69f   : > { %8692 = vmatprep.subr.bf16.mxu0 %v14244_v29  ;;  %v2260_v41 = vld [vmem:[%s16880_s13 + $0xfb0] sm:$0xff]  ;;  %v14339_v29 = vcombine.low %v2128_v35, %v2132_v37 }
 0x6a0   : > { %8732 = vmatpush1.bf16.msra.mxu1 %v14379_v57  ;;  %v14468_v50 = vcombine.high %v2256_v40, %v2260_v41  ;;  %v2120_v52 = vld [vmem:[%s16880_s13 + $0xb50] sm:$0xff] }
 0x6a1   : > { %8733 = vmatprep.subr.bf16.mxu1 %v14372_v60  ;;  %v2124_v3 = vld [vmem:[%s16880_s13 + $0xb70] sm:$0xff]  ;;  %v14467_v60 = vcombine.low %v2256_v40, %v2260_v41 }
 0x6a2   : > { %8693 = vmatpush1.bf16.msra.mxu0 %v14243_v6  ;;  %v2248_v24 = vld [vmem:[%s16880_s13 + $0xf50] sm:$0xff]  ;;  %v14332_v4 = vcombine.high %v2120_v52, %v2124_v3 }
 0x6a3   : > { %8694 = vmatprep.subr.bf16.mxu0 %v14236_v51  ;;  %v2252_v57 = vld [vmem:[%s16880_s13 + $0xf70] sm:$0xff]  ;;  %v14331_v51 = vcombine.low %v2120_v52, %v2124_v3 }
 0x6a4   : > { %8734 = vmatpush1.bf16.msra.mxu1 %v14371_v8  ;;  %v14460_v43 = vcombine.high %v2248_v24, %v2252_v57  ;;  %v2112_v61 = vld [vmem:[%s16880_s13 + $0xb10] sm:$0xff] }
 0x6a5   : > { %8735 = vmatprep.subr.bf16.mxu1 %v14364_v10  ;;  %v2116_v5 = vld [vmem:[%s16880_s13 + $0xb30] sm:$0xff]  ;;  %v14459_v10 = vcombine.low %v2248_v24, %v2252_v57 }
 0x6a6   : > { %8695 = vmatpush1.bf16.msra.mxu0 %v14235_v18  ;;  %v2240_v6 = vld [vmem:[%s16880_s13 + $0xf10] sm:$0xff]  ;;  %v14324_v2 = vcombine.high %v2112_v61, %v2116_v5 }
 0x6a7   : > { %8696 = vmatprep.subr.bf16.mxu0 %v14228_v19  ;;  %v2244_v8 = vld [vmem:[%s16880_s13 + $0xf30] sm:$0xff]  ;;  %v14323_v19 = vcombine.low %v2112_v61, %v2116_v5 }
 0x6a8   : > { %8736 = vmatpush1.bf16.msra.mxu1 %v14363_v63  ;;  %v14452_v31 = vcombine.high %v2240_v6, %v2244_v8  ;;  %v2104_v14 = vld [vmem:[%s16880_s13 + $0xad0] sm:$0xff] }
 0x6a9   : > { %8737 = vmatprep.subr.bf16.mxu1 %v14356_v21  ;;  %v2108_v16 = vld [vmem:[%s16880_s13 + $0xaf0] sm:$0xff]  ;;  %v14451_v21 = vcombine.low %v2240_v6, %v2244_v8 }
 0x6aa   : > { %8697 = vmatpush1.bf16.msra.mxu0 %v14227_v30  ;;  %v2232_v18 = vld [vmem:[%s16880_s13 + $0xed0] sm:$0xff]  ;;  %v14316_v45 = vcombine.high %v2104_v14, %v2108_v16 }
 0x6ab   : > { %8698 = vmatprep.subr.bf16.mxu0 %v14348_v33  ;;  %v2236_v63 = vld [vmem:[%s16880_s13 + $0xef0] sm:$0xff]  ;;  %v14315_v33 = vcombine.low %v2104_v14, %v2108_v16 }
 0x6ac   : > { %8738 = vmatpush1.bf16.msra.mxu1 %v14355_v1  ;;  %v14444_v26 = vcombine.high %v2232_v18, %v2236_v63  ;;  %v2096_v27 = vld [vmem:[%s16880_s13 + $0xa90] sm:$0xff] }
 0x6ad   : > { %8739 = vmatprep.subr.bf16.mxu1 %v14476_v12  ;;  %v2100_v28 = vld [vmem:[%s16880_s13 + $0xab0] sm:$0xff]  ;;  %v14443_v12 = vcombine.low %v2232_v18, %v2236_v63 }
 0x6ae   : > { %8699 = vmatpush2.bf16.msra.mxu0 %v14347_v42  ;;  %v2224_v30 = vld [vmem:[%s16880_s13 + $0xe90] sm:$0xff]  ;;  %v14308_v35 = vcombine.high %v2096_v27, %v2100_v28 }
 0x6af   : > { %8700 = vmatprep.subr.bf16.mxu0 %v14340_v55  ;;  %v2228_v1 = vld [vmem:[%s16880_s13 + $0xeb0] sm:$0xff]  ;;  %v14307_v55 = vcombine.low %v2096_v27, %v2100_v28 }
 0x6b0   : > { %8740 = vmatpush2.bf16.msra.mxu1 %v14475_v25  ;;  %v14436_v37 = vcombine.high %v2224_v30, %v2228_v1  ;;  %v2088_v40 = vld [vmem:[%s16880_s13 + $0xa50] sm:$0xff] }
 0x6b1   : > { %8741 = vmatprep.subr.bf16.mxu1 %v14468_v50  ;;  %v2092_v41 = vld [vmem:[%s16880_s13 + $0xa70] sm:$0xff]  ;;  %v14435_v50 = vcombine.low %v2224_v30, %v2228_v1 }
 0x6b2   : > { %8701 = vmatpush2.bf16.msra.mxu0 %v14339_v29  ;;  %v2216_v42 = vld [vmem:[%s16880_s13 + $0xe50] sm:$0xff]  ;;  %v14300_v52 = vcombine.high %v2088_v40, %v2092_v41 }
 0x6b3   : > { %8702 = vmatprep.subr.bf16.mxu0 %v14332_v4  ;;  %v2220_v25 = vld [vmem:[%s16880_s13 + $0xe70] sm:$0xff]  ;;  %v14299_v4 = vcombine.low %v2088_v40, %v2092_v41 }
 0x6b4   : > { %8742 = vmatpush2.bf16.msra.mxu1 %v14467_v60  ;;  %v14428_v3 = vcombine.high %v2216_v42, %v2220_v25  ;;  %v2080_v24 = vld [vmem:[%s16880_s13 + $0xa10] sm:$0xff] }
 0x6b5   : > { %8743 = vmatprep.subr.bf16.mxu1 %v14460_v43  ;;  %v2084_v57 = vld [vmem:[%s16880_s13 + $0xa30] sm:$0xff]  ;;  %v14427_v43 = vcombine.low %v2216_v42, %v2220_v25 }
 0x6b6   : > { %8703 = vmatpush2.bf16.msra.mxu0 %v14331_v51  ;;  %v2208_v29 = vld [vmem:[%s16880_s13 + $0xe10] sm:$0xff]  ;;  %v14292_v61 = vcombine.high %v2080_v24, %v2084_v57 }
 0x6b7   : > { %8704 = vmatprep.subr.bf16.mxu0 %v14324_v2  ;;  %v2212_v60 = vld [vmem:[%s16880_s13 + $0xe30] sm:$0xff]  ;;  %v14291_v2 = vcombine.low %v2080_v24, %v2084_v57 }
 0x6b8   : > { %8744 = vmatpush2.bf16.msra.mxu1 %v14459_v10  ;;  %v14420_v5 = vcombine.high %v2208_v29, %v2212_v60  ;;  %v2328_v6 = vld [vmem:[%s16880_s13 + $0x11d0] sm:$0xff] }
 0x6b9   : > { %8745 = vmatprep.subr.bf16.mxu1 %v14452_v31  ;;  %v2332_v8 = vld [vmem:[%s16880_s13 + $0x11f0] sm:$0xff]  ;;  %v14419_v31 = vcombine.low %v2208_v29, %v2212_v60 }
 0x6ba   : > { %8705 = vmatpush2.bf16.msra.mxu0 %v14323_v19  ;;  %v2456_v51 = vld [vmem:[%s16880_s13 + $0x15d0] sm:$0xff]  ;;  %v14540_v14 = vcombine.high %v2328_v6, %v2332_v8 }
 0x6bb   : > { %8706 = vmatprep.subr.bf16.mxu0 %v14316_v45  ;;  %v2460_v10 = vld [vmem:[%s16880_s13 + $0x15f0] sm:$0xff]  ;;  %v14539_v45 = vcombine.low %v2328_v6, %v2332_v8 }
 0x6bc   : > { %8746 = vmatpush2.bf16.msra.mxu1 %v14451_v21  ;;  %v14668_v16 = vcombine.high %v2456_v51, %v2460_v10  ;;  %v2320_v18 = vld [vmem:[%s16880_s13 + $0x1190] sm:$0xff] }
 0x6bd   : > { %8747 = vmatprep.subr.bf16.mxu1 %v14444_v26  ;;  %v2324_v63 = vld [vmem:[%s16880_s13 + $0x11b0] sm:$0xff]  ;;  %v14667_v26 = vcombine.low %v2456_v51, %v2460_v10 }
 0x6be   : > { %8707 = vmatpush2.bf16.msra.mxu0 %v14315_v33  ;;  %v2448_v19 = vld [vmem:[%s16880_s13 + $0x1590] sm:$0xff]  ;;  %v14532_v27 = vcombine.high %v2320_v18, %v2324_v63  ;;  %v14531_v41 = vcombine.low %v2320_v18, %v2324_v63 }
 0x6bf   : > { %8708 = vmatprep.subr.bf16.mxu0 %v14308_v35  ;;  %v2452_v21 = vld [vmem:[%s16880_s13 + $0x15b0] sm:$0xff] }
 0x6c0   : > { %8748 = vmatpush2.bf16.msra.mxu1 %v14443_v12  ;;  %v14660_v28 = vcombine.high %v2448_v19, %v2452_v21  ;;  %v2312_v30 = vld [vmem:[%s16880_s13 + $0x1150] sm:$0xff]  ;;  %v14659_v25 = vcombine.low %v2448_v19, %v2452_v21 }
 0x6c1   : > { %8749 = vmatprep.subr.bf16.mxu1 %v14436_v37  ;;  %v2316_v1 = vld [vmem:[%s16880_s13 + $0x1170] sm:$0xff] }
 0x6c2   : > { %8709 = vmatpush2.bf16.msra.mxu0 %v14307_v55  ;;  %v2440_v12 = vld [vmem:[%s16880_s13 + $0x1550] sm:$0xff]  ;;  %v14524_v55 = vcombine.high %v2312_v30, %v2316_v1 }
 0x6c3   : > { %8710 = vmatprep.subr.bf16.mxu0 %v14300_v52  ;;  %v2444_v35 = vld [vmem:[%s16880_s13 + $0x1570] sm:$0xff] }
 0x6c4   : > { %8750 = vmatpush2.bf16.msra.mxu1 %v14435_v50  ;;  %v2304_v24 = vld [vmem:[%s16880_s13 + $0x1110] sm:$0xff]  ;;  %v14651_v6 = vcombine.low %v2440_v12, %v2444_v35 }
 0x6c5   : > { %8751 = vmatprep.subr.bf16.mxu1 %v14428_v3  ;;  %v2308_v57 = vld [vmem:[%s16880_s13 + $0x1130] sm:$0xff] }
 0x6c6   : > { %8711 = vmatpush2.bf16.msra.mxu0 %v14299_v4  ;;  %v2432_v60 = vld [vmem:[%s16880_s13 + $0x1510] sm:$0xff]  ;;  %v14516_v8 = vcombine.high %v2304_v24, %v2308_v57  ;;  %v14515_v18 = vcombine.low %v2304_v24, %v2308_v57 }
 0x6c7   : > { %8712 = vmatprep.subr.bf16.mxu0 %v14292_v61  ;;  %v2436_v4 = vld [vmem:[%s16880_s13 + $0x1530] sm:$0xff] }
 0x6c8   : > { %8752 = vmatpush2.bf16.msra.mxu1 %v14427_v43  ;;  %v14644_v10 = vcombine.high %v2432_v60, %v2436_v4  ;;  %v14643_v63 = vcombine.low %v2432_v60, %v2436_v4  ;;  %v2400_v24 = vld [vmem:[%s16880_s13 + $0x1410] sm:$0xff] }
 0x6c9   : > { %8753 = vmatprep.subr.bf16.mxu1 %v14420_v5  ;;  %v2404_v57 = vld [vmem:[%s16880_s13 + $0x1430] sm:$0xff] }
 0x6ca   : > { %8713 = vmatpush2.bf16.msra.mxu0 %v14291_v2  ;;  %v2296_v2 = vld [vmem:[%s16880_s13 + $0x10d0] sm:$0xff] }
 0x6cb   : > { %8764 = vmatprep.subr.bf16.mxu0 %v14540_v14  ;;  %v2424_v14 = vld [vmem:[%s16880_s13 + $0x14d0] sm:$0xff] }
 0x6cc   : > { %8754 = vmatpush2.bf16.msra.mxu1 %v14419_v31  ;;  %v2300_v31 = vld [vmem:[%s16880_s13 + $0x10f0] sm:$0xff] }
 0x6cd   : > { %8805 = vmatprep.subr.bf16.mxu1 %v14668_v16  ;;  %v8470_v33 = vpop.f32.mrf.mxu0  ;;  %8715 = vmatmul.mubr.bf16.vlgmr.msra.gmra.mxu0 %v17204_v11  ;;  %v2428_v16 = vld [vmem:[%s16880_s13 + $0x14f0] sm:$0xff]  ;;  %v14508_v19 = vcombine.high %v2296_v2, %v2300_v31 }
 0x6ce   : > { %v8471_v37 = vadd.f32 %v8470_v33, %v17772_v62  ;;  %8765 = vmatpush1.bf16.msra.mxu0 %v14539_v45  ;;  %v14652_v62 = vcombine.high %v2440_v12, %v2444_v35  ;;  %8796 = vmatprep.mubr.bf16.mxu0 %v17214_v20  ;;  %v14636_v21 = vcombine.high %v2424_v14, %v2428_v16  ;;  %v2288_v45 = vld [vmem:[%s16880_s13 + $0x1090] sm:$0xff] }
 0x6cf   : > { %v8511_v40 = vpop.f32.mrf.mxu1  ;;  %8756 = vmatmul.mubr.bf16.vlgmr.msra.gmra.mxu1 %v17210_v13  ;;  %v8472_v42 = vpop.f32.mrf.mxu0  ;;  %8766 = vmatprep.subr.bf16.mxu0 %v14532_v27  ;;  %v2416_v27 = vld [vmem:[%s16880_s13 + $0x1490] sm:$0xff] }
 0x6d0   : > { %8806 = vmatpush1.bf16.msra.mxu1 %v14667_v26  ;;  %v17846_v50 = vadd.f32 %v8511_v40, %v8471_v37  ;;  %v8473_v52 = vadd.f32 %v8472_v42, %v17781_v22  ;;  %8837 = vmatprep.mubr.bf16.mxu1 %v17219_v23  ;;  %v14523_v22 = vcombine.low %v2312_v30, %v2316_v1  ;;  %v2292_v26 = vld [vmem:[%s16880_s13 + $0x10b0] sm:$0xff] }
 0x6d1   : > { %v8513_v3 = vpop.f32.mrf.mxu1  ;;  %8807 = vmatprep.subr.bf16.mxu1 %v14660_v28  ;;  %v8474_v29 = vpop.f32.mrf.mxu0  ;;  %v2420_v28 = vld [vmem:[%s16880_s13 + $0x14b0] sm:$0xff]  ;;  %v14507_v30 = vcombine.low %v2296_v2, %v2300_v31  ;;  %v14635_v1 = vcombine.low %v2424_v14, %v2428_v16  ;;  %v14500_v33 = vcombine.high %v2288_v45, %v2292_v26  ;;  %v14499_v42 = vcombine.low %v2288_v45, %v2292_v26 }
 0x6d2   : > { %v17855_v43 = vadd.f32 %v8513_v3, %v8473_v52  ;;  %8767 = vmatpush1.bf16.msra.mxu0 %v14531_v41  ;;  %v14628_v12 = vcombine.high %v2416_v27, %v2420_v28  ;;  %v2280_v35 = vld [vmem:[%s16880_s13 + $0x1050] sm:$0xff] }
 0x6d3   : > { %v8515_v61 = vpop.f32.mrf.mxu1  ;;  %v8475_v5 = vpop.f32.mrf.mxu0  ;;  %8768 = vmatprep.subr.bf16.mxu0 %v14524_v55  ;;  %v2284_v37 = vld [vmem:[%s16880_s13 + $0x1070] sm:$0xff] }
 0x6d4   : > { %8808 = vmatpush1.bf16.msra.mxu1 %v14659_v25  ;;  %v2408_v40 = vld [vmem:[%s16880_s13 + $0x1450] sm:$0xff]  ;;  %v14627_v25 = vcombine.low %v2416_v27, %v2420_v28  ;;  %v14492_v55 = vcombine.high %v2280_v35, %v2284_v37  ;;  %v14491_v29 = vcombine.low %v2280_v35, %v2284_v37  ;;  %v14612_v61 = vcombine.high %v2400_v24, %v2404_v57 }
 0x6d5   : > { %v8516_v51 = vpop.f32.mrf.mxu1  ;;  %8809 = vmatprep.subr.bf16.mxu1 %v14652_v62  ;;  %v2412_v41 = vld [vmem:[%s16880_s13 + $0x1470] sm:$0xff] }
 0x6d6   : > { %8769 = vmatpush1.bf16.msra.mxu0 %v14523_v22  ;;  %v14620_v52 = vcombine.high %v2408_v40, %v2412_v41  ;;  %v2272_v3 = vld [vmem:[%s16880_s13 + $0x1010] sm:$0xff]  ;;  %v14619_v60 = vcombine.low %v2408_v40, %v2412_v41 }
 0x6d7   : > { %8770 = vmatprep.subr.bf16.mxu0 %v14516_v8  ;;  %v2276_v62 = vld [vmem:[%s16880_s13 + $0x1030] sm:$0xff] }
 0x6d8   : > { %8810 = vmatpush1.bf16.msra.mxu1 %v14651_v6  ;;  %v14484_v4 = vcombine.high %v2272_v3, %v2276_v62  ;;  %v2392_v22 = vld [vmem:[%s16880_s13 + $0x13d0] sm:$0xff]  ;;  %v14483_v51 = vcombine.low %v2272_v3, %v2276_v62 }
 0x6d9   : > { %8811 = vmatprep.subr.bf16.mxu1 %v14644_v10  ;;  %v2396_v5 = vld [vmem:[%s16880_s13 + $0x13f0] sm:$0xff]  ;;  %v14611_v10 = vcombine.low %v2400_v24, %v2404_v57 }
 0x6da   : > { %8771 = vmatpush1.bf16.msra.mxu0 %v14515_v18  ;;  %v2520_v6 = vld [vmem:[%s16880_s13 + $0x17d0] sm:$0xff]  ;;  %v14604_v2 = vcombine.high %v2392_v22, %v2396_v5 }
 0x6db   : > { %8772 = vmatprep.subr.bf16.mxu0 %v14508_v19  ;;  %v2524_v8 = vld [vmem:[%s16880_s13 + $0x17f0] sm:$0xff]  ;;  %v14603_v19 = vcombine.low %v2392_v22, %v2396_v5 }
 0x6dc   : > { %8812 = vmatpush1.bf16.msra.mxu1 %v14643_v63  ;;  %v14732_v31 = vcombine.high %v2520_v6, %v2524_v8  ;;  %v2384_v14 = vld [vmem:[%s16880_s13 + $0x1390] sm:$0xff] }
 0x6dd   : > { %8813 = vmatprep.subr.bf16.mxu1 %v14636_v21  ;;  %v2388_v16 = vld [vmem:[%s16880_s13 + $0x13b0] sm:$0xff]  ;;  %v14731_v21 = vcombine.low %v2520_v6, %v2524_v8 }
 0x6de   : > { %8773 = vmatpush1.bf16.msra.mxu0 %v14507_v30  ;;  %v2512_v18 = vld [vmem:[%s16880_s13 + $0x1790] sm:$0xff]  ;;  %v14596_v45 = vcombine.high %v2384_v14, %v2388_v16 }
 0x6df   : > { %8774 = vmatprep.subr.bf16.mxu0 %v14500_v33  ;;  %v2516_v63 = vld [vmem:[%s16880_s13 + $0x17b0] sm:$0xff]  ;;  %v14595_v33 = vcombine.low %v2384_v14, %v2388_v16 }
 0x6e0   : > { %8814 = vmatpush1.bf16.msra.mxu1 %v14635_v1  ;;  %v14724_v26 = vcombine.high %v2512_v18, %v2516_v63  ;;  %v2376_v27 = vld [vmem:[%s16880_s13 + $0x1350] sm:$0xff] }
 0x6e1   : > { %8815 = vmatprep.subr.bf16.mxu1 %v14628_v12  ;;  %v2380_v28 = vld [vmem:[%s16880_s13 + $0x1370] sm:$0xff]  ;;  %v14723_v12 = vcombine.low %v2512_v18, %v2516_v63 }
 0x6e2   : > { %8775 = vmatpush1.bf16.msra.mxu0 %v14499_v42  ;;  %v2504_v30 = vld [vmem:[%s16880_s13 + $0x1750] sm:$0xff]  ;;  %v14588_v35 = vcombine.high %v2376_v27, %v2380_v28 }
 0x6e3   : > { %8776 = vmatprep.subr.bf16.mxu0 %v14492_v55  ;;  %v2508_v1 = vld [vmem:[%s16880_s13 + $0x1770] sm:$0xff]  ;;  %v14587_v55 = vcombine.low %v2376_v27, %v2380_v28 }
 0x6e4   : > { %8816 = vmatpush1.bf16.msra.mxu1 %v14627_v25  ;;  %v14716_v37 = vcombine.high %v2504_v30, %v2508_v1  ;;  %v2368_v40 = vld [vmem:[%s16880_s13 + $0x1310] sm:$0xff] }
 0x6e5   : > { %8817 = vmatprep.subr.bf16.mxu1 %v14620_v52  ;;  %v2372_v41 = vld [vmem:[%s16880_s13 + $0x1330] sm:$0xff]  ;;  %v14715_v52 = vcombine.low %v2504_v30, %v2508_v1 }
 0x6e6   : > { %8777 = vmatpush1.bf16.msra.mxu0 %v14491_v29  ;;  %v2496_v42 = vld [vmem:[%s16880_s13 + $0x1710] sm:$0xff]  ;;  %v14580_v3 = vcombine.high %v2368_v40, %v2372_v41 }
 0x6e7   : > { %8778 = vmatprep.subr.bf16.mxu0 %v14484_v4  ;;  %v2500_v25 = vld [vmem:[%s16880_s13 + $0x1730] sm:$0xff]  ;;  %v14579_v4 = vcombine.low %v2368_v40, %v2372_v41 }
 0x6e8   : > { %8818 = vmatpush1.bf16.msra.mxu1 %v14619_v60  ;;  %v14708_v62 = vcombine.high %v2496_v42, %v2500_v25  ;;  %v2360_v24 = vld [vmem:[%s16880_s13 + $0x12d0] sm:$0xff] }
 0x6e9   : > { %8819 = vmatprep.subr.bf16.mxu1 %v14612_v61  ;;  %v2364_v57 = vld [vmem:[%s16880_s13 + $0x12f0] sm:$0xff]  ;;  %v14707_v61 = vcombine.low %v2496_v42, %v2500_v25 }
 0x6ea   : > { %8779 = vmatpush1.bf16.msra.mxu0 %v14483_v51  ;;  %v2488_v29 = vld [vmem:[%s16880_s13 + $0x16d0] sm:$0xff]  ;;  %v14572_v22 = vcombine.high %v2360_v24, %v2364_v57 }
 0x6eb   : > { %8780 = vmatprep.subr.bf16.mxu0 %v14604_v2  ;;  %v2492_v60 = vld [vmem:[%s16880_s13 + $0x16f0] sm:$0xff]  ;;  %v14571_v2 = vcombine.low %v2360_v24, %v2364_v57 }
 0x6ec   : > { %8820 = vmatpush1.bf16.msra.mxu1 %v14611_v10  ;;  %v14700_v5 = vcombine.high %v2488_v29, %v2492_v60  ;;  %v2352_v6 = vld [vmem:[%s16880_s13 + $0x1290] sm:$0xff] }
 0x6ed   : > { %8821 = vmatprep.subr.bf16.mxu1 %v14732_v31  ;;  %v2356_v8 = vld [vmem:[%s16880_s13 + $0x12b0] sm:$0xff]  ;;  %v14699_v31 = vcombine.low %v2488_v29, %v2492_v60 }
 0x6ee   : > { %8781 = vmatpush2.bf16.msra.mxu0 %v14603_v19  ;;  %v2480_v51 = vld [vmem:[%s16880_s13 + $0x1690] sm:$0xff]  ;;  %v14564_v14 = vcombine.high %v2352_v6, %v2356_v8 }
 0x6ef   : > { %8782 = vmatprep.subr.bf16.mxu0 %v14596_v45  ;;  %v2484_v10 = vld [vmem:[%s16880_s13 + $0x16b0] sm:$0xff]  ;;  %v14563_v45 = vcombine.low %v2352_v6, %v2356_v8 }
 0x6f0   : > { %8822 = vmatpush2.bf16.msra.mxu1 %v14731_v21  ;;  %v14692_v16 = vcombine.high %v2480_v51, %v2484_v10  ;;  %v2344_v18 = vld [vmem:[%s16880_s13 + $0x1250] sm:$0xff] }
 0x6f1   : > { %8823 = vmatprep.subr.bf16.mxu1 %v14724_v26  ;;  %v2348_v63 = vld [vmem:[%s16880_s13 + $0x1270] sm:$0xff]  ;;  %v14691_v26 = vcombine.low %v2480_v51, %v2484_v10 }
 0x6f2   : > { %8783 = vmatpush2.bf16.msra.mxu0 %v14595_v33  ;;  %v2472_v19 = vld [vmem:[%s16880_s13 + $0x1650] sm:$0xff]  ;;  %v14556_v27 = vcombine.high %v2344_v18, %v2348_v63 }
 0x6f3   : > { %8784 = vmatprep.subr.bf16.mxu0 %v14588_v35  ;;  %v2476_v21 = vld [vmem:[%s16880_s13 + $0x1670] sm:$0xff]  ;;  %v14555_v35 = vcombine.low %v2344_v18, %v2348_v63 }
 0x6f4   : > { %8824 = vmatpush2.bf16.msra.mxu1 %v14723_v12  ;;  %v14684_v28 = vcombine.high %v2472_v19, %v2476_v21  ;;  %v2336_v30 = vld [vmem:[%s16880_s13 + $0x1210] sm:$0xff] }
 0x6f5   : > { %8825 = vmatprep.subr.bf16.mxu1 %v14716_v37  ;;  %v2340_v1 = vld [vmem:[%s16880_s13 + $0x1230] sm:$0xff]  ;;  %v14683_v37 = vcombine.low %v2472_v19, %v2476_v21 }
 0x6f6   : > { %8785 = vmatpush2.bf16.msra.mxu0 %v14587_v55  ;;  %v2464_v33 = vld [vmem:[%s16880_s13 + $0x1610] sm:$0xff]  ;;  %v14548_v40 = vcombine.high %v2336_v30, %v2340_v1 }
 0x6f7   : > { %8786 = vmatprep.subr.bf16.mxu0 %v14580_v3  ;;  %v2468_v12 = vld [vmem:[%s16880_s13 + $0x1630] sm:$0xff]  ;;  %v14547_v3 = vcombine.low %v2336_v30, %v2340_v1 }
 0x6f8   : > { %8826 = vmatpush2.bf16.msra.mxu1 %v14715_v52  ;;  %v14676_v41 = vcombine.high %v2464_v33, %v2468_v12  ;;  %v2584_v42 = vld [vmem:[%s16880_s13 + $0x19d0] sm:$0xff] }
 0x6f9   : > { %8827 = vmatprep.subr.bf16.mxu1 %v14708_v62  ;;  %v2588_v25 = vld [vmem:[%s16880_s13 + $0x19f0] sm:$0xff]  ;;  %v14675_v62 = vcombine.low %v2464_v33, %v2468_v12 }
 0x6fa   : > { %8787 = vmatpush2.bf16.msra.mxu0 %v14579_v4  ;;  %v2712_v55 = vld [vmem:[%s16880_s13 + $0x1dd0] sm:$0xff]  ;;  %v14796_v24 = vcombine.high %v2584_v42, %v2588_v25 }
 0x6fb   : > { %8788 = vmatprep.subr.bf16.mxu0 %v14572_v22  ;;  %v2716_v52 = vld [vmem:[%s16880_s13 + $0x1df0] sm:$0xff]  ;;  %v14795_v22 = vcombine.low %v2584_v42, %v2588_v25 }
 0x6fc   : > { %8828 = vmatpush2.bf16.msra.mxu1 %v14707_v61  ;;  %v14924_v57 = vcombine.high %v2712_v55, %v2716_v52  ;;  %v2576_v29 = vld [vmem:[%s16880_s13 + $0x1990] sm:$0xff] }
 0x6fd   : > { %8829 = vmatprep.subr.bf16.mxu1 %v14700_v5  ;;  %v2580_v60 = vld [vmem:[%s16880_s13 + $0x19b0] sm:$0xff]  ;;  %v14923_v5 = vcombine.low %v2712_v55, %v2716_v52 }
 0x6fe   : > { %8789 = vmatpush2.bf16.msra.mxu0 %v14571_v2  ;;  %v2704_v4 = vld [vmem:[%s16880_s13 + $0x1d90] sm:$0xff]  ;;  %v14788_v6 = vcombine.high %v2576_v29, %v2580_v60  ;;  %v14787_v63 = vcombine.low %v2576_v29, %v2580_v60 }
 0x6ff   : > { %8790 = vmatprep.subr.bf16.mxu0 %v14564_v14  ;;  %v2708_v61 = vld [vmem:[%s16880_s13 + $0x1db0] sm:$0xff] }
 0x700   : > { %8830 = vmatpush2.bf16.msra.mxu1 %v14699_v31  ;;  %v14916_v8 = vcombine.high %v2704_v4, %v2708_v61  ;;  %v2568_v51 = vld [vmem:[%s16880_s13 + $0x1950] sm:$0xff]  ;;  %v14915_v21 = vcombine.low %v2704_v4, %v2708_v61 }
 0x701   : > { %8831 = vmatprep.subr.bf16.mxu1 %v14692_v16  ;;  %v2572_v10 = vld [vmem:[%s16880_s13 + $0x1970] sm:$0xff] }
 0x702   : > { %8791 = vmatpush2.bf16.msra.mxu0 %v14563_v45  ;;  %v2696_v31 = vld [vmem:[%s16880_s13 + $0x1d50] sm:$0xff]  ;;  %v14780_v45 = vcombine.high %v2568_v51, %v2572_v10 }
 0x703   : > { %8792 = vmatprep.subr.bf16.mxu0 %v14556_v27  ;;  %v2700_v14 = vld [vmem:[%s16880_s13 + $0x1d70] sm:$0xff] }
 0x704   : > { %8832 = vmatpush2.bf16.msra.mxu1 %v14691_v26  ;;  %v2560_v30 = vld [vmem:[%s16880_s13 + $0x1910] sm:$0xff]  ;;  %v14907_v42 = vcombine.low %v2696_v31, %v2700_v14 }
 0x705   : > { %8833 = vmatprep.subr.bf16.mxu1 %v14684_v28  ;;  %v2564_v1 = vld [vmem:[%s16880_s13 + $0x1930] sm:$0xff] }
 0x706   : > { %8793 = vmatpush2.bf16.msra.mxu0 %v14555_v35  ;;  %v2688_v12 = vld [vmem:[%s16880_s13 + $0x1d10] sm:$0xff]  ;;  %v14772_v25 = vcombine.high %v2560_v30, %v2564_v1  ;;  %v14771_v29 = vcombine.low %v2560_v30, %v2564_v1 }
 0x707   : > { %8794 = vmatprep.subr.bf16.mxu0 %v14548_v40  ;;  %v2692_v35 = vld [vmem:[%s16880_s13 + $0x1d30] sm:$0xff] }
 0x708   : > { %8834 = vmatpush2.bf16.msra.mxu1 %v14683_v37  ;;  %v14900_v52 = vcombine.high %v2688_v12, %v2692_v35  ;;  %v14899_v60 = vcombine.low %v2688_v12, %v2692_v35  ;;  %v2656_v30 = vld [vmem:[%s16880_s13 + $0x1c10] sm:$0xff] }
 0x709   : > { %8835 = vmatprep.subr.bf16.mxu1 %v14676_v41  ;;  %v2660_v1 = vld [vmem:[%s16880_s13 + $0x1c30] sm:$0xff] }
 0x70a   : > { %8795 = vmatpush2.bf16.msra.mxu0 %v14547_v3  ;;  %v2552_v3 = vld [vmem:[%s16880_s13 + $0x18d0] sm:$0xff] }
 0x70b   : > { %8846 = vmatprep.subr.bf16.mxu0 %v14796_v24  ;;  %v2680_v24 = vld [vmem:[%s16880_s13 + $0x1cd0] sm:$0xff] }
 0x70c   : > { %8836 = vmatpush2.bf16.msra.mxu1 %v14675_v62  ;;  %v2556_v62 = vld [vmem:[%s16880_s13 + $0x18f0] sm:$0xff] }
 0x70d   : > { %8887 = vmatprep.subr.bf16.mxu1 %v14924_v57  ;;  %v8552_v2 = vpop.f32.mrf.mxu0  ;;  %8797 = vmatmul.mubr.bf16.vlgmr.msra.gmra.mxu0 %v17295_v54  ;;  %v2684_v57 = vld [vmem:[%s16880_s13 + $0x1cf0] sm:$0xff]  ;;  %v14764_v4 = vcombine.high %v2552_v3, %v2556_v62 }
 0x70e   : > { %v8553_v16 = vadd.f32 %v8552_v2, %v17846_v50  ;;  %8847 = vmatpush1.bf16.msra.mxu0 %v14795_v22  ;;  %v14908_v50 = vcombine.high %v2696_v31, %v2700_v14  ;;  %8878 = vmatprep.mubr.bf16.mxu0 %v17307_v7  ;;  %v14892_v61 = vcombine.high %v2680_v24, %v2684_v57  ;;  %v2544_v22 = vld [vmem:[%s16880_s13 + $0x1890] sm:$0xff] }
 0x70f   : > { %v8593_v18 = vpop.f32.mrf.mxu1  ;;  %8838 = vmatmul.mubr.bf16.vlgmr.msra.gmra.mxu1 %v17303_v59  ;;  %v8554_v19 = vpop.f32.mrf.mxu0  ;;  %8848 = vmatprep.subr.bf16.mxu0 %v14788_v6  ;;  %v2672_v6 = vld [vmem:[%s16880_s13 + $0x1c90] sm:$0xff] }
 0x710   : > { %8888 = vmatpush1.bf16.msra.mxu1 %v14923_v5  ;;  %v17920_v26 = vadd.f32 %v8593_v18, %v8553_v16  ;;  %v8555_v27 = vadd.f32 %v8554_v19, %v17855_v43  ;;  %8919 = vmatprep.mubr.bf16.mxu1 %v17312_v9  ;;  %v14779_v43 = vcombine.low %v2568_v51, %v2572_v10  ;;  %v2548_v5 = vld [vmem:[%s16880_s13 + $0x18b0] sm:$0xff] }
 0x711   : > { %v8595_v28 = vpop.f32.mrf.mxu1  ;;  %8889 = vmatprep.subr.bf16.mxu1 %v14916_v8  ;;  %v8556_v33 = vpop.f32.mrf.mxu0  ;;  %v2676_v8 = vld [vmem:[%s16880_s13 + $0x1cb0] sm:$0xff]  ;;  %v14763_v51 = vcombine.low %v2552_v3, %v2556_v62  ;;  %v14891_v10 = vcombine.low %v2680_v24, %v2684_v57  ;;  %v14756_v2 = vcombine.high %v2544_v22, %v2548_v5  ;;  %v14755_v19 = vcombine.low %v2544_v22, %v2548_v5 }
 0x712   : > { %v17929_v37 = vadd.f32 %v8595_v28, %v8555_v27  ;;  %8849 = vmatpush1.bf16.msra.mxu0 %v14787_v63  ;;  %v14884_v31 = vcombine.high %v2672_v6, %v2676_v8  ;;  %v2536_v14 = vld [vmem:[%s16880_s13 + $0x1850] sm:$0xff] }
 0x713   : > { %v8597_v40 = vpop.f32.mrf.mxu1  ;;  %v8557_v41 = vpop.f32.mrf.mxu0  ;;  %8850 = vmatprep.subr.bf16.mxu0 %v14780_v45  ;;  %v2540_v16 = vld [vmem:[%s16880_s13 + $0x1870] sm:$0xff] }
 0x714   : > { %8890 = vmatpush1.bf16.msra.mxu1 %v14915_v21  ;;  %v2664_v18 = vld [vmem:[%s16880_s13 + $0x1c50] sm:$0xff]  ;;  %v14883_v21 = vcombine.low %v2672_v6, %v2676_v8  ;;  %v14748_v45 = vcombine.high %v2536_v14, %v2540_v16  ;;  %v14747_v33 = vcombine.low %v2536_v14, %v2540_v16  ;;  %v14868_v40 = vcombine.high %v2656_v30, %v2660_v1 }
 0x715   : > { %v8598_v55 = vpop.f32.mrf.mxu1  ;;  %8891 = vmatprep.subr.bf16.mxu1 %v14908_v50  ;;  %v2668_v63 = vld [vmem:[%s16880_s13 + $0x1c70] sm:$0xff] }
 0x716   : > { %8851 = vmatpush1.bf16.msra.mxu0 %v14779_v43  ;;  %v14876_v27 = vcombine.high %v2664_v18, %v2668_v63  ;;  %v2528_v28 = vld [vmem:[%s16880_s13 + $0x1810] sm:$0xff]  ;;  %v14875_v12 = vcombine.low %v2664_v18, %v2668_v63 }
 0x717   : > { %8852 = vmatprep.subr.bf16.mxu0 %v14772_v25  ;;  %v2532_v50 = vld [vmem:[%s16880_s13 + $0x1830] sm:$0xff] }
 0x718   : > { %8892 = vmatpush1.bf16.msra.mxu1 %v14907_v42  ;;  %v14740_v35 = vcombine.high %v2528_v28, %v2532_v50  ;;  %v2648_v43 = vld [vmem:[%s16880_s13 + $0x1bd0] sm:$0xff]  ;;  %v14739_v55 = vcombine.low %v2528_v28, %v2532_v50 }
 0x719   : > { %8893 = vmatprep.subr.bf16.mxu1 %v14900_v52  ;;  %v2652_v41 = vld [vmem:[%s16880_s13 + $0x1bf0] sm:$0xff]  ;;  %v14867_v52 = vcombine.low %v2656_v30, %v2660_v1 }
 0x71a   : > { %8853 = vmatpush1.bf16.msra.mxu0 %v14771_v29  ;;  %v2776_v42 = vld [vmem:[%s16880_s13 + $0x1fd0] sm:$0xff]  ;;  %v14860_v3 = vcombine.high %v2648_v43, %v2652_v41 }
 0x71b   : > { %8854 = vmatprep.subr.bf16.mxu0 %v14764_v4  ;;  %v2780_v25 = vld [vmem:[%s16880_s13 + $0x1ff0] sm:$0xff]  ;;  %v14859_v4 = vcombine.low %v2648_v43, %v2652_v41 }
 0x71c   : > { %8894 = vmatpush1.bf16.msra.mxu1 %v14899_v60  ;;  %v14988_v62 = vcombine.high %v2776_v42, %v2780_v25  ;;  %v2640_v24 = vld [vmem:[%s16880_s13 + $0x1b90] sm:$0xff] }
 0x71d   : > { %8895 = vmatprep.subr.bf16.mxu1 %v14892_v61  ;;  %v2644_v57 = vld [vmem:[%s16880_s13 + $0x1bb0] sm:$0xff]  ;;  %v14987_v61 = vcombine.low %v2776_v42, %v2780_v25 }
 0x71e   : > { %8855 = vmatpush1.bf16.msra.mxu0 %v14763_v51  ;;  %v2768_v29 = vld [vmem:[%s16880_s13 + $0x1f90] sm:$0xff]  ;;  %v14852_v22 = vcombine.high %v2640_v24, %v2644_v57 }
 0x71f   : > { %8856 = vmatprep.subr.bf16.mxu0 %v14756_v2  ;;  %v2772_v60 = vld [vmem:[%s16880_s13 + $0x1fb0] sm:$0xff]  ;;  %v14851_v2 = vcombine.low %v2640_v24, %v2644_v57 }
 0x720   : > { %8896 = vmatpush1.bf16.msra.mxu1 %v14891_v10  ;;  %v14980_v5 = vcombine.high %v2768_v29, %v2772_v60  ;;  %v2632_v6 = vld [vmem:[%s16880_s13 + $0x1b50] sm:$0xff] }
 0x721   : > { %8897 = vmatprep.subr.bf16.mxu1 %v14884_v31  ;;  %v2636_v8 = vld [vmem:[%s16880_s13 + $0x1b70] sm:$0xff]  ;;  %v14979_v31 = vcombine.low %v2768_v29, %v2772_v60 }
 0x722   : > { %8857 = vmatpush1.bf16.msra.mxu0 %v14755_v19  ;;  %v2760_v51 = vld [vmem:[%s16880_s13 + $0x1f50] sm:$0xff]  ;;  %v14844_v14 = vcombine.high %v2632_v6, %v2636_v8 }
 0x723   : > { %8858 = vmatprep.subr.bf16.mxu0 %v14748_v45  ;;  %v2764_v10 = vld [vmem:[%s16880_s13 + $0x1f70] sm:$0xff]  ;;  %v14843_v45 = vcombine.low %v2632_v6, %v2636_v8 }
 0x724   : > { %8898 = vmatpush1.bf16.msra.mxu1 %v14883_v21  ;;  %v14972_v16 = vcombine.high %v2760_v51, %v2764_v10  ;;  %v2624_v18 = vld [vmem:[%s16880_s13 + $0x1b10] sm:$0xff] }
 0x725   : > { %8899 = vmatprep.subr.bf16.mxu1 %v14876_v27  ;;  %v2628_v63 = vld [vmem:[%s16880_s13 + $0x1b30] sm:$0xff]  ;;  %v14971_v27 = vcombine.low %v2760_v51, %v2764_v10 }
 0x726   : > { %8859 = vmatpush1.bf16.msra.mxu0 %v14747_v33  ;;  %v2752_v19 = vld [vmem:[%s16880_s13 + $0x1f10] sm:$0xff]  ;;  %v14836_v28 = vcombine.high %v2624_v18, %v2628_v63 }
 0x727   : > { %8860 = vmatprep.subr.bf16.mxu0 %v14740_v35  ;;  %v2756_v21 = vld [vmem:[%s16880_s13 + $0x1f30] sm:$0xff]  ;;  %v14835_v35 = vcombine.low %v2624_v18, %v2628_v63 }
 0x728   : > { %8900 = vmatpush1.bf16.msra.mxu1 %v14875_v12  ;;  %v14964_v50 = vcombine.high %v2752_v19, %v2756_v21  ;;  %v2616_v30 = vld [vmem:[%s16880_s13 + $0x1ad0] sm:$0xff] }
 0x729   : > { %8901 = vmatprep.subr.bf16.mxu1 %v14868_v40  ;;  %v2620_v1 = vld [vmem:[%s16880_s13 + $0x1af0] sm:$0xff]  ;;  %v14963_v40 = vcombine.low %v2752_v19, %v2756_v21  ;;  %v1817_v19 = vld [vmem:[%s16880_s13 + $0x1d8] sm:$0xff] }
 0x72a   : > { %8861 = vmatpush1.bf16.msra.mxu0 %v14739_v55  ;;  %v2744_v33 = vld [vmem:[%s16880_s13 + $0x1ed0] sm:$0xff]  ;;  %v14828_v43 = vcombine.high %v2616_v30, %v2620_v1  ;;  %v1821_v21 = vld [vmem:[%s16880_s13 + $0x1f8] sm:$0xff] }
 0x72b   : > { %8862 = vmatprep.subr.bf16.mxu0 %v14860_v3  ;;  %v2748_v12 = vld [vmem:[%s16880_s13 + $0x1ef0] sm:$0xff]  ;;  %v14827_v3 = vcombine.low %v2616_v30, %v2620_v1  ;;  %v14030_v1 = vcombine.high %v1817_v19, %v1821_v21 }
 0x72c   : > { %8902 = vmatpush1.bf16.msra.mxu1 %v14867_v52  ;;  %v14956_v41 = vcombine.high %v2744_v33, %v2748_v12  ;;  %v2608_v42 = vld [vmem:[%s16880_s13 + $0x1a90] sm:$0xff] }
 0x72d   : > { %8903 = vmatprep.subr.bf16.mxu1 %v14988_v62  ;;  %v2612_v25 = vld [vmem:[%s16880_s13 + $0x1ab0] sm:$0xff]  ;;  %v14955_v62 = vcombine.low %v2744_v33, %v2748_v12  ;;  %v2806_v12 = vsub.s32 5, %v17014_v15 }
 0x72e   : > { %8863 = vmatpush2.bf16.msra.mxu0 %v14859_v4  ;;  %v2736_v55 = vld [vmem:[%s16880_s13 + $0x1e90] sm:$0xff]  ;;  %v14820_v24 = vcombine.high %v2608_v42, %v2612_v25 }
 0x72f   : > { %8864 = vmatprep.subr.bf16.mxu0 %v14852_v22  ;;  %v2740_v52 = vld [vmem:[%s16880_s13 + $0x1eb0] sm:$0xff]  ;;  %v14819_v22 = vcombine.low %v2608_v42, %v2612_v25  ;;  %v16179_v42 = vld [vmem:[%s16888_s17] sm:$0xff] }
 0x730   : > { %8904 = vmatpush2.bf16.msra.mxu1 %v14987_v61  ;;  %v14948_v57 = vcombine.high %v2736_v55, %v2740_v52  ;;  %v2600_v29 = vld [vmem:[%s16880_s13 + $0x1a50] sm:$0xff] }
 0x731   : > { %8905 = vmatprep.subr.bf16.mxu1 %v14980_v5  ;;  %v2604_v60 = vld [vmem:[%s16880_s13 + $0x1a70] sm:$0xff]  ;;  %v14947_v5 = vcombine.low %v2736_v55, %v2740_v52  ;;  %v14029_v55 = vcombine.low %v1817_v19, %v1821_v21  ;;  %v1921_v21 = vld [vmem:[%s16880_s13 + $0x518] sm:$0xff] }
 0x732   : > { %8865 = vmatpush2.bf16.msra.mxu0 %v14851_v2  ;;  %v2728_v4 = vld [vmem:[%s16880_s13 + $0x1e50] sm:$0xff]  ;;  %v14812_v6 = vcombine.high %v2600_v29, %v2604_v60 }
 0x733   : > { %8866 = vmatprep.subr.bf16.mxu0 %v14844_v14  ;;  %v2732_v61 = vld [vmem:[%s16880_s13 + $0x1e70] sm:$0xff]  ;;  %v14811_v14 = vcombine.low %v2600_v29, %v2604_v60  ;;  %v1805_v29 = vld [vmem:[%s16880_s13 + $0x178] sm:$0xff] }
 0x734   : > { %8906 = vmatpush2.bf16.msra.mxu1 %v14979_v31  ;;  %v14940_v8 = vcombine.high %v2728_v4, %v2732_v61  ;;  %v2592_v51 = vld [vmem:[%s16880_s13 + $0x1a10] sm:$0xff] }
 0x735   : > { %8907 = vmatprep.subr.bf16.mxu1 %v14972_v16  ;;  %v2596_v10 = vld [vmem:[%s16880_s13 + $0x1a30] sm:$0xff]  ;;  %v14939_v16 = vcombine.low %v2728_v4, %v2732_v61  ;;  %v1929_v4 = vld [vmem:[%s16880_s13 + $0x558] sm:$0xff] }
 0x736   : > { %8867 = vmatpush2.bf16.msra.mxu0 %v14843_v45  ;;  %v2720_v2 = vld [vmem:[%s16880_s13 + $0x1e10] sm:$0xff]  ;;  %v14804_v18 = vcombine.high %v2592_v51, %v2596_v10  ;;  %v1945_v45 = vld [vmem:[%s16880_s13 + $0x5d8] sm:$0xff] }
 0x737   : > { %8868 = vmatprep.subr.bf16.mxu0 %v14836_v28  ;;  %v2724_v31 = vld [vmem:[%s16880_s13 + $0x1e30] sm:$0xff]  ;;  %v14803_v28 = vcombine.low %v2592_v51, %v2596_v10  ;;  %v1933_v61 = vld [vmem:[%s16880_s13 + $0x578] sm:$0xff] }
 0x738   : > { %8908 = vmatpush2.bf16.msra.mxu1 %v14971_v27  ;;  %v14932_v63 = vcombine.high %v2720_v2, %v2724_v31  ;;  %v1949_v27 = vld [vmem:[%s16880_s13 + $0x5f8] sm:$0xff]  ;;  %v14931_v30 = vcombine.low %v2720_v2, %v2724_v31 }
 0x739   : > { %8909 = vmatprep.subr.bf16.mxu1 %v14964_v50  ;;  %v2802_v50 = vsub.s32 4, %v17014_v15  ;;  %v14158_v33 = vcombine.high %v1945_v45, %v1949_v27  ;;  %v14157_v52 = vcombine.low %v1945_v45, %v1949_v27  ;;  %v1925_v45 = vld [vmem:[%s16880_s13 + $0x538] sm:$0xff] }
 0x73a   : > { %8869 = vmatpush2.bf16.msra.mxu0 %v14835_v35  ;;  %v1809_v35 = vld [vmem:[%s16880_s13 + $0x198] sm:$0xff] }
 0x73b   : > { %8870 = vmatprep.subr.bf16.mxu0 %v14828_v43  ;;  %v1937_v43 = vld [vmem:[%s16880_s13 + $0x598] sm:$0xff]  ;;  %v2803_v25 = vrot.slane %v16179_v42, %v2802_v50 }
 0x73c   : > { %8910 = vmatpush2.bf16.msra.mxu1 %v14963_v40  ;;  %v1813_v40 = vld [vmem:[%s16880_s13 + $0x1b8] sm:$0xff] }
 0x73d   : > { %8911 = vmatprep.subr.bf16.mxu1 %v14956_v41  ;;  %v1941_v41 = vld [vmem:[%s16880_s13 + $0x5b8] sm:$0xff] }
 0x73e   : > { %8871 = vmatpush2.bf16.msra.mxu0 %v14827_v3  ;;  %v14022_v3 = vcombine.high %v1809_v35, %v1813_v40  ;;  %v14149_v51 = vcombine.low %v1937_v43, %v1941_v41 }
 0x73f   : > { %8872 = vmatprep.subr.bf16.mxu0 %v14820_v24  ;;  %v14150_v24 = vcombine.high %v1937_v43, %v1941_v41  ;;  %v1785_v43 = vld [vmem:[%s16880_s13 + $0xd8] sm:$0xff] }
 0x740   : > { %8912 = vmatpush2.bf16.msra.mxu1 %v14955_v62  ;;  %v2807_v62 = vrot.slane %v16179_v42, %v2806_v12  ;;  %v1913_v41 = vld [vmem:[%s16880_s13 + $0x4d8] sm:$0xff] }
 0x741   : > { %8913 = vmatprep.subr.bf16.mxu1 %v14948_v57  ;;  %v1801_v57 = vld [vmem:[%s16880_s13 + $0x158] sm:$0xff] }
 0x742   : > { %8873 = vmatpush2.bf16.msra.mxu0 %v14819_v22  ;;  %v14014_v10 = vcombine.high %v1801_v57, %v1805_v29  ;;  %v1917_v42 = vld [vmem:[%s16880_s13 + $0x4f8] sm:$0xff] }
 0x743   : > { %8874 = vmatprep.subr.bf16.mxu0 %v14812_v6  ;;  %v14021_v6 = vcombine.low %v1809_v35, %v1813_v40  ;;  %v14134_v40 = vcombine.high %v1921_v21, %v1925_v45 }
 0x744   : > { %8914 = vmatpush2.bf16.msra.mxu1 %v14947_v5 }
 0x745   : > { %8915 = vmatprep.subr.bf16.mxu1 %v14940_v8 }
 0x746   : > { %8875 = vmatpush2.bf16.msra.mxu0 %v14811_v14 }
 0x747   : > { %8876 = vmatprep.subr.bf16.mxu0 %v14804_v18  ;;  %v1793_v18 = vld [vmem:[%s16880_s13 + $0x118] sm:$0xff] }
 0x748   : > { %8916 = vmatpush2.bf16.msra.mxu1 %v14939_v16  ;;  %v14142_v16 = vcombine.high %v1929_v4, %v1933_v61 }
 0x749   : > { %8917 = vmatprep.subr.bf16.mxu1 %v14932_v63  ;;  %v1797_v63 = vld [vmem:[%s16880_s13 + $0x138] sm:$0xff] }
 0x74a   : > { %8877 = vmatpush2.bf16.msra.mxu0 %v14803_v28  ;;  %v14006_v35 = vcombine.high %v1793_v18, %v1797_v63 }
 0x74b   : > { %8928 = vmatprep.subr.bf16.mxu0 %v14030_v1 }
 0x74c   : > { %8918 = vmatpush2.bf16.msra.mxu1 %v14931_v30  ;;  %v14013_v30 = vcombine.low %v1801_v57, %v1805_v29  ;;  %v1905_v57 = vld [vmem:[%s16880_s13 + $0x498] sm:$0xff] }
 0x74d   : > { %8969 = vmatprep.subr.bf16.mxu1 %v14158_v33  ;;  %v8634_v60 = vpop.f32.mrf.mxu0  ;;  %8879 = vmatmul.mubr.bf16.vlgmr.msra.gmra.mxu0 %v17380_v49  ;;  %v14141_v33 = vcombine.low %v1929_v4, %v1933_v61  ;;  %v1909_v29 = vld [vmem:[%s16880_s13 + $0x4b8] sm:$0xff]  ;;  %v14125_v4 = vcombine.low %v1913_v41, %v1917_v42 }
 0x74e   : > { %v8635_v22 = vadd.f32 %v8634_v60, %v2803_v25  ;;  %8929 = vmatpush1.bf16.msra.mxu0 %v14029_v55  ;;  %8960 = vmatprep.mubr.bf16.mxu0 %v17038_v39  ;;  %v14005_v25 = vcombine.low %v1793_v18, %v1797_v63  ;;  %v14133_v55 = vcombine.low %v1921_v21, %v1925_v45  ;;  %v1761_v18 = vld [vmem:[%s16880_s13 + $0x18] sm:$0xff] }
 0x74f   : > { %v8675_v5 = vpop.f32.mrf.mxu1  ;;  %8920 = vmatmul.mubr.bf16.vlgmr.msra.gmra.mxu1 %v17388_v53  ;;  %v8636_v8 = vpop.f32.mrf.mxu0  ;;  %8930 = vmatprep.subr.bf16.mxu0 %v14022_v3  ;;  %v14126_v3 = vcombine.high %v1913_v41, %v1917_v42  ;;  %v1765_v63 = vld [vmem:[%s16880_s13 + $0x38] sm:$0xff] }
 0x750   : > { %8970 = vmatpush1.bf16.msra.mxu1 %v14157_v52  ;;  %v18000_v2 = vadd.f32 %v8675_v5, %v8635_v22  ;;  %v8637_v31 = vadd.f32 %v8636_v8, %v2807_v62  ;;  %9001 = vmatprep.mubr.bf16.mxu1 %v17047_v48  ;;  %v1789_v48 = vld [vmem:[%s16880_s13 + $0xf8] sm:$0xff]  ;;  %v14118_v22 = vcombine.high %v1905_v57, %v1909_v29 }
 0x751   : > { %v8677_v14 = vpop.f32.mrf.mxu1  ;;  %8971 = vmatprep.subr.bf16.mxu1 %v14150_v24  ;;  %v8638_v19 = vpop.f32.mrf.mxu0  ;;  %v13998_v52 = vcombine.high %v1785_v43, %v1789_v48  ;;  %v1777_v62 = vld [vmem:[%s16880_s13 + $0x98] sm:$0xff]  ;;  %v13997_v60 = vcombine.low %v1785_v43, %v1789_v48  ;;  %v13973_v43 = vcombine.low %v1761_v18, %v1765_v63 }
 0x752   : > { %v18008_v27 = vadd.f32 %v8677_v14, %v8637_v31  ;;  %8931 = vmatpush1.bf16.msra.mxu0 %v14021_v6  ;;  %v1781_v24 = vld [vmem:[%s16880_s13 + $0xb8] sm:$0xff]  ;;  %v14117_v31 = vcombine.low %v1905_v57, %v1909_v29 }
 0x753   : > { %v8679_v28 = vpop.f32.mrf.mxu1  ;;  %v8639_v1 = vpop.f32.mrf.mxu0  ;;  %8932 = vmatprep.subr.bf16.mxu0 %v14014_v10  ;;  %v13990_v61 = vcombine.high %v1777_v62, %v1781_v24  ;;  %v1769_v5 = vld [vmem:[%s16880_s13 + $0x58] sm:$0xff]  ;;  %v13989_v10 = vcombine.low %v1777_v62, %v1781_v24 }
 0x754   : > { %8972 = vmatpush1.bf16.msra.mxu1 %v14149_v51  ;;  %v1773_v6 = vld [vmem:[%s16880_s13 + $0x78] sm:$0xff] }
 0x755   : > { %v8680_v39 = vpop.f32.mrf.mxu1  ;;  %8973 = vmatprep.subr.bf16.mxu1 %v14142_v16  ;;  %v1897_v8 = vld [vmem:[%s16880_s13 + $0x458] sm:$0xff]  ;;  %v13982_v14 = vcombine.high %v1769_v5, %v1773_v6  ;;  %v13981_v45 = vcombine.low %v1769_v5, %v1773_v6 }
 0x756   : > { %8933 = vmatpush1.bf16.msra.mxu0 %v14013_v30  ;;  %v1901_v51 = vld [vmem:[%s16880_s13 + $0x478] sm:$0xff]  ;;  %v13974_v30 = vcombine.high %v1761_v18, %v1765_v63 }
 0x757   : > { %8934 = vmatprep.subr.bf16.mxu0 %v14006_v35  ;;  %v14110_v16 = vcombine.high %v1897_v8, %v1901_v51  ;;  %v1889_v19 = vld [vmem:[%s16880_s13 + $0x418] sm:$0xff]  ;;  %v14109_v28 = vcombine.low %v1897_v8, %v1901_v51 }
 0x758   : > { %8974 = vmatpush1.bf16.msra.mxu1 %v14141_v33  ;;  %v1893_v21 = vld [vmem:[%s16880_s13 + $0x438] sm:$0xff] }
 0x759   : > { %8975 = vmatprep.subr.bf16.mxu1 %v14134_v40  ;;  %v14102_v1 = vcombine.high %v1889_v19, %v1893_v21  ;;  %v1881_v33 = vld [vmem:[%s16880_s13 + $0x3d8] sm:$0xff]  ;;  %v14101_v48 = vcombine.low %v1889_v19, %v1893_v21 }
 0x75a   : > { %8935 = vmatpush1.bf16.msra.mxu0 %v14005_v25  ;;  %v1885_v35 = vld [vmem:[%s16880_s13 + $0x3f8] sm:$0xff] }
 0x75b   : > { %8936 = vmatprep.subr.bf16.mxu0 %v13998_v52  ;;  %v2009_v39 = vld [vmem:[%s16880_s13 + $0x7d8] sm:$0xff]  ;;  %v14094_v41 = vcombine.high %v1881_v33, %v1885_v35  ;;  %v14093_v62 = vcombine.low %v1881_v33, %v1885_v35 }
 0x75c   : > { %8976 = vmatpush1.bf16.msra.mxu1 %v14133_v55  ;;  %v2013_v40 = vld [vmem:[%s16880_s13 + $0x7f8] sm:$0xff] }
 0x75d   : > { %8977 = vmatprep.subr.bf16.mxu1 %v14126_v3  ;;  %v14222_v42 = vcombine.high %v2009_v39, %v2013_v40  ;;  %v1873_v25 = vld [vmem:[%s16880_s13 + $0x398] sm:$0xff]  ;;  %v14221_v24 = vcombine.low %v2009_v39, %v2013_v40 }
 0x75e   : > { %8937 = vmatpush1.bf16.msra.mxu0 %v13997_v60  ;;  %v1877_v55 = vld [vmem:[%s16880_s13 + $0x3b8] sm:$0xff] }
 0x75f   : > { %8938 = vmatprep.subr.bf16.mxu0 %v13990_v61  ;;  %v2001_v52 = vld [vmem:[%s16880_s13 + $0x798] sm:$0xff]  ;;  %v14086_v57 = vcombine.high %v1873_v25, %v1877_v55  ;;  %v14085_v5 = vcombine.low %v1873_v25, %v1877_v55 }
 0x760   : > { %8978 = vmatpush1.bf16.msra.mxu1 %v14125_v4  ;;  %v2005_v3 = vld [vmem:[%s16880_s13 + $0x7b8] sm:$0xff] }
 0x761   : > { %8979 = vmatprep.subr.bf16.mxu1 %v14118_v22  ;;  %v14214_v29 = vcombine.high %v2001_v52, %v2005_v3  ;;  %v1865_v60 = vld [vmem:[%s16880_s13 + $0x358] sm:$0xff]  ;;  %v14213_v6 = vcombine.low %v2001_v52, %v2005_v3 }
 0x762   : > { %8939 = vmatpush1.bf16.msra.mxu0 %v13989_v10  ;;  %v1869_v4 = vld [vmem:[%s16880_s13 + $0x378] sm:$0xff] }
 0x763   : > { %8940 = vmatprep.subr.bf16.mxu0 %v13982_v14  ;;  %v1993_v61 = vld [vmem:[%s16880_s13 + $0x758] sm:$0xff]  ;;  %v14078_v8 = vcombine.high %v1865_v60, %v1869_v4  ;;  %v14077_v18 = vcombine.low %v1865_v60, %v1869_v4 }
 0x764   : > { %8980 = vmatpush1.bf16.msra.mxu1 %v14117_v31  ;;  %v1997_v22 = vld [vmem:[%s16880_s13 + $0x778] sm:$0xff] }
 0x765   : > { %8981 = vmatprep.subr.bf16.mxu1 %v14110_v16  ;;  %v14206_v51 = vcombine.high %v1993_v61, %v1997_v22  ;;  %v1857_v10 = vld [vmem:[%s16880_s13 + $0x318] sm:$0xff]  ;;  %v14205_v63 = vcombine.low %v1993_v61, %v1997_v22 }
 0x766   : > { %8941 = vmatpush1.bf16.msra.mxu0 %v13981_v45  ;;  %v1861_v31 = vld [vmem:[%s16880_s13 + $0x338] sm:$0xff] }
 0x767   : > { %8942 = vmatprep.subr.bf16.mxu0 %v13974_v30  ;;  %v1985_v14 = vld [vmem:[%s16880_s13 + $0x718] sm:$0xff]  ;;  %v14070_v19 = vcombine.high %v1857_v10, %v1861_v31  ;;  %v14069_v33 = vcombine.low %v1857_v10, %v1861_v31 }
 0x768   : > { %8982 = vmatpush1.bf16.msra.mxu1 %v14109_v28  ;;  %v1989_v16 = vld [vmem:[%s16880_s13 + $0x738] sm:$0xff] }
 0x769   : > { %8983 = vmatprep.subr.bf16.mxu1 %v14102_v1  ;;  %v14198_v21 = vcombine.high %v1985_v14, %v1989_v16  ;;  %v1849_v45 = vld [vmem:[%s16880_s13 + $0x2d8] sm:$0xff]  ;;  %v14197_v35 = vcombine.low %v1985_v14, %v1989_v16 }
 0x76a   : > { %8943 = vmatpush1.bf16.msra.mxu0 %v13973_v43  ;;  %v1853_v28 = vld [vmem:[%s16880_s13 + $0x2f8] sm:$0xff] }
 0x76b   : > { %8944 = vmatprep.subr.bf16.mxu0 %v14094_v41  ;;  %v1977_v30 = vld [vmem:[%s16880_s13 + $0x6d8] sm:$0xff]  ;;  %v14062_v39 = vcombine.high %v1849_v45, %v1853_v28  ;;  %v14061_v25 = vcombine.low %v1849_v45, %v1853_v28 }
 0x76c   : > { %8984 = vmatpush1.bf16.msra.mxu1 %v14101_v48  ;;  %v1981_v1 = vld [vmem:[%s16880_s13 + $0x6f8] sm:$0xff] }
 0x76d   : > { %8985 = vmatprep.subr.bf16.mxu1 %v14222_v42  ;;  %v14190_v40 = vcombine.high %v1977_v30, %v1981_v1  ;;  %v1841_v43 = vld [vmem:[%s16880_s13 + $0x298] sm:$0xff]  ;;  %v14189_v55 = vcombine.low %v1977_v30, %v1981_v1 }
 0x76e   : > { %8945 = vmatpush2.bf16.msra.mxu0 %v14093_v62  ;;  %v1845_v48 = vld [vmem:[%s16880_s13 + $0x2b8] sm:$0xff] }
 0x76f   : > { %8946 = vmatprep.subr.bf16.mxu0 %v14086_v57  ;;  %v1969_v41 = vld [vmem:[%s16880_s13 + $0x698] sm:$0xff]  ;;  %v14054_v52 = vcombine.high %v1841_v43, %v1845_v48  ;;  %v14053_v60 = vcombine.low %v1841_v43, %v1845_v48 }
 0x770   : > { %8986 = vmatpush2.bf16.msra.mxu1 %v14221_v24  ;;  %v1973_v42 = vld [vmem:[%s16880_s13 + $0x6b8] sm:$0xff] }
 0x771   : > { %8987 = vmatprep.subr.bf16.mxu1 %v14214_v29  ;;  %v14182_v3 = vcombine.high %v1969_v41, %v1973_v42  ;;  %v1833_v62 = vld [vmem:[%s16880_s13 + $0x258] sm:$0xff]  ;;  %v14181_v4 = vcombine.low %v1969_v41, %v1973_v42 }
 0x772   : > { %8947 = vmatpush2.bf16.msra.mxu0 %v14085_v5  ;;  %v1837_v24 = vld [vmem:[%s16880_s13 + $0x278] sm:$0xff] }
 0x773   : > { %8948 = vmatprep.subr.bf16.mxu0 %v14078_v8  ;;  %v1961_v57 = vld [vmem:[%s16880_s13 + $0x658] sm:$0xff]  ;;  %v14046_v61 = vcombine.high %v1833_v62, %v1837_v24  ;;  %v14045_v10 = vcombine.low %v1833_v62, %v1837_v24 }
 0x774   : > { %8988 = vmatpush2.bf16.msra.mxu1 %v14213_v6  ;;  %v1965_v29 = vld [vmem:[%s16880_s13 + $0x678] sm:$0xff] }
 0x775   : > { %8989 = vmatprep.subr.bf16.mxu1 %v14206_v51  ;;  %v14174_v22 = vcombine.high %v1961_v57, %v1965_v29  ;;  %v1825_v5 = vld [vmem:[%s16880_s13 + $0x218] sm:$0xff]  ;;  %v14173_v31 = vcombine.low %v1961_v57, %v1965_v29 }
 0x776   : > { %8949 = vmatpush2.bf16.msra.mxu0 %v14077_v18  ;;  %v1829_v6 = vld [vmem:[%s16880_s13 + $0x238] sm:$0xff] }
 0x777   : > { %8950 = vmatprep.subr.bf16.mxu0 %v14070_v19  ;;  %v1953_v8 = vld [vmem:[%s16880_s13 + $0x618] sm:$0xff]  ;;  %v14038_v14 = vcombine.high %v1825_v5, %v1829_v6  ;;  %v14037_v45 = vcombine.low %v1825_v5, %v1829_v6 }
 0x778   : > { %8990 = vmatpush2.bf16.msra.mxu1 %v14205_v63  ;;  %v1957_v51 = vld [vmem:[%s16880_s13 + $0x638] sm:$0xff] }
 0x779   : > { %8991 = vmatprep.subr.bf16.mxu1 %v14198_v21  ;;  %v14166_v16 = vcombine.high %v1953_v8, %v1957_v51  ;;  %v2073_v18 = vld [vmem:[%s16880_s13 + $0x9d8] sm:$0xff]  ;;  %v14165_v28 = vcombine.low %v1953_v8, %v1957_v51 }
 0x77a   : > { %8951 = vmatpush2.bf16.msra.mxu0 %v14069_v33  ;;  %v2077_v63 = vld [vmem:[%s16880_s13 + $0x9f8] sm:$0xff] }
 0x77b   : > { %8952 = vmatprep.subr.bf16.mxu0 %v14062_v39  ;;  %v2201_v19 = vld [vmem:[%s16880_s13 + $0xdd8] sm:$0xff]  ;;  %v14286_v30 = vcombine.high %v2073_v18, %v2077_v63  ;;  %v14285_v43 = vcombine.low %v2073_v18, %v2077_v63 }
 0x77c   : > { %8992 = vmatpush2.bf16.msra.mxu1 %v14197_v35  ;;  %v2205_v21 = vld [vmem:[%s16880_s13 + $0xdf8] sm:$0xff] }
 0x77d   : > { %8993 = vmatprep.subr.bf16.mxu1 %v14190_v40  ;;  %v14414_v1 = vcombine.high %v2201_v19, %v2205_v21  ;;  %v2065_v33 = vld [vmem:[%s16880_s13 + $0x998] sm:$0xff]  ;;  %v14413_v48 = vcombine.low %v2201_v19, %v2205_v21 }
 0x77e   : > { %8953 = vmatpush2.bf16.msra.mxu0 %v14061_v25  ;;  %v2069_v35 = vld [vmem:[%s16880_s13 + $0x9b8] sm:$0xff] }
 0x77f   : > { %8954 = vmatprep.subr.bf16.mxu0 %v14054_v52  ;;  %v2193_v39 = vld [vmem:[%s16880_s13 + $0xd98] sm:$0xff]  ;;  %v14278_v41 = vcombine.high %v2065_v33, %v2069_v35  ;;  %v14277_v29 = vcombine.low %v2065_v33, %v2069_v35 }
 0x780   : > { %8994 = vmatpush2.bf16.msra.mxu1 %v14189_v55  ;;  %v2197_v40 = vld [vmem:[%s16880_s13 + $0xdb8] sm:$0xff] }
 0x781   : > { %8995 = vmatprep.subr.bf16.mxu1 %v14182_v3  ;;  %v14406_v42 = vcombine.high %v2193_v39, %v2197_v40  ;;  %v2057_v25 = vld [vmem:[%s16880_s13 + $0x958] sm:$0xff] }
 0x782   : > { %8955 = vmatpush2.bf16.msra.mxu0 %v14053_v60  ;;  %v2061_v55 = vld [vmem:[%s16880_s13 + $0x978] sm:$0xff] }
 0x783   : > { %8956 = vmatprep.subr.bf16.mxu0 %v14046_v61  ;;  %v2185_v3 = vld [vmem:[%s16880_s13 + $0xd58] sm:$0xff]  ;;  %v14270_v61 = vcombine.high %v2057_v25, %v2061_v55 }
 0x784   : > { %8996 = vmatpush2.bf16.msra.mxu1 %v14181_v4  ;;  %v2189_v62 = vld [vmem:[%s16880_s13 + $0xd78] sm:$0xff]  ;;  %v14405_v4 = vcombine.low %v2193_v39, %v2197_v40 }
 0x785   : > { %8997 = vmatprep.subr.bf16.mxu1 %v14174_v22  ;;  %v2049_v6 = vld [vmem:[%s16880_s13 + $0x918] sm:$0xff]  ;;  %v14397_v18 = vcombine.low %v2185_v3, %v2189_v62 }
 0x786   : > { %8957 = vmatpush2.bf16.msra.mxu0 %v14045_v10  ;;  %v2053_v8 = vld [vmem:[%s16880_s13 + $0x938] sm:$0xff] }
 0x787   : > { %8958 = vmatprep.subr.bf16.mxu0 %v14038_v14  ;;  %v2177_v51 = vld [vmem:[%s16880_s13 + $0xd18] sm:$0xff]  ;;  %v14262_v63 = vcombine.high %v2049_v6, %v2053_v8 }
 0x788   : > { %8998 = vmatpush2.bf16.msra.mxu1 %v14173_v31  ;;  %v2181_v10 = vld [vmem:[%s16880_s13 + $0xd38] sm:$0xff] }
 0x789   : > { %8999 = vmatprep.subr.bf16.mxu1 %v14166_v16  ;;  %v14390_v19 = vcombine.high %v2177_v51, %v2181_v10  ;;  %v2041_v21 = vld [vmem:[%s16880_s13 + $0x8d8] sm:$0xff] }
 0x78a   : > { %8959 = vmatpush2.bf16.msra.mxu0 %v14037_v45  ;;  %v2169_v45 = vld [vmem:[%s16880_s13 + $0xcd8] sm:$0xff] }
 0x78b   : > { %9010 = vmatprep.subr.bf16.mxu0 %v14286_v30  ;;  %v14261_v30 = vcombine.low %v2049_v6, %v2053_v8  ;;  %v2033_v39 = vld [vmem:[%s16880_s13 + $0x898] sm:$0xff] }
 0x78c   : > { %9000 = vmatpush2.bf16.msra.mxu1 %v14165_v28  ;;  %v2173_v28 = vld [vmem:[%s16880_s13 + $0xcf8] sm:$0xff] }
 0x78d   : > { %9051 = vmatprep.subr.bf16.mxu1 %v14414_v1  ;;  %v8716_v52 = vpop.f32.mrf.mxu0  ;;  %8961 = vmatmul.mubr.bf16.vlgmr.msra.gmra.mxu0 %v17109_v34  ;;  %v14389_v1 = vcombine.low %v2177_v51, %v2181_v10  ;;  %v14382_v35 = vcombine.high %v2169_v45, %v2173_v28  ;;  %v2037_v40 = vld [vmem:[%s16880_s13 + $0x8b8] sm:$0xff] }
 0x78e   : > { %v8717_v24 = vadd.f32 %v8716_v52, %v18000_v2  ;;  %9011 = vmatpush1.bf16.msra.mxu0 %v14285_v43  ;;  %v14398_v2 = vcombine.high %v2185_v3, %v2189_v62  ;;  %9042 = vmatprep.mubr.bf16.mxu0 %v17123_v47  ;;  %v2161_v43 = vld [vmem:[%s16880_s13 + $0xc98] sm:$0xff] }
 0x78f   : > { %v8757_v57 = vpop.f32.mrf.mxu1  ;;  %9002 = vmatmul.mubr.bf16.vlgmr.msra.gmra.mxu1 %v17117_v38  ;;  %v8718_v60 = vpop.f32.mrf.mxu0  ;;  %9012 = vmatprep.subr.bf16.mxu0 %v14278_v41  ;;  %v2025_v52 = vld [vmem:[%s16880_s13 + $0x858] sm:$0xff] }
 0x790   : > { %9052 = vmatpush1.bf16.msra.mxu1 %v14413_v48  ;;  %v18073_v22 = vadd.f32 %v8757_v57, %v8717_v24  ;;  %v8719_v34 = vadd.f32 %v8718_v60, %v18008_v27  ;;  %9083 = vmatprep.mubr.bf16.mxu1 %v17126_v36  ;;  %v14269_v27 = vcombine.low %v2057_v25, %v2061_v55  ;;  %v2045_v36 = vld [vmem:[%s16880_s13 + $0x8f8] sm:$0xff] }
 0x791   : > { %v8759_v5 = vpop.f32.mrf.mxu1  ;;  %9053 = vmatprep.subr.bf16.mxu1 %v14406_v42  ;;  %v8720_v38 = vpop.f32.mrf.mxu0  ;;  %v14254_v33 = vcombine.high %v2041_v21, %v2045_v36  ;;  %v2165_v48 = vld [vmem:[%s16880_s13 + $0xcb8] sm:$0xff]  ;;  %v14253_v41 = vcombine.low %v2041_v21, %v2045_v36  ;;  %v14381_v42 = vcombine.low %v2169_v45, %v2173_v28  ;;  %v14246_v25 = vcombine.high %v2033_v39, %v2037_v40 }
 0x792   : > { %v18082_v31 = vadd.f32 %v8759_v5, %v8719_v34  ;;  %9013 = vmatpush1.bf16.msra.mxu0 %v14277_v29  ;;  %v14374_v55 = vcombine.high %v2161_v43, %v2165_v48  ;;  %v2029_v3 = vld [vmem:[%s16880_s13 + $0x878] sm:$0xff]  ;;  %v14245_v57 = vcombine.low %v2033_v39, %v2037_v40  ;;  %v14373_v29 = vcombine.low %v2161_v43, %v2165_v48 }
 0x793   : > { %v8761_v14 = vpop.f32.mrf.mxu1  ;;  %v8721_v16 = vpop.f32.mrf.mxu0  ;;  %9014 = vmatprep.subr.bf16.mxu0 %v14270_v61  ;;  %v2153_v62 = vld [vmem:[%s16880_s13 + $0xc58] sm:$0xff]  ;;  %v14238_v60 = vcombine.high %v2025_v52, %v2029_v3  ;;  %v14237_v6 = vcombine.low %v2025_v52, %v2029_v3 }
 0x794   : > { %9054 = vmatpush1.bf16.msra.mxu1 %v14405_v4  ;;  %v2157_v24 = vld [vmem:[%s16880_s13 + $0xc78] sm:$0xff] }
 0x795   : > { %v8762_v47 = vpop.f32.mrf.mxu1  ;;  %9055 = vmatprep.subr.bf16.mxu1 %v14398_v2  ;;  %v14366_v4 = vcombine.high %v2153_v62, %v2157_v24  ;;  %v2017_v61 = vld [vmem:[%s16880_s13 + $0x818] sm:$0xff]  ;;  %v14365_v8 = vcombine.low %v2153_v62, %v2157_v24 }
 0x796   : > { %9015 = vmatpush1.bf16.msra.mxu0 %v14269_v27  ;;  %v2021_v34 = vld [vmem:[%s16880_s13 + $0x838] sm:$0xff] }
 0x797   : > { %9016 = vmatprep.subr.bf16.mxu0 %v14262_v63  ;;  %v2145_v5 = vld [vmem:[%s16880_s13 + $0xc18] sm:$0xff]  ;;  %v14230_v38 = vcombine.high %v2017_v61, %v2021_v34 }
 0x798   : > { %9056 = vmatpush1.bf16.msra.mxu1 %v14397_v18  ;;  %v2149_v2 = vld [vmem:[%s16880_s13 + $0xc38] sm:$0xff]  ;;  %v14229_v18 = vcombine.low %v2017_v61, %v2021_v34 }
 0x799   : > { %9057 = vmatprep.subr.bf16.mxu1 %v14390_v19  ;;  %v14358_v51 = vcombine.high %v2145_v5, %v2149_v2  ;;  %v2137_v10 = vld [vmem:[%s16880_s13 + $0xbd8] sm:$0xff]  ;;  %v14357_v63 = vcombine.low %v2145_v5, %v2149_v2 }
 0x79a   : > { %9017 = vmatpush1.bf16.msra.mxu0 %v14261_v30  ;;  %v2141_v14 = vld [vmem:[%s16880_s13 + $0xbf8] sm:$0xff] }
 0x79b   : > { %9018 = vmatprep.subr.bf16.mxu0 %v14254_v33  ;;  %v2265_v27 = vld [vmem:[%s16880_s13 + $0xfd8] sm:$0xff]  ;;  %v14350_v47 = vcombine.high %v2137_v10, %v2141_v14  ;;  %v14349_v30 = vcombine.low %v2137_v10, %v2141_v14 }
 0x79c   : > { %9058 = vmatpush1.bf16.msra.mxu1 %v14389_v1  ;;  %v2269_v16 = vld [vmem:[%s16880_s13 + $0xff8] sm:$0xff] }
 0x79d   : > { %9059 = vmatprep.subr.bf16.mxu1 %v14382_v35  ;;  %v14478_v19 = vcombine.high %v2265_v27, %v2269_v16  ;;  %v2129_v21 = vld [vmem:[%s16880_s13 + $0xb98] sm:$0xff]  ;;  %v14477_v1 = vcombine.low %v2265_v27, %v2269_v16 }
 0x79e   : > { %9019 = vmatpush1.bf16.msra.mxu0 %v14253_v41  ;;  %v2133_v36 = vld [vmem:[%s16880_s13 + $0xbb8] sm:$0xff] }
 0x79f   : > { %9020 = vmatprep.subr.bf16.mxu0 %v14246_v25  ;;  %v2257_v45 = vld [vmem:[%s16880_s13 + $0xf98] sm:$0xff]  ;;  %v14342_v33 = vcombine.high %v2129_v21, %v2133_v36  ;;  %v14341_v41 = vcombine.low %v2129_v21, %v2133_v36 }
 0x7a0   : > { %9060 = vmatpush1.bf16.msra.mxu1 %v14381_v42  ;;  %v2261_v28 = vld [vmem:[%s16880_s13 + $0xfb8] sm:$0xff] }
 0x7a1   : > { %9061 = vmatprep.subr.bf16.mxu1 %v14374_v55  ;;  %v14470_v35 = vcombine.high %v2257_v45, %v2261_v28  ;;  %v2121_v39 = vld [vmem:[%s16880_s13 + $0xb58] sm:$0xff]  ;;  %v14469_v42 = vcombine.low %v2257_v45, %v2261_v28 }
 0x7a2   : > { %9021 = vmatpush1.bf16.msra.mxu0 %v14245_v57  ;;  %v2125_v40 = vld [vmem:[%s16880_s13 + $0xb78] sm:$0xff] }
 0x7a3   : > { %9022 = vmatprep.subr.bf16.mxu0 %v14238_v60  ;;  %v2249_v43 = vld [vmem:[%s16880_s13 + $0xf58] sm:$0xff]  ;;  %v14334_v25 = vcombine.high %v2121_v39, %v2125_v40  ;;  %v14333_v57 = vcombine.low %v2121_v39, %v2125_v40 }
 0x7a4   : > { %9062 = vmatpush1.bf16.msra.mxu1 %v14373_v29  ;;  %v2253_v48 = vld [vmem:[%s16880_s13 + $0xf78] sm:$0xff] }
 0x7a5   : > { %9063 = vmatprep.subr.bf16.mxu1 %v14366_v4  ;;  %v14462_v55 = vcombine.high %v2249_v43, %v2253_v48  ;;  %v2113_v52 = vld [vmem:[%s16880_s13 + $0xb18] sm:$0xff]  ;;  %v14461_v29 = vcombine.low %v2249_v43, %v2253_v48 }
 0x7a6   : > { %9023 = vmatpush1.bf16.msra.mxu0 %v14237_v6  ;;  %v2117_v3 = vld [vmem:[%s16880_s13 + $0xb38] sm:$0xff] }
 0x7a7   : > { %9024 = vmatprep.subr.bf16.mxu0 %v14230_v38  ;;  %v2241_v62 = vld [vmem:[%s16880_s13 + $0xf18] sm:$0xff]  ;;  %v14326_v60 = vcombine.high %v2113_v52, %v2117_v3  ;;  %v14325_v6 = vcombine.low %v2113_v52, %v2117_v3 }
 0x7a8   : > { %9064 = vmatpush1.bf16.msra.mxu1 %v14365_v8  ;;  %v2245_v24 = vld [vmem:[%s16880_s13 + $0xf38] sm:$0xff] }
 0x7a9   : > { %9065 = vmatprep.subr.bf16.mxu1 %v14358_v51  ;;  %v14454_v4 = vcombine.high %v2241_v62, %v2245_v24  ;;  %v2105_v61 = vld [vmem:[%s16880_s13 + $0xad8] sm:$0xff]  ;;  %v14453_v8 = vcombine.low %v2241_v62, %v2245_v24 }
 0x7aa   : > { %9025 = vmatpush1.bf16.msra.mxu0 %v14229_v18  ;;  %v2109_v34 = vld [vmem:[%s16880_s13 + $0xaf8] sm:$0xff] }
 0x7ab   : > { %9026 = vmatprep.subr.bf16.mxu0 %v14350_v47  ;;  %v2233_v5 = vld [vmem:[%s16880_s13 + $0xed8] sm:$0xff]  ;;  %v14318_v38 = vcombine.high %v2105_v61, %v2109_v34  ;;  %v14317_v18 = vcombine.low %v2105_v61, %v2109_v34 }
 0x7ac   : > { %9066 = vmatpush1.bf16.msra.mxu1 %v14357_v63  ;;  %v2237_v2 = vld [vmem:[%s16880_s13 + $0xef8] sm:$0xff] }
 0x7ad   : > { %9067 = vmatprep.subr.bf16.mxu1 %v14478_v19  ;;  %v14446_v51 = vcombine.high %v2233_v5, %v2237_v2  ;;  %v2097_v10 = vld [vmem:[%s16880_s13 + $0xa98] sm:$0xff]  ;;  %v14445_v63 = vcombine.low %v2233_v5, %v2237_v2 }
 0x7ae   : > { %9027 = vmatpush2.bf16.msra.mxu0 %v14349_v30  ;;  %v2101_v14 = vld [vmem:[%s16880_s13 + $0xab8] sm:$0xff] }
 0x7af   : > { %9028 = vmatprep.subr.bf16.mxu0 %v14342_v33  ;;  %v2225_v27 = vld [vmem:[%s16880_s13 + $0xe98] sm:$0xff]  ;;  %v14310_v47 = vcombine.high %v2097_v10, %v2101_v14  ;;  %v14309_v30 = vcombine.low %v2097_v10, %v2101_v14 }
 0x7b0   : > { %9068 = vmatpush2.bf16.msra.mxu1 %v14477_v1  ;;  %v2229_v16 = vld [vmem:[%s16880_s13 + $0xeb8] sm:$0xff] }
 0x7b1   : > { %9069 = vmatprep.subr.bf16.mxu1 %v14470_v35  ;;  %v14438_v19 = vcombine.high %v2225_v27, %v2229_v16  ;;  %v2089_v21 = vld [vmem:[%s16880_s13 + $0xa58] sm:$0xff]  ;;  %v14437_v1 = vcombine.low %v2225_v27, %v2229_v16 }
 0x7b2   : > { %9029 = vmatpush2.bf16.msra.mxu0 %v14341_v41  ;;  %v2093_v36 = vld [vmem:[%s16880_s13 + $0xa78] sm:$0xff] }
 0x7b3   : > { %9030 = vmatprep.subr.bf16.mxu0 %v14334_v25  ;;  %v2217_v45 = vld [vmem:[%s16880_s13 + $0xe58] sm:$0xff]  ;;  %v14302_v33 = vcombine.high %v2089_v21, %v2093_v36  ;;  %v14301_v41 = vcombine.low %v2089_v21, %v2093_v36 }
 0x7b4   : > { %9070 = vmatpush2.bf16.msra.mxu1 %v14469_v42  ;;  %v2221_v28 = vld [vmem:[%s16880_s13 + $0xe78] sm:$0xff] }
 0x7b5   : > { %9071 = vmatprep.subr.bf16.mxu1 %v14462_v55  ;;  %v14430_v35 = vcombine.high %v2217_v45, %v2221_v28  ;;  %v2081_v39 = vld [vmem:[%s16880_s13 + $0xa18] sm:$0xff]  ;;  %v14429_v42 = vcombine.low %v2217_v45, %v2221_v28 }
 0x7b6   : > { %9031 = vmatpush2.bf16.msra.mxu0 %v14333_v57  ;;  %v2085_v40 = vld [vmem:[%s16880_s13 + $0xa38] sm:$0xff] }
 0x7b7   : > { %9032 = vmatprep.subr.bf16.mxu0 %v14326_v60  ;;  %v2209_v43 = vld [vmem:[%s16880_s13 + $0xe18] sm:$0xff]  ;;  %v14294_v25 = vcombine.high %v2081_v39, %v2085_v40  ;;  %v14293_v57 = vcombine.low %v2081_v39, %v2085_v40 }
 0x7b8   : > { %9072 = vmatpush2.bf16.msra.mxu1 %v14461_v29  ;;  %v2213_v48 = vld [vmem:[%s16880_s13 + $0xe38] sm:$0xff] }
 0x7b9   : > { %9073 = vmatprep.subr.bf16.mxu1 %v14454_v4  ;;  %v14422_v55 = vcombine.high %v2209_v43, %v2213_v48  ;;  %v2329_v52 = vld [vmem:[%s16880_s13 + $0x11d8] sm:$0xff]  ;;  %v14421_v29 = vcombine.low %v2209_v43, %v2213_v48 }
 0x7ba   : > { %9033 = vmatpush2.bf16.msra.mxu0 %v14325_v6  ;;  %v2333_v3 = vld [vmem:[%s16880_s13 + $0x11f8] sm:$0xff] }
 0x7bb   : > { %9034 = vmatprep.subr.bf16.mxu0 %v14318_v38  ;;  %v2457_v62 = vld [vmem:[%s16880_s13 + $0x15d8] sm:$0xff]  ;;  %v14542_v60 = vcombine.high %v2329_v52, %v2333_v3  ;;  %v14541_v6 = vcombine.low %v2329_v52, %v2333_v3 }
 0x7bc   : > { %9074 = vmatpush2.bf16.msra.mxu1 %v14453_v8  ;;  %v2461_v24 = vld [vmem:[%s16880_s13 + $0x15f8] sm:$0xff] }
 0x7bd   : > { %9075 = vmatprep.subr.bf16.mxu1 %v14446_v51  ;;  %v14670_v4 = vcombine.high %v2457_v62, %v2461_v24  ;;  %v2321_v61 = vld [vmem:[%s16880_s13 + $0x1198] sm:$0xff]  ;;  %v14669_v8 = vcombine.low %v2457_v62, %v2461_v24 }
 0x7be   : > { %9035 = vmatpush2.bf16.msra.mxu0 %v14317_v18  ;;  %v2325_v34 = vld [vmem:[%s16880_s13 + $0x11b8] sm:$0xff] }
 0x7bf   : > { %9036 = vmatprep.subr.bf16.mxu0 %v14310_v47  ;;  %v2449_v5 = vld [vmem:[%s16880_s13 + $0x1598] sm:$0xff]  ;;  %v14534_v38 = vcombine.high %v2321_v61, %v2325_v34 }
 0x7c0   : > { %9076 = vmatpush2.bf16.msra.mxu1 %v14445_v63  ;;  %v2453_v2 = vld [vmem:[%s16880_s13 + $0x15b8] sm:$0xff] }
 0x7c1   : > { %9077 = vmatprep.subr.bf16.mxu1 %v14438_v19  ;;  %v14662_v51 = vcombine.high %v2449_v5, %v2453_v2  ;;  %v2313_v10 = vld [vmem:[%s16880_s13 + $0x1158] sm:$0xff]  ;;  %v14533_v19 = vcombine.low %v2321_v61, %v2325_v34  ;;  %v14661_v36 = vcombine.low %v2449_v5, %v2453_v2 }
 0x7c2   : > { %9037 = vmatpush2.bf16.msra.mxu0 %v14309_v30  ;;  %v2317_v14 = vld [vmem:[%s16880_s13 + $0x1178] sm:$0xff] }
 0x7c3   : > { %9038 = vmatprep.subr.bf16.mxu0 %v14302_v33  ;;  %v2441_v16 = vld [vmem:[%s16880_s13 + $0x1558] sm:$0xff]  ;;  %v14526_v45 = vcombine.high %v2313_v10, %v2317_v14 }
 0x7c4   : > { %9078 = vmatpush2.bf16.msra.mxu1 %v14437_v1  ;;  %v2445_v18 = vld [vmem:[%s16880_s13 + $0x1578] sm:$0xff] }
 0x7c5   : > { %9079 = vmatprep.subr.bf16.mxu1 %v14430_v35  ;;  %v2305_v1 = vld [vmem:[%s16880_s13 + $0x1118] sm:$0xff] }
 0x7c6   : > { %9039 = vmatpush2.bf16.msra.mxu0 %v14301_v41  ;;  %v2309_v33 = vld [vmem:[%s16880_s13 + $0x1138] sm:$0xff]  ;;  %v14653_v41 = vcombine.low %v2441_v16, %v2445_v18 }
 0x7c7   : > { %9040 = vmatprep.subr.bf16.mxu0 %v14294_v25  ;;  %v2433_v35 = vld [vmem:[%s16880_s13 + $0x1518] sm:$0xff]  ;;  %v14517_v62 = vcombine.low %v2305_v1, %v2309_v33 }
 0x7c8   : > { %9080 = vmatpush2.bf16.msra.mxu1 %v14429_v42  ;;  %v2437_v39 = vld [vmem:[%s16880_s13 + $0x1538] sm:$0xff]  ;;  %v14518_v42 = vcombine.high %v2305_v1, %v2309_v33 }
 0x7c9   : > { %9081 = vmatprep.subr.bf16.mxu1 %v14422_v55  ;;  %v14646_v25 = vcombine.high %v2433_v35, %v2437_v39  ;;  %v2297_v55 = vld [vmem:[%s16880_s13 + $0x10d8] sm:$0xff]  ;;  %v14645_v24 = vcombine.low %v2433_v35, %v2437_v39 }
 0x7ca   : > { %9041 = vmatpush2.bf16.msra.mxu0 %v14293_v57  ;;  %v2425_v52 = vld [vmem:[%s16880_s13 + $0x14d8] sm:$0xff] }
 0x7cb   : > { %9092 = vmatprep.subr.bf16.mxu0 %v14542_v60  ;;  %v2429_v3 = vld [vmem:[%s16880_s13 + $0x14f8] sm:$0xff] }
 0x7cc   : > { %9082 = vmatpush2.bf16.msra.mxu1 %v14421_v29  ;;  %v14638_v29 = vcombine.high %v2425_v52, %v2429_v3  ;;  %v2289_v60 = vld [vmem:[%s16880_s13 + $0x1098] sm:$0xff]  ;;  %v14637_v2 = vcombine.low %v2425_v52, %v2429_v3 }
 0x7cd   : > { %9133 = vmatprep.subr.bf16.mxu1 %v14670_v4  ;;  %v8798_v27 = vpop.f32.mrf.mxu0  ;;  %9043 = vmatmul.mubr.bf16.vlgmr.msra.gmra.mxu0 %v17204_v11  ;;  %v2293_v4 = vld [vmem:[%s16880_s13 + $0x10b8] sm:$0xff] }
 0x7ce   : > { %v8799_v63 = vadd.f32 %v8798_v27, %v18073_v22  ;;  %9093 = vmatpush1.bf16.msra.mxu0 %v14541_v6  ;;  %v14654_v22 = vcombine.high %v2441_v16, %v2445_v18  ;;  %9124 = vmatprep.mubr.bf16.mxu0 %v17214_v20  ;;  %v2417_v61 = vld [vmem:[%s16880_s13 + $0x1498] sm:$0xff]  ;;  %v14502_v6 = vcombine.high %v2289_v60, %v2293_v4 }
 0x7cf   : > { %v8839_v47 = vpop.f32.mrf.mxu1  ;;  %9084 = vmatmul.mubr.bf16.vlgmr.msra.gmra.mxu1 %v17210_v13  ;;  %v8800_v21 = vpop.f32.mrf.mxu0  ;;  %9094 = vmatprep.subr.bf16.mxu0 %v14534_v38  ;;  %v2421_v34 = vld [vmem:[%s16880_s13 + $0x14b8] sm:$0xff]  ;;  %v14501_v27 = vcombine.low %v2289_v60, %v2293_v4 }
 0x7d0   : > { %9134 = vmatpush1.bf16.msra.mxu1 %v14669_v8  ;;  %v18147_v28 = vadd.f32 %v8839_v47, %v8799_v63  ;;  %v8801_v11 = vadd.f32 %v8800_v21, %v18082_v31  ;;  %9165 = vmatprep.mubr.bf16.mxu1 %v17219_v23  ;;  %v14525_v31 = vcombine.low %v2313_v10, %v2317_v14  ;;  %v2301_v23 = vld [vmem:[%s16880_s13 + $0x10f8] sm:$0xff] }
 0x7d1   : > { %v8841_v30 = vpop.f32.mrf.mxu1  ;;  %9135 = vmatprep.subr.bf16.mxu1 %v14662_v51  ;;  %v8802_v13 = vpop.f32.mrf.mxu0  ;;  %v14510_v57 = vcombine.high %v2297_v55, %v2301_v23  ;;  %v14509_v5 = vcombine.low %v2297_v55, %v2301_v23  ;;  %v14630_v8 = vcombine.high %v2417_v61, %v2421_v34  ;;  %v2281_v38 = vld [vmem:[%s16880_s13 + $0x1058] sm:$0xff]  ;;  %v14629_v16 = vcombine.low %v2417_v61, %v2421_v34 }
 0x7d2   : > { %v18156_v40 = vadd.f32 %v8841_v30, %v8801_v11  ;;  %9095 = vmatpush1.bf16.msra.mxu0 %v14533_v19  ;;  %v2285_v51 = vld [vmem:[%s16880_s13 + $0x1078] sm:$0xff] }
 0x7d3   : > { %v8843_v43 = vpop.f32.mrf.mxu1  ;;  %v8803_v48 = vpop.f32.mrf.mxu0  ;;  %9096 = vmatprep.subr.bf16.mxu0 %v14526_v45  ;;  %v2409_v10 = vld [vmem:[%s16880_s13 + $0x1458] sm:$0xff]  ;;  %v14494_v18 = vcombine.high %v2281_v38, %v2285_v51  ;;  %v14493_v45 = vcombine.low %v2281_v38, %v2285_v51 }
 0x7d4   : > { %9136 = vmatpush1.bf16.msra.mxu1 %v14661_v36  ;;  %v2413_v14 = vld [vmem:[%s16880_s13 + $0x1478] sm:$0xff] }
 0x7d5   : > { %v8844_v20 = vpop.f32.mrf.mxu1  ;;  %9137 = vmatprep.subr.bf16.mxu1 %v14654_v22  ;;  %v14622_v63 = vcombine.high %v2409_v10, %v2413_v14  ;;  %v2273_v47 = vld [vmem:[%s16880_s13 + $0x1018] sm:$0xff]  ;;  %v14621_v11 = vcombine.low %v2409_v10, %v2413_v14 }
 0x7d6   : > { %9097 = vmatpush1.bf16.msra.mxu0 %v14525_v31  ;;  %v2277_v19 = vld [vmem:[%s16880_s13 + $0x1038] sm:$0xff] }
 0x7d7   : > { %9098 = vmatprep.subr.bf16.mxu0 %v14518_v42  ;;  %v2401_v21 = vld [vmem:[%s16880_s13 + $0x1418] sm:$0xff]  ;;  %v14486_v30 = vcombine.high %v2273_v47, %v2277_v19  ;;  %v14485_v39 = vcombine.low %v2273_v47, %v2277_v19 }
 0x7d8   : > { %9138 = vmatpush1.bf16.msra.mxu1 %v14653_v41  ;;  %v2405_v36 = vld [vmem:[%s16880_s13 + $0x1438] sm:$0xff] }
 0x7d9   : > { %9139 = vmatprep.subr.bf16.mxu1 %v14646_v25  ;;  %v14614_v22 = vcombine.high %v2401_v21, %v2405_v36  ;;  %v2393_v1 = vld [vmem:[%s16880_s13 + $0x13d8] sm:$0xff]  ;;  %v14613_v43 = vcombine.low %v2401_v21, %v2405_v36 }
 0x7da   : > { %9099 = vmatpush1.bf16.msra.mxu0 %v14517_v62  ;;  %v2397_v33 = vld [vmem:[%s16880_s13 + $0x13f8] sm:$0xff] }
 0x7db   : > { %9100 = vmatprep.subr.bf16.mxu0 %v14510_v57  ;;  %v2521_v13 = vld [vmem:[%s16880_s13 + $0x17d8] sm:$0xff]  ;;  %v14606_v31 = vcombine.high %v2393_v1, %v2397_v33  ;;  %v14605_v55 = vcombine.low %v2393_v1, %v2397_v33 }
 0x7dc   : > { %9140 = vmatpush1.bf16.msra.mxu1 %v14645_v24  ;;  %v2525_v35 = vld [vmem:[%s16880_s13 + $0x17f8] sm:$0xff] }
 0x7dd   : > { %9141 = vmatprep.subr.bf16.mxu1 %v14638_v29  ;;  %v14734_v48 = vcombine.high %v2521_v13, %v2525_v35  ;;  %v2385_v41 = vld [vmem:[%s16880_s13 + $0x1398] sm:$0xff]  ;;  %v14733_v23 = vcombine.low %v2521_v13, %v2525_v35 }
 0x7de   : > { %9101 = vmatpush1.bf16.msra.mxu0 %v14509_v5  ;;  %v2389_v42 = vld [vmem:[%s16880_s13 + $0x13b8] sm:$0xff] }
 0x7df   : > { %9102 = vmatprep.subr.bf16.mxu0 %v14502_v6  ;;  %v2513_v20 = vld [vmem:[%s16880_s13 + $0x1798] sm:$0xff]  ;;  %v14598_v52 = vcombine.high %v2385_v41, %v2389_v42  ;;  %v14597_v60 = vcombine.low %v2385_v41, %v2389_v42 }
 0x7e0   : > { %9142 = vmatpush1.bf16.msra.mxu1 %v14637_v2  ;;  %v2517_v25 = vld [vmem:[%s16880_s13 + $0x17b8] sm:$0xff] }
 0x7e1   : > { %9143 = vmatprep.subr.bf16.mxu1 %v14630_v8  ;;  %v14726_v3 = vcombine.high %v2513_v20, %v2517_v25  ;;  %v2377_v62 = vld [vmem:[%s16880_s13 + $0x1358] sm:$0xff]  ;;  %v14725_v4 = vcombine.low %v2513_v20, %v2517_v25 }
 0x7e2   : > { %9103 = vmatpush1.bf16.msra.mxu0 %v14501_v27  ;;  %v2381_v24 = vld [vmem:[%s16880_s13 + $0x1378] sm:$0xff] }
 0x7e3   : > { %9104 = vmatprep.subr.bf16.mxu0 %v14494_v18  ;;  %v2505_v57 = vld [vmem:[%s16880_s13 + $0x1758] sm:$0xff]  ;;  %v14590_v61 = vcombine.high %v2377_v62, %v2381_v24  ;;  %v14589_v38 = vcombine.low %v2377_v62, %v2381_v24 }
 0x7e4   : > { %9144 = vmatpush1.bf16.msra.mxu1 %v14629_v16  ;;  %v2509_v29 = vld [vmem:[%s16880_s13 + $0x1778] sm:$0xff] }
 0x7e5   : > { %9145 = vmatprep.subr.bf16.mxu1 %v14622_v63  ;;  %v14718_v34 = vcombine.high %v2505_v57, %v2509_v29  ;;  %v2369_v5 = vld [vmem:[%s16880_s13 + $0x1318] sm:$0xff]  ;;  %v14717_v51 = vcombine.low %v2505_v57, %v2509_v29 }
 0x7e6   : > { %9105 = vmatpush1.bf16.msra.mxu0 %v14493_v45  ;;  %v2373_v2 = vld [vmem:[%s16880_s13 + $0x1338] sm:$0xff] }
 0x7e7   : > { %9106 = vmatprep.subr.bf16.mxu0 %v14486_v30  ;;  %v2497_v6 = vld [vmem:[%s16880_s13 + $0x1718] sm:$0xff]  ;;  %v14582_v10 = vcombine.high %v2369_v5, %v2373_v2  ;;  %v14581_v47 = vcombine.low %v2369_v5, %v2373_v2 }
 0x7e8   : > { %9146 = vmatpush1.bf16.msra.mxu1 %v14621_v11  ;;  %v2501_v8 = vld [vmem:[%s16880_s13 + $0x1738] sm:$0xff] }
 0x7e9   : > { %9147 = vmatprep.subr.bf16.mxu1 %v14614_v22  ;;  %v14710_v14 = vcombine.high %v2497_v6, %v2501_v8  ;;  %v2361_v27 = vld [vmem:[%s16880_s13 + $0x12d8] sm:$0xff]  ;;  %v14709_v19 = vcombine.low %v2497_v6, %v2501_v8 }
 0x7ea   : > { %9107 = vmatpush1.bf16.msra.mxu0 %v14485_v39  ;;  %v2365_v16 = vld [vmem:[%s16880_s13 + $0x12f8] sm:$0xff] }
 0x7eb   : > { %9108 = vmatprep.subr.bf16.mxu0 %v14606_v31  ;;  %v2489_v18 = vld [vmem:[%s16880_s13 + $0x16d8] sm:$0xff]  ;;  %v14574_v21 = vcombine.high %v2361_v27, %v2365_v16  ;;  %v14573_v1 = vcombine.low %v2361_v27, %v2365_v16 }
 0x7ec   : > { %9148 = vmatpush1.bf16.msra.mxu1 %v14613_v43  ;;  %v2493_v63 = vld [vmem:[%s16880_s13 + $0x16f8] sm:$0xff] }
 0x7ed   : > { %9149 = vmatprep.subr.bf16.mxu1 %v14734_v48  ;;  %v14702_v36 = vcombine.high %v2489_v18, %v2493_v63  ;;  %v2353_v45 = vld [vmem:[%s16880_s13 + $0x1298] sm:$0xff]  ;;  %v14701_v33 = vcombine.low %v2489_v18, %v2493_v63 }
 0x7ee   : > { %9109 = vmatpush2.bf16.msra.mxu0 %v14605_v55  ;;  %v2357_v11 = vld [vmem:[%s16880_s13 + $0x12b8] sm:$0xff] }
 0x7ef   : > { %9110 = vmatprep.subr.bf16.mxu0 %v14598_v52  ;;  %v2481_v30 = vld [vmem:[%s16880_s13 + $0x1698] sm:$0xff]  ;;  %v14566_v13 = vcombine.high %v2353_v45, %v2357_v11  ;;  %v14565_v41 = vcombine.low %v2353_v45, %v2357_v11 }
 0x7f0   : > { %9150 = vmatpush2.bf16.msra.mxu1 %v14733_v23  ;;  %v2485_v22 = vld [vmem:[%s16880_s13 + $0x16b8] sm:$0xff] }
 0x7f1   : > { %9151 = vmatprep.subr.bf16.mxu1 %v14726_v3  ;;  %v14694_v35 = vcombine.high %v2481_v30, %v2485_v22  ;;  %v2345_v39 = vld [vmem:[%s16880_s13 + $0x1258] sm:$0xff]  ;;  %v14693_v42 = vcombine.low %v2481_v30, %v2485_v22 }
 0x7f2   : > { %9111 = vmatpush2.bf16.msra.mxu0 %v14597_v60  ;;  %v2349_v43 = vld [vmem:[%s16880_s13 + $0x1278] sm:$0xff] }
 0x7f3   : > { %9112 = vmatprep.subr.bf16.mxu0 %v14590_v61  ;;  %v2473_v31 = vld [vmem:[%s16880_s13 + $0x1658] sm:$0xff]  ;;  %v14558_v20 = vcombine.high %v2345_v39, %v2349_v43  ;;  %v14557_v62 = vcombine.low %v2345_v39, %v2349_v43 }
 0x7f4   : > { %9152 = vmatpush2.bf16.msra.mxu1 %v14725_v4  ;;  %v2477_v48 = vld [vmem:[%s16880_s13 + $0x1678] sm:$0xff] }
 0x7f5   : > { %9153 = vmatprep.subr.bf16.mxu1 %v14718_v34  ;;  %v14686_v25 = vcombine.high %v2473_v31, %v2477_v48  ;;  %v2337_v55 = vld [vmem:[%s16880_s13 + $0x1218] sm:$0xff]  ;;  %v14685_v24 = vcombine.low %v2473_v31, %v2477_v48 }
 0x7f6   : > { %9113 = vmatpush2.bf16.msra.mxu0 %v14589_v38  ;;  %v2341_v23 = vld [vmem:[%s16880_s13 + $0x1238] sm:$0xff] }
 0x7f7   : > { %9114 = vmatprep.subr.bf16.mxu0 %v14582_v10  ;;  %v2465_v52 = vld [vmem:[%s16880_s13 + $0x1618] sm:$0xff]  ;;  %v14550_v57 = vcombine.high %v2337_v55, %v2341_v23  ;;  %v14549_v5 = vcombine.low %v2337_v55, %v2341_v23 }
 0x7f8   : > { %9154 = vmatpush2.bf16.msra.mxu1 %v14717_v51  ;;  %v2469_v3 = vld [vmem:[%s16880_s13 + $0x1638] sm:$0xff] }
 0x7f9   : > { %9155 = vmatprep.subr.bf16.mxu1 %v14710_v14  ;;  %v14678_v29 = vcombine.high %v2465_v52, %v2469_v3  ;;  %v2585_v60 = vld [vmem:[%s16880_s13 + $0x19d8] sm:$0xff]  ;;  %v14677_v2 = vcombine.low %v2465_v52, %v2469_v3 }
 0x7fa   : > { %9115 = vmatpush2.bf16.msra.mxu0 %v14581_v47  ;;  %v2589_v4 = vld [vmem:[%s16880_s13 + $0x19f8] sm:$0xff] }
 0x7fb   : > { %9116 = vmatprep.subr.bf16.mxu0 %v14574_v21  ;;  %v2713_v61 = vld [vmem:[%s16880_s13 + $0x1dd8] sm:$0xff]  ;;  %v14798_v6 = vcombine.high %v2585_v60, %v2589_v4  ;;  %v14797_v27 = vcombine.low %v2585_v60, %v2589_v4 }
 0x7fc   : > { %9156 = vmatpush2.bf16.msra.mxu1 %v14709_v19  ;;  %v2717_v34 = vld [vmem:[%s16880_s13 + $0x1df8] sm:$0xff] }
 0x7fd   : > { %9157 = vmatprep.subr.bf16.mxu1 %v14702_v36  ;;  %v14926_v8 = vcombine.high %v2713_v61, %v2717_v34  ;;  %v2577_v38 = vld [vmem:[%s16880_s13 + $0x1998] sm:$0xff]  ;;  %v14925_v16 = vcombine.low %v2713_v61, %v2717_v34 }
 0x7fe   : > { %9117 = vmatpush2.bf16.msra.mxu0 %v14573_v1  ;;  %v2581_v51 = vld [vmem:[%s16880_s13 + $0x19b8] sm:$0xff] }
 0x7ff   : > { %9118 = vmatprep.subr.bf16.mxu0 %v14566_v13  ;;  %v2705_v10 = vld [vmem:[%s16880_s13 + $0x1d98] sm:$0xff]  ;;  %v14790_v18 = vcombine.high %v2577_v38, %v2581_v51  ;;  %v14789_v22 = vcombine.low %v2577_v38, %v2581_v51 }
 0x800   : > { %9158 = vmatpush2.bf16.msra.mxu1 %v14701_v33  ;;  %v2709_v14 = vld [vmem:[%s16880_s13 + $0x1db8] sm:$0xff] }
 0x801   : > { %9159 = vmatprep.subr.bf16.mxu1 %v14694_v35  ;;  %v14918_v63 = vcombine.high %v2705_v10, %v2709_v14  ;;  %v2569_v47 = vld [vmem:[%s16880_s13 + $0x1958] sm:$0xff]  ;;  %v14917_v33 = vcombine.low %v2705_v10, %v2709_v14 }
 0x802   : > { %9119 = vmatpush2.bf16.msra.mxu0 %v14565_v41  ;;  %v2573_v19 = vld [vmem:[%s16880_s13 + $0x1978] sm:$0xff] }
 0x803   : > { %9120 = vmatprep.subr.bf16.mxu0 %v14558_v20  ;;  %v2697_v36 = vld [vmem:[%s16880_s13 + $0x1d58] sm:$0xff]  ;;  %v14782_v13 = vcombine.high %v2569_v47, %v2573_v19 }
 0x804   : > { %9160 = vmatpush2.bf16.msra.mxu1 %v14693_v42  ;;  %v2701_v45 = vld [vmem:[%s16880_s13 + $0x1d78] sm:$0xff] }
 0x805   : > { %9161 = vmatprep.subr.bf16.mxu1 %v14686_v25  ;;  %v2561_v43 = vld [vmem:[%s16880_s13 + $0x1918] sm:$0xff]  ;;  %v14909_v55 = vcombine.low %v2697_v36, %v2701_v45 }
 0x806   : > { %9121 = vmatpush2.bf16.msra.mxu0 %v14557_v62  ;;  %v2565_v31 = vld [vmem:[%s16880_s13 + $0x1938] sm:$0xff] }
 0x807   : > { %9122 = vmatprep.subr.bf16.mxu0 %v14550_v57  ;;  %v2689_v48 = vld [vmem:[%s16880_s13 + $0x1d18] sm:$0xff]  ;;  %v14774_v23 = vcombine.high %v2561_v43, %v2565_v31  ;;  %v14773_v57 = vcombine.low %v2561_v43, %v2565_v31 }
 0x808   : > { %9162 = vmatpush2.bf16.msra.mxu1 %v14685_v24  ;;  %v2693_v41 = vld [vmem:[%s16880_s13 + $0x1d38] sm:$0xff] }
 0x809   : > { %9163 = vmatprep.subr.bf16.mxu1 %v14678_v29  ;;  %v14902_v52 = vcombine.high %v2689_v48, %v2693_v41  ;;  %v2553_v3 = vld [vmem:[%s16880_s13 + $0x18d8] sm:$0xff]  ;;  %v14901_v29 = vcombine.low %v2689_v48, %v2693_v41 }
 0x80a   : > { %9123 = vmatpush2.bf16.msra.mxu0 %v14549_v5  ;;  %v2681_v62 = vld [vmem:[%s16880_s13 + $0x1cd8] sm:$0xff] }
 0x80b   : > { %9174 = vmatprep.subr.bf16.mxu0 %v14798_v6  ;;  %v2685_v24 = vld [vmem:[%s16880_s13 + $0x1cf8] sm:$0xff] }
 0x80c   : > { %9164 = vmatpush2.bf16.msra.mxu1 %v14677_v2  ;;  %v14894_v4 = vcombine.high %v2681_v62, %v2685_v24  ;;  %v2545_v61 = vld [vmem:[%s16880_s13 + $0x1898] sm:$0xff] }
 0x80d   : > { %9215 = vmatprep.subr.bf16.mxu1 %v14926_v8  ;;  %v8880_v21 = vpop.f32.mrf.mxu0  ;;  %9125 = vmatmul.mubr.bf16.vlgmr.msra.gmra.mxu0 %v17295_v54  ;;  %v2549_v34 = vld [vmem:[%s16880_s13 + $0x18b8] sm:$0xff]  ;;  %v14893_v8 = vcombine.low %v2681_v62, %v2685_v24 }
 0x80e   : > { %v8881_v11 = vadd.f32 %v8880_v21, %v18147_v28  ;;  %9175 = vmatpush1.bf16.msra.mxu0 %v14797_v27  ;;  %v14910_v28 = vcombine.high %v2697_v36, %v2701_v45  ;;  %9206 = vmatprep.mubr.bf16.mxu0 %v17307_v7  ;;  %v2673_v5 = vld [vmem:[%s16880_s13 + $0x1c98] sm:$0xff]  ;;  %v14758_v38 = vcombine.high %v2545_v61, %v2549_v34 }
 0x80f   : > { %v8921_v30 = vpop.f32.mrf.mxu1  ;;  %9166 = vmatmul.mubr.bf16.vlgmr.msra.gmra.mxu1 %v17303_v59  ;;  %v8882_v1 = vpop.f32.mrf.mxu0  ;;  %9176 = vmatprep.subr.bf16.mxu0 %v14790_v18  ;;  %v2677_v2 = vld [vmem:[%s16880_s13 + $0x1cb8] sm:$0xff]  ;;  %v14757_v18 = vcombine.low %v2545_v61, %v2549_v34 }
 0x810   : > { %9216 = vmatpush1.bf16.msra.mxu1 %v14925_v16  ;;  %v18221_v35 = vadd.f32 %v8921_v30, %v8881_v11  ;;  %v8883_v54 = vadd.f32 %v8882_v1, %v18156_v40  ;;  %9247 = vmatprep.mubr.bf16.mxu1 %v17312_v9  ;;  %v14781_v40 = vcombine.low %v2569_v47, %v2573_v19  ;;  %v2557_v9 = vld [vmem:[%s16880_s13 + $0x18f8] sm:$0xff] }
 0x811   : > { %v8923_v39 = vpop.f32.mrf.mxu1  ;;  %9217 = vmatprep.subr.bf16.mxu1 %v14918_v63  ;;  %v8884_v59 = vpop.f32.mrf.mxu0  ;;  %v14766_v60 = vcombine.high %v2553_v3, %v2557_v9  ;;  %v14765_v6 = vcombine.low %v2553_v3, %v2557_v9  ;;  %v14886_v51 = vcombine.high %v2673_v5, %v2677_v2  ;;  %v2537_v10 = vld [vmem:[%s16880_s13 + $0x1858] sm:$0xff]  ;;  %v14885_v63 = vcombine.low %v2673_v5, %v2677_v2 }
 0x812   : > { %v18230_v42 = vadd.f32 %v8923_v39, %v8883_v54  ;;  %9177 = vmatpush1.bf16.msra.mxu0 %v14789_v22  ;;  %v2541_v14 = vld [vmem:[%s16880_s13 + $0x1878] sm:$0xff] }
 0x813   : > { %v8925_v20 = vpop.f32.mrf.mxu1  ;;  %v8885_v25 = vpop.f32.mrf.mxu0  ;;  %9178 = vmatprep.subr.bf16.mxu0 %v14782_v13  ;;  %v2665_v27 = vld [vmem:[%s16880_s13 + $0x1c58] sm:$0xff]  ;;  %v14750_v47 = vcombine.high %v2537_v10, %v2541_v14  ;;  %v14749_v30 = vcombine.low %v2537_v10, %v2541_v14 }
 0x814   : > { %9218 = vmatpush1.bf16.msra.mxu1 %v14917_v33  ;;  %v2669_v16 = vld [vmem:[%s16880_s13 + $0x1c78] sm:$0xff] }
 0x815   : > { %v8926_v7 = vpop.f32.mrf.mxu1  ;;  %9219 = vmatprep.subr.bf16.mxu1 %v14910_v28  ;;  %v14878_v19 = vcombine.high %v2665_v27, %v2669_v16  ;;  %v2529_v21 = vld [vmem:[%s16880_s13 + $0x1818] sm:$0xff]  ;;  %v14877_v22 = vcombine.low %v2665_v27, %v2669_v16 }
 0x816   : > { %9179 = vmatpush1.bf16.msra.mxu0 %v14781_v40  ;;  %v2533_v36 = vld [vmem:[%s16880_s13 + $0x1838] sm:$0xff] }
 0x817   : > { %9180 = vmatprep.subr.bf16.mxu0 %v14774_v23  ;;  %v2657_v45 = vld [vmem:[%s16880_s13 + $0x1c18] sm:$0xff]  ;;  %v14742_v1 = vcombine.high %v2529_v21, %v2533_v36  ;;  %v14741_v43 = vcombine.low %v2529_v21, %v2533_v36 }
 0x818   : > { %9220 = vmatpush1.bf16.msra.mxu1 %v14909_v55  ;;  %v2661_v11 = vld [vmem:[%s16880_s13 + $0x1c38] sm:$0xff] }
 0x819   : > { %9221 = vmatprep.subr.bf16.mxu1 %v14902_v52  ;;  %v14870_v33 = vcombine.high %v2657_v45, %v2661_v11  ;;  %v2649_v13 = vld [vmem:[%s16880_s13 + $0x1bd8] sm:$0xff]  ;;  %v14869_v31 = vcombine.low %v2657_v45, %v2661_v11 }
 0x81a   : > { %9181 = vmatpush1.bf16.msra.mxu0 %v14773_v57  ;;  %v2653_v54 = vld [vmem:[%s16880_s13 + $0x1bf8] sm:$0xff] }
 0x81b   : > { %9182 = vmatprep.subr.bf16.mxu0 %v14766_v60  ;;  %v2777_v39 = vld [vmem:[%s16880_s13 + $0x1fd8] sm:$0xff]  ;;  %v14862_v59 = vcombine.high %v2649_v13, %v2653_v54  ;;  %v14861_v55 = vcombine.low %v2649_v13, %v2653_v54 }
 0x81c   : > { %9222 = vmatpush1.bf16.msra.mxu1 %v14901_v29  ;;  %v2781_v28 = vld [vmem:[%s16880_s13 + $0x1ff8] sm:$0xff] }
 0x81d   : > { %9223 = vmatprep.subr.bf16.mxu1 %v14894_v4  ;;  %v14990_v48 = vcombine.high %v2777_v39, %v2781_v28  ;;  %v2641_v41 = vld [vmem:[%s16880_s13 + $0x1b98] sm:$0xff]  ;;  %v14989_v23 = vcombine.low %v2777_v39, %v2781_v28 }
 0x81e   : > { %9183 = vmatpush1.bf16.msra.mxu0 %v14765_v6  ;;  %v2645_v20 = vld [vmem:[%s16880_s13 + $0x1bb8] sm:$0xff] }
 0x81f   : > { %9184 = vmatprep.subr.bf16.mxu0 %v14758_v38  ;;  %v2769_v40 = vld [vmem:[%s16880_s13 + $0x1f98] sm:$0xff]  ;;  %v14854_v7 = vcombine.high %v2641_v41, %v2645_v20  ;;  %v14853_v57 = vcombine.low %v2641_v41, %v2645_v20 }
 0x820   : > { %9224 = vmatpush1.bf16.msra.mxu1 %v14893_v8  ;;  %v2773_v25 = vld [vmem:[%s16880_s13 + $0x1fb8] sm:$0xff] }
 0x821   : > { %9225 = vmatprep.subr.bf16.mxu1 %v14886_v51  ;;  %v14982_v52 = vcombine.high %v2769_v40, %v2773_v25  ;;  %v2633_v3 = vld [vmem:[%s16880_s13 + $0x1b58] sm:$0xff]  ;;  %v14981_v29 = vcombine.low %v2769_v40, %v2773_v25 }
 0x822   : > { %9185 = vmatpush1.bf16.msra.mxu0 %v14757_v18  ;;  %v2637_v9 = vld [vmem:[%s16880_s13 + $0x1b78] sm:$0xff] }
 0x823   : > { %9186 = vmatprep.subr.bf16.mxu0 %v14750_v47  ;;  %v2761_v62 = vld [vmem:[%s16880_s13 + $0x1f58] sm:$0xff]  ;;  %v14846_v60 = vcombine.high %v2633_v3, %v2637_v9  ;;  %v14845_v6 = vcombine.low %v2633_v3, %v2637_v9  ;;  %v9328_v3 = vld [vmem:[%s16890_s19 + $0x1c0] sm:$0xff] }
 0x824   : > { %9226 = vmatpush1.bf16.msra.mxu1 %v14885_v63  ;;  %v2765_v24 = vld [vmem:[%s16880_s13 + $0x1f78] sm:$0xff]  ;;  %v9332_v9 = vld [vmem:[%s16890_s19 + $0x1e0] sm:$0xff] }
 0x825   : > { %9227 = vmatprep.subr.bf16.mxu1 %v14878_v19  ;;  %v14974_v4 = vcombine.high %v2761_v62, %v2765_v24  ;;  %v2625_v61 = vld [vmem:[%s16880_s13 + $0x1b18] sm:$0xff]  ;;  %v14973_v8 = vcombine.low %v2761_v62, %v2765_v24  ;;  %v9456_v62 = vld [vmem:[%s16890_s19 + $0x5c0] sm:$0xff] }
 0x826   : > { %9187 = vmatpush1.bf16.msra.mxu0 %v14749_v30  ;;  %v2629_v34 = vld [vmem:[%s16880_s13 + $0x1b38] sm:$0xff]  ;;  %v9460_v24 = vld [vmem:[%s16890_s19 + $0x5e0] sm:$0xff] }
 0x827   : > { %9188 = vmatprep.subr.bf16.mxu0 %v14742_v1  ;;  %v2753_v5 = vld [vmem:[%s16880_s13 + $0x1f18] sm:$0xff]  ;;  %v14838_v38 = vcombine.high %v2625_v61, %v2629_v34  ;;  %v14837_v18 = vcombine.low %v2625_v61, %v2629_v34  ;;  %v15176_v61 = vcombine.high %v9456_v62, %v9460_v24  ;;  %v2814_v34 = vsub.s32 7, %v17014_v15 }
 0x828   : > { %9228 = vmatpush1.bf16.msra.mxu1 %v14877_v22  ;;  %v2757_v2 = vld [vmem:[%s16880_s13 + $0x1f38] sm:$0xff] }
 0x829   : > { %9229 = vmatprep.subr.bf16.mxu1 %v14870_v33  ;;  %v14966_v51 = vcombine.high %v2753_v5, %v2757_v2  ;;  %v2617_v10 = vld [vmem:[%s16880_s13 + $0x1ad8] sm:$0xff]  ;;  %v14965_v63 = vcombine.low %v2753_v5, %v2757_v2  ;;  %v9257_v5 = vmax.f32 %v17628_v17, 0.0  ;;  %v9320_v2 = vld [vmem:[%s16890_s19 + $0x180] sm:$0xff] }
 0x82a   : > { %9189 = vmatpush1.bf16.msra.mxu0 %v14741_v43  ;;  %v2621_v14 = vld [vmem:[%s16880_s13 + $0x1af8] sm:$0xff] }
 0x82b   : > { %9190 = vmatprep.subr.bf16.mxu0 %v14862_v59  ;;  %v2745_v27 = vld [vmem:[%s16880_s13 + $0x1ed8] sm:$0xff]  ;;  %v14830_v47 = vcombine.high %v2617_v10, %v2621_v14  ;;  %v14829_v30 = vcombine.low %v2617_v10, %v2621_v14  ;;  %v15047_v10 = vcombine.low %v9328_v3, %v9332_v9  ;;  %v9448_v14 = vld [vmem:[%s16890_s19 + $0x580] sm:$0xff] }
 0x82c   : > { %9230 = vmatpush1.bf16.msra.mxu1 %v14869_v31  ;;  %v2749_v16 = vld [vmem:[%s16880_s13 + $0x1ef8] sm:$0xff] }
 0x82d   : > { %9231 = vmatprep.subr.bf16.mxu1 %v14990_v48  ;;  %v14958_v19 = vcombine.high %v2745_v27, %v2749_v16  ;;  %v2609_v21 = vld [vmem:[%s16880_s13 + $0x1a98] sm:$0xff]  ;;  %v14957_v22 = vcombine.low %v2745_v27, %v2749_v16  ;;  %v9452_v27 = vld [vmem:[%s16890_s19 + $0x5a0] sm:$0xff]  ;;  %v15175_v16 = vcombine.low %v9456_v62, %v9460_v24 }
 0x82e   : > { %9191 = vmatpush2.bf16.msra.mxu0 %v14861_v55  ;;  %v2613_v36 = vld [vmem:[%s16880_s13 + $0x1ab8] sm:$0xff]  ;;  %v9300_v62 = vld [vmem:[%s16890_s19 + $0xe0] sm:$0xff] }
 0x82f   : > { %9192 = vmatprep.subr.bf16.mxu0 %v14854_v7  ;;  %v2737_v45 = vld [vmem:[%s16880_s13 + $0x1e98] sm:$0xff]  ;;  %v14822_v1 = vcombine.high %v2609_v21, %v2613_v36  ;;  %v14821_v43 = vcombine.low %v2609_v21, %v2613_v36  ;;  %v15168_v21 = vcombine.high %v9448_v14, %v9452_v27  ;;  %v9440_v36 = vld [vmem:[%s16890_s19 + $0x540] sm:$0xff] }
 0x830   : > { %9232 = vmatpush2.bf16.msra.mxu1 %v14989_v23  ;;  %v2741_v11 = vld [vmem:[%s16880_s13 + $0x1eb8] sm:$0xff]  ;;  %v9424_v24 = vld [vmem:[%s16890_s19 + $0x4c0] sm:$0xff] }
 0x831   : > { %9233 = vmatprep.subr.bf16.mxu1 %v14982_v52  ;;  %v14950_v33 = vcombine.high %v2737_v45, %v2741_v11  ;;  %v2601_v13 = vld [vmem:[%s16880_s13 + $0x1a58] sm:$0xff]  ;;  %v14949_v31 = vcombine.low %v2737_v45, %v2741_v11  ;;  %v9444_v45 = vld [vmem:[%s16890_s19 + $0x560] sm:$0xff] }
 0x832   : > { %9193 = vmatpush2.bf16.msra.mxu0 %v14853_v57  ;;  %v2605_v54 = vld [vmem:[%s16880_s13 + $0x1a78] sm:$0xff] }
 0x833   : > { %9194 = vmatprep.subr.bf16.mxu0 %v14846_v60  ;;  %v2729_v39 = vld [vmem:[%s16880_s13 + $0x1e58] sm:$0xff]  ;;  %v14814_v59 = vcombine.high %v2601_v13, %v2605_v54  ;;  %v14813_v55 = vcombine.low %v2601_v13, %v2605_v54 }
 0x834   : > { %9234 = vmatpush2.bf16.msra.mxu1 %v14981_v29  ;;  %v2733_v28 = vld [vmem:[%s16880_s13 + $0x1e78] sm:$0xff]  ;;  %v2810_v29 = vsub.s32 6, %v17014_v15 }
 0x835   : > { %9235 = vmatprep.subr.bf16.mxu1 %v14974_v4  ;;  %v14942_v48 = vcombine.high %v2729_v39, %v2733_v28  ;;  %v2593_v41 = vld [vmem:[%s16880_s13 + $0x1a18] sm:$0xff]  ;;  %v14941_v23 = vcombine.low %v2729_v39, %v2733_v28  ;;  %v15048_v4 = vcombine.high %v9328_v3, %v9332_v9  ;;  %v9296_v9 = vld [vmem:[%s16890_s19 + $0xc0] sm:$0xff] }
 0x836   : > { %9195 = vmatpush2.bf16.msra.mxu0 %v14845_v6  ;;  %v2597_v20 = vld [vmem:[%s16880_s13 + $0x1a38] sm:$0xff]  ;;  %v9324_v6 = vld [vmem:[%s16890_s19 + $0x1a0] sm:$0xff] }
 0x837   : > { %9196 = vmatprep.subr.bf16.mxu0 %v14838_v38  ;;  %v2721_v40 = vld [vmem:[%s16880_s13 + $0x1e18] sm:$0xff]  ;;  %v14806_v7 = vcombine.high %v2593_v41, %v2597_v20  ;;  %v14805_v57 = vcombine.low %v2593_v41, %v2597_v20  ;;  %v16180_v38 = vld [vmem:[%s16888_s17] sm:$0xff]  ;;  %v9436_v41 = vld [vmem:[%s16890_s19 + $0x520] sm:$0xff] }
 0x838   : > { %9236 = vmatpush2.bf16.msra.mxu1 %v14973_v8  ;;  %v2725_v25 = vld [vmem:[%s16880_s13 + $0x1e38] sm:$0xff]  ;;  %v9259_v8 = vmax.f32 %v17929_v37, 0.0  ;;  %v2815_v17 = vrot.slane %v16180_v38, %v2814_v34  ;;  %v9316_v37 = vld [vmem:[%s16890_s19 + $0x160] sm:$0xff]  ;;  %s13748_s13 = sshll.u32 %s16528_s14, 4  ;;  %s13749_s13 = int_to_ptr.vmem [resolvable:$true] %s13748_s13 }
 0x839   : > { %9237 = vmatprep.subr.bf16.mxu1 %v14966_v51  ;;  %v14934_v52 = vcombine.high %v2721_v40, %v2725_v25  ;;  %v14933_v60 = vcombine.low %v2721_v40, %v2725_v25  ;;  %v2811_v51 = vrot.slane %v16180_v38, %v2810_v29  ;;  %v9420_v38 = vld [vmem:[%s16890_s19 + $0x4a0] sm:$0xff]  ;;  %s16428_s17 = scalar_lea.vmem %s13749_s13, 32  ;;  %p16435_p3 = scmp.lt.s32.totalorder %s13749_s13, %s13749_s13 }
 0x83a   : > { %9197 = vmatpush2.bf16.msra.mxu0 %v14837_v18  ;;  %v15040_v18 = vcombine.high %v9320_v2, %v9324_v6  ;;  %v18304_v11 = vpack.c.bf16 %v9259_v8, %v9259_v8  ;;  %v9416_v8 = vld [vmem:[%s16890_s19 + $0x480] sm:$0xff]  ;;  %p16429_p9 = scmp.ne.s32.totalorder %s13749_s13, %s16428_s17  ;;  %p16436_p8 = scmp.lt.s32.totalorder %s16428_s17, %s16428_s17 }
 0x83b   : > { %9198 = vmatprep.subr.bf16.mxu0 %v14830_v47  ;;  %v18299_v47 = vpack.c.bf16 %v9257_v5, %v9257_v5 }
 0x83c   : > { %9238 = vmatpush2.bf16.msra.mxu1 %v14965_v63  ;;  %v9312_v63 = vld [vmem:[%s16890_s19 + $0x140] sm:$0xff]  ;;  %p16430_p2 = pnand %p16429_p9, %p16061_p4  ;;  %p16437_p10 = por %p16436_p8, %p16435_p3 }
 0x83d   : > { %9239 = vmatprep.subr.bf16.mxu1 %v14958_v19  ;;  %v15032_v13 = vcombine.high %v9312_v63, %v9316_v37  ;;  %v15031_v25 = vcombine.low %v9312_v63, %v9316_v37  ;;  %v9412_v63 = vld [vmem:[%s16890_s19 + $0x460] sm:$0xff] }
 0x83e   : > { %9199 = vmatpush2.bf16.msra.mxu0 %v14829_v30  ;;  %p16431_p5 = pneg %p16430_p2 }
 0x83f   : > { %9200 = vmatprep.subr.bf16.mxu0 %v14822_v1  ;;  %v15039_v1 = vcombine.low %v9320_v2, %v9324_v6  ;;  %v9288_v2 = vld [vmem:[%s16890_s19 + $0x80] sm:$0xff] }
 0x840   : > { %9240 = vmatpush2.bf16.msra.mxu1 %v14957_v22  ;;  %v9292_v6 = vld [vmem:[%s16890_s19 + $0xa0] sm:$0xff]  ;;  %p16438_p13 = pnand %p16437_p10, %p16431_p5 }
 0x841   : > { %9241 = vmatprep.subr.bf16.mxu1 %v14950_v33  ;;  %v15007_v37 = vcombine.low %v9288_v2, %v9292_v6 }
 0x842   : > { %9201 = vmatpush2.bf16.msra.mxu0 %v14821_v43  ;;  %v15160_v43 = vcombine.high %v9440_v36, %v9444_v45 }
 0x843   : > { %9202 = vmatprep.subr.bf16.mxu0 %v14814_v59 }
 0x844   : > { %9242 = vmatpush2.bf16.msra.mxu1 %v14949_v31  ;;  %v9304_v31 = vld [vmem:[%s16890_s19 + $0x100] sm:$0xff] }
 0x845   : > { %9243 = vmatprep.subr.bf16.mxu1 %v14942_v48  ;;  %v9432_v48 = vld [vmem:[%s16890_s19 + $0x500] sm:$0xff] }
 0x846   : > { %9203 = vmatpush2.bf16.msra.mxu0 %v14813_v55  ;;  %v15152_v3 = vcombine.high %v9432_v48, %v9436_v41 }
 0x847   : > { %9204 = vmatprep.subr.bf16.mxu0 %v14806_v7 }
 0x848   : > { %9244 = vmatpush2.bf16.msra.mxu1 %v14941_v23  ;;  %v15159_v23 = vcombine.low %v9440_v36, %v9444_v45  ;;  %v9272_v45 = vld [vmem:[%s16890_s19] sm:$0xff] }
 0x849   : > { %9245 = vmatprep.subr.bf16.mxu1 %v14934_v52 }
 0x84a   : > { %9205 = vmatpush2.bf16.msra.mxu0 %v14805_v57  ;;  %v9428_v57 = vld [vmem:[%s16890_s19 + $0x4e0] sm:$0xff] }
 0x84b   : > { %12386 = vmatprep.subr.bf16.mxu0 %v15048_v4  ;;  %v15151_v4 = vcombine.low %v9432_v48, %v9436_v41  ;;  %v15144_v5 = vcombine.high %v9424_v24, %v9428_v57 }
 0x84c   : > { %9246 = vmatpush2.bf16.msra.mxu1 %v14933_v60 }
 0x84d   : > { %12427 = vmatprep.subr.bf16.mxu1 %v15176_v61  ;;  %v8962_v19 = vpop.f32.mrf.mxu0  ;;  %9207 = vmatmul.mubr.bf16.vlgmr.msra.gmra.mxu0 %v17380_v49  ;;  %v15167_v49 = vcombine.low %v9448_v14, %v9452_v27  ;;  %v15016_v61 = vcombine.high %v9296_v9, %v9300_v62  ;;  %v15008_v14 = vcombine.high %v9288_v2, %v9292_v6 }
 0x84e   : > { %v8963_v30 = vadd.f32 %v8962_v19, %v2811_v51  ;;  %12387 = vmatpush1.bf16.msra.mxu0 %v15047_v10  ;;  %12418 = vmatprep.mubr.bf16.mxu0 %v18299_v47  ;;  %v15015_v51 = vcombine.low %v9296_v9, %v9300_v62  ;;  %v15143_v10 = vcombine.low %v9424_v24, %v9428_v57  ;;  %v9376_v24 = vld [vmem:[%s16890_s19 + $0x340] sm:$0xff] }
 0x84f   : > { %v9003_v22 = vpop.f32.mrf.mxu1  ;;  %9248 = vmatmul.mubr.bf16.vlgmr.msra.gmra.mxu1 %v17388_v53  ;;  %v8964_v33 = vpop.f32.mrf.mxu0  ;;  %12388 = vmatprep.subr.bf16.mxu0 %v15040_v18  ;;  %v9308_v53 = vld [vmem:[%s16890_s19 + $0x120] sm:$0xff]  ;;  %v15136_v27 = vcombine.high %v9416_v8, %v9420_v38  ;;  %v15135_v19 = vcombine.low %v9416_v8, %v9420_v38 }
 0x850   : > { %12428 = vmatpush1.bf16.msra.mxu1 %v15175_v16  ;;  %v18308_v54 = vadd.f32 %v9003_v22, %v8963_v30  ;;  %12459 = vmatprep.mubr.bf16.mxu1 %v18304_v11  ;;  %v8965_v39 = vadd.f32 %v8964_v33, %v2815_v17  ;;  %v15024_v7 = vcombine.high %v9304_v31, %v9308_v53  ;;  %v9280_v16 = vld [vmem:[%s16890_s19 + $0x40] sm:$0xff] }
 0x851   : > { %v9005_v28 = vpop.f32.mrf.mxu1  ;;  %v8966_v59 = vpop.f32.mrf.mxu0  ;;  %12429 = vmatprep.subr.bf16.mxu1 %v15168_v21  ;;  %v15023_v60 = vcombine.low %v9304_v31, %v9308_v53  ;;  %v9284_v17 = vld [vmem:[%s16890_s19 + $0x60] sm:$0xff] }
 0x852   : > { %v18315_v20 = vadd.f32 %v9005_v28, %v8965_v39  ;;  %12389 = vmatpush1.bf16.msra.mxu0 %v15039_v1  ;;  %v9408_v18 = vld [vmem:[%s16890_s19 + $0x440] sm:$0xff]  ;;  %v15000_v21 = vcombine.high %v9280_v16, %v9284_v17  ;;  %v14999_v33 = vcombine.low %v9280_v16, %v9284_v17 }
 0x853   : > { %v9007_v40 = vpop.f32.mrf.mxu1  ;;  %v8967_v55 = vpop.f32.mrf.mxu0  ;;  %12390 = vmatprep.subr.bf16.mxu0 %v15032_v13  ;;  %v15128_v36 = vcombine.high %v9408_v18, %v9412_v63  ;;  %v9276_v30 = vld [vmem:[%s16890_s19 + $0x20] sm:$0xff] }
 0x854   : > { %12430 = vmatpush1.bf16.msra.mxu1 %v15167_v49  ;;  %v9400_v22 = vld [vmem:[%s16890_s19 + $0x400] sm:$0xff]  ;;  %v15127_v49 = vcombine.low %v9408_v18, %v9412_v63  ;;  %v14992_v13 = vcombine.high %v9272_v45, %v9276_v30  ;;  %v14991_v59 = vcombine.low %v9272_v45, %v9276_v30 }
 0x855   : > { %v9008_v52 = vpop.f32.mrf.mxu1  ;;  %12431 = vmatprep.subr.bf16.mxu1 %v15160_v43  ;;  %v9404_v1 = vld [vmem:[%s16890_s19 + $0x420] sm:$0xff] }
 0x856   : > { %12391 = vmatpush1.bf16.msra.mxu0 %v15031_v25  ;;  %v15120_v39 = vcombine.high %v9400_v22, %v9404_v1  ;;  %v9392_v28 = vld [vmem:[%s16890_s19 + $0x3c0] sm:$0xff]  ;;  %v15119_v48 = vcombine.low %v9400_v22, %v9404_v1 }
 0x857   : > { %12392 = vmatprep.subr.bf16.mxu0 %v15024_v7  ;;  %v9396_v43 = vld [vmem:[%s16890_s19 + $0x3e0] sm:$0xff] }
 0x858   : > { %12432 = vmatpush1.bf16.msra.mxu1 %v15159_v23  ;;  %v9520_v31 = vld [vmem:[%s16890_s19 + $0x7c0] sm:$0xff]  ;;  %v15112_v41 = vcombine.high %v9392_v28, %v9396_v43  ;;  %v15111_v52 = vcombine.low %v9392_v28, %v9396_v43 }
 0x859   : > { %12433 = vmatprep.subr.bf16.mxu1 %v15152_v3  ;;  %v9524_v53 = vld [vmem:[%s16890_s19 + $0x7e0] sm:$0xff] }
 0x85a   : > { %12393 = vmatpush1.bf16.msra.mxu0 %v15023_v60  ;;  %v15240_v40 = vcombine.high %v9520_v31, %v9524_v53  ;;  %v9384_v25 = vld [vmem:[%s16890_s19 + $0x380] sm:$0xff]  ;;  %v15239_v3 = vcombine.low %v9520_v31, %v9524_v53 }
 0x85b   : > { %12394 = vmatprep.subr.bf16.mxu0 %v15016_v61  ;;  %v9388_v55 = vld [vmem:[%s16890_s19 + $0x3a0] sm:$0xff] }
 0x85c   : > { %12434 = vmatpush1.bf16.msra.mxu1 %v15151_v4  ;;  %v9512_v23 = vld [vmem:[%s16890_s19 + $0x780] sm:$0xff]  ;;  %v15104_v9 = vcombine.high %v9384_v25, %v9388_v55  ;;  %v15103_v61 = vcombine.low %v9384_v25, %v9388_v55 }
 0x85d   : > { %12435 = vmatprep.subr.bf16.mxu1 %v15144_v5  ;;  %v9516_v7 = vld [vmem:[%s16890_s19 + $0x7a0] sm:$0xff] }
 0x85e   : > { %12395 = vmatpush1.bf16.msra.mxu0 %v15015_v51  ;;  %v15232_v62 = vcombine.high %v9512_v23, %v9516_v7  ;;  %v9380_v57 = vld [vmem:[%s16890_s19 + $0x360] sm:$0xff]  ;;  %v15231_v5 = vcombine.low %v9512_v23, %v9516_v7 }
 0x85f   : > { %12396 = vmatprep.subr.bf16.mxu0 %v15008_v14  ;;  %v9504_v60 = vld [vmem:[%s16890_s19 + $0x740] sm:$0xff]  ;;  %v15096_v2 = vcombine.high %v9376_v24, %v9380_v57  ;;  %v15095_v14 = vcombine.low %v9376_v24, %v9380_v57 }
 0x860   : > { %12436 = vmatpush1.bf16.msra.mxu1 %v15143_v10  ;;  %v9508_v4 = vld [vmem:[%s16890_s19 + $0x760] sm:$0xff] }
 0x861   : > { %12437 = vmatprep.subr.bf16.mxu1 %v15136_v27  ;;  %v15224_v6 = vcombine.high %v9504_v60, %v9508_v4  ;;  %v9368_v8 = vld [vmem:[%s16890_s19 + $0x300] sm:$0xff]  ;;  %v15223_v27 = vcombine.low %v9504_v60, %v9508_v4 }
 0x862   : > { %12397 = vmatpush1.bf16.msra.mxu0 %v15007_v37  ;;  %v9372_v38 = vld [vmem:[%s16890_s19 + $0x320] sm:$0xff] }
 0x863   : > { %12398 = vmatprep.subr.bf16.mxu0 %v15000_v21  ;;  %v9496_v51 = vld [vmem:[%s16890_s19 + $0x700] sm:$0xff]  ;;  %v15088_v16 = vcombine.high %v9368_v8, %v9372_v38  ;;  %v15087_v21 = vcombine.low %v9368_v8, %v9372_v38 }
 0x864   : > { %12438 = vmatpush1.bf16.msra.mxu1 %v15135_v19  ;;  %v9500_v10 = vld [vmem:[%s16890_s19 + $0x720] sm:$0xff] }
 0x865   : > { %12439 = vmatprep.subr.bf16.mxu1 %v15128_v36  ;;  %v15216_v17 = vcombine.high %v9496_v51, %v9500_v10  ;;  %v9360_v18 = vld [vmem:[%s16890_s19 + $0x2c0] sm:$0xff]  ;;  %v15215_v36 = vcombine.low %v9496_v51, %v9500_v10  ;;  %v9258_v51 = vmax.f32 %v17920_v26, 0.0 }
 0x866   : > { %12399 = vmatpush1.bf16.msra.mxu0 %v14999_v33  ;;  %v9364_v63 = vld [vmem:[%s16890_s19 + $0x2e0] sm:$0xff] }
 0x867   : > { %12400 = vmatprep.subr.bf16.mxu0 %v14992_v13  ;;  %v9488_v37 = vld [vmem:[%s16890_s19 + $0x6c0] sm:$0xff]  ;;  %v15080_v45 = vcombine.high %v9360_v18, %v9364_v63  ;;  %v15079_v13 = vcombine.low %v9360_v18, %v9364_v63 }
 0x868   : > { %12440 = vmatpush1.bf16.msra.mxu1 %v15127_v49  ;;  %v9492_v19 = vld [vmem:[%s16890_s19 + $0x6e0] sm:$0xff] }
 0x869   : > { %12441 = vmatprep.subr.bf16.mxu1 %v15120_v39  ;;  %v15208_v30 = vcombine.high %v9488_v37, %v9492_v19  ;;  %v9352_v22 = vld [vmem:[%s16890_s19 + $0x280] sm:$0xff]  ;;  %v15207_v39 = vcombine.low %v9488_v37, %v9492_v19  ;;  %v18378_v19 = vpack.c.bf16 %v9258_v51, %v9258_v51 }
 0x86a   : > { %12401 = vmatpush1.bf16.msra.mxu0 %v14991_v59  ;;  %v9356_v1 = vld [vmem:[%s16890_s19 + $0x2a0] sm:$0xff] }
 0x86b   : > { %12402 = vmatprep.subr.bf16.mxu0 %v15112_v41  ;;  %v9480_v33 = vld [vmem:[%s16890_s19 + $0x680] sm:$0xff]  ;;  %v15072_v28 = vcombine.high %v9352_v22, %v9356_v1  ;;  %v15071_v41 = vcombine.low %v9352_v22, %v9356_v1 }
 0x86c   : > { %12442 = vmatpush1.bf16.msra.mxu1 %v15119_v48  ;;  %v9484_v49 = vld [vmem:[%s16890_s19 + $0x6a0] sm:$0xff] }
 0x86d   : > { %12443 = vmatprep.subr.bf16.mxu1 %v15240_v40  ;;  %v15200_v43 = vcombine.high %v9480_v33, %v9484_v49  ;;  %v9344_v31 = vld [vmem:[%s16890_s19 + $0x240] sm:$0xff]  ;;  %v15199_v40 = vcombine.low %v9480_v33, %v9484_v49 }
 0x86e   : > { %12403 = vmatpush2.bf16.msra.mxu0 %v15111_v52  ;;  %v9348_v53 = vld [vmem:[%s16890_s19 + $0x260] sm:$0xff] }
 0x86f   : > { %12404 = vmatprep.subr.bf16.mxu0 %v15104_v9  ;;  %v9472_v59 = vld [vmem:[%s16890_s19 + $0x640] sm:$0xff]  ;;  %v15064_v25 = vcombine.high %v9344_v31, %v9348_v53  ;;  %v15063_v9 = vcombine.low %v9344_v31, %v9348_v53 }
 0x870   : > { %12444 = vmatpush2.bf16.msra.mxu1 %v15239_v3  ;;  %v9476_v48 = vld [vmem:[%s16890_s19 + $0x660] sm:$0xff] }
 0x871   : > { %12445 = vmatprep.subr.bf16.mxu1 %v15232_v62  ;;  %v15192_v55 = vcombine.high %v9472_v59, %v9476_v48  ;;  %v9336_v23 = vld [vmem:[%s16890_s19 + $0x200] sm:$0xff]  ;;  %v15191_v62 = vcombine.low %v9472_v59, %v9476_v48 }
 0x872   : > { %12405 = vmatpush2.bf16.msra.mxu0 %v15103_v61  ;;  %v9340_v7 = vld [vmem:[%s16890_s19 + $0x220] sm:$0xff] }
 0x873   : > { %12406 = vmatprep.subr.bf16.mxu0 %v15096_v2  ;;  %v9464_v52 = vld [vmem:[%s16890_s19 + $0x600] sm:$0xff]  ;;  %v15056_v24 = vcombine.high %v9336_v23, %v9340_v7  ;;  %v15055_v2 = vcombine.low %v9336_v23, %v9340_v7 }
 0x874   : > { %12446 = vmatpush2.bf16.msra.mxu1 %v15231_v5  ;;  %v9468_v3 = vld [vmem:[%s16890_s19 + $0x620] sm:$0xff] }
 0x875   : > { %12447 = vmatprep.subr.bf16.mxu1 %v15224_v6  ;;  %v15184_v57 = vcombine.high %v9464_v52, %v9468_v3  ;;  %v9584_v60 = vld [vmem:[%s16890_s19 + $0x9c0] sm:$0xff]  ;;  %v9256_v6 = vmax.f32 %v17619_v46, 0.0  ;;  %v15183_v8 = vcombine.low %v9464_v52, %v9468_v3 }
 0x876   : > { %12407 = vmatpush2.bf16.msra.mxu0 %v15095_v14  ;;  %v9588_v4 = vld [vmem:[%s16890_s19 + $0x9e0] sm:$0xff] }
 0x877   : > { %12408 = vmatprep.subr.bf16.mxu0 %v15088_v16  ;;  %v9712_v61 = vld [vmem:[%s16890_s19 + $0xdc0] sm:$0xff]  ;;  %v15304_v38 = vcombine.high %v9584_v60, %v9588_v4  ;;  %v9261_v16 = vmax.f32 %v18230_v42, 0.0  ;;  %v18376_v37 = vpack.c.bf16 %v9256_v6, %v9256_v6  ;;  %v18404_v6 = vld [vmem:[%s16890_s19 + $0x5c8] sm:$0xff] }
 0x878   : > { %12448 = vmatpush2.bf16.msra.mxu1 %v15223_v27  ;;  %v9716_v5 = vld [vmem:[%s16890_s19 + $0xde0] sm:$0xff] }
 0x879   : > { %12449 = vmatprep.subr.bf16.mxu1 %v15216_v17  ;;  %v9576_v10 = vld [vmem:[%s16890_s19 + $0x980] sm:$0xff]  ;;  %v15432_v27 = vcombine.high %v9712_v61, %v9716_v5  ;;  %v15303_v17 = vcombine.low %v9584_v60, %v9588_v4 }
 0x87a   : > { %12409 = vmatpush2.bf16.msra.mxu0 %v15087_v21  ;;  %v9580_v14 = vld [vmem:[%s16890_s19 + $0x9a0] sm:$0xff] }
 0x87b   : > { %12410 = vmatprep.subr.bf16.mxu0 %v15080_v45  ;;  %v9704_v18 = vld [vmem:[%s16890_s19 + $0xd80] sm:$0xff]  ;;  %v15296_v46 = vcombine.high %v9576_v10, %v9580_v14  ;;  %v18382_v45 = vpack.c.bf16 %v9261_v16, %v9261_v16  ;;  %v15295_v33 = vcombine.low %v9576_v10, %v9580_v14 }
 0x87c   : > { %12450 = vmatpush2.bf16.msra.mxu1 %v15215_v36  ;;  %v9708_v63 = vld [vmem:[%s16890_s19 + $0xda0] sm:$0xff]  ;;  %v15431_v36 = vcombine.low %v9712_v61, %v9716_v5 }
 0x87d   : > { %12451 = vmatprep.subr.bf16.mxu1 %v15208_v30  ;;  %v9568_v26 = vld [vmem:[%s16890_s19 + $0x940] sm:$0xff]  ;;  %v15424_v30 = vcombine.high %v9704_v18, %v9708_v63  ;;  %v15423_v48 = vcombine.low %v9704_v18, %v9708_v63 }
 0x87e   : > { %12411 = vmatpush2.bf16.msra.mxu0 %v15079_v13  ;;  %v9572_v21 = vld [vmem:[%s16890_s19 + $0x960] sm:$0xff] }
 0x87f   : > { %12412 = vmatprep.subr.bf16.mxu0 %v15072_v28  ;;  %v9696_v49 = vld [vmem:[%s16890_s19 + $0xd40] sm:$0xff]  ;;  %v15288_v28 = vcombine.high %v9568_v26, %v9572_v21  ;;  %v15287_v23 = vcombine.low %v9568_v26, %v9572_v21 }
 0x880   : > { %12452 = vmatpush2.bf16.msra.mxu1 %v15207_v39  ;;  %v9700_v13 = vld [vmem:[%s16890_s19 + $0xd60] sm:$0xff] }
 0x881   : > { %12453 = vmatprep.subr.bf16.mxu1 %v15200_v43  ;;  %v9564_v59 = vld [vmem:[%s16890_s19 + $0x920] sm:$0xff] }
 0x882   : > { %12413 = vmatpush2.bf16.msra.mxu0 %v15071_v41  ;;  %v9688_v7 = vld [vmem:[%s16890_s19 + $0xd00] sm:$0xff] }
 0x883   : > { %12414 = vmatprep.subr.bf16.mxu0 %v15064_v25  ;;  %v9692_v52 = vld [vmem:[%s16890_s19 + $0xd20] sm:$0xff] }
 0x884   : > { %12454 = vmatpush2.bf16.msra.mxu1 %v15199_v40  ;;  %v15416_v40 = vcombine.high %v9696_v49, %v9700_v13  ;;  %v15408_v60 = vcombine.high %v9688_v7, %v9692_v52  ;;  %v9680_v61 = vld [vmem:[%s16890_s19 + $0xcc0] sm:$0xff]  ;;  %v15407_v10 = vcombine.low %v9688_v7, %v9692_v52 }
 0x885   : > { %12455 = vmatprep.subr.bf16.mxu1 %v15192_v55  ;;  %v9684_v5 = vld [vmem:[%s16890_s19 + $0xce0] sm:$0xff] }
 0x886   : > { %12415 = vmatpush2.bf16.msra.mxu0 %v15063_v9  ;;  %v9548_v51 = vld [vmem:[%s16890_s19 + $0x8a0] sm:$0xff]  ;;  %v15399_v21 = vcombine.low %v9680_v61, %v9684_v5 }
 0x887   : > { %12416 = vmatprep.subr.bf16.mxu0 %v15056_v24  ;;  %v9556_v24 = vld [vmem:[%s16890_s19 + $0x8e0] sm:$0xff] }
 0x888   : > { %12456 = vmatpush2.bf16.msra.mxu1 %v15191_v62  ;;  %v9552_v62 = vld [vmem:[%s16890_s19 + $0x8c0] sm:$0xff] }
 0x889   : > { %12457 = vmatprep.subr.bf16.mxu1 %v15184_v57  ;;  %v15415_v57 = vcombine.low %v9696_v49, %v9700_v13  ;;  %v15271_v16 = vcombine.low %v9552_v62, %v9556_v24  ;;  %v9676_v18 = vld [vmem:[%s16890_s19 + $0xca0] sm:$0xff] }
 0x88a   : > { %12417 = vmatpush2.bf16.msra.mxu0 %v15055_v2  ;;  %v15272_v2 = vcombine.high %v9552_v62, %v9556_v24  ;;  %v9540_v26 = vld [vmem:[%s16890_s19 + $0x860] sm:$0xff] }
 0x88b   : > { %12468 = vmatprep.subr.bf16.mxu0 %v15304_v38  ;;  %v9544_v38 = vld [vmem:[%s16890_s19 + $0x880] sm:$0xff] }
 0x88c   : > { %12458 = vmatpush2.bf16.msra.mxu1 %v15183_v8  ;;  %v18407_v8 = vld [vmem:[%s16890_s19 + $0x5e8] sm:$0xff]  ;;  %v15264_v63 = vcombine.high %v9544_v38, %v9548_v51  ;;  %v9532_v49 = vld [vmem:[%s16890_s19 + $0x820] sm:$0xff] }
 0x88d   : > { %12509 = vmatprep.subr.bf16.mxu1 %v15432_v27  ;;  %v9044_v42 = vpop.f32.mrf.mxu0  ;;  %12419 = vmatmul.mubr.bf16.vlgmr.msra.gmra.mxu0 %v18376_v37  ;;  %v15177_v14 = vcombine.low %v18404_v6, %v18407_v8  ;;  %v15400_v27 = vcombine.high %v9680_v61, %v9684_v5  ;;  %v9780_v7 = vld [vmem:[%s16890_s19 + $0xfe0] sm:$0xff] }
 0x88e   : > { %v9045_v22 = vadd.f32 %v9044_v42, %v18308_v54  ;;  %12469 = vmatpush1.bf16.msra.mxu0 %v15303_v17  ;;  %12500 = vmatprep.mubr.bf16.mxu0 %v18382_v45  ;;  %v9560_v54 = vld [vmem:[%s16890_s19 + $0x900] sm:$0xff]  ;;  %v15263_v42 = vcombine.low %v9544_v38, %v9548_v51 }
 0x88f   : > { %v9085_v1 = vpop.f32.mrf.mxu1  ;;  %12460 = vmatmul.mubr.bf16.vlgmr.msra.gmra.mxu1 %v18378_v19  ;;  %v9046_v39 = vpop.f32.mrf.mxu0  ;;  %12470 = vmatprep.subr.bf16.mxu0 %v15296_v46  ;;  %v15280_v3 = vcombine.high %v9560_v54, %v9564_v59  ;;  %v15279_v4 = vcombine.low %v9560_v54, %v9564_v59  ;;  %v9672_v17 = vld [vmem:[%s16890_s19 + $0xc80] sm:$0xff] }
 0x890   : > { %v18390_v43 = vadd.f32 %v9085_v1, %v9045_v22  ;;  %v9047_v31 = vadd.f32 %v9046_v39, %v18315_v20  ;;  %12510 = vmatpush1.bf16.msra.mxu1 %v15431_v36  ;;  %v9536_v46 = vld [vmem:[%s16890_s19 + $0x840] sm:$0xff]  ;;  %v15392_v36 = vcombine.high %v9672_v17, %v9676_v18  ;;  %v15391_v13 = vcombine.low %v9672_v17, %v9676_v18 }
 0x891   : > { %v9087_v53 = vpop.f32.mrf.mxu1  ;;  %v9048_v41 = vpop.f32.mrf.mxu0  ;;  %12511 = vmatprep.subr.bf16.mxu1 %v15424_v30  ;;  %v9664_v30 = vld [vmem:[%s16890_s19 + $0xc40] sm:$0xff]  ;;  %v15256_v1 = vcombine.high %v9536_v46, %v9540_v26 }
 0x892   : > { %v18395_v25 = vadd.f32 %v9087_v53, %v9047_v31  ;;  %12471 = vmatpush1.bf16.msra.mxu0 %v15295_v33  ;;  %v9668_v22 = vld [vmem:[%s16890_s19 + $0xc60] sm:$0xff] }
 0x893   : > { %v9089_v55 = vpop.f32.mrf.mxu1  ;;  %v9049_v20 = vpop.f32.mrf.mxu0  ;;  %12472 = vmatprep.subr.bf16.mxu0 %v15288_v28  ;;  %v9528_v33 = vld [vmem:[%s16890_s19 + $0x800] sm:$0xff]  ;;  %v15384_v39 = vcombine.high %v9664_v30, %v9668_v22  ;;  %v15255_v28 = vcombine.low %v9536_v46, %v9540_v26  ;;  %v15383_v41 = vcombine.low %v9664_v30, %v9668_v22 }
 0x894   : > { %12512 = vmatpush1.bf16.msra.mxu1 %v15423_v48  ;;  %v9656_v31 = vld [vmem:[%s16890_s19 + $0xc00] sm:$0xff]  ;;  %v15248_v54 = vcombine.high %v9528_v33, %v9532_v49  ;;  %v15247_v55 = vcombine.low %v9528_v33, %v9532_v49 }
 0x895   : > { %v9090_v9 = vpop.f32.mrf.mxu1  ;;  %12513 = vmatprep.subr.bf16.mxu1 %v15416_v40  ;;  %v9660_v53 = vld [vmem:[%s16890_s19 + $0xc20] sm:$0xff] }
 0x896   : > { %12473 = vmatpush1.bf16.msra.mxu0 %v15287_v23  ;;  %v9648_v59 = vld [vmem:[%s16890_s19 + $0xbc0] sm:$0xff]  ;;  %v15376_v40 = vcombine.high %v9656_v31, %v9660_v53  ;;  %v15375_v9 = vcombine.low %v9656_v31, %v9660_v53 }
 0x897   : > { %12474 = vmatprep.subr.bf16.mxu0 %v15280_v3  ;;  %v9652_v48 = vld [vmem:[%s16890_s19 + $0xbe0] sm:$0xff] }
 0x898   : > { %12514 = vmatpush1.bf16.msra.mxu1 %v15415_v57  ;;  %v9776_v23 = vld [vmem:[%s16890_s19 + $0xfc0] sm:$0xff]  ;;  %v15368_v52 = vcombine.high %v9648_v59, %v9652_v48  ;;  %v15367_v24 = vcombine.low %v9648_v59, %v9652_v48 }
 0x899   : > { %12515 = vmatprep.subr.bf16.mxu1 %v15408_v60  ;;  %v9640_v20 = vld [vmem:[%s16890_s19 + $0xb80] sm:$0xff]  ;;  %v15496_v62 = vcombine.high %v9776_v23, %v9780_v7 }
 0x89a   : > { %12475 = vmatpush1.bf16.msra.mxu0 %v15279_v4  ;;  %v9644_v3 = vld [vmem:[%s16890_s19 + $0xba0] sm:$0xff] }
 0x89b   : > { %12476 = vmatprep.subr.bf16.mxu0 %v15272_v2  ;;  %v9768_v57 = vld [vmem:[%s16890_s19 + $0xf80] sm:$0xff]  ;;  %v15360_v4 = vcombine.high %v9640_v20, %v9644_v3  ;;  %v15495_v2 = vcombine.low %v9776_v23, %v9780_v7  ;;  %v15359_v51 = vcombine.low %v9640_v20, %v9644_v3 }
 0x89c   : > { %12516 = vmatpush1.bf16.msra.mxu1 %v15407_v10  ;;  %v9772_v60 = vld [vmem:[%s16890_s19 + $0xfa0] sm:$0xff] }
 0x89d   : > { %12517 = vmatprep.subr.bf16.mxu1 %v15400_v27  ;;  %v9632_v61 = vld [vmem:[%s16890_s19 + $0xb40] sm:$0xff]  ;;  %v15488_v38 = vcombine.high %v9768_v57, %v9772_v60 }
 0x89e   : > { %12477 = vmatpush1.bf16.msra.mxu0 %v15271_v16  ;;  %v9636_v5 = vld [vmem:[%s16890_s19 + $0xb60] sm:$0xff] }
 0x89f   : > { %12478 = vmatprep.subr.bf16.mxu0 %v15264_v63  ;;  %v9760_v10 = vld [vmem:[%s16890_s19 + $0xf40] sm:$0xff]  ;;  %v15352_v16 = vcombine.high %v9632_v61, %v9636_v5  ;;  %v15487_v63 = vcombine.low %v9768_v57, %v9772_v60  ;;  %v15351_v26 = vcombine.low %v9632_v61, %v9636_v5 }
 0x8a0   : > { %12518 = vmatpush1.bf16.msra.mxu1 %v15399_v21  ;;  %v9764_v27 = vld [vmem:[%s16890_s19 + $0xf60] sm:$0xff] }
 0x8a1   : > { %12519 = vmatprep.subr.bf16.mxu1 %v15392_v36  ;;  %v9624_v17 = vld [vmem:[%s16890_s19 + $0xb00] sm:$0xff]  ;;  %v15480_v46 = vcombine.high %v9760_v10, %v9764_v27 }
 0x8a2   : > { %12479 = vmatpush1.bf16.msra.mxu0 %v15263_v42  ;;  %v9628_v18 = vld [vmem:[%s16890_s19 + $0xb20] sm:$0xff] }
 0x8a3   : > { %12480 = vmatprep.subr.bf16.mxu0 %v15256_v1  ;;  %v9752_v21 = vld [vmem:[%s16890_s19 + $0xf00] sm:$0xff]  ;;  %v15344_v42 = vcombine.high %v9624_v17, %v9628_v18  ;;  %v15479_v1 = vcombine.low %v9760_v10, %v9764_v27  ;;  %v15343_v49 = vcombine.low %v9624_v17, %v9628_v18  ;;  %v9329_v10 = vld [vmem:[%s16890_s19 + $0x1c8] sm:$0xff] }
 0x8a4   : > { %12520 = vmatpush1.bf16.msra.mxu1 %v15391_v13  ;;  %v9756_v36 = vld [vmem:[%s16890_s19 + $0xf20] sm:$0xff]  ;;  %v9333_v27 = vld [vmem:[%s16890_s19 + $0x1e8] sm:$0xff] }
 0x8a5   : > { %12521 = vmatprep.subr.bf16.mxu1 %v15384_v39  ;;  %v9616_v30 = vld [vmem:[%s16890_s19 + $0xac0] sm:$0xff]  ;;  %v15472_v33 = vcombine.high %v9752_v21, %v9756_v36 }
 0x8a6   : > { %12481 = vmatpush1.bf16.msra.mxu0 %v15255_v28  ;;  %v9620_v22 = vld [vmem:[%s16890_s19 + $0xae0] sm:$0xff] }
 0x8a7   : > { %12482 = vmatprep.subr.bf16.mxu0 %v15248_v54  ;;  %v9744_v13 = vld [vmem:[%s16890_s19 + $0xec0] sm:$0xff]  ;;  %v15336_v28 = vcombine.high %v9616_v30, %v9620_v22  ;;  %v15471_v54 = vcombine.low %v9752_v21, %v9756_v36  ;;  %v15335_v48 = vcombine.low %v9616_v30, %v9620_v22  ;;  %v9325_v21 = vld [vmem:[%s16890_s19 + $0x1a8] sm:$0xff]  ;;  %v15049_v30 = vcombine.low %v9329_v10, %v9333_v27 }
 0x8a8   : > { %12522 = vmatpush1.bf16.msra.mxu1 %v15383_v41  ;;  %v9748_v39 = vld [vmem:[%s16890_s19 + $0xee0] sm:$0xff] }
 0x8a9   : > { %12523 = vmatprep.subr.bf16.mxu1 %v15376_v40  ;;  %v9608_v31 = vld [vmem:[%s16890_s19 + $0xa80] sm:$0xff]  ;;  %v15464_v59 = vcombine.high %v9744_v13, %v9748_v39 }
 0x8aa   : > { %12483 = vmatpush1.bf16.msra.mxu0 %v15247_v55  ;;  %v9612_v53 = vld [vmem:[%s16890_s19 + $0xaa0] sm:$0xff] }
 0x8ab   : > { %12484 = vmatprep.subr.bf16.mxu0 %v15368_v52  ;;  %v9736_v41 = vld [vmem:[%s16890_s19 + $0xe80] sm:$0xff]  ;;  %v15328_v55 = vcombine.high %v9608_v31, %v9612_v53  ;;  %v15463_v52 = vcombine.low %v9744_v13, %v9748_v39  ;;  %v15327_v3 = vcombine.low %v9608_v31, %v9612_v53 }
 0x8ac   : > { %12524 = vmatpush1.bf16.msra.mxu1 %v15375_v9  ;;  %v9740_v40 = vld [vmem:[%s16890_s19 + $0xea0] sm:$0xff] }
 0x8ad   : > { %12525 = vmatprep.subr.bf16.mxu1 %v15496_v62  ;;  %v9600_v23 = vld [vmem:[%s16890_s19 + $0xa40] sm:$0xff]  ;;  %v15456_v20 = vcombine.high %v9736_v41, %v9740_v40 }
 0x8ae   : > { %12485 = vmatpush2.bf16.msra.mxu0 %v15367_v24  ;;  %v9604_v7 = vld [vmem:[%s16890_s19 + $0xa60] sm:$0xff] }
 0x8af   : > { %12486 = vmatprep.subr.bf16.mxu0 %v15360_v4  ;;  %v9728_v9 = vld [vmem:[%s16890_s19 + $0xe40] sm:$0xff]  ;;  %v15320_v24 = vcombine.high %v9600_v23, %v9604_v7  ;;  %v15455_v4 = vcombine.low %v9736_v41, %v9740_v40  ;;  %v15319_v5 = vcombine.low %v9600_v23, %v9604_v7  ;;  %v9309_v41 = vld [vmem:[%s16890_s19 + $0x128] sm:$0xff] }
 0x8b0   : > { %12526 = vmatpush2.bf16.msra.mxu1 %v15495_v2  ;;  %v9732_v62 = vld [vmem:[%s16890_s19 + $0xe60] sm:$0xff] }
 0x8b1   : > { %12527 = vmatprep.subr.bf16.mxu1 %v15488_v38  ;;  %v9592_v57 = vld [vmem:[%s16890_s19 + $0xa00] sm:$0xff]  ;;  %v15448_v61 = vcombine.high %v9728_v9, %v9732_v62 }
 0x8b2   : > { %12487 = vmatpush2.bf16.msra.mxu0 %v15359_v51  ;;  %v9596_v60 = vld [vmem:[%s16890_s19 + $0xa20] sm:$0xff] }
 0x8b3   : > { %12488 = vmatprep.subr.bf16.mxu0 %v15352_v16  ;;  %v9720_v2 = vld [vmem:[%s16890_s19 + $0xe00] sm:$0xff]  ;;  %v15312_v51 = vcombine.high %v9592_v57, %v9596_v60  ;;  %v15447_v16 = vcombine.low %v9728_v9, %v9732_v62  ;;  %v15311_v18 = vcombine.low %v9592_v57, %v9596_v60  ;;  %v9293_v57 = vld [vmem:[%s16890_s19 + $0xa8] sm:$0xff] }
 0x8b4   : > { %12528 = vmatpush2.bf16.msra.mxu1 %v15487_v63  ;;  %v9724_v38 = vld [vmem:[%s16890_s19 + $0xe20] sm:$0xff]  ;;  %v9260_v63 = vmax.f32 %v18221_v35, 0.0 }
 0x8b5   : > { %12529 = vmatprep.subr.bf16.mxu1 %v15480_v46  ;;  %v15440_v17 = vcombine.high %v9720_v2, %v9724_v38  ;;  %v15050_v46 = vcombine.high %v9329_v10, %v9333_v27  ;;  %v15439_v36 = vcombine.low %v9720_v2, %v9724_v38  ;;  %v9277_v10 = vld [vmem:[%s16890_s19 + $0x28] sm:$0xff] }
 0x8b6   : > { %12489 = vmatpush2.bf16.msra.mxu0 %v15351_v26  ;;  %v9321_v26 = vld [vmem:[%s16890_s19 + $0x188] sm:$0xff]  ;;  %v18462_v22 = vpack.c.bf16 %v9260_v63, %v9260_v63 }
 0x8b7   : > { %12490 = vmatprep.subr.bf16.mxu0 %v15344_v42  ;;  %v15178_v42 = vcombine.high %v18404_v6, %v18407_v8 }
 0x8b8   : > { %12530 = vmatpush2.bf16.msra.mxu1 %v15479_v1  ;;  %v15042_v1 = vcombine.high %v9321_v26, %v9325_v21 }
 0x8b9   : > { %12531 = vmatprep.subr.bf16.mxu1 %v15472_v33  ;;  %v9313_v33 = vld [vmem:[%s16890_s19 + $0x148] sm:$0xff] }
 0x8ba   : > { %12491 = vmatpush2.bf16.msra.mxu0 %v15343_v49  ;;  %v9317_v49 = vld [vmem:[%s16890_s19 + $0x168] sm:$0xff] }
 0x8bb   : > { %12492 = vmatprep.subr.bf16.mxu0 %v15336_v28  ;;  %v15041_v28 = vcombine.low %v9321_v26, %v9325_v21  ;;  %v15034_v53 = vcombine.high %v9313_v33, %v9317_v49  ;;  %v9385_v26 = vld [vmem:[%s16890_s19 + $0x388] sm:$0xff] }
 0x8bc   : > { %12532 = vmatpush2.bf16.msra.mxu1 %v15471_v54  ;;  %v9389_v21 = vld [vmem:[%s16890_s19 + $0x3a8] sm:$0xff] }
 0x8bd   : > { %12533 = vmatprep.subr.bf16.mxu1 %v15464_v59 }
 0x8be   : > { %12493 = vmatpush2.bf16.msra.mxu0 %v15335_v48  ;;  %v9305_v48 = vld [vmem:[%s16890_s19 + $0x108] sm:$0xff] }
 0x8bf   : > { %12494 = vmatprep.subr.bf16.mxu0 %v15328_v55  ;;  %v15033_v55 = vcombine.low %v9313_v33, %v9317_v49  ;;  %v15026_v7 = vcombine.high %v9305_v48, %v9309_v41  ;;  %v15025_v9 = vcombine.low %v9305_v48, %v9309_v41  ;;  %v15105_v33 = vcombine.low %v9385_v26, %v9389_v21  ;;  %v9365_v48 = vld [vmem:[%s16890_s19 + $0x2e8] sm:$0xff] }
 0x8c0   : > { %12534 = vmatpush2.bf16.msra.mxu1 %v15463_v52 }
 0x8c1   : > { %12535 = vmatprep.subr.bf16.mxu1 %v15456_v20  ;;  %v9297_v20 = vld [vmem:[%s16890_s19 + $0xc8] sm:$0xff] }
 0x8c2   : > { %12495 = vmatpush2.bf16.msra.mxu0 %v15327_v3  ;;  %v9301_v3 = vld [vmem:[%s16890_s19 + $0xe8] sm:$0xff] }
 0x8c3   : > { %12496 = vmatprep.subr.bf16.mxu0 %v15320_v24  ;;  %v15018_v62 = vcombine.high %v9297_v20, %v9301_v3  ;;  %v9289_v24 = vld [vmem:[%s16890_s19 + $0x88] sm:$0xff]  ;;  %v15017_v60 = vcombine.low %v9297_v20, %v9301_v3 }
 0x8c4   : > { %12536 = vmatpush2.bf16.msra.mxu1 %v15455_v4  ;;  %v15010_v4 = vcombine.high %v9289_v24, %v9293_v57  ;;  %v15009_v2 = vcombine.low %v9289_v24, %v9293_v57  ;;  %v9349_v20 = vld [vmem:[%s16890_s19 + $0x268] sm:$0xff] }
 0x8c5   : > { %12537 = vmatprep.subr.bf16.mxu1 %v15448_v61  ;;  %v9281_v61 = vld [vmem:[%s16890_s19 + $0x48] sm:$0xff] }
 0x8c6   : > { %12497 = vmatpush2.bf16.msra.mxu0 %v15319_v5  ;;  %v9285_v5 = vld [vmem:[%s16890_s19 + $0x68] sm:$0xff] }
 0x8c7   : > { %12498 = vmatprep.subr.bf16.mxu0 %v15312_v51  ;;  %v15002_v38 = vcombine.high %v9281_v61, %v9285_v5  ;;  %v9273_v51 = vld [vmem:[%s16890_s19 + $0x8] sm:$0xff]  ;;  %v15001_v27 = vcombine.low %v9281_v61, %v9285_v5 }
 0x8c8   : > { %12538 = vmatpush2.bf16.msra.mxu1 %v15447_v16  ;;  %v14994_v16 = vcombine.high %v9273_v51, %v9277_v10  ;;  %v14993_v63 = vcombine.low %v9273_v51, %v9277_v10  ;;  %v9341_v24 = vld [vmem:[%s16890_s19 + $0x228] sm:$0xff] }
 0x8c9   : > { %12539 = vmatprep.subr.bf16.mxu1 %v15440_v17  ;;  %v9393_v17 = vld [vmem:[%s16890_s19 + $0x3c8] sm:$0xff] }
 0x8ca   : > { %12499 = vmatpush2.bf16.msra.mxu0 %v15311_v18  ;;  %v9397_v18 = vld [vmem:[%s16890_s19 + $0x3e8] sm:$0xff] }
 0x8cb   : > { %12550 = vmatprep.subr.bf16.mxu0 %v15050_v46  ;;  %v15114_v46 = vcombine.high %v9393_v17, %v9397_v18  ;;  %v9589_v61 = vld [vmem:[%s16890_s19 + $0x9e8] sm:$0xff] }
 0x8cc   : > { %12540 = vmatpush2.bf16.msra.mxu1 %v15439_v36  ;;  %v15113_v36 = vcombine.low %v9393_v17, %v9397_v18  ;;  %v9581_v51 = vld [vmem:[%s16890_s19 + $0x9a8] sm:$0xff] }
 0x8cd   : > { %v9126_v35 = vpop.f32.mrf.mxu0  ;;  %12501 = vmatmul.mubr.bf16.vlgmr.msra.gmra.mxu0 %v18462_v22  ;;  %12591 = vmatprep.subr.bf16.mxu1 %v15178_v42  ;;  %v15106_v42 = vcombine.high %v9385_v26, %v9389_v21  ;;  %v9569_v17 = vld [vmem:[%s16890_s19 + $0x948] sm:$0xff] }
 0x8ce   : > { %v9127_v13 = vadd.f32 %v9126_v35, %v18390_v43  ;;  %12551 = vmatpush1.bf16.msra.mxu0 %v15049_v30  ;;  %12582 = vmatprep.mubr.bf16.mxu0 %v18299_v47  ;;  %v9377_v30 = vld [vmem:[%s16890_s19 + $0x348] sm:$0xff] }
 0x8cf   : > { %v9167_v39 = vpop.f32.mrf.mxu1  ;;  %v18469_v31 = vpop.f32.mrf.mxu0  ;;  %12552 = vmatprep.subr.bf16.mxu0 %v15042_v1  ;;  %v9381_v1 = vld [vmem:[%s16890_s19 + $0x368] sm:$0xff] }
 0x8d0   : > { %v18471_v54 = vadd.f32 %v9167_v39, %v9127_v13  ;;  %v15098_v49 = vcombine.high %v9377_v30, %v9381_v1  ;;  %v9369_v35 = vld [vmem:[%s16890_s19 + $0x308] sm:$0xff]  ;;  %v15097_v39 = vcombine.low %v9377_v30, %v9381_v1  ;;  %v9129_v10 = vadd.f32 %v18469_v31, %v18395_v25 }
 0x8d1   : > { %v18473_v59 = vpop.f32.mrf.mxu1  ;;  %v9130_v43 = vpop.f32.mrf.mxu0  ;;  %v9373_v13 = vld [vmem:[%s16890_s19 + $0x328] sm:$0xff] }
 0x8d2   : > { %12553 = vmatpush1.bf16.msra.mxu0 %v15041_v28  ;;  %v15090_v28 = vcombine.high %v9369_v35, %v9373_v13  ;;  %v15089_v41 = vcombine.low %v9369_v35, %v9373_v13  ;;  %v9573_v18 = vld [vmem:[%s16890_s19 + $0x968] sm:$0xff] }
 0x8d3   : > { %v9171_v40 = vpop.f32.mrf.mxu1  ;;  %v9131_v23 = vpop.f32.mrf.mxu0  ;;  %12554 = vmatprep.subr.bf16.mxu0 %v15034_v53  ;;  %v9361_v53 = vld [vmem:[%s16890_s19 + $0x2c8] sm:$0xff]  ;;  %v15289_v13 = vcombine.low %v9569_v17, %v9573_v18 }
 0x8d4   : > { %v15082_v43 = vcombine.high %v9361_v53, %v9365_v48  ;;  %v9353_v40 = vld [vmem:[%s16890_s19 + $0x288] sm:$0xff]  ;;  %v15081_v23 = vcombine.low %v9361_v53, %v9365_v48 }
 0x8d5   : > { %v9172_v52 = vpop.f32.mrf.mxu1 }
 0x8d6   : > { %12555 = vmatpush1.bf16.msra.mxu0 %v15033_v55  ;;  %v9357_v55 = vld [vmem:[%s16890_s19 + $0x2a8] sm:$0xff] }
 0x8d7   : > { %12556 = vmatprep.subr.bf16.mxu0 %v15026_v7  ;;  %v15074_v7 = vcombine.high %v9353_v40, %v9357_v55  ;;  %v9345_v52 = vld [vmem:[%s16890_s19 + $0x248] sm:$0xff]  ;;  %v15073_v3 = vcombine.low %v9353_v40, %v9357_v55 }
 0x8d8   : > { %v15065_v57 = vcombine.low %v9345_v52, %v9349_v20  ;;  %v9453_v40 = vld [vmem:[%s16890_s19 + $0x5a8] sm:$0xff] }
 0x8d9   : > { %v9553_v55 = vld [vmem:[%s16890_s19 + $0x8c8] sm:$0xff] }
 0x8da   : > { %12557 = vmatpush1.bf16.msra.mxu0 %v15025_v9  ;;  %v15066_v9 = vcombine.high %v9345_v52, %v9349_v20 }
 0x8db   : > { %12558 = vmatprep.subr.bf16.mxu0 %v15018_v62  ;;  %v9337_v62 = vld [vmem:[%s16890_s19 + $0x208] sm:$0xff] }
 0x8dc   : > { %v15057_v5 = vcombine.low %v9337_v62, %v9341_v24 }
 0x8de   : > { %12559 = vmatpush1.bf16.msra.mxu0 %v15017_v60  ;;  %v15058_v60 = vcombine.high %v9337_v62, %v9341_v24  ;;  %v9441_v62 = vld [vmem:[%s16890_s19 + $0x548] sm:$0xff] }
 0x8df   : > { %12560 = vmatprep.subr.bf16.mxu0 %v15010_v4  ;;  %v9585_v4 = vld [vmem:[%s16890_s19 + $0x9c8] sm:$0xff] }
 0x8e0   : > { %v9445_v24 = vld [vmem:[%s16890_s19 + $0x568] sm:$0xff] }
 0x8e1   : > { %v15161_v6 = vcombine.low %v9441_v62, %v9445_v24 }
 0x8e2   : > { %12561 = vmatpush1.bf16.msra.mxu0 %v15009_v2  ;;  %v15306_v2 = vcombine.high %v9585_v4, %v9589_v61 }
 0x8e3   : > { %12562 = vmatprep.subr.bf16.mxu0 %v15002_v38  ;;  %v9577_v38 = vld [vmem:[%s16890_s19 + $0x988] sm:$0xff] }
 0x8e4   : > { %v15297_v25 = vcombine.low %v9577_v38, %v9581_v51 }
 0x8e6   : > { %12563 = vmatpush1.bf16.msra.mxu0 %v15001_v27  ;;  %v15305_v27 = vcombine.low %v9585_v4, %v9589_v61 }
 0x8e7   : > { %12564 = vmatprep.subr.bf16.mxu0 %v14994_v16  ;;  %v15298_v16 = vcombine.high %v9577_v38, %v9581_v51  ;;  %v9433_v38 = vld [vmem:[%s16890_s19 + $0x508] sm:$0xff] }
 0x8e8   : > { %v9437_v51 = vld [vmem:[%s16890_s19 + $0x528] sm:$0xff] }
 0x8ea   : > { %12565 = vmatpush1.bf16.msra.mxu0 %v14993_v63 }
 0x8eb   : > { %12566 = vmatprep.subr.bf16.mxu0 %v15114_v46  ;;  %v9170_v46 = vadd.f32 %v18473_v59, %v9129_v10  ;;  %v9537_v10 = vld [vmem:[%s16890_s19 + $0x848] sm:$0xff] }
 0x8ee   : > { %12567 = vmatpush2.bf16.msra.mxu0 %v15113_v36  ;;  %v15290_v36 = vcombine.high %v9569_v17, %v9573_v18  ;;  %v9425_v17 = vld [vmem:[%s16890_s19 + $0x4c8] sm:$0xff] }
 0x8ef   : > { %12568 = vmatprep.subr.bf16.mxu0 %v15106_v42  ;;  %v9429_v18 = vld [vmem:[%s16890_s19 + $0x4e8] sm:$0xff] }
 0x8f2   : > { %12569 = vmatpush2.bf16.msra.mxu0 %v15105_v33  ;;  %v9561_v33 = vld [vmem:[%s16890_s19 + $0x908] sm:$0xff] }
 0x8f3   : > { %12570 = vmatprep.subr.bf16.mxu0 %v15098_v49  ;;  %v9565_v49 = vld [vmem:[%s16890_s19 + $0x928] sm:$0xff] }
 0x8f4   : > { %v15282_v53 = vcombine.high %v9561_v33, %v9565_v49  ;;  %v15281_v20 = vcombine.low %v9561_v33, %v9565_v49  ;;  %v15145_v33 = vcombine.low %v9425_v17, %v9429_v18 }
 0x8f6   : > { %12571 = vmatpush2.bf16.msra.mxu0 %v15097_v39 }
 0x8f7   : > { %12572 = vmatprep.subr.bf16.mxu0 %v15090_v28 }
 0x8fa   : > { %12573 = vmatpush2.bf16.msra.mxu0 %v15089_v41 }
 0x8fb   : > { %12574 = vmatprep.subr.bf16.mxu0 %v15082_v43  ;;  %v9449_v43 = vld [vmem:[%s16890_s19 + $0x588] sm:$0xff] }
 0x8fc   : > { %v15169_v4 = vcombine.low %v9449_v43, %v9453_v40 }
 0x8fe   : > { %12575 = vmatpush2.bf16.msra.mxu0 %v15081_v23  ;;  %v9557_v23 = vld [vmem:[%s16890_s19 + $0x8e8] sm:$0xff] }
 0x8ff   : > { %12576 = vmatprep.subr.bf16.mxu0 %v15074_v7  ;;  %v15273_v61 = vcombine.low %v9553_v55, %v9557_v23 }
 0x902   : > { %12577 = vmatpush2.bf16.msra.mxu0 %v15073_v3  ;;  %v15170_v3 = vcombine.high %v9449_v43, %v9453_v40  ;;  %v9401_v40 = vld [vmem:[%s16890_s19 + $0x408] sm:$0xff] }
 0x903   : > { %12578 = vmatprep.subr.bf16.mxu0 %v15066_v9  ;;  %v15274_v9 = vcombine.high %v9553_v55, %v9557_v23  ;;  %v9405_v55 = vld [vmem:[%s16890_s19 + $0x428] sm:$0xff] }
 0x904   : > { %v9633_v23 = vld [vmem:[%s16890_s19 + $0xb48] sm:$0xff] }
 0x906   : > { %12579 = vmatpush2.bf16.msra.mxu0 %v15065_v57  ;;  %v9545_v57 = vld [vmem:[%s16890_s19 + $0x888] sm:$0xff] }
 0x907   : > { %12580 = vmatprep.subr.bf16.mxu0 %v15058_v60  ;;  %v9549_v60 = vld [vmem:[%s16890_s19 + $0x8a8] sm:$0xff] }
 0x908   : > { %v15265_v8 = vcombine.low %v9545_v57, %v9549_v60 }
 0x90a   : > { %12581 = vmatpush2.bf16.msra.mxu0 %v15057_v5  ;;  %v15162_v5 = vcombine.high %v9441_v62, %v9445_v24  ;;  %v15122_v62 = vcombine.high %v9401_v40, %v9405_v55 }
 0x90b   : > { %12632 = vmatprep.subr.bf16.mxu0 %v15306_v2  ;;  %v15266_v2 = vcombine.high %v9545_v57, %v9549_v60  ;;  %v9521_v57 = vld [vmem:[%s16890_s19 + $0x7c8] sm:$0xff] }
 0x90c   : > { %v9525_v60 = vld [vmem:[%s16890_s19 + $0x7e8] sm:$0xff] }
 0x90d   : > { %v9208_v63 = vpop.f32.mrf.mxu0  ;;  %12583 = vmatmul.mubr.bf16.vlgmr.msra.gmra.mxu0 %v18376_v37 }
 0x90e   : > { %v9209_v26 = vadd.f32 %v9208_v63, %v18471_v54  ;;  %12633 = vmatpush1.bf16.msra.mxu0 %v15305_v27  ;;  %12664 = vmatprep.mubr.bf16.mxu0 %v18382_v45  ;;  %v9541_v27 = vld [vmem:[%s16890_s19 + $0x868] sm:$0xff] }
 0x90f   : > { %v9249_v21 = vpop.f32.mrf.mxu1  ;;  %v9210_v31 = vpop.f32.mrf.mxu0  ;;  %12634 = vmatprep.subr.bf16.mxu0 %v15298_v16  ;;  %v15258_v16 = vcombine.high %v9537_v10, %v9541_v27  ;;  %v9529_v63 = vld [vmem:[%s16890_s19 + $0x808] sm:$0xff] }
 0x910   : > { %v9250_v42 = vadd.f32 %v9249_v21, %v9209_v26  ;;  %v9211_v30 = vadd.f32 %v9210_v31, %v9170_v46  ;;  %v9533_v46 = vld [vmem:[%s16890_s19 + $0x828] sm:$0xff]  ;;  %v15153_v26 = vcombine.low %v9433_v38, %v9437_v51  ;;  %v15257_v21 = vcombine.low %v9537_v10, %v9541_v27 }
 0x911   : > { %v9251_v1 = vpop.f32.mrf.mxu1  ;;  %v9212_v59 = vpop.f32.mrf.mxu0  ;;  %v15250_v31 = vcombine.high %v9529_v63, %v9533_v46  ;;  %v15249_v49 = vcombine.low %v9529_v63, %v9533_v46  ;;  %v9513_v10 = vld [vmem:[%s16890_s19 + $0x788] sm:$0xff] }
 0x912   : > { %v9252_v35 = vadd.f32 %v9251_v1, %v9211_v30  ;;  %12635 = vmatpush1.bf16.msra.mxu0 %v15297_v25  ;;  %v9262_v39 = vmax.f32 %v9250_v42, 0.0  ;;  %v15146_v25 = vcombine.high %v9425_v17, %v9429_v18  ;;  %v9421_v42 = vld [vmem:[%s16890_s19 + $0x4a8] sm:$0xff] }
 0x913   : > { %v9253_v54 = vpop.f32.mrf.mxu1  ;;  %v9213_v28 = vpop.f32.mrf.mxu0  ;;  %12636 = vmatprep.subr.bf16.mxu0 %v15290_v36  ;;  %v9417_v36 = vld [vmem:[%s16890_s19 + $0x488] sm:$0xff] }
 0x914   : > { %v9263_v48 = vmax.f32 %v9252_v35, 0.0  ;;  %v18521_v52 = vpack.c.bf16 %v9262_v39, %v9262_v39  ;;  %v9649_v30 = vld [vmem:[%s16890_s19 + $0xbc8] sm:$0xff]  ;;  %v15138_v59 = vcombine.high %v9417_v36, %v9421_v42 }
 0x915   : > { %v9254_v41 = vpop.f32.mrf.mxu1  ;;  %v9653_v1 = vld [vmem:[%s16890_s19 + $0xbe8] sm:$0xff] }
 0x916   : > { %v18519_v7 = vpack.c.bf16 %v9263_v48, %v9263_v48  ;;  %12637 = vmatpush1.bf16.msra.mxu0 %v15289_v13  ;;  %v15370_v35 = vcombine.high %v9649_v30, %v9653_v1  ;;  %v9409_v54 = vld [vmem:[%s16890_s19 + $0x448] sm:$0xff]  ;;  %v15369_v48 = vcombine.low %v9649_v30, %v9653_v1 }
 0x917   : > { %12638 = vmatprep.subr.bf16.mxu0 %v15282_v53  ;;  %v9413_v13 = vld [vmem:[%s16890_s19 + $0x468] sm:$0xff]  ;;  %v15137_v53 = vcombine.low %v9417_v36, %v9421_v42 }
 0x918   : > { %12541 = vmatprep.mubr.bf16.mxu1 %v18519_v7  ;;  %v9641_v39 = vld [vmem:[%s16890_s19 + $0xb88] sm:$0xff]  ;;  %v15130_v41 = vcombine.high %v9409_v54, %v9413_v13 }
 0x919   : > { %12542 = vmatmul.mubr.bf16.vlgmr.msra.gmra.mxu1 %v18521_v52  ;;  %v9645_v28 = vld [vmem:[%s16890_s19 + $0xba8] sm:$0xff] }
 0x91a   : > { %12592 = vmatpush1.bf16.msra.mxu1 %v15177_v14  ;;  %12623 = vmatprep.mubr.bf16.mxu1 %v18304_v11  ;;  %v15154_v14 = vcombine.high %v9433_v38, %v9437_v51  ;;  %v15362_v43 = vcombine.high %v9641_v39, %v9645_v28  ;;  %v15242_v38 = vcombine.high %v9521_v57, %v9525_v60  ;;  %v9517_v27 = vld [vmem:[%s16890_s19 + $0x7a8] sm:$0xff] }
 0x91b   : > { %12639 = vmatpush1.bf16.msra.mxu0 %v15281_v20  ;;  %12593 = vmatprep.subr.bf16.mxu1 %v15170_v3  ;;  %v9637_v20 = vld [vmem:[%s16890_s19 + $0xb68] sm:$0xff]  ;;  %v15129_v3 = vcombine.low %v9409_v54, %v9413_v13  ;;  %v15234_v17 = vcombine.high %v9513_v10, %v9517_v27 }
 0x91c   : > { %12640 = vmatprep.subr.bf16.mxu0 %v15274_v9  ;;  %v15361_v9 = vcombine.low %v9641_v39, %v9645_v28  ;;  %v15354_v24 = vcombine.high %v9633_v23, %v9637_v20  ;;  %v9505_v63 = vld [vmem:[%s16890_s19 + $0x748] sm:$0xff] }
 0x91d   : > { %v9509_v46 = vld [vmem:[%s16890_s19 + $0x768] sm:$0xff] }
 0x91e   : > { %12594 = vmatpush1.bf16.msra.mxu1 %v15169_v4  ;;  %v9625_v4 = vld [vmem:[%s16890_s19 + $0xb08] sm:$0xff]  ;;  %v15226_v36 = vcombine.high %v9505_v63, %v9509_v46 }
 0x91f   : > { %12641 = vmatpush1.bf16.msra.mxu0 %v15273_v61  ;;  %12595 = vmatprep.subr.bf16.mxu1 %v15162_v5  ;;  %v9629_v61 = vld [vmem:[%s16890_s19 + $0xb28] sm:$0xff]  ;;  %v15121_v5 = vcombine.low %v9401_v40, %v9405_v55 }
 0x920   : > { %12642 = vmatprep.subr.bf16.mxu0 %v15266_v2  ;;  %v15353_v2 = vcombine.low %v9633_v23, %v9637_v20  ;;  %v15346_v51 = vcombine.high %v9625_v4, %v9629_v61  ;;  %v9497_v30 = vld [vmem:[%s16890_s19 + $0x708] sm:$0xff] }
 0x921   : > { %v9501_v1 = vld [vmem:[%s16890_s19 + $0x728] sm:$0xff] }
 0x922   : > { %12596 = vmatpush1.bf16.msra.mxu1 %v15161_v6  ;;  %v9617_v6 = vld [vmem:[%s16890_s19 + $0xac8] sm:$0xff]  ;;  %v15218_v54 = vcombine.high %v9497_v30, %v9501_v1 }
 0x923   : > { %12643 = vmatpush1.bf16.msra.mxu0 %v15265_v8  ;;  %12597 = vmatprep.subr.bf16.mxu1 %v15154_v14  ;;  %v9621_v8 = vld [vmem:[%s16890_s19 + $0xae8] sm:$0xff]  ;;  %v15241_v14 = vcombine.low %v9521_v57, %v9525_v60 }
 0x924   : > { %12644 = vmatprep.subr.bf16.mxu0 %v15258_v16  ;;  %v15345_v16 = vcombine.low %v9625_v4, %v9629_v61  ;;  %v15338_v18 = vcombine.high %v9617_v6, %v9621_v8  ;;  %v9489_v39 = vld [vmem:[%s16890_s19 + $0x6c8] sm:$0xff] }
 0x925   : > { %v9493_v28 = vld [vmem:[%s16890_s19 + $0x6e8] sm:$0xff] }
 0x926   : > { %12598 = vmatpush1.bf16.msra.mxu1 %v15153_v26  ;;  %v9609_v26 = vld [vmem:[%s16890_s19 + $0xa88] sm:$0xff]  ;;  %v15210_v40 = vcombine.high %v9489_v39, %v9493_v28 }
 0x927   : > { %12645 = vmatpush1.bf16.msra.mxu0 %v15257_v21  ;;  %12599 = vmatprep.subr.bf16.mxu1 %v15146_v25  ;;  %v9613_v21 = vld [vmem:[%s16890_s19 + $0xaa8] sm:$0xff]  ;;  %v15233_v25 = vcombine.low %v9513_v10, %v9517_v27 }
 0x928   : > { %12646 = vmatprep.subr.bf16.mxu0 %v15250_v31  ;;  %v15337_v31 = vcombine.low %v9617_v6, %v9621_v8  ;;  %v15330_v42 = vcombine.high %v9609_v26, %v9613_v21  ;;  %v9481_v23 = vld [vmem:[%s16890_s19 + $0x688] sm:$0xff] }
 0x929   : > { %v9485_v20 = vld [vmem:[%s16890_s19 + $0x6a8] sm:$0xff] }
 0x92a   : > { %12600 = vmatpush1.bf16.msra.mxu1 %v15145_v33  ;;  %v9601_v33 = vld [vmem:[%s16890_s19 + $0xa48] sm:$0xff]  ;;  %v15202_v57 = vcombine.high %v9481_v23, %v9485_v20 }
 0x92b   : > { %12647 = vmatpush1.bf16.msra.mxu0 %v15249_v49  ;;  %12601 = vmatprep.subr.bf16.mxu1 %v15138_v59  ;;  %v9605_v49 = vld [vmem:[%s16890_s19 + $0xa68] sm:$0xff]  ;;  %v15225_v59 = vcombine.low %v9505_v63, %v9509_v46  ;;  %v9314_v63 = vld [vmem:[%s16890_s19 + $0x150] sm:$0xff] }
 0x92c   : > { %12648 = vmatprep.subr.bf16.mxu0 %v15370_v35  ;;  %v15329_v35 = vcombine.low %v9609_v26, %v9613_v21  ;;  %v15322_v13 = vcombine.high %v9601_v33, %v9605_v49  ;;  %v9784_v60 = vld [vmem:[%s16897_s29] sm:$0xff]  ;;  %v9318_v46 = vld [vmem:[%s16890_s19 + $0x170] sm:$0xff] }
 0x92d   : > { %v9473_v61 = vld [vmem:[%s16890_s19 + $0x648] sm:$0xff]  ;;  %v9789_v10 = vrot.slane %v9784_v60, %v2786_v0  ;;  %v9793_v6 = vrot.slane %v9784_v60, %v2790_v44 }
 0x92e   : > { %12602 = vmatpush1.bf16.msra.mxu1 %v15137_v53  ;;  %v9593_v53 = vld [vmem:[%s16890_s19 + $0xa08] sm:$0xff] }
 0x92f   : > { %12649 = vmatpush2.bf16.msra.mxu0 %v15369_v48  ;;  %12603 = vmatprep.subr.bf16.mxu1 %v15130_v41  ;;  %v9597_v48 = vld [vmem:[%s16890_s19 + $0xa28] sm:$0xff]  ;;  %v15217_v41 = vcombine.low %v9497_v30, %v9501_v1  ;;  %v15036_v1 = vcombine.high %v9314_v63, %v9318_v46 }
 0x930   : > { %12650 = vmatprep.subr.bf16.mxu0 %v15362_v43  ;;  %v15321_v43 = vcombine.low %v9601_v33, %v9605_v49  ;;  %v15314_v55 = vcombine.high %v9593_v53, %v9597_v48  ;;  %v9713_v33 = vld [vmem:[%s16890_s19 + $0xdc8] sm:$0xff] }
 0x931   : > { %v9717_v49 = vld [vmem:[%s16890_s19 + $0xde8] sm:$0xff] }
 0x932   : > { %12604 = vmatpush1.bf16.msra.mxu1 %v15129_v3  ;;  %v9330_v3 = vld [vmem:[%s16890_s19 + $0x1d0] sm:$0xff]  ;;  %v9697_v60 = vld [vmem:[%s16890_s19 + $0xd48] sm:$0xff] }
 0x933   : > { %12651 = vmatpush2.bf16.msra.mxu0 %v15361_v9  ;;  %12605 = vmatprep.subr.bf16.mxu1 %v15122_v62  ;;  %v9334_v9 = vld [vmem:[%s16890_s19 + $0x1f0] sm:$0xff]  ;;  %v15209_v62 = vcombine.low %v9489_v39, %v9493_v28 }
 0x934   : > { %12652 = vmatprep.subr.bf16.mxu0 %v15354_v24  ;;  %v15313_v24 = vcombine.low %v9593_v53, %v9597_v48  ;;  %v15052_v4 = vcombine.high %v9330_v3, %v9334_v9  ;;  %v15051_v27 = vcombine.low %v9330_v3, %v9334_v9  ;;  %v15035_v48 = vcombine.low %v9314_v63, %v9318_v46  ;;  %v9302_v3 = vld [vmem:[%s16890_s19 + $0xf0] sm:$0xff]  ;;  %v9681_v46 = vld [vmem:[%s16890_s19 + $0xcc8] sm:$0xff] }
 0x935   : > { %v15433_v9 = vcombine.low %v9713_v33, %v9717_v49 }
 0x936   : > { %12606 = vmatpush1.bf16.msra.mxu1 %v15121_v5  ;;  %v9477_v5 = vld [vmem:[%s16890_s19 + $0x668] sm:$0xff] }
 0x937   : > { %12653 = vmatpush2.bf16.msra.mxu0 %v15353_v2  ;;  %12607 = vmatprep.subr.bf16.mxu1 %v15242_v38  ;;  %v9322_v2 = vld [vmem:[%s16890_s19 + $0x190] sm:$0xff]  ;;  %v15194_v8 = vcombine.high %v9473_v61, %v9477_v5  ;;  %v15193_v0 = vcombine.low %v9473_v61, %v9477_v5 }
 0x938   : > { %12654 = vmatprep.subr.bf16.mxu0 %v15346_v51  ;;  %v9326_v38 = vld [vmem:[%s16890_s19 + $0x1b0] sm:$0xff]  ;;  %v15201_v51 = vcombine.low %v9481_v23, %v9485_v20  ;;  %v9709_v23 = vld [vmem:[%s16890_s19 + $0xda8] sm:$0xff] }
 0x939   : > { %v9298_v20 = vld [vmem:[%s16890_s19 + $0xd0] sm:$0xff] }
 0x93a   : > { %12608 = vmatpush2.bf16.msra.mxu1 %v15241_v14  ;;  %v15044_v14 = vcombine.high %v9322_v2, %v9326_v38  ;;  %v9290_v61 = vld [vmem:[%s16890_s19 + $0x90] sm:$0xff] }
 0x93b   : > { %12655 = vmatpush2.bf16.msra.mxu0 %v15345_v16  ;;  %12609 = vmatprep.subr.bf16.mxu1 %v15234_v17  ;;  %v9465_v16 = vld [vmem:[%s16890_s19 + $0x608] sm:$0xff]  ;;  %v9294_v5 = vld [vmem:[%s16890_s19 + $0xb0] sm:$0xff] }
 0x93c   : > { %12656 = vmatprep.subr.bf16.mxu0 %v15338_v18  ;;  %v9469_v17 = vld [vmem:[%s16890_s19 + $0x628] sm:$0xff] }
 0x93d   : > { %v15185_v28 = vcombine.low %v9465_v16, %v9469_v17 }
 0x93e   : > { %12610 = vmatpush2.bf16.msra.mxu1 %v15233_v25  ;;  %v15043_v25 = vcombine.low %v9322_v2, %v9326_v38  ;;  %v15019_v38 = vcombine.low %v9298_v20, %v9302_v3 }
 0x93f   : > { %12657 = vmatpush2.bf16.msra.mxu0 %v15337_v31  ;;  %12611 = vmatprep.subr.bf16.mxu1 %v15226_v36  ;;  %v15186_v31 = vcombine.high %v9465_v16, %v9469_v17  ;;  %v15011_v17 = vcombine.low %v9290_v61, %v9294_v5 }
 0x940   : > { %12658 = vmatprep.subr.bf16.mxu0 %v15330_v42 }
 0x942   : > { %12612 = vmatpush2.bf16.msra.mxu1 %v15225_v59 }
 0x943   : > { %12659 = vmatpush2.bf16.msra.mxu0 %v15329_v35  ;;  %12613 = vmatprep.subr.bf16.mxu1 %v15218_v54  ;;  %v9306_v35 = vld [vmem:[%s16890_s19 + $0x110] sm:$0xff] }
 0x944   : > { %12660 = vmatprep.subr.bf16.mxu0 %v15322_v13  ;;  %v9310_v54 = vld [vmem:[%s16890_s19 + $0x130] sm:$0xff] }
 0x946   : > { %12614 = vmatpush2.bf16.msra.mxu1 %v15217_v41  ;;  %v15434_v41 = vcombine.high %v9713_v33, %v9717_v49  ;;  %v9394_v33 = vld [vmem:[%s16890_s19 + $0x3d0] sm:$0xff] }
 0x947   : > { %12661 = vmatpush2.bf16.msra.mxu0 %v15321_v43  ;;  %12615 = vmatprep.subr.bf16.mxu1 %v15210_v40  ;;  %v15028_v40 = vcombine.high %v9306_v35, %v9310_v54  ;;  %v9398_v49 = vld [vmem:[%s16890_s19 + $0x3f0] sm:$0xff] }
 0x948   : > { %12662 = vmatprep.subr.bf16.mxu0 %v15314_v55  ;;  %v9705_v55 = vld [vmem:[%s16890_s19 + $0xd88] sm:$0xff] }
 0x949   : > { %v15425_v2 = vcombine.low %v9705_v55, %v9709_v23 }
 0x94a   : > { %12616 = vmatpush2.bf16.msra.mxu1 %v15209_v62  ;;  %v15027_v62 = vcombine.low %v9306_v35, %v9310_v54 }
 0x94b   : > { %12663 = vmatpush2.bf16.msra.mxu0 %v15313_v24  ;;  %12617 = vmatprep.subr.bf16.mxu1 %v15202_v57  ;;  %v15426_v24 = vcombine.high %v9705_v55, %v9709_v23  ;;  %v15020_v57 = vcombine.high %v9298_v20, %v9302_v3  ;;  %v9657_v20 = vld [vmem:[%s16890_s19 + $0xc08] sm:$0xff] }
 0x94c   : > { %12714 = vmatprep.subr.bf16.mxu0 %v15052_v4  ;;  %v9701_v4 = vld [vmem:[%s16890_s19 + $0xd68] sm:$0xff] }
 0x94d   : > { %v12420_v18 = vpop.f32.mrf.mxu0  ;;  %v15417_v16 = vcombine.low %v9697_v60, %v9701_v4  ;;  %v9661_v3 = vld [vmem:[%s16890_s19 + $0xc28] sm:$0xff] }
 0x94e   : > { %v12421_v26 = vadd.f32 %v12420_v18, %v9789_v10  ;;  %12618 = vmatpush2.bf16.msra.mxu1 %v15201_v51  ;;  %12665 = vmatmul.mubr.bf16.vlgmr.msra.gmra.mxu0 %v18462_v22  ;;  %v15418_v51 = vcombine.high %v9697_v60, %v9701_v4  ;;  %v15012_v10 = vcombine.high %v9290_v61, %v9294_v5  ;;  %v9777_v61 = vld [vmem:[%s16890_s19 + $0xfc8] sm:$0xff] }
 0x94f   : > { %v12461_v21 = vpop.f32.mrf.mxu1  ;;  %12715 = vmatpush1.bf16.msra.mxu0 %v15051_v27  ;;  %12746 = vmatprep.mubr.bf16.mxu0 %v18299_v47  ;;  %v12422_v44 = vpop.f32.mrf.mxu0  ;;  %v9689_v27 = vld [vmem:[%s16890_s19 + $0xd08] sm:$0xff]  ;;  %v15378_v60 = vcombine.high %v9657_v20, %v9661_v3 }
 0x950   : > { %v18592_v36 = vadd.f32 %v12461_v21, %v12421_v26  ;;  %v12423_v42 = vadd.f32 %v12422_v44, %v9793_v6  ;;  %12619 = vmatprep.subr.bf16.mxu1 %v15194_v8  ;;  %12716 = vmatprep.subr.bf16.mxu0 %v15044_v14  ;;  %v9693_v6 = vld [vmem:[%s16890_s19 + $0xd28] sm:$0xff]  ;;  %v9282_v8 = vld [vmem:[%s16890_s19 + $0x50] sm:$0xff] }
 0x951   : > { %v12463_v30 = vpop.f32.mrf.mxu1  ;;  %v12424_v59 = vpop.f32.mrf.mxu0  ;;  %v9286_v14 = vld [vmem:[%s16890_s19 + $0x70] sm:$0xff]  ;;  %v15410_v18 = vcombine.high %v9689_v27, %v9693_v6  ;;  %v9685_v26 = vld [vmem:[%s16890_s19 + $0xce8] sm:$0xff]  ;;  %v15409_v44 = vcombine.low %v9689_v27, %v9693_v6 }
 0x952   : > { %v18598_v13 = vadd.f32 %v12463_v30, %v12423_v42  ;;  %12620 = vmatpush2.bf16.msra.mxu1 %v15193_v0  ;;  %v15004_v63 = vcombine.high %v9282_v8, %v9286_v14  ;;  %v9274_v21 = vld [vmem:[%s16890_s19 + $0x10] sm:$0xff]  ;;  %v9673_v30 = vld [vmem:[%s16890_s19 + $0xc88] sm:$0xff]  ;;  %v15401_v59 = vcombine.low %v9681_v46, %v9685_v26 }
 0x953   : > { %v12465_v39 = vpop.f32.mrf.mxu1  ;;  %12717 = vmatpush1.bf16.msra.mxu0 %v15043_v25  ;;  %v12425_v53 = vpop.f32.mrf.mxu0  ;;  %12621 = vmatprep.subr.bf16.mxu1 %v15186_v31  ;;  %v9278_v0 = vld [vmem:[%s16890_s19 + $0x30] sm:$0xff]  ;;  %v15003_v25 = vcombine.low %v9282_v8, %v9286_v14  ;;  %v15402_v31 = vcombine.high %v9681_v46, %v9685_v26  ;;  %v9781_v5 = vld [vmem:[%s16890_s19 + $0xfe8] sm:$0xff] }
 0x954   : > { %12718 = vmatprep.subr.bf16.mxu0 %v15036_v1  ;;  %v14996_v42 = vcombine.high %v9274_v21, %v9278_v0  ;;  %v9677_v1 = vld [vmem:[%s16890_s19 + $0xca8] sm:$0xff]  ;;  %v14995_v35 = vcombine.low %v9274_v21, %v9278_v0  ;;  %v15116_v39 = vcombine.high %v9394_v33, %v9398_v49  ;;  %v15498_v27 = vcombine.high %v9777_v61, %v9781_v5 }
 0x955   : > { %v12466_v43 = vpop.f32.mrf.mxu1  ;;  %v15394_v54 = vcombine.high %v9673_v30, %v9677_v1  ;;  %v9669_v53 = vld [vmem:[%s16890_s19 + $0xc68] sm:$0xff] }
 0x956   : > { %12622 = vmatpush2.bf16.msra.mxu1 %v15185_v28  ;;  %v9665_v28 = vld [vmem:[%s16890_s19 + $0xc48] sm:$0xff]  ;;  %v15393_v43 = vcombine.low %v9673_v30, %v9677_v1 }
 0x957   : > { %12719 = vmatpush1.bf16.msra.mxu0 %v15035_v48  ;;  %12673 = vmatprep.subr.bf16.mxu1 %v15434_v41  ;;  %v9386_v48 = vld [vmem:[%s16890_s19 + $0x390] sm:$0xff]  ;;  %v15386_v55 = vcombine.high %v9665_v28, %v9669_v53  ;;  %v9769_v8 = vld [vmem:[%s16890_s19 + $0xf88] sm:$0xff] }
 0x958   : > { %12720 = vmatprep.subr.bf16.mxu0 %v15028_v40  ;;  %v9390_v41 = vld [vmem:[%s16890_s19 + $0x3b0] sm:$0xff]  ;;  %v15115_v40 = vcombine.low %v9394_v33, %v9398_v49  ;;  %v9773_v14 = vld [vmem:[%s16890_s19 + $0xfa8] sm:$0xff] }
 0x959   : > { %12624 = vmatmul.mubr.bf16.vlgmr.msra.gmra.mxu1 %v18378_v19  ;;  %v15108_v23 = vcombine.high %v9386_v48, %v9390_v41  ;;  %v15490_v46 = vcombine.high %v9769_v8, %v9773_v14  ;;  %v9761_v21 = vld [vmem:[%s16890_s19 + $0xf48] sm:$0xff] }
 0x95a   : > { %12674 = vmatpush1.bf16.msra.mxu1 %v15433_v9  ;;  %12705 = vmatprep.mubr.bf16.mxu1 %v18519_v7  ;;  %v9378_v9 = vld [vmem:[%s16890_s19 + $0x350] sm:$0xff]  ;;  %v9765_v0 = vld [vmem:[%s16890_s19 + $0xf68] sm:$0xff] }
 0x95b   : > { %12721 = vmatpush1.bf16.msra.mxu0 %v15027_v62  ;;  %12675 = vmatprep.subr.bf16.mxu1 %v15426_v24  ;;  %v9382_v62 = vld [vmem:[%s16890_s19 + $0x370] sm:$0xff]  ;;  %v15385_v24 = vcombine.low %v9665_v28, %v9669_v53  ;;  %v15482_v30 = vcombine.high %v9761_v21, %v9765_v0  ;;  %v9753_v33 = vld [vmem:[%s16890_s19 + $0xf08] sm:$0xff] }
 0x95c   : > { %12722 = vmatprep.subr.bf16.mxu0 %v15020_v57  ;;  %v15107_v57 = vcombine.low %v9386_v48, %v9390_v41  ;;  %v15100_v4 = vcombine.high %v9378_v9, %v9382_v62  ;;  %v9757_v49 = vld [vmem:[%s16890_s19 + $0xf28] sm:$0xff] }
 0x95d   : > { %v15474_v28 = vcombine.high %v9753_v33, %v9757_v49  ;;  %v9745_v48 = vld [vmem:[%s16890_s19 + $0xec8] sm:$0xff] }
 0x95e   : > { %12676 = vmatpush1.bf16.msra.mxu1 %v15425_v2  ;;  %v9370_v2 = vld [vmem:[%s16890_s19 + $0x310] sm:$0xff]  ;;  %v9749_v41 = vld [vmem:[%s16890_s19 + $0xee8] sm:$0xff] }
 0x95f   : > { %12723 = vmatpush1.bf16.msra.mxu0 %v15019_v38  ;;  %12677 = vmatprep.subr.bf16.mxu1 %v15418_v51  ;;  %v9374_v38 = vld [vmem:[%s16890_s19 + $0x330] sm:$0xff]  ;;  %v15377_v51 = vcombine.low %v9657_v20, %v9661_v3  ;;  %v15466_v20 = vcombine.high %v9745_v48, %v9749_v41 }
 0x960   : > { %12724 = vmatprep.subr.bf16.mxu0 %v15012_v10  ;;  %v15099_v10 = vcombine.low %v9378_v9, %v9382_v62  ;;  %v15092_v6 = vcombine.high %v9370_v2, %v9374_v38  ;;  %v9737_v9 = vld [vmem:[%s16890_s19 + $0xe88] sm:$0xff] }
 0x961   : > { %v9741_v62 = vld [vmem:[%s16890_s19 + $0xea8] sm:$0xff] }
 0x962   : > { %12678 = vmatpush1.bf16.msra.mxu1 %v15417_v16  ;;  %v9362_v16 = vld [vmem:[%s16890_s19 + $0x2d0] sm:$0xff] }
 0x963   : > { %12725 = vmatpush1.bf16.msra.mxu0 %v15011_v17  ;;  %12679 = vmatprep.subr.bf16.mxu1 %v15410_v18  ;;  %v9366_v17 = vld [vmem:[%s16890_s19 + $0x2f0] sm:$0xff]  ;;  %v15497_v18 = vcombine.low %v9777_v61, %v9781_v5  ;;  %v15458_v61 = vcombine.high %v9737_v9, %v9741_v62 }
 0x964   : > { %12726 = vmatprep.subr.bf16.mxu0 %v15004_v63  ;;  %v15091_v63 = vcombine.low %v9370_v2, %v9374_v38  ;;  %v15084_v26 = vcombine.high %v9362_v16, %v9366_v17  ;;  %v9729_v2 = vld [vmem:[%s16890_s19 + $0xe48] sm:$0xff] }
 0x965   : > { %v9733_v38 = vld [vmem:[%s16890_s19 + $0xe68] sm:$0xff] }
 0x966   : > { %12680 = vmatpush1.bf16.msra.mxu1 %v15409_v44  ;;  %v9354_v44 = vld [vmem:[%s16890_s19 + $0x290] sm:$0xff] }
 0x967   : > { %12727 = vmatpush1.bf16.msra.mxu0 %v15003_v25  ;;  %12681 = vmatprep.subr.bf16.mxu1 %v15402_v31  ;;  %v9358_v25 = vld [vmem:[%s16890_s19 + $0x2b0] sm:$0xff]  ;;  %v15489_v31 = vcombine.low %v9769_v8, %v9773_v14  ;;  %v15450_v8 = vcombine.high %v9729_v2, %v9733_v38 }
 0x968   : > { %12728 = vmatprep.subr.bf16.mxu0 %v14996_v42  ;;  %v15083_v42 = vcombine.low %v9362_v16, %v9366_v17  ;;  %v15076_v1 = vcombine.high %v9354_v44, %v9358_v25  ;;  %v9721_v16 = vld [vmem:[%s16890_s19 + $0xe08] sm:$0xff] }
 0x969   : > { %v9725_v17 = vld [vmem:[%s16890_s19 + $0xe28] sm:$0xff] }
 0x96a   : > { %12682 = vmatpush1.bf16.msra.mxu1 %v15401_v59  ;;  %v9346_v59 = vld [vmem:[%s16890_s19 + $0x250] sm:$0xff] }
 0x96b   : > { %12729 = vmatpush1.bf16.msra.mxu0 %v14995_v35  ;;  %12683 = vmatprep.subr.bf16.mxu1 %v15394_v54  ;;  %v9350_v35 = vld [vmem:[%s16890_s19 + $0x270] sm:$0xff]  ;;  %v15481_v54 = vcombine.low %v9761_v21, %v9765_v0  ;;  %v15449_v21 = vcombine.low %v9729_v2, %v9733_v38 }
 0x96c   : > { %12730 = vmatprep.subr.bf16.mxu0 %v15116_v39  ;;  %v15075_v39 = vcombine.low %v9354_v44, %v9358_v25  ;;  %v15068_v53 = vcombine.high %v9346_v59, %v9350_v35  ;;  %v15442_v25 = vcombine.high %v9721_v16, %v9725_v17  ;;  %v9538_v2 = vld [vmem:[%s16890_s19 + $0x850] sm:$0xff] }
 0x96d   : > { %v9542_v38 = vld [vmem:[%s16890_s19 + $0x870] sm:$0xff] }
 0x96e   : > { %12684 = vmatpush1.bf16.msra.mxu1 %v15393_v43  ;;  %v9338_v43 = vld [vmem:[%s16890_s19 + $0x210] sm:$0xff] }
 0x96f   : > { %12731 = vmatpush2.bf16.msra.mxu0 %v15115_v40  ;;  %12685 = vmatprep.subr.bf16.mxu1 %v15386_v55  ;;  %v9342_v40 = vld [vmem:[%s16890_s19 + $0x230] sm:$0xff]  ;;  %v15473_v55 = vcombine.low %v9753_v33, %v9757_v49 }
 0x970   : > { %12732 = vmatprep.subr.bf16.mxu0 %v15108_v23  ;;  %v15067_v23 = vcombine.low %v9346_v59, %v9350_v35  ;;  %v15060_v3 = vcombine.high %v9338_v43, %v9342_v40  ;;  %v9562_v33 = vld [vmem:[%s16890_s19 + $0x910] sm:$0xff]  ;;  %v15441_v59 = vcombine.low %v9721_v16, %v9725_v17 }
 0x971   : > { %v9566_v49 = vld [vmem:[%s16890_s19 + $0x930] sm:$0xff] }
 0x972   : > { %12686 = vmatpush1.bf16.msra.mxu1 %v15385_v24  ;;  %v9586_v24 = vld [vmem:[%s16890_s19 + $0x9d0] sm:$0xff] }
 0x973   : > { %12733 = vmatpush2.bf16.msra.mxu0 %v15107_v57  ;;  %12687 = vmatprep.subr.bf16.mxu1 %v15378_v60  ;;  %v9590_v57 = vld [vmem:[%s16890_s19 + $0x9f0] sm:$0xff]  ;;  %v15465_v60 = vcombine.low %v9745_v48, %v9749_v41 }
 0x974   : > { %12734 = vmatprep.subr.bf16.mxu0 %v15100_v4  ;;  %v15059_v4 = vcombine.low %v9338_v43, %v9342_v40  ;;  %v15308_v5 = vcombine.high %v9586_v24, %v9590_v57  ;;  %v9554_v48 = vld [vmem:[%s16890_s19 + $0x8d0] sm:$0xff]  ;;  %v15283_v40 = vcombine.low %v9562_v33, %v9566_v49 }
 0x975   : > { %v9558_v41 = vld [vmem:[%s16890_s19 + $0x8f0] sm:$0xff] }
 0x976   : > { %12688 = vmatpush1.bf16.msra.mxu1 %v15377_v51  ;;  %v9578_v51 = vld [vmem:[%s16890_s19 + $0x990] sm:$0xff] }
 0x977   : > { %12735 = vmatpush2.bf16.msra.mxu0 %v15099_v10  ;;  %12689 = vmatprep.subr.bf16.mxu1 %v15498_v27  ;;  %v9582_v10 = vld [vmem:[%s16890_s19 + $0x9b0] sm:$0xff]  ;;  %v15457_v27 = vcombine.low %v9737_v9, %v9741_v62 }
 0x978   : > { %12736 = vmatprep.subr.bf16.mxu0 %v15092_v6  ;;  %v15307_v6 = vcombine.low %v9586_v24, %v9590_v57  ;;  %v15300_v14 = vcombine.high %v9578_v51, %v9582_v10  ;;  %v15299_v44 = vcombine.low %v9578_v51, %v9582_v10  ;;  %v9546_v9 = vld [vmem:[%s16890_s19 + $0x890] sm:$0xff]  ;;  %v15275_v57 = vcombine.low %v9554_v48, %v9558_v41 }
 0x979   : > { %v9550_v62 = vld [vmem:[%s16890_s19 + $0x8b0] sm:$0xff] }
 0x97a   : > { %12690 = vmatpush2.bf16.msra.mxu1 %v15497_v18  ;;  %v15267_v10 = vcombine.low %v9546_v9, %v9550_v62  ;;  %v9530_v16 = vld [vmem:[%s16890_s19 + $0x810] sm:$0xff] }
 0x97b   : > { %12737 = vmatpush2.bf16.msra.mxu0 %v15091_v63  ;;  %12691 = vmatprep.subr.bf16.mxu1 %v15490_v46  ;;  %v9570_v63 = vld [vmem:[%s16890_s19 + $0x950] sm:$0xff] }
 0x97c   : > { %12738 = vmatprep.subr.bf16.mxu0 %v15084_v26  ;;  %v9574_v46 = vld [vmem:[%s16890_s19 + $0x970] sm:$0xff] }
 0x97d   : > { %v9534_v17 = vld [vmem:[%s16890_s19 + $0x830] sm:$0xff] }
 0x97e   : > { %12692 = vmatpush2.bf16.msra.mxu1 %v15489_v31 }
 0x97f   : > { %12739 = vmatpush2.bf16.msra.mxu0 %v15083_v42  ;;  %12693 = vmatprep.subr.bf16.mxu1 %v15482_v30  ;;  %v9458_v42 = vld [vmem:[%s16890_s19 + $0x5d0] sm:$0xff] }
 0x980   : > { %12740 = vmatprep.subr.bf16.mxu0 %v15076_v1  ;;  %v9462_v30 = vld [vmem:[%s16890_s19 + $0x5f0] sm:$0xff] }
 0x981   : > { %v15179_v43 = vcombine.low %v9458_v42, %v9462_v30 }
 0x982   : > { %12694 = vmatpush2.bf16.msra.mxu1 %v15481_v54  ;;  %v15291_v54 = vcombine.low %v9570_v63, %v9574_v46 }
 0x983   : > { %12741 = vmatpush2.bf16.msra.mxu0 %v15075_v39  ;;  %12695 = vmatprep.subr.bf16.mxu1 %v15474_v28  ;;  %v15284_v39 = vcombine.high %v9562_v33, %v9566_v49  ;;  %v9450_v28 = vld [vmem:[%s16890_s19 + $0x590] sm:$0xff] }
 0x984   : > { %12742 = vmatprep.subr.bf16.mxu0 %v15068_v53  ;;  %v9454_v53 = vld [vmem:[%s16890_s19 + $0x5b0] sm:$0xff] }
 0x985   : > { %v15171_v24 = vcombine.low %v9450_v28, %v9454_v53  ;;  %v9410_v49 = vld [vmem:[%s16890_s19 + $0x450] sm:$0xff] }
 0x986   : > { %12696 = vmatpush2.bf16.msra.mxu1 %v15473_v55  ;;  %v15172_v55 = vcombine.high %v9450_v28, %v9454_v53 }
 0x987   : > { %12743 = vmatpush2.bf16.msra.mxu0 %v15067_v23  ;;  %12697 = vmatprep.subr.bf16.mxu1 %v15466_v20  ;;  %v15276_v23 = vcombine.high %v9554_v48, %v9558_v41  ;;  %v9442_v20 = vld [vmem:[%s16890_s19 + $0x550] sm:$0xff] }
 0x988   : > { %12744 = vmatprep.subr.bf16.mxu0 %v15060_v3  ;;  %v9446_v3 = vld [vmem:[%s16890_s19 + $0x570] sm:$0xff] }
 0x989   : > { %v15163_v51 = vcombine.low %v9442_v20, %v9446_v3  ;;  %v9402_v48 = vld [vmem:[%s16890_s19 + $0x410] sm:$0xff] }
 0x98a   : > { %12698 = vmatpush2.bf16.msra.mxu1 %v15465_v60  ;;  %v15164_v60 = vcombine.high %v9442_v20, %v9446_v3  ;;  %v9406_v41 = vld [vmem:[%s16890_s19 + $0x430] sm:$0xff] }
 0x98b   : > { %12745 = vmatpush2.bf16.msra.mxu0 %v15059_v4  ;;  %12699 = vmatprep.subr.bf16.mxu1 %v15458_v61  ;;  %v15268_v4 = vcombine.high %v9546_v9, %v9550_v62  ;;  %v9434_v61 = vld [vmem:[%s16890_s19 + $0x510] sm:$0xff]  ;;  %v15124_v20 = vcombine.high %v9402_v48, %v9406_v41 }
 0x98c   : > { %12796 = vmatprep.subr.bf16.mxu0 %v15308_v5  ;;  %v9438_v5 = vld [vmem:[%s16890_s19 + $0x530] sm:$0xff] }
 0x98d   : > { %v12502_v18 = vpop.f32.mrf.mxu0  ;;  %v9522_v9 = vld [vmem:[%s16890_s19 + $0x7d0] sm:$0xff] }
 0x98e   : > { %v18663_v26 = vadd.f32 %v12502_v18, %v18592_v36  ;;  %12700 = vmatpush2.bf16.msra.mxu1 %v15457_v27  ;;  %12747 = vmatmul.mubr.bf16.vlgmr.msra.gmra.mxu0 %v18376_v37  ;;  %v15292_v36 = vcombine.high %v9570_v63, %v9574_v46  ;;  %v15156_v27 = vcombine.high %v9434_v61, %v9438_v5  ;;  %v9526_v62 = vld [vmem:[%s16890_s19 + $0x7f0] sm:$0xff] }
 0x98f   : > { %12797 = vmatpush1.bf16.msra.mxu0 %v15307_v6  ;;  %12828 = vmatprep.mubr.bf16.mxu0 %v18382_v45  ;;  %v12504_v0 = vpop.f32.mrf.mxu0  ;;  %v15260_v6 = vcombine.high %v9538_v2, %v9542_v38  ;;  %v15155_v18 = vcombine.low %v9434_v61, %v9438_v5  ;;  %v15259_v63 = vcombine.low %v9538_v2, %v9542_v38  ;;  %v9514_v2 = vld [vmem:[%s16890_s19 + $0x790] sm:$0xff] }
 0x990   : > { %v18668_v31 = vadd.f32 %v12504_v0, %v18598_v13  ;;  %12701 = vmatprep.subr.bf16.mxu1 %v15450_v8  ;;  %12798 = vmatprep.subr.bf16.mxu0 %v15300_v14  ;;  %v15180_v13 = vcombine.high %v9458_v42, %v9462_v30  ;;  %v9426_v8 = vld [vmem:[%s16890_s19 + $0x4d0] sm:$0xff]  ;;  %v15251_v30 = vcombine.low %v9530_v16, %v9534_v17 }
 0x991   : > { %v12506_v1 = vpop.f32.mrf.mxu0  ;;  %v9430_v14 = vld [vmem:[%s16890_s19 + $0x4f0] sm:$0xff]  ;;  %v15244_v61 = vcombine.high %v9522_v9, %v9526_v62 }
 0x992   : > { %12702 = vmatpush2.bf16.msra.mxu1 %v15449_v21  ;;  %v15148_v46 = vcombine.high %v9426_v8, %v9430_v14  ;;  %v15252_v21 = vcombine.high %v9530_v16, %v9534_v17  ;;  %v9418_v0 = vld [vmem:[%s16890_s19 + $0x490] sm:$0xff]  ;;  %v15147_v42 = vcombine.low %v9426_v8, %v9430_v14 }
 0x993   : > { %12799 = vmatpush1.bf16.msra.mxu0 %v15299_v44  ;;  %v12507_v35 = vpop.f32.mrf.mxu0  ;;  %12703 = vmatprep.subr.bf16.mxu1 %v15442_v25  ;;  %v9422_v44 = vld [vmem:[%s16890_s19 + $0x4b0] sm:$0xff] }
 0x994   : > { %12800 = vmatprep.subr.bf16.mxu0 %v15292_v36  ;;  %v9650_v25 = vld [vmem:[%s16890_s19 + $0xbd0] sm:$0xff]  ;;  %v15140_v1 = vcombine.high %v9418_v0, %v9422_v44 }
 0x995   : > { %v9654_v36 = vld [vmem:[%s16890_s19 + $0xbf0] sm:$0xff] }
 0x996   : > { %12704 = vmatpush2.bf16.msra.mxu1 %v15441_v59  ;;  %v15372_v33 = vcombine.high %v9650_v25, %v9654_v36  ;;  %v9414_v59 = vld [vmem:[%s16890_s19 + $0x470] sm:$0xff] }
 0x997   : > { %12801 = vmatpush1.bf16.msra.mxu0 %v15291_v54  ;;  %12755 = vmatprep.subr.bf16.mxu1 %v15180_v13  ;;  %v9642_v35 = vld [vmem:[%s16890_s19 + $0xb90] sm:$0xff]  ;;  %v15139_v13 = vcombine.low %v9418_v0, %v9422_v44  ;;  %v15132_v28 = vcombine.high %v9410_v49, %v9414_v59 }
 0x998   : > { %12802 = vmatprep.subr.bf16.mxu0 %v15284_v39  ;;  %v9646_v54 = vld [vmem:[%s16890_s19 + $0xbb0] sm:$0xff]  ;;  %v15371_v39 = vcombine.low %v9650_v25, %v9654_v36 }
 0x999   : > { %12706 = vmatmul.mubr.bf16.vlgmr.msra.gmra.mxu1 %v18521_v52  ;;  %v15364_v53 = vcombine.high %v9642_v35, %v9646_v54  ;;  %v9518_v38 = vld [vmem:[%s16890_s19 + $0x7b0] sm:$0xff] }
 0x99a   : > { %12756 = vmatpush1.bf16.msra.mxu1 %v15179_v43  ;;  %12787 = vmatprep.mubr.bf16.mxu1 %v18304_v11  ;;  %v9634_v43 = vld [vmem:[%s16890_s19 + $0xb50] sm:$0xff]  ;;  %v15236_v8 = vcombine.high %v9514_v2, %v9518_v38 }
 0x99b   : > { %12803 = vmatpush1.bf16.msra.mxu0 %v15283_v40  ;;  %12757 = vmatprep.subr.bf16.mxu1 %v15172_v55  ;;  %v9638_v40 = vld [vmem:[%s16890_s19 + $0xb70] sm:$0xff]  ;;  %v15131_v55 = vcombine.low %v9410_v49, %v9414_v59 }
 0x99c   : > { %12804 = vmatprep.subr.bf16.mxu0 %v15276_v23  ;;  %v15363_v23 = vcombine.low %v9642_v35, %v9646_v54  ;;  %v15356_v3 = vcombine.high %v9634_v43, %v9638_v40  ;;  %v9506_v16 = vld [vmem:[%s16890_s19 + $0x750] sm:$0xff] }
 0x99d   : > { %v9510_v17 = vld [vmem:[%s16890_s19 + $0x770] sm:$0xff] }
 0x99e   : > { %12758 = vmatpush1.bf16.msra.mxu1 %v15171_v24  ;;  %v9626_v24 = vld [vmem:[%s16890_s19 + $0xb10] sm:$0xff]  ;;  %v15228_v0 = vcombine.high %v9506_v16, %v9510_v17 }
 0x99f   : > { %12805 = vmatpush1.bf16.msra.mxu0 %v15275_v57  ;;  %12759 = vmatprep.subr.bf16.mxu1 %v15164_v60  ;;  %v9630_v57 = vld [vmem:[%s16890_s19 + $0xb30] sm:$0xff]  ;;  %v15123_v60 = vcombine.low %v9402_v48, %v9406_v41 }
 0x9a0   : > { %12806 = vmatprep.subr.bf16.mxu0 %v15268_v4  ;;  %v15355_v4 = vcombine.low %v9634_v43, %v9638_v40  ;;  %v15348_v5 = vcombine.high %v9626_v24, %v9630_v57  ;;  %v9498_v25 = vld [vmem:[%s16890_s19 + $0x710] sm:$0xff] }
 0x9a1   : > { %v9502_v36 = vld [vmem:[%s16890_s19 + $0x730] sm:$0xff] }
 0x9a2   : > { %12760 = vmatpush1.bf16.msra.mxu1 %v15163_v51  ;;  %v9618_v51 = vld [vmem:[%s16890_s19 + $0xad0] sm:$0xff]  ;;  %v15220_v49 = vcombine.high %v9498_v25, %v9502_v36 }
 0x9a3   : > { %12807 = vmatpush1.bf16.msra.mxu0 %v15267_v10  ;;  %12761 = vmatprep.subr.bf16.mxu1 %v15156_v27  ;;  %v9622_v10 = vld [vmem:[%s16890_s19 + $0xaf0] sm:$0xff]  ;;  %v15243_v27 = vcombine.low %v9522_v9, %v9526_v62 }
 0x9a4   : > { %12808 = vmatprep.subr.bf16.mxu0 %v15260_v6  ;;  %v15347_v6 = vcombine.low %v9626_v24, %v9630_v57  ;;  %v15340_v14 = vcombine.high %v9618_v51, %v9622_v10  ;;  %v9490_v35 = vld [vmem:[%s16890_s19 + $0x6d0] sm:$0xff] }
 0x9a5   : > { %v9494_v54 = vld [vmem:[%s16890_s19 + $0x6f0] sm:$0xff] }
 0x9a6   : > { %12762 = vmatpush1.bf16.msra.mxu1 %v15155_v18  ;;  %v9610_v18 = vld [vmem:[%s16890_s19 + $0xa90] sm:$0xff]  ;;  %v15212_v48 = vcombine.high %v9490_v35, %v9494_v54 }
 0x9a7   : > { %12809 = vmatpush1.bf16.msra.mxu0 %v15259_v63  ;;  %12763 = vmatprep.subr.bf16.mxu1 %v15148_v46  ;;  %v9614_v63 = vld [vmem:[%s16890_s19 + $0xab0] sm:$0xff]  ;;  %v15235_v46 = vcombine.low %v9514_v2, %v9518_v38 }
 0x9a8   : > { %12810 = vmatprep.subr.bf16.mxu0 %v15252_v21  ;;  %v15339_v21 = vcombine.low %v9618_v51, %v9622_v10  ;;  %v15332_v44 = vcombine.high %v9610_v18, %v9614_v63  ;;  %v9482_v43 = vld [vmem:[%s16890_s19 + $0x690] sm:$0xff] }
 0x9a9   : > { %v9486_v40 = vld [vmem:[%s16890_s19 + $0x6b0] sm:$0xff] }
 0x9aa   : > { %12764 = vmatpush1.bf16.msra.mxu1 %v15147_v42  ;;  %v9602_v42 = vld [vmem:[%s16890_s19 + $0xa50] sm:$0xff]  ;;  %v15204_v9 = vcombine.high %v9482_v43, %v9486_v40 }
 0x9ab   : > { %12811 = vmatpush1.bf16.msra.mxu0 %v15251_v30  ;;  %12765 = vmatprep.subr.bf16.mxu1 %v15140_v1  ;;  %v9606_v30 = vld [vmem:[%s16890_s19 + $0xa70] sm:$0xff]  ;;  %v15227_v1 = vcombine.low %v9506_v16, %v9510_v17 }
 0x9ac   : > { %12812 = vmatprep.subr.bf16.mxu0 %v15372_v33  ;;  %v15331_v33 = vcombine.low %v9610_v18, %v9614_v63  ;;  %v15324_v59 = vcombine.high %v9602_v42, %v9606_v30  ;;  %v9474_v24 = vld [vmem:[%s16890_s19 + $0x650] sm:$0xff] }
 0x9ad   : > { %v9478_v57 = vld [vmem:[%s16890_s19 + $0x670] sm:$0xff] }
 0x9ae   : > { %12766 = vmatpush1.bf16.msra.mxu1 %v15139_v13  ;;  %v9594_v13 = vld [vmem:[%s16890_s19 + $0xa10] sm:$0xff]  ;;  %v15196_v2 = vcombine.high %v9474_v24, %v9478_v57 }
 0x9af   : > { %12813 = vmatpush2.bf16.msra.mxu0 %v15371_v39  ;;  %12767 = vmatprep.subr.bf16.mxu1 %v15132_v28  ;;  %v9598_v39 = vld [vmem:[%s16890_s19 + $0xa30] sm:$0xff]  ;;  %v15219_v28 = vcombine.low %v9498_v25, %v9502_v36  ;;  %v9311_v25 = vld [vmem:[%s16890_s19 + $0x138] sm:$0xff] }
 0x9b0   : > { %12814 = vmatprep.subr.bf16.mxu0 %v15364_v53  ;;  %v15323_v53 = vcombine.low %v9602_v42, %v9606_v30  ;;  %v15316_v41 = vcombine.high %v9594_v13, %v9598_v39  ;;  %v9466_v51 = vld [vmem:[%s16890_s19 + $0x610] sm:$0xff] }
 0x9b1   : > { %v9470_v10 = vld [vmem:[%s16890_s19 + $0x630] sm:$0xff] }
 0x9b2   : > { %12768 = vmatpush1.bf16.msra.mxu1 %v15131_v55  ;;  %v9331_v55 = vld [vmem:[%s16890_s19 + $0x1d8] sm:$0xff]  ;;  %v15188_v18 = vcombine.high %v9466_v51, %v9470_v10  ;;  %v15187_v36 = vcombine.low %v9466_v51, %v9470_v10  ;;  %v9682_v10 = vld [vmem:[%s16890_s19 + $0xcd0] sm:$0xff] }
 0x9b3   : > { %12815 = vmatpush2.bf16.msra.mxu0 %v15363_v23  ;;  %12769 = vmatprep.subr.bf16.mxu1 %v15124_v20  ;;  %v9335_v23 = vld [vmem:[%s16890_s19 + $0x1f8] sm:$0xff]  ;;  %v15211_v20 = vcombine.low %v9490_v35, %v9494_v54 }
 0x9b4   : > { %12816 = vmatprep.subr.bf16.mxu0 %v15356_v3  ;;  %v15315_v3 = vcombine.low %v9594_v13, %v9598_v39  ;;  %v15054_v62 = vcombine.high %v9331_v55, %v9335_v23  ;;  %v9303_v35 = vld [vmem:[%s16890_s19 + $0xf8] sm:$0xff] }
 0x9b6   : > { %12770 = vmatpush1.bf16.msra.mxu1 %v15123_v60  ;;  %v9323_v60 = vld [vmem:[%s16890_s19 + $0x198] sm:$0xff] }
 0x9b7   : > { %12817 = vmatpush2.bf16.msra.mxu0 %v15355_v4  ;;  %12771 = vmatprep.subr.bf16.mxu1 %v15244_v61  ;;  %v9327_v4 = vld [vmem:[%s16890_s19 + $0x1b8] sm:$0xff]  ;;  %v15203_v61 = vcombine.low %v9482_v43, %v9486_v40 }
 0x9b8   : > { %12818 = vmatprep.subr.bf16.mxu0 %v15348_v5  ;;  %v15053_v5 = vcombine.low %v9331_v55, %v9335_v23  ;;  %v15046_v38 = vcombine.high %v9323_v60, %v9327_v4  ;;  %v15045_v17 = vcombine.low %v9323_v60, %v9327_v4  ;;  %v9291_v43 = vld [vmem:[%s16890_s19 + $0x98] sm:$0xff] }
 0x9b9   : > { %v9295_v40 = vld [vmem:[%s16890_s19 + $0xb8] sm:$0xff] }
 0x9ba   : > { %12772 = vmatpush2.bf16.msra.mxu1 %v15243_v27  ;;  %v9283_v4 = vld [vmem:[%s16890_s19 + $0x58] sm:$0xff] }
 0x9bb   : > { %12819 = vmatpush2.bf16.msra.mxu0 %v15347_v6  ;;  %12773 = vmatprep.subr.bf16.mxu1 %v15236_v8  ;;  %v9315_v6 = vld [vmem:[%s16890_s19 + $0x158] sm:$0xff] }
 0x9bc   : > { %12820 = vmatprep.subr.bf16.mxu0 %v15340_v14  ;;  %v9319_v8 = vld [vmem:[%s16890_s19 + $0x178] sm:$0xff]  ;;  %v15195_v14 = vcombine.low %v9474_v24, %v9478_v57  ;;  %v15014_v24 = vcombine.high %v9291_v43, %v9295_v40  ;;  %v9690_v57 = vld [vmem:[%s16890_s19 + $0xd10] sm:$0xff] }
 0x9bd   : > { %v15038_v63 = vcombine.high %v9315_v6, %v9319_v8  ;;  %v15037_v42 = vcombine.low %v9315_v6, %v9319_v8  ;;  %v9686_v6 = vld [vmem:[%s16890_s19 + $0xcf0] sm:$0xff]  ;;  %v9275_v8 = vld [vmem:[%s16890_s19 + $0x18] sm:$0xff] }
 0x9be   : > { %12774 = vmatpush2.bf16.msra.mxu1 %v15235_v46  ;;  %v9714_v46 = vld [vmem:[%s16890_s19 + $0xdd0] sm:$0xff] }
 0x9bf   : > { %12821 = vmatpush2.bf16.msra.mxu0 %v15339_v21  ;;  %12775 = vmatprep.subr.bf16.mxu1 %v15228_v0  ;;  %v9718_v21 = vld [vmem:[%s16890_s19 + $0xdf0] sm:$0xff] }
 0x9c0   : > { %12822 = vmatprep.subr.bf16.mxu0 %v15332_v44  ;;  %v9307_v44 = vld [vmem:[%s16890_s19 + $0x118] sm:$0xff]  ;;  %v15436_v30 = vcombine.high %v9714_v46, %v9718_v21  ;;  %v15435_v54 = vcombine.low %v9714_v46, %v9718_v21  ;;  %v9674_v21 = vld [vmem:[%s16890_s19 + $0xc90] sm:$0xff] }
 0x9c1   : > { %v15029_v13 = vcombine.low %v9307_v44, %v9311_v25 }
 0x9c2   : > { %12776 = vmatpush2.bf16.msra.mxu1 %v15227_v1  ;;  %v15030_v1 = vcombine.high %v9307_v44, %v9311_v25  ;;  %v9395_v44 = vld [vmem:[%s16890_s19 + $0x3d8] sm:$0xff] }
 0x9c3   : > { %12823 = vmatpush2.bf16.msra.mxu0 %v15331_v33  ;;  %12777 = vmatprep.subr.bf16.mxu1 %v15220_v49  ;;  %v9706_v33 = vld [vmem:[%s16890_s19 + $0xd90] sm:$0xff]  ;;  %v9399_v25 = vld [vmem:[%s16890_s19 + $0x3f8] sm:$0xff] }
 0x9c4   : > { %12824 = vmatprep.subr.bf16.mxu0 %v15324_v59  ;;  %v9710_v49 = vld [vmem:[%s16890_s19 + $0xdb0] sm:$0xff]  ;;  %v9299_v59 = vld [vmem:[%s16890_s19 + $0xd8] sm:$0xff] }
 0x9c5   : > { %v15428_v39 = vcombine.high %v9706_v33, %v9710_v49  ;;  %v15427_v23 = vcombine.low %v9706_v33, %v9710_v49  ;;  %v9670_v33 = vld [vmem:[%s16890_s19 + $0xc70] sm:$0xff]  ;;  %v9387_v49 = vld [vmem:[%s16890_s19 + $0x398] sm:$0xff] }
 0x9c6   : > { %12778 = vmatpush2.bf16.msra.mxu1 %v15219_v28  ;;  %v15022_v28 = vcombine.high %v9299_v59, %v9303_v35 }
 0x9c7   : > { %12825 = vmatpush2.bf16.msra.mxu0 %v15323_v53  ;;  %12779 = vmatprep.subr.bf16.mxu1 %v15212_v48  ;;  %v9698_v53 = vld [vmem:[%s16890_s19 + $0xd50] sm:$0xff] }
 0x9c8   : > { %12826 = vmatprep.subr.bf16.mxu0 %v15316_v41  ;;  %v9702_v48 = vld [vmem:[%s16890_s19 + $0xd70] sm:$0xff] }
 0x9ca   : > { %12780 = vmatpush2.bf16.msra.mxu1 %v15211_v20 }
 0x9cb   : > { %12827 = vmatpush2.bf16.msra.mxu0 %v15315_v3  ;;  %12781 = vmatprep.subr.bf16.mxu1 %v15204_v9  ;;  %v15021_v3 = vcombine.low %v9299_v59, %v9303_v35  ;;  %v15420_v9 = vcombine.high %v9698_v53, %v9702_v48  ;;  %v9391_v59 = vld [vmem:[%s16890_s19 + $0x3b8] sm:$0xff] }
 0x9cc   : > { %12878 = vmatprep.subr.bf16.mxu0 %v15054_v62 }
 0x9cd   : > { %v18734_v27 = vpop.f32.mrf.mxu0 }
 0x9ce   : > { %12782 = vmatpush2.bf16.msra.mxu1 %v15203_v61  ;;  %12829 = vmatmul.mubr.bf16.vlgmr.msra.gmra.mxu0 %v18462_v22  ;;  %v9287_v61 = vld [vmem:[%s16890_s19 + $0x78] sm:$0xff] }
 0x9cf   : > { %12879 = vmatpush1.bf16.msra.mxu0 %v15053_v5  ;;  %12910 = vmatprep.mubr.bf16.mxu0 %v18299_v47  ;;  %v18740_v16 = vpop.f32.mrf.mxu0  ;;  %v15419_v5 = vcombine.low %v9698_v53, %v9702_v48  ;;  %v15006_v51 = vcombine.high %v9283_v4, %v9287_v61  ;;  %v9662_v53 = vld [vmem:[%s16890_s19 + $0xc30] sm:$0xff]  ;;  %v9379_v48 = vld [vmem:[%s16890_s19 + $0x358] sm:$0xff] }
 0x9d0   : > { %12783 = vmatprep.subr.bf16.mxu1 %v15196_v2  ;;  %12880 = vmatprep.subr.bf16.mxu0 %v15046_v38  ;;  %v15013_v38 = vcombine.low %v9291_v43, %v9295_v40  ;;  %v15109_v40 = vcombine.low %v9387_v49, %v9391_v59 }
 0x9d1   : > { %v12588_v0 = vpop.f32.mrf.mxu0 }
 0x9d2   : > { %12784 = vmatpush2.bf16.msra.mxu1 %v15195_v14  ;;  %v9279_v14 = vld [vmem:[%s16890_s19 + $0x38] sm:$0xff]  ;;  %v9678_v0 = vld [vmem:[%s16890_s19 + $0xcb0] sm:$0xff] }
 0x9d3   : > { %12881 = vmatpush1.bf16.msra.mxu0 %v15045_v17  ;;  %v12589_v47 = vpop.f32.mrf.mxu0  ;;  %12785 = vmatprep.subr.bf16.mxu1 %v15188_v18  ;;  %v15005_v18 = vcombine.low %v9283_v4, %v9287_v61  ;;  %v14998_v46 = vcombine.high %v9275_v8, %v9279_v14  ;;  %v15395_v35 = vcombine.low %v9674_v21, %v9678_v0 }
 0x9d4   : > { %12882 = vmatprep.subr.bf16.mxu0 %v15038_v63  ;;  %v15404_v63 = vcombine.high %v9682_v10, %v9686_v6  ;;  %v14997_v47 = vcombine.low %v9275_v8, %v9279_v14  ;;  %v9762_v14 = vld [vmem:[%s16890_s19 + $0xf50] sm:$0xff] }
 0x9d6   : > { %12786 = vmatpush2.bf16.msra.mxu1 %v15187_v36  ;;  %v15403_v36 = vcombine.low %v9682_v10, %v9686_v6 }
 0x9d7   : > { %12883 = vmatpush1.bf16.msra.mxu0 %v15037_v42  ;;  %12837 = vmatprep.subr.bf16.mxu1 %v15436_v30  ;;  %v15396_v42 = vcombine.high %v9674_v21, %v9678_v0  ;;  %v15118_v30 = vcombine.high %v9395_v44, %v9399_v25 }
 0x9d8   : > { %12884 = vmatprep.subr.bf16.mxu0 %v15030_v1  ;;  %v9666_v1 = vld [vmem:[%s16890_s19 + $0xc50] sm:$0xff] }
 0x9d9   : > { %12788 = vmatmul.mubr.bf16.vlgmr.msra.gmra.mxu1 %v18378_v19  ;;  %v12543_v41 = vpop.f32.mrf.mxu1  ;;  %v15387_v43 = vcombine.low %v9666_v1, %v9670_v33 }
 0x9da   : > { %v18756_v55 = vadd.f32 %v12543_v41, %v18663_v26  ;;  %12838 = vmatpush1.bf16.msra.mxu1 %v15435_v54  ;;  %12869 = vmatprep.mubr.bf16.mxu1 %v18519_v7  ;;  %v9694_v26 = vld [vmem:[%s16890_s19 + $0xd30] sm:$0xff]  ;;  %v15117_v54 = vcombine.low %v9395_v44, %v9399_v25  ;;  %v9383_v41 = vld [vmem:[%s16890_s19 + $0x378] sm:$0xff] }
 0x9db   : > { %12885 = vmatpush1.bf16.msra.mxu0 %v15029_v13  ;;  %v12545_v20 = vpop.f32.mrf.mxu1  ;;  %12839 = vmatprep.subr.bf16.mxu1 %v15428_v39  ;;  %v15411_v17 = vcombine.low %v9690_v57, %v9694_v26  ;;  %v15388_v13 = vcombine.high %v9666_v1, %v9670_v33  ;;  %v15110_v39 = vcombine.high %v9387_v49, %v9391_v59  ;;  %v9754_v25 = vld [vmem:[%s16890_s19 + $0xf10] sm:$0xff] }
 0x9dc   : > { %v18760_v62 = vadd.f32 %v12545_v20, %v18668_v31  ;;  %12886 = vmatprep.subr.bf16.mxu0 %v15022_v28  ;;  %v15412_v31 = vcombine.high %v9690_v57, %v9694_v26  ;;  %v9658_v28 = vld [vmem:[%s16890_s19 + $0xc10] sm:$0xff]  ;;  %v15102_v20 = vcombine.high %v9379_v48, %v9383_v41  ;;  %v9375_v57 = vld [vmem:[%s16890_s19 + $0x338] sm:$0xff] }
 0x9dd   : > { %v12547_v60 = vpop.f32.mrf.mxu1  ;;  %v15379_v26 = vcombine.low %v9658_v28, %v9662_v53  ;;  %v9746_v59 = vld [vmem:[%s16890_s19 + $0xed0] sm:$0xff] }
 0x9de   : > { %12840 = vmatpush1.bf16.msra.mxu1 %v15427_v23  ;;  %v15380_v23 = vcombine.high %v9658_v28, %v9662_v53  ;;  %v15101_v60 = vcombine.low %v9379_v48, %v9383_v41  ;;  %v9738_v41 = vld [vmem:[%s16890_s19 + $0xe90] sm:$0xff] }
 0x9df   : > { %12887 = vmatpush1.bf16.msra.mxu0 %v15021_v3  ;;  %v12548_v2 = vpop.f32.mrf.mxu1  ;;  %12841 = vmatprep.subr.bf16.mxu1 %v15420_v9  ;;  %v9778_v3 = vld [vmem:[%s16890_s19 + $0xfd0] sm:$0xff] }
 0x9e0   : > { %12888 = vmatprep.subr.bf16.mxu0 %v15014_v24  ;;  %v9782_v9 = vld [vmem:[%s16890_s19 + $0xff0] sm:$0xff]  ;;  %v9371_v24 = vld [vmem:[%s16890_s19 + $0x318] sm:$0xff] }
 0x9e1   : > { %v15500_v4 = vcombine.high %v9778_v3, %v9782_v9  ;;  %v15094_v61 = vcombine.high %v9371_v24, %v9375_v57  ;;  %v9774_v2 = vld [vmem:[%s16890_s19 + $0xfb0] sm:$0xff]  ;;  %v15093_v10 = vcombine.low %v9371_v24, %v9375_v57 }
 0x9e2   : > { %12842 = vmatpush1.bf16.msra.mxu1 %v15419_v5  ;;  %v9770_v5 = vld [vmem:[%s16890_s19 + $0xf90] sm:$0xff] }
 0x9e3   : > { %12889 = vmatpush1.bf16.msra.mxu0 %v15013_v38  ;;  %12843 = vmatprep.subr.bf16.mxu1 %v15412_v31  ;;  %v9363_v38 = vld [vmem:[%s16890_s19 + $0x2d8] sm:$0xff]  ;;  %v15492_v6 = vcombine.high %v9770_v5, %v9774_v2  ;;  %v9730_v57 = vld [vmem:[%s16890_s19 + $0xe50] sm:$0xff] }
 0x9e4   : > { %12890 = vmatprep.subr.bf16.mxu0 %v15006_v51  ;;  %v9367_v31 = vld [vmem:[%s16890_s19 + $0x2f8] sm:$0xff]  ;;  %v15499_v51 = vcombine.low %v9778_v3, %v9782_v9 }
 0x9e5   : > { %v15086_v8 = vcombine.high %v9363_v38, %v9367_v31  ;;  %v15085_v21 = vcombine.low %v9363_v38, %v9367_v31  ;;  %v9722_v31 = vld [vmem:[%s16890_s19 + $0xe10] sm:$0xff] }
 0x9e6   : > { %12844 = vmatpush1.bf16.msra.mxu1 %v15411_v17  ;;  %v9766_v17 = vld [vmem:[%s16890_s19 + $0xf70] sm:$0xff] }
 0x9e7   : > { %12891 = vmatpush1.bf16.msra.mxu0 %v15005_v18  ;;  %12845 = vmatprep.subr.bf16.mxu1 %v15404_v63  ;;  %v9355_v18 = vld [vmem:[%s16890_s19 + $0x298] sm:$0xff]  ;;  %v15484_v0 = vcombine.high %v9762_v14, %v9766_v17 }
 0x9e8   : > { %12892 = vmatprep.subr.bf16.mxu0 %v14998_v46  ;;  %v9359_v63 = vld [vmem:[%s16890_s19 + $0x2b8] sm:$0xff]  ;;  %v15491_v46 = vcombine.low %v9770_v5, %v9774_v2 }
 0x9e9   : > { %v15078_v44 = vcombine.high %v9355_v18, %v9359_v63  ;;  %v15077_v1 = vcombine.low %v9355_v18, %v9359_v63 }
 0x9ea   : > { %12846 = vmatpush1.bf16.msra.mxu1 %v15403_v36  ;;  %v9758_v36 = vld [vmem:[%s16890_s19 + $0xf30] sm:$0xff] }
 0x9eb   : > { %12893 = vmatpush1.bf16.msra.mxu0 %v14997_v47  ;;  %12847 = vmatprep.subr.bf16.mxu1 %v15396_v42  ;;  %v9347_v47 = vld [vmem:[%s16890_s19 + $0x258] sm:$0xff]  ;;  %v15476_v33 = vcombine.high %v9754_v25, %v9758_v36 }
 0x9ec   : > { %12894 = vmatprep.subr.bf16.mxu0 %v15118_v30  ;;  %v9351_v42 = vld [vmem:[%s16890_s19 + $0x278] sm:$0xff]  ;;  %v15483_v30 = vcombine.low %v9762_v14, %v9766_v17 }
 0x9ed   : > { %v15070_v49 = vcombine.high %v9347_v47, %v9351_v42  ;;  %v15069_v28 = vcombine.low %v9347_v47, %v9351_v42  ;;  %v18823_v42 = vld [vmem:[%s16897_s29] sm:$0xff] }
 0x9ee   : > { %12848 = vmatpush1.bf16.msra.mxu1 %v15395_v35  ;;  %v9750_v35 = vld [vmem:[%s16890_s19 + $0xef0] sm:$0xff] }
 0x9ef   : > { %12895 = vmatpush2.bf16.msra.mxu0 %v15117_v54  ;;  %12849 = vmatprep.subr.bf16.mxu1 %v15388_v13  ;;  %v9339_v54 = vld [vmem:[%s16890_s19 + $0x218] sm:$0xff]  ;;  %v15468_v53 = vcombine.high %v9746_v59, %v9750_v35 }
 0x9f0   : > { %12896 = vmatprep.subr.bf16.mxu0 %v15110_v39  ;;  %v9343_v13 = vld [vmem:[%s16890_s19 + $0x238] sm:$0xff]  ;;  %v15475_v39 = vcombine.low %v9754_v25, %v9758_v36 }
 0x9f1   : > { %v15062_v48 = vcombine.high %v9339_v54, %v9343_v13  ;;  %v15061_v3 = vcombine.low %v9339_v54, %v9343_v13  ;;  %v9567_v25 = vld [vmem:[%s16890_s19 + $0x938] sm:$0xff]  ;;  %v9801_v13 = vrot.slane %v18823_v42, %v2798_v58 }
 0x9f2   : > { %12850 = vmatpush1.bf16.msra.mxu1 %v15387_v43  ;;  %v9742_v43 = vld [vmem:[%s16890_s19 + $0xeb0] sm:$0xff]  ;;  %v9559_v54 = vld [vmem:[%s16890_s19 + $0x8f8] sm:$0xff] }
 0x9f3   : > { %12897 = vmatpush2.bf16.msra.mxu0 %v15109_v40  ;;  %12851 = vmatprep.subr.bf16.mxu1 %v15380_v23  ;;  %v9587_v40 = vld [vmem:[%s16890_s19 + $0x9d8] sm:$0xff]  ;;  %v15460_v9 = vcombine.high %v9738_v41, %v9742_v43  ;;  %v12587_v58 = vadd.f32 %v18740_v16, %v9801_v13 }
 0x9f4   : > { %12898 = vmatprep.subr.bf16.mxu0 %v15102_v20  ;;  %v9591_v23 = vld [vmem:[%s16890_s19 + $0x9f8] sm:$0xff]  ;;  %v15467_v20 = vcombine.low %v9746_v59, %v9750_v35 }
 0x9f5   : > { %v15310_v24 = vcombine.high %v9587_v40, %v9591_v23  ;;  %v15309_v5 = vcombine.low %v9587_v40, %v9591_v23  ;;  %v9455_v59 = vld [vmem:[%s16890_s19 + $0x5b8] sm:$0xff] }
 0x9f6   : > { %12852 = vmatpush1.bf16.msra.mxu1 %v15379_v26  ;;  %v9734_v26 = vld [vmem:[%s16890_s19 + $0xe70] sm:$0xff]  ;;  %v9555_v35 = vld [vmem:[%s16890_s19 + $0x8d8] sm:$0xff] }
 0x9f7   : > { %12899 = vmatpush2.bf16.msra.mxu0 %v15101_v60  ;;  %12853 = vmatprep.subr.bf16.mxu1 %v15500_v4  ;;  %v9579_v60 = vld [vmem:[%s16890_s19 + $0x998] sm:$0xff]  ;;  %v15452_v2 = vcombine.high %v9730_v57, %v9734_v26  ;;  %v15451_v14 = vcombine.low %v9730_v57, %v9734_v26 }
 0x9f8   : > { %12900 = vmatprep.subr.bf16.mxu0 %v15094_v61  ;;  %v9583_v4 = vld [vmem:[%s16890_s19 + $0x9b8] sm:$0xff]  ;;  %v15459_v61 = vcombine.low %v9738_v41, %v9742_v43 }
 0x9f9   : > { %v15302_v38 = vcombine.high %v9579_v60, %v9583_v4  ;;  %v15301_v17 = vcombine.low %v9579_v60, %v9583_v4  ;;  %v9443_v41 = vld [vmem:[%s16890_s19 + $0x558] sm:$0xff] }
 0x9fa   : > { %12854 = vmatpush2.bf16.msra.mxu1 %v15499_v51  ;;  %v9726_v51 = vld [vmem:[%s16890_s19 + $0xe30] sm:$0xff]  ;;  %v9447_v43 = vld [vmem:[%s16890_s19 + $0x578] sm:$0xff] }
 0x9fb   : > { %12901 = vmatpush2.bf16.msra.mxu0 %v15093_v10  ;;  %12855 = vmatprep.subr.bf16.mxu1 %v15492_v6  ;;  %v9571_v10 = vld [vmem:[%s16890_s19 + $0x958] sm:$0xff]  ;;  %v15444_v18 = vcombine.high %v9722_v31, %v9726_v51  ;;  %v15443_v36 = vcombine.low %v9722_v31, %v9726_v51  ;;  %v15166_v57 = vcombine.high %v9443_v41, %v9447_v43 }
 0x9fc   : > { %12902 = vmatprep.subr.bf16.mxu0 %v15086_v8  ;;  %v9575_v6 = vld [vmem:[%s16890_s19 + $0x978] sm:$0xff] }
 0x9fd   : > { %v9547_v23 = vld [vmem:[%s16890_s19 + $0x898] sm:$0xff] }
 0x9fe   : > { %12856 = vmatpush2.bf16.msra.mxu1 %v15491_v46  ;;  %v15294_v46 = vcombine.high %v9571_v10, %v9575_v6  ;;  %v9435_v4 = vld [vmem:[%s16890_s19 + $0x518] sm:$0xff] }
 0x9ff   : > { %12903 = vmatpush2.bf16.msra.mxu0 %v15085_v21  ;;  %12857 = vmatprep.subr.bf16.mxu1 %v15484_v0  ;;  %v9459_v21 = vld [vmem:[%s16890_s19 + $0x5d8] sm:$0xff] }
 0xa00   : > { %12904 = vmatprep.subr.bf16.mxu0 %v15078_v44  ;;  %v9463_v0 = vld [vmem:[%s16890_s19 + $0x5f8] sm:$0xff] }
 0xa01   : > { %v9563_v44 = vld [vmem:[%s16890_s19 + $0x918] sm:$0xff]  ;;  %v15182_v47 = vcombine.high %v9459_v21, %v9463_v0 }
 0xa02   : > { %12858 = vmatpush2.bf16.msra.mxu1 %v15483_v30  ;;  %v9797_v30 = vrot.slane %v18823_v42, %v2794_v32  ;;  %v15285_v32 = vcombine.low %v9563_v44, %v9567_v25 }
 0xa03   : > { %12905 = vmatpush2.bf16.msra.mxu0 %v15077_v1  ;;  %12859 = vmatprep.subr.bf16.mxu1 %v15476_v33  ;;  %v15286_v33 = vcombine.high %v9563_v44, %v9567_v25  ;;  %v9419_v25 = vld [vmem:[%s16890_s19 + $0x498] sm:$0xff] }
 0xa04   : > { %12906 = vmatprep.subr.bf16.mxu0 %v15070_v49  ;;  %v9451_v49 = vld [vmem:[%s16890_s19 + $0x598] sm:$0xff] }
 0xa06   : > { %12860 = vmatpush2.bf16.msra.mxu1 %v15475_v39  ;;  %v15181_v39 = vcombine.low %v9459_v21, %v9463_v0 }
 0xa07   : > { %12907 = vmatpush2.bf16.msra.mxu0 %v15069_v28  ;;  %12861 = vmatprep.subr.bf16.mxu1 %v15468_v53  ;;  %v15174_v28 = vcombine.high %v9451_v49, %v9455_v59  ;;  %v12585_v53 = vadd.f32 %v18734_v27, %v9797_v30  ;;  %v15173_v27 = vcombine.low %v9451_v49, %v9455_v59  ;;  %v9411_v49 = vld [vmem:[%s16890_s19 + $0x458] sm:$0xff] }
 0xa08   : > { %12908 = vmatprep.subr.bf16.mxu0 %v15062_v48  ;;  %v15278_v48 = vcombine.high %v9555_v35, %v9559_v54  ;;  %v9415_v59 = vld [vmem:[%s16890_s19 + $0x478] sm:$0xff] }
 0xa0a   : > { %12862 = vmatpush2.bf16.msra.mxu1 %v15467_v20  ;;  %v9551_v20 = vld [vmem:[%s16890_s19 + $0x8b8] sm:$0xff] }
 0xa0b   : > { %12909 = vmatpush2.bf16.msra.mxu0 %v15061_v3  ;;  %12863 = vmatprep.subr.bf16.mxu1 %v15460_v9  ;;  %v15270_v60 = vcombine.high %v9547_v23, %v9551_v20 }
 0xa0c   : > { %12960 = vmatprep.subr.bf16.mxu0 %v15310_v24  ;;  %v15277_v24 = vcombine.low %v9555_v35, %v9559_v54  ;;  %v9643_v35 = vld [vmem:[%s16890_s19 + $0xb98] sm:$0xff] }
 0xa0d   : > { %v9647_v54 = vld [vmem:[%s16890_s19 + $0xbb8] sm:$0xff] }
 0xa0e   : > { %v18814_v8 = vpop.f32.mrf.mxu0  ;;  %12864 = vmatpush2.bf16.msra.mxu1 %v15459_v61  ;;  %12911 = vmatmul.mubr.bf16.vlgmr.msra.gmra.mxu0 %v18376_v37  ;;  %v9439_v61 = vld [vmem:[%s16890_s19 + $0x538] sm:$0xff] }
 0xa0f   : > { %12961 = vmatpush1.bf16.msra.mxu0 %v15309_v5  ;;  %12992 = vmatprep.mubr.bf16.mxu0 %v18382_v45  ;;  %v15293_v45 = vcombine.low %v9571_v10, %v9575_v6  ;;  %v15269_v10 = vcombine.low %v9547_v23, %v9551_v20  ;;  %v15158_v6 = vcombine.high %v9435_v4, %v9439_v61 }
 0xa10   : > { %v12668_v63 = vpop.f32.mrf.mxu0  ;;  %12865 = vmatprep.subr.bf16.mxu1 %v15452_v2  ;;  %12962 = vmatprep.subr.bf16.mxu0 %v15302_v38  ;;  %v9543_v2 = vld [vmem:[%s16890_s19 + $0x878] sm:$0xff]  ;;  %v15165_v38 = vcombine.low %v9443_v41, %v9447_v43  ;;  %v15157_v21 = vcombine.low %v9435_v4, %v9439_v61  ;;  %v15365_v23 = vcombine.low %v9643_v35, %v9647_v54 }
 0xa11   : > { %v9635_v41 = vld [vmem:[%s16890_s19 + $0xb58] sm:$0xff] }
 0xa12   : > { %v12670_v37 = vpop.f32.mrf.mxu0  ;;  %12866 = vmatpush2.bf16.msra.mxu1 %v15451_v14  ;;  %v9427_v14 = vld [vmem:[%s16890_s19 + $0x4d8] sm:$0xff] }
 0xa13   : > { %12963 = vmatpush1.bf16.msra.mxu0 %v15301_v17  ;;  %12867 = vmatprep.subr.bf16.mxu1 %v15444_v18  ;;  %v9431_v17 = vld [vmem:[%s16890_s19 + $0x4f8] sm:$0xff] }
 0xa14   : > { %v12671_v1 = vpop.f32.mrf.mxu0  ;;  %12964 = vmatprep.subr.bf16.mxu0 %v15294_v46  ;;  %v9531_v18 = vld [vmem:[%s16890_s19 + $0x818] sm:$0xff]  ;;  %v15150_v0 = vcombine.high %v9427_v14, %v9431_v17 }
 0xa15   : > { %v9535_v46 = vld [vmem:[%s16890_s19 + $0x838] sm:$0xff] }
 0xa16   : > { %12868 = vmatpush2.bf16.msra.mxu1 %v15443_v36  ;;  %v15254_v44 = vcombine.high %v9531_v18, %v9535_v46  ;;  %v9423_v37 = vld [vmem:[%s16890_s19 + $0x4b8] sm:$0xff]  ;;  %v15253_v30 = vcombine.low %v9531_v18, %v9535_v46 }
 0xa17   : > { %12965 = vmatpush1.bf16.msra.mxu0 %v15293_v45  ;;  %12919 = vmatprep.subr.bf16.mxu1 %v15182_v47  ;;  %v9651_v36 = vld [vmem:[%s16890_s19 + $0xbd8] sm:$0xff]  ;;  %v15149_v47 = vcombine.low %v9427_v14, %v9431_v17  ;;  %v15142_v1 = vcombine.high %v9419_v25, %v9423_v37  ;;  %v15141_v13 = vcombine.low %v9419_v25, %v9423_v37 }
 0xa18   : > { %12966 = vmatprep.subr.bf16.mxu0 %v15286_v33  ;;  %v9655_v45 = vld [vmem:[%s16890_s19 + $0xbf8] sm:$0xff] }
 0xa19   : > { %v12625_v40 = vpop.f32.mrf.mxu1  ;;  %12870 = vmatmul.mubr.bf16.vlgmr.msra.gmra.mxu1 %v18521_v52  ;;  %v15374_v33 = vcombine.high %v9651_v36, %v9655_v45  ;;  %v9639_v43 = vld [vmem:[%s16890_s19 + $0xb78] sm:$0xff] }
 0xa1a   : > { %v12626_v3 = vadd.f32 %v12625_v40, %v12585_v53  ;;  %12920 = vmatpush1.bf16.msra.mxu1 %v15181_v39  ;;  %12951 = vmatprep.mubr.bf16.mxu1 %v18304_v11  ;;  %v9539_v11 = vld [vmem:[%s16890_s19 + $0x858] sm:$0xff]  ;;  %v15373_v39 = vcombine.low %v9651_v36, %v9655_v45  ;;  %v15133_v40 = vcombine.low %v9411_v49, %v9415_v59 }
 0xa1b   : > { %v12627_v9 = vpop.f32.mrf.mxu1  ;;  %12967 = vmatpush1.bf16.msra.mxu0 %v15285_v32  ;;  %12921 = vmatprep.subr.bf16.mxu1 %v15174_v28  ;;  %v15134_v32 = vcombine.high %v9411_v49, %v9415_v59  ;;  %v15366_v28 = vcombine.high %v9643_v35, %v9647_v54  ;;  %v9403_v53 = vld [vmem:[%s16890_s19 + $0x418] sm:$0xff] }
 0xa1c   : > { %v12628_v26 = vadd.f32 %v12627_v9, %v12587_v58  ;;  %12968 = vmatprep.subr.bf16.mxu0 %v15278_v48  ;;  %v18846_v16 = vadd.f32 %v18814_v8, %v12626_v3  ;;  %v15262_v8 = vcombine.high %v9539_v11, %v9543_v2  ;;  %v9407_v48 = vld [vmem:[%s16890_s19 + $0x438] sm:$0xff]  ;;  %v15358_v58 = vcombine.high %v9635_v41, %v9639_v43 }
 0xa1d   : > { %v12629_v5 = vpop.f32.mrf.mxu1  ;;  %v15126_v20 = vcombine.high %v9403_v53, %v9407_v48  ;;  %v9523_v3 = vld [vmem:[%s16890_s19 + $0x7d8] sm:$0xff] }
 0xa1e   : > { %12922 = vmatpush1.bf16.msra.mxu1 %v15173_v27  ;;  %v18850_v31 = vadd.f32 %v12668_v63, %v12628_v26  ;;  %v15261_v63 = vcombine.low %v9539_v11, %v9543_v2  ;;  %v9527_v27 = vld [vmem:[%s16890_s19 + $0x7f8] sm:$0xff]  ;;  %v15357_v26 = vcombine.low %v9635_v41, %v9639_v43 }
 0xa1f   : > { %v12630_v51 = vpop.f32.mrf.mxu1  ;;  %12969 = vmatpush1.bf16.msra.mxu0 %v15277_v24  ;;  %12923 = vmatprep.subr.bf16.mxu1 %v15166_v57  ;;  %v9627_v9 = vld [vmem:[%s16890_s19 + $0xb18] sm:$0xff]  ;;  %v15125_v57 = vcombine.low %v9403_v53, %v9407_v48 }
 0xa20   : > { %12970 = vmatprep.subr.bf16.mxu0 %v15270_v60  ;;  %v9631_v24 = vld [vmem:[%s16890_s19 + $0xb38] sm:$0xff]  ;;  %v15246_v60 = vcombine.high %v9523_v3, %v9527_v27 }
 0xa21   : > { %v15350_v4 = vcombine.high %v9627_v9, %v9631_v24  ;;  %v9515_v61 = vld [vmem:[%s16890_s19 + $0x798] sm:$0xff]  ;;  %v15349_v51 = vcombine.low %v9627_v9, %v9631_v24  ;;  %v16116_v24 = vld [vmem:[%s16899_s30 + $0x70] sm:$0xff]  }
 0xa22   : > { %12924 = vmatpush1.bf16.msra.mxu1 %v15165_v38  ;;  %v9519_v5 = vld [vmem:[%s16890_s19 + $0x7b8] sm:$0xff]  ;;  %v15245_v38 = vcombine.low %v9523_v3, %v9527_v27  ;;  %v16115_v27 = vld [vmem:[%s16899_s30 + $0x38] sm:$0xff]  }
 0xa23   : > { %12971 = vmatpush1.bf16.msra.mxu0 %v15269_v10  ;;  %12925 = vmatprep.subr.bf16.mxu1 %v15158_v6  ;;  %v9619_v11 = vld [vmem:[%s16890_s19 + $0xad8] sm:$0xff]  ;;  %v15238_v10 = vcombine.high %v9515_v61, %v9519_v5  ;;  %v15237_v46 = vcombine.low %v9515_v61, %v9519_v5  ;;  %v16117_v61 = vld [vmem:[%s16899_s30 + $0x30] sm:$0xff]  }
 0xa24   : > { %12972 = vmatprep.subr.bf16.mxu0 %v15262_v8  ;;  %v9623_v2 = vld [vmem:[%s16890_s19 + $0xaf8] sm:$0xff] }
 0xa25   : > { %v15342_v6 = vcombine.high %v9619_v11, %v9623_v2  ;;  %v9507_v8 = vld [vmem:[%s16890_s19 + $0x758] sm:$0xff] }
 0xa26   : > { %12926 = vmatpush1.bf16.msra.mxu1 %v15157_v21  ;;  %v9511_v14 = vld [vmem:[%s16890_s19 + $0x778] sm:$0xff]  ;;  %v15341_v21 = vcombine.low %v9619_v11, %v9623_v2 }
 0xa27   : > { %12973 = vmatpush1.bf16.msra.mxu0 %v15261_v63  ;;  %12927 = vmatprep.subr.bf16.mxu1 %v15150_v0  ;;  %v9611_v17 = vld [vmem:[%s16890_s19 + $0xa98] sm:$0xff]  ;;  %v15230_v63 = vcombine.high %v9507_v8, %v9511_v14  ;;  %v15229_v45 = vcombine.low %v9507_v8, %v9511_v14 }
 0xa28   : > { %12974 = vmatprep.subr.bf16.mxu0 %v15254_v44  ;;  %v9615_v18 = vld [vmem:[%s16890_s19 + $0xab8] sm:$0xff] }
 0xa29   : > { %v15334_v0 = vcombine.high %v9611_v17, %v9615_v18  ;;  %v9499_v44 = vld [vmem:[%s16890_s19 + $0x718] sm:$0xff] }
 0xa2a   : > { %12928 = vmatpush1.bf16.msra.mxu1 %v15149_v47  ;;  %v9503_v25 = vld [vmem:[%s16890_s19 + $0x738] sm:$0xff]  ;;  %v15333_v47 = vcombine.low %v9611_v17, %v9615_v18  ;;  %v16120_v17 = vld [vmem:[%s16899_s30 + $0x60] sm:$0xff]  }
 0xa2b   : > { %12975 = vmatpush1.bf16.msra.mxu0 %v15253_v30  ;;  %12929 = vmatprep.subr.bf16.mxu1 %v15142_v1  ;;  %v9603_v37 = vld [vmem:[%s16890_s19 + $0xa58] sm:$0xff]  ;;  %v15222_v30 = vcombine.high %v9499_v44, %v9503_v25  ;;  %v15221_v54 = vcombine.low %v9499_v44, %v9503_v25  ;;  %v16122_v44 = vld [vmem:[%s16899_s30 + $0x58] sm:$0xff]  }
 0xa2c   : > { %12976 = vmatprep.subr.bf16.mxu0 %v15374_v33  ;;  %v9607_v36 = vld [vmem:[%s16890_s19 + $0xa78] sm:$0xff] }
 0xa2d   : > { %v15326_v1 = vcombine.high %v9603_v37, %v9607_v36  ;;  %v9491_v33 = vld [vmem:[%s16890_s19 + $0x6d8] sm:$0xff] }
 0xa2e   : > { %12930 = vmatpush1.bf16.msra.mxu1 %v15141_v13  ;;  %v9495_v49 = vld [vmem:[%s16890_s19 + $0x6f8] sm:$0xff]  ;;  %v15325_v13 = vcombine.low %v9603_v37, %v9607_v36 }
 0xa2f   : > { %12977 = vmatpush2.bf16.msra.mxu0 %v15373_v39  ;;  %12931 = vmatprep.subr.bf16.mxu1 %v15134_v32  ;;  %v9595_v59 = vld [vmem:[%s16890_s19 + $0xa18] sm:$0xff]  ;;  %v15214_v39 = vcombine.high %v9491_v33, %v9495_v49  ;;  %v15213_v48 = vcombine.low %v9491_v33, %v9495_v49  ;;  %v16124_v49 = vld [vmem:[%s16899_s30 + $0x50] sm:$0xff]  }
 0xa30   : > { %12978 = vmatprep.subr.bf16.mxu0 %v15366_v28  ;;  %v9599_v35 = vld [vmem:[%s16890_s19 + $0xa38] sm:$0xff] }
 0xa31   : > { %v15318_v32 = vcombine.high %v9595_v59, %v9599_v35  ;;  %v9483_v28 = vld [vmem:[%s16890_s19 + $0x698] sm:$0xff]  ;;  %v15317_v41 = vcombine.low %v9595_v59, %v9599_v35 }
 0xa32   : > { %12932 = vmatpush1.bf16.msra.mxu1 %v15133_v40  ;;  %v9487_v53 = vld [vmem:[%s16890_s19 + $0x6b8] sm:$0xff]  ;;  %v16114_v40 = vld [vmem:[%s16899_s30 + $0x78] sm:$0xff]  }
 0xa33   : > { %12979 = vmatpush2.bf16.msra.mxu0 %v15365_v23  ;;  %12933 = vmatprep.subr.bf16.mxu1 %v15126_v20  ;;  %v15206_v43 = vcombine.high %v9483_v28, %v9487_v53  ;;  %v13043_v23 = vmax.f32 %v18760_v62, 0.0  ;;  %v9475_v20 = vld [vmem:[%s16890_s19 + $0x658] sm:$0xff]  ;;  %v15205_v3 = vcombine.low %v9483_v28, %v9487_v53 }
 0xa34   : > { %12980 = vmatprep.subr.bf16.mxu0 %v15358_v58  ;;  %v9479_v58 = vld [vmem:[%s16890_s19 + $0x678] sm:$0xff] }
 0xa35   : > { %v15198_v9 = vcombine.high %v9475_v20, %v9479_v58  ;;  %v15197_v62 = vcombine.low %v9475_v20, %v9479_v58  ;;  %v16118_v2 = vld [vmem:[%s16899_s30 + $0x68] sm:$0xff]   ;;  %v16129_v58 = vld [vmem:[%s16899_s30] sm:$0xff]  }
 0xa36   : > { %12934 = vmatpush1.bf16.msra.mxu1 %v15125_v57  ;;  %v9467_v57 = vld [vmem:[%s16890_s19 + $0x618] sm:$0xff] }
 0xa37   : > { %12981 = vmatpush2.bf16.msra.mxu0 %v15357_v26  ;;  %12935 = vmatprep.subr.bf16.mxu1 %v15246_v60  ;;  %v9471_v26 = vld [vmem:[%s16890_s19 + $0x638] sm:$0xff]  ;;  %v13051_v60 = vpack.c.bf16 %v13043_v23, %v13043_v23 }
 0xa38   : > { %12982 = vmatprep.subr.bf16.mxu0 %v15350_v4  ;;  %v15190_v5 = vcombine.high %v9467_v57, %v9471_v26  ;;  %v9707_v18 = vld [vmem:[%s16890_s19 + $0xd98] sm:$0xff] }
 0xa39   : > { %v9699_v25 = vld [vmem:[%s16890_s19 + $0xd58] sm:$0xff] }
 0xa3a   : > { %12936 = vmatpush2.bf16.msra.mxu1 %v15245_v38  ;;  %v9715_v38 = vld [vmem:[%s16890_s19 + $0xdd8] sm:$0xff] }
 0xa3b   : > { %12983 = vmatpush2.bf16.msra.mxu0 %v15349_v51  ;;  %12937 = vmatprep.subr.bf16.mxu1 %v15238_v10  ;;  %v9719_v51 = vld [vmem:[%s16890_s19 + $0xdf8] sm:$0xff] }
 0xa3c   : > { %12984 = vmatprep.subr.bf16.mxu0 %v15342_v6  ;;  %v16119_v6 = vld [vmem:[%s16899_s30 + $0x28] sm:$0xff]   ;;  %v15438_v8 = vcombine.high %v9715_v38, %v9719_v51 }
 0xa3d   : > { %v9703_v37 = vld [vmem:[%s16890_s19 + $0xd78] sm:$0xff] }
 0xa3e   : > { %12938 = vmatpush2.bf16.msra.mxu1 %v15237_v46  ;;  %v9711_v46 = vld [vmem:[%s16890_s19 + $0xdb8] sm:$0xff]  ;;  %v15422_v33 = vcombine.high %v9699_v25, %v9703_v37  ;;  %v15421_v35 = vcombine.low %v9699_v25, %v9703_v37  ;;  %v16153_v25 = vld [vmem:[%s16899_s30 + $0x120] sm:$0xff]  }
 0xa3f   : > { %12985 = vmatpush2.bf16.msra.mxu0 %v15341_v21  ;;  %12939 = vmatprep.subr.bf16.mxu1 %v15230_v63  ;;  %v15437_v21 = vcombine.low %v9715_v38, %v9719_v51  ;;  %v16121_v63 = vld [vmem:[%s16899_s30 + $0x20] sm:$0xff]   ;;  %v9695_v59 = vld [vmem:[%s16890_s19 + $0xd38] sm:$0xff]  ;;  %v16148_v38 = vld [vmem:[%s16899_s30 + $0x170] sm:$0xff]  }
 0xa40   : > { %12986 = vmatprep.subr.bf16.mxu0 %v15334_v0  ;;  %v15430_v0 = vcombine.high %v9707_v18, %v9711_v46  ;;  %v9687_v28 = vld [vmem:[%s16890_s19 + $0xcf8] sm:$0xff] }
 0xa41   : > { %v9679_v23 = vld [vmem:[%s16890_s19 + $0xcb8] sm:$0xff] }
 0xa42   : > { %12940 = vmatpush2.bf16.msra.mxu1 %v15229_v45  ;;  %v9763_v37 = vld [vmem:[%s16890_s19 + $0xf58] sm:$0xff] }
 0xa43   : > { %12987 = vmatpush2.bf16.msra.mxu0 %v15333_v47  ;;  %12941 = vmatprep.subr.bf16.mxu1 %v15222_v30  ;;  %v15429_v47 = vcombine.low %v9707_v18, %v9711_v46  ;;  %v16151_v18 = vld [vmem:[%s16899_s30 + $0x128] sm:$0xff]  }
 0xa44   : > { %12988 = vmatprep.subr.bf16.mxu0 %v15326_v1  ;;  %v16123_v1 = vld [vmem:[%s16899_s30 + $0x18] sm:$0xff]   ;;  %v9771_v46 = vld [vmem:[%s16890_s19 + $0xf98] sm:$0xff] }
 0xa46   : > { %12942 = vmatpush2.bf16.msra.mxu1 %v15221_v54  ;;  %v16125_v54 = vld [vmem:[%s16899_s30 + $0x10] sm:$0xff]  }
 0xa47   : > { %12989 = vmatpush2.bf16.msra.mxu0 %v15325_v13  ;;  %12943 = vmatprep.subr.bf16.mxu1 %v15214_v39  ;;  %v16126_v39 = vld [vmem:[%s16899_s30 + $0x48] sm:$0xff]  }
 0xa48   : > { %12990 = vmatprep.subr.bf16.mxu0 %v15318_v32  ;;  %v9683_v32 = vld [vmem:[%s16890_s19 + $0xcd8] sm:$0xff] }
 0xa49   : > { %v15405_v20 = vcombine.low %v9683_v32, %v9687_v28 }
 0xa4a   : > { %12944 = vmatpush2.bf16.msra.mxu1 %v15213_v48  ;;  %v16127_v48 = vld [vmem:[%s16899_s30 + $0x8] sm:$0xff]  }
 0xa4b   : > { %12991 = vmatpush2.bf16.msra.mxu0 %v15317_v41  ;;  %12945 = vmatprep.subr.bf16.mxu1 %v15206_v43  ;;  %v15406_v41 = vcombine.high %v9683_v32, %v9687_v28  ;;  %v16128_v43 = vld [vmem:[%s16899_s30 + $0x40] sm:$0xff]   ;;  %v16158_v32 = vld [vmem:[%s16899_s30 + $0x148] sm:$0xff]  }
 0xa4c   : > { %15874 = vmatprep.subr.bf16.mxu0 %v16114_v40  ;;  %v9675_v40 = vld [vmem:[%s16890_s19 + $0xc98] sm:$0xff] }
 0xa4e   : > { %v18898_v4 = vpop.f32.mrf.mxu0  ;;  %12946 = vmatpush2.bf16.msra.mxu1 %v15205_v3  ;;  %12993 = vmatmul.mubr.bf16.vlgmr.msra.gmra.mxu0 %v18462_v22  ;;  %v15189_v22 = vcombine.low %v9467_v57, %v9471_v26  ;;  %v15398_v3 = vcombine.high %v9675_v40, %v9679_v23  ;;  %v16146_v57 = vld [vmem:[%s16899_s30 + $0x178] sm:$0xff]   ;;  %v15397_v26 = vcombine.low %v9675_v40, %v9679_v23  ;;  %v16160_v40 = vld [vmem:[%s16899_s30 + $0x140] sm:$0xff]  }
 0xa4f   : > { %15875 = vmatpush3.bf16.msra.mxu0 %v16115_v27  ;;  %13609 = vmatprep.mubr.bf16.mxu0 %v13051_v60  ;;  %v13042_v27 = vmax.f32 %v18756_v55, 0.0 }
 0xa50   : > { %v18902_v11 = vpop.f32.mrf.mxu0  ;;  %12947 = vmatprep.subr.bf16.mxu1 %v15198_v9  ;;  %15876 = vmatprep.subr.bf16.mxu0 %v16116_v24  ;;  %v9667_v9 = vld [vmem:[%s16890_s19 + $0xc58] sm:$0xff] }
 0xa51   : > { %v9671_v24 = vld [vmem:[%s16890_s19 + $0xc78] sm:$0xff] }
 0xa52   : > { %v12752_v10 = vpop.f32.mrf.mxu0  ;;  %12948 = vmatpush2.bf16.msra.mxu1 %v15197_v62  ;;  %v15390_v60 = vcombine.high %v9667_v9, %v9671_v24  ;;  %v16147_v62 = vld [vmem:[%s16899_s30 + $0x138] sm:$0xff]   ;;  %v15389_v55 = vcombine.low %v9667_v9, %v9671_v24 }
 0xa53   : > { %15877 = vmatpush3.bf16.msra.mxu0 %v16117_v61  ;;  %12949 = vmatprep.subr.bf16.mxu1 %v15190_v5  ;;  %v13050_v61 = vpack.c.bf16 %v13042_v27, %v13042_v27  ;;  %v9659_v5 = vld [vmem:[%s16890_s19 + $0xc18] sm:$0xff]  ;;  %v16149_v10 = vld [vmem:[%s16899_s30 + $0x130] sm:$0xff]  }
 0xa54   : > { %v12753_v14 = vpop.f32.mrf.mxu0  ;;  %15878 = vmatprep.subr.bf16.mxu0 %v16118_v2  ;;  %v9663_v2 = vld [vmem:[%s16890_s19 + $0xc38] sm:$0xff] }
 0xa55   : > { %v15382_v51 = vcombine.high %v9659_v5, %v9663_v2  ;;  %v15381_v14 = vcombine.low %v9659_v5, %v9663_v2  ;;  %v9735_v27 = vld [vmem:[%s16890_s19 + $0xe78] sm:$0xff] }
 0xa56   : > { %12950 = vmatpush2.bf16.msra.mxu1 %v15189_v22  ;;  %v9779_v22 = vld [vmem:[%s16890_s19 + $0xfd8] sm:$0xff] }
 0xa57   : > { %15879 = vmatpush3.bf16.msra.mxu0 %v16119_v6  ;;  %13001 = vmatprep.subr.bf16.mxu1 %v15438_v8  ;;  %v9783_v6 = vld [vmem:[%s16890_s19 + $0xff8] sm:$0xff] }
 0xa58   : > { %15880 = vmatprep.subr.bf16.mxu0 %v16120_v17  ;;  %v16150_v8 = vld [vmem:[%s16899_s30 + $0x168] sm:$0xff]   ;;  %v15502_v17 = vcombine.high %v9779_v22, %v9783_v6 }
 0xa59   : > { %v12707_v36 = vpop.f32.mrf.mxu1  ;;  %12952 = vmatmul.mubr.bf16.vlgmr.msra.gmra.mxu1 %v18378_v19  ;;  %v9691_v19 = vld [vmem:[%s16890_s19 + $0xd18] sm:$0xff] }
 0xa5a   : > { %v18917_v45 = vadd.f32 %v12707_v36, %v18846_v16  ;;  %13002 = vmatpush1.bf16.msra.mxu1 %v15437_v21  ;;  %13033 = vmatprep.mubr.bf16.mxu1 %v18519_v7  ;;  %v15414_v13 = vcombine.high %v9691_v19, %v9695_v59  ;;  %v15413_v53 = vcombine.low %v9691_v19, %v9695_v59  ;;  %v9775_v21 = vld [vmem:[%s16890_s19 + $0xfb8] sm:$0xff] }
 0xa5b   : > { %v18920_v30 = vpop.f32.mrf.mxu1  ;;  %15881 = vmatpush3.bf16.msra.mxu0 %v16121_v63  ;;  %13003 = vmatprep.subr.bf16.mxu1 %v15430_v0  ;;  %v16152_v63 = vld [vmem:[%s16899_s30 + $0x160] sm:$0xff]   ;;  %v15501_v0 = vcombine.low %v9779_v22, %v9783_v6  ;;  %v9767_v36 = vld [vmem:[%s16890_s19 + $0xf78] sm:$0xff] }
 0xa5c   : > { %15882 = vmatprep.subr.bf16.mxu0 %v16122_v44  ;;  %v15494_v44 = vcombine.high %v9771_v46, %v9775_v21  ;;  %v9755_v19 = vld [vmem:[%s16890_s19 + $0xf18] sm:$0xff]  ;;  %v12710_v5 = vadd.f32 %v18920_v30, %v18850_v31  ;;  %v16131_v31 = vld [vmem:[%s16899_s30 + $0xb8] sm:$0xff]   ;;  %v16132_v30 = vld [vmem:[%s16899_s30 + $0xf0] sm:$0xff]  }
 0xa5d   : > { %v12711_v16 = vpop.f32.mrf.mxu1  ;;  %v9759_v59 = vld [vmem:[%s16890_s19 + $0xf38] sm:$0xff] }
 0xa5e   : > { %13004 = vmatpush1.bf16.msra.mxu1 %v15429_v47  ;;  %v16154_v47 = vld [vmem:[%s16899_s30 + $0x158] sm:$0xff]   ;;  %v16156_v16 = vld [vmem:[%s16899_s30 + $0x150] sm:$0xff]   ;;  %v15477_v28 = vcombine.low %v9755_v19, %v9759_v59  ;;  %v13045_v22 = vmax.f32 %v12710_v5, 0.0 }
 0xa5f   : > { %v12712_v7 = vpop.f32.mrf.mxu1  ;;  %15883 = vmatpush3.bf16.msra.mxu0 %v16123_v1  ;;  %13005 = vmatprep.subr.bf16.mxu1 %v15422_v33  ;;  %v15493_v1 = vcombine.low %v9771_v46, %v9775_v21  ;;  %v15486_v33 = vcombine.high %v9763_v37, %v9767_v36 }
 0xa60   : > { %15884 = vmatprep.subr.bf16.mxu0 %v16124_v49  ;;  %v16155_v49 = vld [vmem:[%s16899_s30 + $0x118] sm:$0xff]   ;;  %v15478_v7 = vcombine.high %v9755_v19, %v9759_v59  ;;  %v16142_v19 = vld [vmem:[%s16899_s30 + $0xc8] sm:$0xff]  }
 0xa61   : > { %v16143_v59 = vld [vmem:[%s16899_s30 + $0x88] sm:$0xff]  }
 0xa62   : > { %13006 = vmatpush1.bf16.msra.mxu1 %v15421_v35  ;;  %v15485_v35 = vcombine.low %v9763_v37, %v9767_v36  ;;  %v16136_v37 = vld [vmem:[%s16899_s30 + $0xe0] sm:$0xff]  }
 0xa63   : > { %15885 = vmatpush3.bf16.msra.mxu0 %v16125_v54  ;;  %13007 = vmatprep.subr.bf16.mxu1 %v15414_v13  ;;  %v16157_v54 = vld [vmem:[%s16899_s30 + $0x110] sm:$0xff]   ;;  %v9747_v13 = vld [vmem:[%s16890_s19 + $0xed8] sm:$0xff]  ;;  %v16137_v36 = vld [vmem:[%s16899_s30 + $0xa0] sm:$0xff]  }
 0xa64   : > { %15886 = vmatprep.subr.bf16.mxu0 %v16126_v39  ;;  %v9751_v39 = vld [vmem:[%s16890_s19 + $0xef8] sm:$0xff] }
 0xa65   : > { %v15469_v23 = vcombine.low %v9747_v13, %v9751_v39 }
 0xa66   : > { %13008 = vmatpush1.bf16.msra.mxu1 %v15413_v53  ;;  %v15470_v53 = vcombine.high %v9747_v13, %v9751_v39  ;;  %v16163_v13 = vld [vmem:[%s16899_s30 + $0x1b8] sm:$0xff]  }
 0xa67   : > { %15887 = vmatpush3.bf16.msra.mxu0 %v16127_v48  ;;  %13009 = vmatprep.subr.bf16.mxu1 %v15406_v41  ;;  %v16159_v48 = vld [vmem:[%s16899_s30 + $0x108] sm:$0xff]  }
 0xa68   : > { %15888 = vmatprep.subr.bf16.mxu0 %v16128_v43  ;;  %v9739_v41 = vld [vmem:[%s16890_s19 + $0xe98] sm:$0xff] }
 0xa69   : > { %v9743_v43 = vld [vmem:[%s16890_s19 + $0xeb8] sm:$0xff] }
 0xa6a   : > { %13010 = vmatpush1.bf16.msra.mxu1 %v15405_v20  ;;  %v15462_v20 = vcombine.high %v9739_v41, %v9743_v43  ;;  %v15461_v9 = vcombine.low %v9739_v41, %v9743_v43  ;;  %v16169_v41 = vld [vmem:[%s16899_s30 + $0x1a0] sm:$0xff]   ;;  %v16170_v43 = vld [vmem:[%s16899_s30 + $0x1d8] sm:$0xff]  }
 0xa6b   : > { %15889 = vmatpush3.bf16.msra.mxu0 %v16129_v58  ;;  %13011 = vmatprep.subr.bf16.mxu1 %v15398_v3  ;;  %v16161_v58 = vld [vmem:[%s16899_s30 + $0x100] sm:$0xff]   ;;  %v9731_v3 = vld [vmem:[%s16890_s19 + $0xe58] sm:$0xff] }
 0xa6c   : > { %15918 = vmatprep.subr.bf16.mxu0 %v16146_v57  ;;  %v15454_v24 = vcombine.high %v9731_v3, %v9735_v27  ;;  %v9723_v57 = vld [vmem:[%s16890_s19 + $0xe18] sm:$0xff] }
 0xa6e   : > { %13012 = vmatpush1.bf16.msra.mxu1 %v15397_v26  ;;  %13610 = vmatmul.mubr.bf16.vlgmr.msra.gmra.mxu0 %v13050_v61  ;;  %v9727_v26 = vld [vmem:[%s16890_s19 + $0xe38] sm:$0xff] }
 0xa6f   : > { %13013 = vmatprep.subr.bf16.mxu1 %v15390_v60  ;;  %15919 = vmatpush3.bf16.msra.mxu0 %v16147_v62  ;;  %v15453_v62 = vcombine.low %v9731_v3, %v9735_v27  ;;  %v15446_v61 = vcombine.high %v9723_v57, %v9727_v26 }
 0xa70   : > { %15920 = vmatprep.subr.bf16.mxu0 %v16148_v38 }
 0xa72   : > { %13014 = vmatpush1.bf16.msra.mxu1 %v15389_v55  ;;  %v15445_v55 = vcombine.low %v9723_v57, %v9727_v26  ;;  %v16174_v26 = vld [vmem:[%s16899_s30 + $0x1c8] sm:$0xff]  }
 0xa73   : > { %13015 = vmatprep.subr.bf16.mxu1 %v15382_v51  ;;  %15921 = vmatpush3.bf16.msra.mxu0 %v16149_v10  ;;  %v16130_v51 = vld [vmem:[%s16899_s30 + $0xf8] sm:$0xff]   ;;  %v9805_v10 = vrot.slane %v18823_v42, %v2802_v50 }
 0xa74   : > { %15922 = vmatprep.subr.bf16.mxu0 %v16150_v8  ;;  %v9809_v8 = vrot.slane %v18823_v42, %v2806_v12  ;;  %v16133_v12 = vld [vmem:[%s16899_s30 + $0xb0] sm:$0xff]  }
 0xa76   : > { %13016 = vmatpush1.bf16.msra.mxu1 %v15381_v14  ;;  %v12749_v14 = vadd.f32 %v18898_v4, %v9805_v10  ;;  %v12751_v50 = vadd.f32 %v18902_v11, %v9809_v8  ;;  %v16177_v10 = vld [vmem:[%s16899_s30 + $0x180] sm:$0xff]   ;;  %v1643_v8 = vand.u32 127, %v1642_v56  ;;  %v9817_v56 = vrot.slane %v18823_v42, %v2814_v34 }
 0xa77   : > { %13017 = vmatprep.subr.bf16.mxu1 %v15502_v17  ;;  %15923 = vmatpush3.bf16.msra.mxu0 %v16151_v18  ;;  %v13053_v17 = vpack.c.bf16 %v13045_v22, %v13045_v22 }
 0xa78   : > { %15924 = vmatprep.subr.bf16.mxu0 %v16152_v63  ;;  %v16134_v63 = vld [vmem:[%s16899_s30 + $0xe8] sm:$0xff]  }
 0xa7a   : > { %13018 = vmatpush2.bf16.msra.mxu1 %v15501_v0 }
 0xa7b   : > { %13019 = vmatprep.subr.bf16.mxu1 %v15494_v44  ;;  %15925 = vmatpush3.bf16.msra.mxu0 %v16153_v25 }
 0xa7c   : > { %15926 = vmatprep.subr.bf16.mxu0 %v16154_v47  ;;  %v16138_v47 = vld [vmem:[%s16899_s30 + $0xd8] sm:$0xff]  }
 0xa7e   : > { %13020 = vmatpush2.bf16.msra.mxu1 %v15493_v1  ;;  %v16139_v1 = vld [vmem:[%s16899_s30 + $0x98] sm:$0xff]  }
 0xa7f   : > { %13021 = vmatprep.subr.bf16.mxu1 %v15486_v33  ;;  %15927 = vmatpush3.bf16.msra.mxu0 %v16155_v49  ;;  %v16140_v33 = vld [vmem:[%s16899_s30 + $0xd0] sm:$0xff]  }
 0xa80   : > { %15928 = vmatprep.subr.bf16.mxu0 %v16156_v16  ;;  %v16141_v49 = vld [vmem:[%s16899_s30 + $0x90] sm:$0xff]   ;;  %v16144_v16 = vld [vmem:[%s16899_s30 + $0xc0] sm:$0xff]  }
 0xa82   : > { %13022 = vmatpush2.bf16.msra.mxu1 %v15485_v35  ;;  %v16145_v35 = vld [vmem:[%s16899_s30 + $0x80] sm:$0xff]  }
 0xa83   : > { %13023 = vmatprep.subr.bf16.mxu1 %v15478_v7  ;;  %15929 = vmatpush3.bf16.msra.mxu0 %v16157_v54  ;;  %v13044_v7 = vmax.f32 %v18917_v45, 0.0  ;;  %v16162_v54 = vld [vmem:[%s16899_s30 + $0x1f8] sm:$0xff]   ;;  %v16167_v45 = vld [vmem:[%s16899_s30 + $0x1a8] sm:$0xff]  }
 0xa84   : > { %15930 = vmatprep.subr.bf16.mxu0 %v16158_v32  ;;  %v16164_v32 = vld [vmem:[%s16899_s30 + $0x1f0] sm:$0xff]  }
 0xa85   : > { %v13052_v39 = vpack.c.bf16 %v13044_v7, %v13044_v7 }
 0xa86   : > { %13024 = vmatpush2.bf16.msra.mxu1 %v15477_v28  ;;  %v16165_v28 = vld [vmem:[%s16899_s30 + $0x1b0] sm:$0xff]  }
 0xa87   : > { %13025 = vmatprep.subr.bf16.mxu1 %v15470_v53  ;;  %15931 = vmatpush3.bf16.msra.mxu0 %v16159_v48  ;;  %v16166_v53 = vld [vmem:[%s16899_s30 + $0x1e8] sm:$0xff]   ;;  %v16168_v48 = vld [vmem:[%s16899_s30 + $0x1e0] sm:$0xff]  }
 0xa88   : > { %15932 = vmatprep.subr.bf16.mxu0 %v16160_v40  ;;  %v16171_v40 = vld [vmem:[%s16899_s30 + $0x198] sm:$0xff]  }
 0xa8a   : > { %13026 = vmatpush2.bf16.msra.mxu1 %v15469_v23  ;;  %v16172_v23 = vld [vmem:[%s16899_s30 + $0x1d0] sm:$0xff]  }
 0xa8b   : > { %13027 = vmatprep.subr.bf16.mxu1 %v15462_v20  ;;  %15933 = vmatpush3.bf16.msra.mxu0 %v16161_v58  ;;  %v16173_v20 = vld [vmem:[%s16899_s30 + $0x190] sm:$0xff]  }
 0xa8e   : > { %v12830_v60 = vpop.f32.mrf.mxu0  ;;  %13028 = vmatpush2.bf16.msra.mxu1 %v15461_v9 }
 0xa8f   : > { %13029 = vmatprep.subr.bf16.mxu1 %v15454_v24 }
 0xa90   : > { %v12832_v2 = vpop.f32.mrf.mxu0 }
 0xa92   : > { %v12834_v38 = vpop.f32.mrf.mxu0  ;;  %13030 = vmatpush2.bf16.msra.mxu1 %v15453_v62  ;;  %v16175_v62 = vld [vmem:[%s16899_s30 + $0x188] sm:$0xff]  }
 0xa93   : > { %13031 = vmatprep.subr.bf16.mxu1 %v15446_v61 }
 0xa94   : > { %v12835_v6 = vpop.f32.mrf.mxu0 }
 0xa96   : > { %13032 = vmatpush2.bf16.msra.mxu1 %v15445_v55  ;;  %v16176_v55 = vld [vmem:[%s16899_s30 + $0x1c0] sm:$0xff]  }
 0xa97   : > { %15896 = vmatprep.subr.bf16.mxu1 %v16130_v51 }
 0xa99   : > { %v12789_v18 = vpop.f32.mrf.mxu1  ;;  %13034 = vmatmul.mubr.bf16.vlgmr.msra.gmra.mxu1 %v18521_v52  ;;  %v16135_v52 = vld [vmem:[%s16899_s30 + $0xa8] sm:$0xff]  }
 0xa9a   : > { %v12790_v46 = vadd.f32 %v12789_v18, %v12749_v14  ;;  %15897 = vmatpush3.bf16.msra.mxu1 %v16131_v31  ;;  %13649 = vmatprep.mubr.bf16.mxu1 %v13053_v17  ;;  %v1644_v31 = vstv %s16608_s21  ;;  %v16527_v14 = vmov 0.0  }
 0xa9b   : > { %v12791_v21 = vpop.f32.mrf.mxu1  ;;  %15898 = vmatprep.subr.bf16.mxu1 %v16132_v30  ;;  %v1648_v30 = vld [vmem:[#allocation2] sm:$0x3]  ;;  %vm1645_vm2 = vcmp.eq.s32.totalorder %v1643_v8, %v1644_v31 }
 0xa9c   : > { %v12792_v0 = vadd.f32 %v12791_v21, %v12751_v50  ;;  %v12831_v4 = vadd.f32 %v12830_v60, %v12790_v46  ;;  %v13966_v17 = vsel %vm1645_vm2, 1.0, %v16527_v14 }
 0xa9d   : > { %v12793_v44 = vpop.f32.mrf.mxu1  ;;  %v1649_v18 = vmul.f32 %v13966_v17, %v1648_v30 }
 0xa9e   : > { %15899 = vmatpush3.bf16.msra.mxu1 %v16133_v12  ;;  %v12833_v11 = vadd.f32 %v12832_v2, %v12792_v0 }
 0xa9f   : > { %v12794_v25 = vpop.f32.mrf.mxu1  ;;  %15900 = vmatprep.subr.bf16.mxu1 %v16134_v63  ;;  %v1651_v50 = vsel %vm1650_vm3, %v1649_v18, 0.0  ;;  %v9813_v63 = vrot.slane %v18823_v42, %v2810_v29 }
 0xaa0   : > { %1652 = vadd.xlane.f32.xlu0 %v1651_v50 }
 0xaa2   : > { %15901 = vmatpush3.bf16.msra.mxu1 %v16135_v52 }
 0xaa3   : > { %15902 = vmatprep.subr.bf16.mxu1 %v16136_v37 }
 0xaa6   : > { %15903 = vmatpush3.bf16.msra.mxu1 %v16137_v36 }
 0xaa7   : > { %15904 = vmatprep.subr.bf16.mxu1 %v16138_v47 }
 0xaaa   : > { %15905 = vmatpush3.bf16.msra.mxu1 %v16139_v1 }
 0xaab   : > { %15906 = vmatprep.subr.bf16.mxu1 %v16140_v33 }
 0xaae   : > { %15907 = vmatpush3.bf16.msra.mxu1 %v16141_v49 }
 0xaaf   : > { %15908 = vmatprep.subr.bf16.mxu1 %v16142_v19 }
 0xab2   : > { %15909 = vmatpush3.bf16.msra.mxu1 %v16143_v59 }
 0xab3   : > { %15910 = vmatprep.subr.bf16.mxu1 %v16144_v16 }
 0xab6   : > { %15911 = vmatpush3.bf16.msra.mxu1 %v16145_v35 }
 0xab7   : > { %15940 = vmatprep.subr.bf16.mxu1 %v16162_v54 }
 0xab9   : > { %13650 = vmatmul.mubr.bf16.vlgmr.msra.gmra.mxu1 %v13052_v39 }
 0xaba   : > { %15941 = vmatpush3.bf16.msra.mxu1 %v16163_v13 }
 0xabb   : > { %15942 = vmatprep.subr.bf16.mxu1 %v16164_v32 }
 0xabe   : > { %15943 = vmatpush3.bf16.msra.mxu1 %v16165_v28 }
 0xabf   : > { %15944 = vmatprep.subr.bf16.mxu1 %v16166_v53  ;;  %v15503_v53 = vld [vmem:[%s556_s27] ss:$0 sm:$0xff] }
 0xac2   : > { %15945 = vmatpush3.bf16.msra.mxu1 %v16167_v45 }
 0xac3   : > { %15946 = vmatprep.subr.bf16.mxu1 %v16168_v48 }
 0xac6   : > { %15947 = vmatpush3.bf16.msra.mxu1 %v16169_v41 }
 0xac7   : > { %15948 = vmatprep.subr.bf16.mxu1 %v16170_v43 }
 0xaca   : > { %15949 = vmatpush3.bf16.msra.mxu1 %v16171_v40 }
 0xacb   : > { %15950 = vmatprep.subr.bf16.mxu1 %v16172_v23 }
 0xace   : > { %v12912_v58 = vpop.f32.mrf.mxu0  ;;  %15951 = vmatpush3.bf16.msra.mxu1 %v16173_v20 }
 0xacf   : > { %15952 = vmatprep.subr.bf16.mxu1 %v16174_v26 }
 0xad0   : > { %v12914_v3 = vpop.f32.mrf.mxu0 }
 0xad1   : > { %v12915_v52 = vadd.f32 %v12914_v3, %v9817_v56 }
 0xad2   : > { %v12916_v27 = vpop.f32.mrf.mxu0  ;;  %15953 = vmatpush3.bf16.msra.mxu1 %v16175_v62 }
 0xad3   : > { %15954 = vmatprep.subr.bf16.mxu1 %v16176_v55 }
 0xad4   : > { %v12917_v9 = vpop.f32.mrf.mxu0 }
 0xad6   : > { %15955 = vmatpush3.bf16.msra.mxu1 %v16177_v10 }
 0xad9   : > { %v12871_v24 = vpop.f32.mrf.mxu1 }
 0xada   : > { %v12872_v57 = vadd.f32 %v12871_v24, %v12831_v4  ;;  %v12913_v4 = vadd.f32 %v12912_v58, %v9813_v63 }
 0xadb   : > { %v12873_v60 = vpop.f32.mrf.mxu1 }
 0xadc   : > { %v12874_v61 = vadd.f32 %v12873_v60, %v12833_v11  ;;  %v13046_v5 = vmax.f32 %v12872_v57, 0.0 }
 0xadd   : > { %v12875_v2 = vpop.f32.mrf.mxu1 }
 0xade   : > { %v13047_v38 = vmax.f32 %v12874_v61, 0.0  ;;  %v13054_v6 = vpack.c.bf16 %v13046_v5, %v13046_v5 }
 0xadf   : > { %v12876_v51 = vpop.f32.mrf.mxu1 }
 0xae0   : > { %v13055_v22 = vpack.c.bf16 %v13047_v38, %v13047_v38  ;;  %v13737_v38 = vld [vmem:[#allocation18] sm:$0x3] }
 0xae2   : > { %13689 = vmatprep.mubr.bf16.mxu0 %v13055_v22 }
 0xae3   : > { %13690 = vmatmul.mubr.bf16.vlgmr.msra.gmra.mxu0 %v13054_v6 }
 0xb0e   : > { %v12994_v46 = vpop.f32.mrf.mxu0 }
 0xb10   : > { %v12996_v12 = vpop.f32.mrf.mxu0 }
 0xb12   : > { %v12998_v21 = vpop.f32.mrf.mxu0 }
 0xb14   : > { %v12999_v0 = vpop.f32.mrf.mxu0 }
 0xb19   : > { %v12953_v44 = vpop.f32.mrf.mxu1 }
 0xb1a   : > { %v12954_v11 = vadd.f32 %v12953_v44, %v12913_v4 }
 0xb1b   : > { %v12955_v25 = vpop.f32.mrf.mxu1 }
 0xb1c   : > { %v12956_v37 = vadd.f32 %v12955_v25, %v12915_v52  ;;  %v12995_v36 = vadd.f32 %v12994_v46, %v12954_v11 }
 0xb1d   : > { %v12957_v47 = vpop.f32.mrf.mxu1 }
 0xb1e   : > { %v12997_v1 = vadd.f32 %v12996_v12, %v12956_v37 }
 0xb1f   : > { %v12958_v33 = vpop.f32.mrf.mxu1 }
 0xb29   : > { %v1653_v5 = vpop.xlane.xlu0 %1652 }
 0xb2e   : > { %v15890_v49 = vpop.f32.mrf.mxu0 }
 0xb30   : > { %v15891_v19 = vpop.f32.mrf.mxu0 }
 0xb31   : > { %v15892_v59 = vadd.f32 %v15891_v19, %v15890_v49 }
 0xb32   : > { %v15893_v29 = vpop.f32.mrf.mxu0 }
 0xb33   : > { %v13612_v41 = vadd.f32 %v15892_v59, %v15503_v53 }
 0xb34   : > { %v15894_v16 = vpop.f32.mrf.mxu0 }
 0xb59   : > { %v13035_v35 = vpop.f32.mrf.mxu1 }
 0xb5a   : > { %v13036_v15 = vadd.f32 %v13035_v35, %v12995_v36 }
 0xb5b   : > { %v13037_v7 = vpop.f32.mrf.mxu1 }
 0xb5c   : > { %v13038_v34 = vadd.f32 %v13037_v7, %v12997_v1  ;;  %v13048_v42 = vmax.f32 %v13036_v15, 0.0 }
 0xb5d   : > { %v13039_v54 = vpop.f32.mrf.mxu1 }
 0xb5e   : > { %v13049_v13 = vmax.f32 %v13038_v34, 0.0  ;;  %v13056_v28 = vpack.c.bf16 %v13048_v42, %v13048_v42 }
 0xb5f   : > { %v13040_v39 = vpop.f32.mrf.mxu1 }
 0xb60   : > { %v13057_v32 = vpack.c.bf16 %v13049_v13, %v13049_v13 }
 0xb62   : > { %13729 = vmatprep.mubr.bf16.mxu1 %v13057_v32 }
 0xb63   : > { %13730 = vmatmul.mubr.bf16.vlgmr.msra.gmra.mxu1 %v13056_v28 }
 0xb79   : > { %v15912_v45 = vpop.f32.mrf.mxu1 }
 0xb7b   : > { %v15913_v48 = vpop.f32.mrf.mxu1 }
 0xb7c   : > { %v15914_v43 = vadd.f32 %v15913_v48, %v15912_v45 }
 0xb7d   : > { %v15915_v40 = vpop.f32.mrf.mxu1 }
 0xb7e   : > { %v13652_v23 = vadd.f32 %v15914_v43, %v13612_v41 }
 0xb7f   : > { %v15916_v20 = vpop.f32.mrf.mxu1 }
 0xba3   : > { %v15934_v58 = vpop.f32.mrf.mxu0 }
 0xba5   : > { %v15935_v3 = vpop.f32.mrf.mxu0 }
 0xba6   : > { %v15936_v27 = vadd.f32 %v15935_v3, %v15934_v58 }
 0xba7   : > { %v15937_v9 = vpop.f32.mrf.mxu0 }
 0xba8   : > { %v13692_v24 = vadd.f32 %v15936_v27, %v13652_v23 }
 0xba9   : > { %v15938_v57 = vpop.f32.mrf.mxu0 }
 0xc23   : > { %v15956_v26 = vpop.f32.mrf.mxu1 }
 0xc25   : > { %v15957_v60 = vpop.f32.mrf.mxu1 }
 0xc26   : > { %v15958_v62 = vadd.f32 %v15957_v60, %v15956_v26 }
 0xc27   : > { %v15959_v61 = vpop.f32.mrf.mxu1 }
 0xc28   : > { %v13732_v2 = vadd.f32 %v15958_v62, %v13692_v24 }
 0xc29   : > { %v15960_v55 = vpop.f32.mrf.mxu1 }
 0xc2a   : > { %v13738_v51 = vmul.f32 %v13732_v2, %v1653_v5 }
 0xc2c   : > { %v13739_v10 = vadd.f32 %v13738_v51, %v13737_v38 }
 0xc2e   : > { %13740 = vst [vmem:[#allocation18] sm:$0x3] %v13739_v10 }
 0xc2f   : > { %16441 = shalt.err (!%p16438_p13)
}
 0xc30   : > { %s19106_s30 = sld [smem:[#allocation32_spill]] }
 0xc36   : > { %16022 = dma.vmem_to_hbm [thread:$0]  (%p16061_p4), %s13749_s13, 32, %s19106_s30, [#allocation5]  }
 0xc37   : > { %16489 = dma.done.wait (%p16061_p4), [#allocation5], 32  }
 0xc38   : > { %16491 = vsyncadd (%p16061_p4), [#allocation5], 4294967264 }
 0xc39 PF: > { %s19107_s20 = sld [smem:[#allocation26_spill]]  ;;  %s19110_s17 = smov %s16498_s18 }
 0xc3a   : > { %s19108_s27 = sld [smem:[#allocation25_spill]] }
 0xc3b   : > { %s19109_s19 = sld [smem:[#allocation27_spill]] }
 0xc3f   : > { %p30_p12 = scmp.ge.s32.totalorder %s19107_s20, 5  }
 0xc40   : > { %s19111_s18 = smov %s19108_s27 }
 0xc41   :  { %32 = sbr.rel (!%p30_p12) target bundleno = 16 (0x10), region = 177 }
 0xc46   :  { %13761 = vsyncpa [#allocation4], 1 }
 0xc47   :  { %13763 = vsyncpa [#allocation4 + $0x1], 1 }
 0xc48   :  { %13764 = vsyncpa [#allocation7], 1 }
 0xc49   :  { %13765 = vsyncpa [#allocation10], 1 }
 0xc4a   :  { %13767 = vsyncpa [#allocation10 + $0x1], 1 }
 0xc4b   :  { %13768 = vsyncpa [#allocation13], 1 }
 0xc4c   :  { %13770 = vsyncpa [#allocation13 + $0x1], 1 }
 0xc4d   :  { %13771 = vsyncpa [#allocation16], 1 }
 0xc4e   :  { %13773 = vsyncpa [#allocation16 + $0x1], 1 }
 0xc4f   :  { %13774 = vsyncpa [#allocation5], 1 }
 0xc50   :  { %13776 = vsyncpa [#allocation5 + $0x1], 1 }

</bundles_post_ra>
